<compile_context>
chip_gen: v5e
topology: v5e:2x2
jax: 0.10.0
libtpu: 0.0.40
codegen_flags: <defaults>
</compile_context>

<pallas_src>
import jax
import jax.numpy as jnp
from jax.experimental import pallas as pl
from jax.experimental.pallas import tpu as pltpu


def pg_policy_kernel(x_ref, w1_ref, b1_ref, w2_ref, b2_ref, out_ref):
    # x_ref:  (TB, S)     w1_ref: (S, H)    b1_ref: (1, H)
    # w2_ref: (H, A)      b2_ref: (1, A)    out_ref: (TB, A)
    x = x_ref[...]
    w1 = w1_ref[...]
    s = x_ref.shape[1]  # static, tiny (state_size == 4)

    # fc1 + ReLU: K == state_size is tiny, so do it as S broadcast-FMAs on the
    # VPU (an MXU matmul at K=4 is <5% utilized).
    # TODO(synk): if bundle dumps show VALU/XLU saturating here, switch to a
    # single MXU dot (the MXU is idle during this phase).
    h = b1_ref[...] + x[:, 0:1] * w1[0:1, :]
    for k in range(1, s):          # static unroll (s == 4)
        h = h + x[:, k:k + 1] * w1[k:k + 1, :]
    h = jnp.maximum(h, 0.0)

    # fc2 on the MXU (K = hidden = 256), real action columns only.
    logits = jnp.dot(h, w2_ref[...], preferred_element_type=jnp.float32) + b2_ref[...]

    # Numerically stable softmax over the action axis (cross-lane reduce over
    # just `action_size` lanes; exact divide keeps rows summing to 1).
    m = jnp.max(logits, axis=1, keepdims=True)
    e = jnp.exp(logits - m)
    denom = jnp.sum(e, axis=1, keepdims=True)
    out_ref[...] = (e / denom).astype(out_ref.dtype)


def pg_policy_forward(x, w1, b1, w2, b2, *, num_tiles=None):
    B, state_size = x.shape
    hidden = w1.shape[1]
    action_size = w2.shape[1]

    # One batch tile per TensorCore: v7x has 2 TCs/chip (megacore shards the
    # "parallel" grid axis); v5e/v6e have 1, where the grid is a serial loop.
    if num_tiles is None:
        try:
            n_tc = int(getattr(jax.devices()[0], "num_cores", 1))
        except Exception:
            n_tc = 1
        num_tiles = max(1, min(n_tc, 2))

    tile_b = max(8, ((pl.cdiv(B, num_tiles) + 7) // 8) * 8)
    bp = tile_b * num_tiles
    # Choose the production batch as a multiple of tile_b and this pad is a
    # no-op (it is a no-op in the demo below).
    xp = jnp.pad(x, ((0, bp - B), (0, 0))) if bp != B else x

    cost = pl.CostEstimate(
        flops=2 * bp * state_size * hidden + 2 * bp * hidden * action_size,
        transcendentals=bp * action_size,
        bytes_accessed=4 * (bp * state_size + bp * action_size
                            + state_size * hidden + hidden
                            + hidden * action_size + action_size),
    )

    out = pl.pallas_call(
        pg_policy_kernel,
        out_shape=jax.ShapeDtypeStruct((bp, action_size), jnp.float32),
        grid_spec=pl.GridSpec(
            grid=(num_tiles,),
            in_specs=[
                pl.BlockSpec((tile_b, state_size), lambda i: (i, 0)),
                # Grid-invariant full-array weight/bias blocks (<10 KB total,
                # so default double-buffering is harmless).
                pl.BlockSpec((state_size, hidden), lambda i: (0, 0)),
                pl.BlockSpec((1, hidden), lambda i: (0, 0)),
                pl.BlockSpec((hidden, action_size), lambda i: (0, 0)),
                pl.BlockSpec((1, action_size), lambda i: (0, 0)),
            ],
            out_specs=pl.BlockSpec((tile_b, action_size), lambda i: (i, 0)),
        ),
        compiler_params=pltpu.CompilerParams(
            dimension_semantics=("parallel",),
        ),
        cost_estimate=cost,
    )(xp, w1, b1, w2, b2)

    return out[:B] if bp != B else out


def reference_forward(x, w1, b1, w2, b2):
    h = jnp.maximum(x @ w1 + b1, 0.0)
    logits = h @ w2 + b2
    return jax.nn.softmax(logits, axis=1)


if __name__ == "__main__":
    state_size = 4      # CartPole-v1 observation dim
    action_size = 2     # CartPole-v1 action dim
    hidden = 256
    batch = 512         # divides tile_b for both grid=(1,) and grid=(2,)

    key = jax.random.PRNGKey(0)
    kx, k1, k2, k3, k4 = jax.random.split(key, 5)

    # Deterministic synthetic parameters (uniform init, torch-Linear-like scale).
    bound1 = 1.0 / jnp.sqrt(state_size)
    bound2 = 1.0 / jnp.sqrt(hidden)
    w1 = jax.random.uniform(k1, (state_size, hidden), jnp.float32, -bound1, bound1)
    b1 = jax.random.uniform(k2, (1, hidden), jnp.float32, -bound1, bound1)
    w2 = jax.random.uniform(k3, (hidden, action_size), jnp.float32, -bound2, bound2)
    b2 = jax.random.uniform(k4, (1, action_size), jnp.float32, -bound2, bound2)

    x = jax.random.normal(kx, (batch, state_size), jnp.float32)

    out = pg_policy_forward(x, w1, b1, w2, b2)
    out = jax.block_until_ready(out)

    ref = reference_forward(x, w1, b1, w2, b2)
    assert out.shape == (batch, action_size)
    assert jnp.allclose(out, ref, atol=1e-4, rtol=1e-4)
    assert jnp.allclose(jnp.sum(out, axis=1), 1.0, atol=1e-5)

    print("KERNEL_OK")
</pallas_src>

<mosaic_0001>
module attributes {stable_mosaic.version = 11 : i64} {
  func.func @pg_policy_kernel(%arg0: i32, %arg1: memref<512x4xf32, #tpu.memory_space<vmem>>, %arg2: memref<4x256xf32, #tpu.memory_space<vmem>>, %arg3: memref<1x256xf32, #tpu.memory_space<vmem>>, %arg4: memref<256x2xf32, #tpu.memory_space<vmem>>, %arg5: memref<1x2xf32, #tpu.memory_space<vmem>>, %arg6: memref<512x2xf32, #tpu.memory_space<vmem>>) attributes {dimension_semantics = [#tpu.dimension_semantics<parallel>], iteration_bounds = array<i64: 1>, scalar_prefetch = 0 : i64, scratch_operands = 0 : i64, tpu.core_type = #tpu.core_type<tc>, window_params = [{transform_indices = @transform_0, window_bounds = array<i64: 512, 4>}, {pipeline_mode = #tpu.pipeline_mode<synchronous>, transform_indices = @transform_1, window_bounds = array<i64: 4, 256>}, {pipeline_mode = #tpu.pipeline_mode<synchronous>, transform_indices = @transform_2, window_bounds = array<i64: 1, 256>}, {pipeline_mode = #tpu.pipeline_mode<synchronous>, transform_indices = @transform_3, window_bounds = array<i64: 256, 2>}, {pipeline_mode = #tpu.pipeline_mode<synchronous>, transform_indices = @transform_4, window_bounds = array<i64: 1, 2>}, {transform_indices = @transform_5, window_bounds = array<i64: 512, 2>}]} {
    %c0 = arith.constant 0 : index
    %c0_0 = arith.constant 0 : index
    %0 = vector.load %arg1[%c0, %c0_0] : memref<512x4xf32, #tpu.memory_space<vmem>>, vector<512x4xf32>
    %c0_1 = arith.constant 0 : index
    %c0_2 = arith.constant 0 : index
    %1 = vector.load %arg2[%c0_1, %c0_2] : memref<4x256xf32, #tpu.memory_space<vmem>>, vector<4x256xf32>
    %c0_3 = arith.constant 0 : index
    %c0_4 = arith.constant 0 : index
    %2 = vector.load %arg3[%c0_3, %c0_4] : memref<1x256xf32, #tpu.memory_space<vmem>>, vector<1x256xf32>
    %3 = vector.extract_strided_slice %0 {offsets = [0, 0], sizes = [512, 1], strides = [1, 1]} : vector<512x4xf32> to vector<512x1xf32>
    %4 = vector.extract_strided_slice %1 {offsets = [0, 0], sizes = [1, 256], strides = [1, 1]} : vector<4x256xf32> to vector<1x256xf32>
    %5 = vector.broadcast %3 : vector<512x1xf32> to vector<512x256xf32>
    %6 = vector.broadcast %4 : vector<1x256xf32> to vector<512x256xf32>
    %7 = arith.mulf %5, %6 : vector<512x256xf32>
    %8 = vector.broadcast %2 : vector<1x256xf32> to vector<512x256xf32>
    %9 = arith.addf %8, %7 : vector<512x256xf32>
    %10 = vector.extract_strided_slice %0 {offsets = [0, 1], sizes = [512, 1], strides = [1, 1]} : vector<512x4xf32> to vector<512x1xf32>
    %11 = vector.extract_strided_slice %1 {offsets = [1, 0], sizes = [1, 256], strides = [1, 1]} : vector<4x256xf32> to vector<1x256xf32>
    %12 = vector.broadcast %10 : vector<512x1xf32> to vector<512x256xf32>
    %13 = vector.broadcast %11 : vector<1x256xf32> to vector<512x256xf32>
    %14 = arith.mulf %12, %13 : vector<512x256xf32>
    %15 = arith.addf %9, %14 : vector<512x256xf32>
    %16 = vector.extract_strided_slice %0 {offsets = [0, 2], sizes = [512, 1], strides = [1, 1]} : vector<512x4xf32> to vector<512x1xf32>
    %17 = vector.extract_strided_slice %1 {offsets = [2, 0], sizes = [1, 256], strides = [1, 1]} : vector<4x256xf32> to vector<1x256xf32>
    %18 = vector.broadcast %16 : vector<512x1xf32> to vector<512x256xf32>
    %19 = vector.broadcast %17 : vector<1x256xf32> to vector<512x256xf32>
    %20 = arith.mulf %18, %19 : vector<512x256xf32>
    %21 = arith.addf %15, %20 : vector<512x256xf32>
    %22 = vector.extract_strided_slice %0 {offsets = [0, 3], sizes = [512, 1], strides = [1, 1]} : vector<512x4xf32> to vector<512x1xf32>
    %23 = vector.extract_strided_slice %1 {offsets = [3, 0], sizes = [1, 256], strides = [1, 1]} : vector<4x256xf32> to vector<1x256xf32>
    %24 = vector.broadcast %22 : vector<512x1xf32> to vector<512x256xf32>
    %25 = vector.broadcast %23 : vector<1x256xf32> to vector<512x256xf32>
    %26 = arith.mulf %24, %25 : vector<512x256xf32>
    %27 = arith.addf %21, %26 : vector<512x256xf32>
    %cst = arith.constant 0.000000e+00 : f32
    %28 = vector.broadcast %cst : f32 to vector<512x256xf32>
    %29 = arith.maximumf %27, %28 : vector<512x256xf32>
    %c0_5 = arith.constant 0 : index
    %c0_6 = arith.constant 0 : index
    %30 = vector.load %arg4[%c0_5, %c0_6] : memref<256x2xf32, #tpu.memory_space<vmem>>, vector<256x2xf32>
    %cst_7 = arith.constant dense<0.000000e+00> : vector<512x2xf32>
    %31 = tpu.matmul %29, %30, %cst_7 {dimension_numbers = #tpu.dot_dimension_numbers<[1], [0], [0], [1], [0, 0, 1, 1], [], []>} : vector<512x256xf32>, vector<256x2xf32>, vector<512x2xf32> -> vector<512x2xf32>
    %c0_8 = arith.constant 0 : index
    %c0_9 = arith.constant 0 : index
    %32 = vector.load %arg5[%c0_8, %c0_9] : memref<1x2xf32, #tpu.memory_space<vmem>>, vector<1x2xf32>
    %33 = vector.broadcast %32 : vector<1x2xf32> to vector<512x2xf32>
    %34 = arith.addf %31, %33 : vector<512x2xf32>
    %cst_10 = arith.constant dense<0xFF800000> : vector<512xf32>
    %35 = vector.multi_reduction <maximumf>, %34, %cst_10 [1] : vector<512x2xf32> to vector<512xf32>
    %36 = vector.shape_cast %35 : vector<512xf32> to vector<512x1xf32>
    %37 = vector.broadcast %36 : vector<512x1xf32> to vector<512x2xf32>
    %38 = arith.subf %34, %37 : vector<512x2xf32>
    %39 = math.exp %38 : vector<512x2xf32>
    %cst_11 = arith.constant dense<0.000000e+00> : vector<512xf32>
    %40 = vector.multi_reduction <add>, %39, %cst_11 [1] : vector<512x2xf32> to vector<512xf32>
    %41 = vector.shape_cast %40 : vector<512xf32> to vector<512x1xf32>
    %42 = vector.broadcast %41 : vector<512x1xf32> to vector<512x2xf32>
    %43 = arith.divf %39, %42 : vector<512x2xf32>
    %c0_12 = arith.constant 0 : index
    %c0_13 = arith.constant 0 : index
    %44 = vector.load %arg6[%c0_12, %c0_13] : memref<512x2xf32, #tpu.memory_space<vmem>>, vector<512x2xf32>
    tpu.vector_store %arg6[%c0_12, %c0_13], %43 {strides = array<i32>} : memref<512x2xf32, #tpu.memory_space<vmem>>, vector<512x2xf32>,
    return
  }
  func.func @transform_0(%arg0: i32) -> (i32, i32) {
    %c0_i32 = arith.constant 0 : i32
    %c0_i32_0 = arith.constant 0 : i32
    return %arg0, %c0_i32 : i32, i32
  }
  func.func @transform_1(%arg0: i32) -> (i32, i32) {
    %c0_i32 = arith.constant 0 : i32
    %c0_i32_0 = arith.constant 0 : i32
    %c0_i32_1 = arith.constant 0 : i32
    return %c0_i32, %c0_i32_0 : i32, i32
  }
  func.func @transform_2(%arg0: i32) -> (i32, i32) {
    %c0_i32 = arith.constant 0 : i32
    %c0_i32_0 = arith.constant 0 : i32
    %c0_i32_1 = arith.constant 0 : i32
    return %c0_i32, %c0_i32_0 : i32, i32
  }
  func.func @transform_3(%arg0: i32) -> (i32, i32) {
    %c0_i32 = arith.constant 0 : i32
    %c0_i32_0 = arith.constant 0 : i32
    %c0_i32_1 = arith.constant 0 : i32
    return %c0_i32, %c0_i32_0 : i32, i32
  }
  func.func @transform_4(%arg0: i32) -> (i32, i32) {
    %c0_i32 = arith.constant 0 : i32
    %c0_i32_0 = arith.constant 0 : i32
    %c0_i32_1 = arith.constant 0 : i32
    return %c0_i32, %c0_i32_0 : i32, i32
  }
  func.func @transform_5(%arg0: i32) -> (i32, i32) {
    %c0_i32 = arith.constant 0 : i32
    %c0_i32_0 = arith.constant 0 : i32
    return %arg0, %c0_i32 : i32, i32
  }
}

</mosaic_0001>

<bundles_post_ra>
// kernel: tpu_custom_call.1
= control target key start
LH: loop header
LB: loop body
LE: loop exit
PB: predicated region body
PF: predicated region fallthrough
CT: control target
= control target key end

     0   :  { %v4758_v0 = vmov 0   ;;  %vm2810_vm0 = vcmask 15360   ;;  %s9460_s0 = inlined_call_operand.vmem [shape: f32[512,4], index: 0, kind: input, shape index: {}]   ;;  %s9461_s3 = inlined_call_operand.vmem [shape: f32[256,2], index: 3, kind: input, shape index: {}]   ;;  %s9462_s1 = inlined_call_operand.vmem [shape: f32[4,256], index: 1, kind: input, shape index: {}]   ;;  %s9463_s2 = inlined_call_operand.vmem [shape: f32[1,256], index: 2, kind: input, shape index: {}]   ;;  %s9464_s4 = inlined_call_operand.vmem [shape: f32[1,2], index: 4, kind: input, shape index: {}]   ;;  %s9465_s5 = inlined_call_operand.vmem [shape: f32[512,2], index: 5, kind: output, shape index: {}]  }
   0x1   :  { %4453 = vset.pattern.permute.xlu2 %v4758_v0  ;;  %4452 = vset.pattern.permute.xlu1 %v4758_v0  ;;  %v4795_v1 = vld [vmem:[%s9460_s0 + $0x20] sm:$0xff]  ;;  %v4800_v2 = vld [vmem:[%s9460_s0 + $0x10] sm:$0xff]  ;;  %v4813_v4 = vld [vmem:[%s9460_s0 + $0x28] sm:$0xff] }
   0x2   :  { %v4805_v3 = vld [vmem:[%s9460_s0] sm:$0xff]  ;;  %4451 = vset.pattern.permute.xlu0 %v4758_v0  ;;  %108 = vperm.xlu2 %4453, %v4795_v1   ;;  %v4818_v5 = vld [vmem:[%s9460_s0 + $0x18] sm:$0xff]  ;;  %v4823_v6 = vld [vmem:[%s9460_s0 + $0x8] sm:$0xff] }
   0x3   :  { %98 = vperm.xlu1 %4452, %v4800_v2   ;;  %88 = vperm.xlu0 %4451, %v4805_v3   ;;  %9754 = vst [vmem:[#allocation2_spill] sm:$0xff] %v4823_v6  ;;  %v4831_v7 = vld [vmem:[%s9460_s0 + $0x40] sm:$0xff]  ;;  %v4836_v8 = vld [vmem:[%s9460_s0 + $0x38] sm:$0xff]  ;;  %v4841_v9 = vld [vmem:[%s9460_s0 + $0x30] sm:$0xff] }
   0x4   :  { %v4849_v10 = vld [vmem:[%s9460_s0 + $0x58] sm:$0xff]  ;;  %v4854_v11 = vld [vmem:[%s9460_s0 + $0x50] sm:$0xff]  ;;  %v4859_v12 = vld [vmem:[%s9460_s0 + $0x48] sm:$0xff] }
   0x5   :  { %v4867_v13 = vld [vmem:[%s9460_s0 + $0x70] sm:$0xff]  ;;  %v4872_v14 = vld [vmem:[%s9460_s0 + $0x68] sm:$0xff]  ;;  %v4877_v15 = vld [vmem:[%s9460_s0 + $0x60] sm:$0xff] }
   0x6   :  { %v4885_v16 = vld [vmem:[%s9460_s0 + $0x88] sm:$0xff]  ;;  %v4890_v17 = vld [vmem:[%s9460_s0 + $0x80] sm:$0xff]  ;;  %v4895_v18 = vld [vmem:[%s9460_s0 + $0x78] sm:$0xff] }
   0x7   :  { %v4903_v19 = vld [vmem:[%s9460_s0 + $0xa0] sm:$0xff]  ;;  %v4908_v20 = vld [vmem:[%s9460_s0 + $0x98] sm:$0xff]  ;;  %v4913_v21 = vld [vmem:[%s9460_s0 + $0x90] sm:$0xff] }
   0x8   :  { %v4921_v22 = vld [vmem:[%s9460_s0 + $0xb8] sm:$0xff]  ;;  %v4926_v23 = vld [vmem:[%s9460_s0 + $0xb0] sm:$0xff]  ;;  %v4931_v24 = vld [vmem:[%s9460_s0 + $0xa8] sm:$0xff] }
   0x9   :  { %v4939_v25 = vld [vmem:[%s9460_s0 + $0xd0] sm:$0xff]  ;;  %v4944_v26 = vld [vmem:[%s9460_s0 + $0xc8] sm:$0xff]  ;;  %v4949_v27 = vld [vmem:[%s9460_s0 + $0xc0] sm:$0xff] }
   0xa   :  { %113 = vperm.xlu2 %4453, %v4813_v4   ;;  %v4957_v28 = vld [vmem:[%s9460_s0 + $0xe8] sm:$0xff]  ;;  %v4962_v29 = vld [vmem:[%s9460_s0 + $0xe0] sm:$0xff]  ;;  %v4967_v30 = vld [vmem:[%s9460_s0 + $0xd8] sm:$0xff] }
   0xb   :  { %103 = vperm.xlu1 %4452, %v4818_v5   ;;  %93 = vperm.xlu0 %4451, %v4823_v6   ;;  %v4975_v31 = vld [vmem:[%s9460_s0 + $0x100] sm:$0xff]  ;;  %v4980_v32 = vld [vmem:[%s9460_s0 + $0xf8] sm:$0xff]  ;;  %v4985_v33 = vld [vmem:[%s9460_s0 + $0xf0] sm:$0xff] }
   0xc   :  { %v4993_v34 = vld [vmem:[%s9460_s0 + $0x118] sm:$0xff]  ;;  %v4998_v35 = vld [vmem:[%s9460_s0 + $0x110] sm:$0xff]  ;;  %v5003_v36 = vld [vmem:[%s9460_s0 + $0x108] sm:$0xff] }
   0xd   :  { %v5013_v38 = vld [vmem:[%s9460_s0 + $0x130] sm:$0xff]  ;;  %v5018_v39 = vld [vmem:[%s9460_s0 + $0x128] sm:$0xff]  ;;  %v5023_v40 = vld [vmem:[%s9460_s0 + $0x120] sm:$0xff] }
   0xe   :  { %v5033_v42 = vld [vmem:[%s9460_s0 + $0x148] sm:$0xff]  ;;  %v5038_v43 = vld [vmem:[%s9460_s0 + $0x140] sm:$0xff]  ;;  %v5043_v44 = vld [vmem:[%s9460_s0 + $0x138] sm:$0xff] }
   0xf   :  { %v5053_v46 = vld [vmem:[%s9460_s0 + $0x160] sm:$0xff]  ;;  %v5058_v47 = vld [vmem:[%s9460_s0 + $0x158] sm:$0xff]  ;;  %v5063_v48 = vld [vmem:[%s9460_s0 + $0x150] sm:$0xff] }
  0x10   :  { %v5077_v52 = vld [vmem:[%s9460_s0 + $0x178] sm:$0xff]  ;;  %v5082_v53 = vld [vmem:[%s9460_s0 + $0x170] sm:$0xff]  ;;  %v5087_v54 = vld [vmem:[%s9460_s0 + $0x168] sm:$0xff] }
  0x11   :  { %v5101_v58 = vld [vmem:[%s9460_s0 + $0x190] sm:$0xff]  ;;  %v5106_v59 = vld [vmem:[%s9460_s0 + $0x188] sm:$0xff]  ;;  %v5111_v60 = vld [vmem:[%s9460_s0 + $0x180] sm:$0xff] }
  0x12   :  { %128 = vperm.xlu2 %4453, %v4831_v7   ;;  %v5125_v0 = vld [vmem:[%s9460_s0 + $0x1a8] sm:$0xff] }
  0x13   :  { %123 = vperm.xlu1 %4452, %v4836_v8   ;;  %118 = vperm.xlu0 %4451, %v4841_v9  }
  0x1a   :  { %143 = vperm.xlu2 %4453, %v4849_v10  }
  0x1b   :  { %138 = vperm.xlu1 %4452, %v4854_v11   ;;  %133 = vperm.xlu0 %4451, %v4859_v12  }
  0x22   :  { %158 = vperm.xlu2 %4453, %v4867_v13  }
  0x23   :  { %153 = vperm.xlu1 %4452, %v4872_v14   ;;  %148 = vperm.xlu0 %4451, %v4877_v15  }
  0x2a   :  { %173 = vperm.xlu2 %4453, %v4885_v16  }
  0x2b   :  { %168 = vperm.xlu1 %4452, %v4890_v17   ;;  %163 = vperm.xlu0 %4451, %v4895_v18  }
  0x32   :  { %188 = vperm.xlu2 %4453, %v4903_v19  }
  0x33   :  { %183 = vperm.xlu1 %4452, %v4908_v20   ;;  %178 = vperm.xlu0 %4451, %v4913_v21  }
  0x3a   :  { %203 = vperm.xlu2 %4453, %v4921_v22  }
  0x3b   :  { %198 = vperm.xlu1 %4452, %v4926_v23   ;;  %193 = vperm.xlu0 %4451, %v4931_v24  }
  0x42   :  { %218 = vperm.xlu2 %4453, %v4939_v25  }
  0x43   :  { %213 = vperm.xlu1 %4452, %v4944_v26   ;;  %208 = vperm.xlu0 %4451, %v4949_v27  }
  0x4a   :  { %233 = vperm.xlu2 %4453, %v4957_v28  }
  0x4b   :  { %228 = vperm.xlu1 %4452, %v4962_v29   ;;  %223 = vperm.xlu0 %4451, %v4967_v30  }
  0x52   :  { %248 = vperm.xlu2 %4453, %v4975_v31  }
  0x53   :  { %243 = vperm.xlu1 %4452, %v4980_v32   ;;  %238 = vperm.xlu0 %4451, %v4985_v33  }
  0x5a   :  { %263 = vperm.xlu2 %4453, %v4993_v34  }
  0x5b   :  { %258 = vperm.xlu1 %4452, %v4998_v35   ;;  %253 = vperm.xlu0 %4451, %v5003_v36  }
  0x5c   :  { %v5008_v37 = vpop.permute.xlu2 %108 }
  0x5d   :  { %9755 = vst [vmem:[#allocation3_spill] sm:$0xff] %v5008_v37  ;;  %v5183_v37 = vld [vmem:[%s9460_s0 + $0x1c8] sm:$0xff] }
  0x5e   :  { %9779 = vst [vmem:[#allocation27_spill] sm:$0xff] %v5183_v37 }
  0x62   :  { %278 = vperm.xlu2 %4453, %v5013_v38  }
  0x63   :  { %273 = vperm.xlu1 %4452, %v5018_v39   ;;  %268 = vperm.xlu0 %4451, %v5023_v40  }
  0x64   :  { %v5028_v41 = vpop.permute.xlu2 %113 }
  0x65   :  { %9756 = vst [vmem:[#allocation4_spill] sm:$0xff] %v5028_v41  ;;  %v5178_v41 = vld [vmem:[%s9460_s0 + $0x1d0] sm:$0xff] }
  0x66   :  { %9778 = vst [vmem:[#allocation26_spill] sm:$0xff] %v5178_v41 }
  0x6a   :  { %293 = vperm.xlu2 %4453, %v5033_v42  }
  0x6b   :  { %288 = vperm.xlu1 %4452, %v5038_v43   ;;  %283 = vperm.xlu0 %4451, %v5043_v44  }
  0x6c   :  { %v5048_v45 = vpop.permute.xlu2 %128 }
  0x6d   :  { %9757 = vst [vmem:[#allocation5_spill] sm:$0xff] %v5048_v45  ;;  %v5173_v45 = vld [vmem:[%s9460_s0 + $0x1d8] sm:$0xff] }
  0x6e   :  { %9777 = vst [vmem:[#allocation25_spill] sm:$0xff] %v5173_v45 }
  0x72   :  { %308 = vperm.xlu2 %4453, %v5053_v46  }
  0x73   :  { %303 = vperm.xlu1 %4452, %v5058_v47   ;;  %298 = vperm.xlu0 %4451, %v5063_v48  }
  0x74   :  { %v5068_v49 = vpop.permute.xlu2 %143 }
  0x75   :  { %9758 = vst [vmem:[#allocation6_spill] sm:$0xff] %v5068_v49  ;;  %v5070_v50 = vpop.permute.xlu1 %98  ;;  %v5072_v51 = vpop.permute.xlu0 %88  ;;  %v5154_v49 = vld [vmem:[%s9460_s0 + $0x1b8] sm:$0xff] }
  0x76   :  { %9759 = vst [vmem:[#allocation7_spill] sm:$0xff] %v5070_v50  ;;  %v5149_v50 = vld [vmem:[%s9460_s0 + $0x1c0] sm:$0xff] }
  0x77   :  { %9760 = vst [vmem:[#allocation8_spill] sm:$0xff] %v5072_v51  ;;  %v5197_v51 = vld [vmem:[%s9460_s0 + $0x1f0] sm:$0xff] }
  0x78   :  { %9771 = vst [vmem:[#allocation19_spill] sm:$0xff] %v5149_v50 }
  0x79   :  { %9772 = vst [vmem:[#allocation20_spill] sm:$0xff] %v5154_v49 }
  0x7a   :  { %323 = vperm.xlu2 %4453, %v5077_v52   ;;  %9783 = vst [vmem:[#allocation31_spill] sm:$0xff] %v5197_v51 }
  0x7b   :  { %318 = vperm.xlu1 %4452, %v5082_v53   ;;  %313 = vperm.xlu0 %4451, %v5087_v54  }
  0x7c   :  { %v5092_v55 = vpop.permute.xlu2 %158 }
  0x7d   :  { %9761 = vst [vmem:[#allocation9_spill] sm:$0xff] %v5092_v55  ;;  %v5094_v56 = vpop.permute.xlu1 %103  ;;  %v5096_v57 = vpop.permute.xlu0 %93  ;;  %v5135_v55 = vld [vmem:[%s9460_s0 + $0x198] sm:$0xff] }
  0x7e   :  { %9762 = vst [vmem:[#allocation10_spill] sm:$0xff] %v5094_v56  ;;  %v5130_v56 = vld [vmem:[%s9460_s0 + $0x1a0] sm:$0xff] }
  0x7f   :  { %9763 = vst [vmem:[#allocation11_spill] sm:$0xff] %v5096_v57  ;;  %v5159_v57 = vld [vmem:[%s9460_s0 + $0x1b0] sm:$0xff] }
  0x80   :  { %9767 = vst [vmem:[#allocation15_spill] sm:$0xff] %v5135_v55 }
  0x81   :  { %9773 = vst [vmem:[#allocation21_spill] sm:$0xff] %v5159_v57 }
  0x82   :  { %338 = vperm.xlu2 %4453, %v5101_v58  }
  0x83   :  { %333 = vperm.xlu1 %4452, %v5106_v59   ;;  %328 = vperm.xlu0 %4451, %v5111_v60  }
  0x84   :  { %v5116_v61 = vpop.permute.xlu2 %173 }
  0x85   :  { %9764 = vst [vmem:[#allocation12_spill] sm:$0xff] %v5116_v61  ;;  %v5118_v62 = vpop.permute.xlu1 %123  ;;  %v5120_v63 = vpop.permute.xlu0 %118 }
  0x86   :  { %9765 = vst [vmem:[#allocation13_spill] sm:$0xff] %v5118_v62 }
  0x87   :  { %9766 = vst [vmem:[#allocation14_spill] sm:$0xff] %v5120_v63 }
  0x8a   :  { %353 = vperm.xlu2 %4453, %v5125_v0  }
  0x8b   :  { %348 = vperm.xlu1 %4452, %v5130_v56   ;;  %343 = vperm.xlu0 %4451, %v5135_v55  }
  0x8c   :  { %v5140_v63 = vpop.permute.xlu2 %188 }
  0x8d   :  { %9768 = vst [vmem:[#allocation16_spill] sm:$0xff] %v5140_v63  ;;  %v5142_v62 = vpop.permute.xlu1 %138  ;;  %v5144_v61 = vpop.permute.xlu0 %133 }
  0x8e   :  { %9769 = vst [vmem:[#allocation17_spill] sm:$0xff] %v5142_v62 }
  0x8f   :  { %9770 = vst [vmem:[#allocation18_spill] sm:$0xff] %v5144_v61 }
  0x92   :  { %368 = vperm.xlu2 %4453, %v5149_v50   ;;  %v5202_v50 = vld [vmem:[%s9460_s0 + $0x1e8] sm:$0xff] }
  0x93   :  { %363 = vperm.xlu1 %4452, %v5154_v49   ;;  %358 = vperm.xlu0 %4451, %v5159_v57  }
  0x94   :  { %v5164_v61 = vpop.permute.xlu2 %203 }
  0x95   :  { %9774 = vst [vmem:[#allocation22_spill] sm:$0xff] %v5164_v61  ;;  %v5166_v62 = vpop.permute.xlu1 %153  ;;  %v5168_v63 = vpop.permute.xlu0 %148 }
  0x96   :  { %9775 = vst [vmem:[#allocation23_spill] sm:$0xff] %v5166_v62 }
  0x97   :  { %9776 = vst [vmem:[#allocation24_spill] sm:$0xff] %v5168_v63 }
  0x9a   :  { %383 = vperm.xlu2 %4453, %v5173_v45   ;;  %v5207_v45 = vld [vmem:[%s9460_s0 + $0x1e0] sm:$0xff] }
  0x9b   :  { %378 = vperm.xlu1 %4452, %v5178_v41   ;;  %373 = vperm.xlu0 %4451, %v5183_v37   ;;  %9784 = vst [vmem:[#allocation32_spill] sm:$0xff] %v5207_v45  ;;  %v5221_v41 = vld [vmem:[%s9460_s0 + $0x1f8] sm:$0xff]  ;;  %v4759_v37 = vmov 1  }
  0x9c   :  { %v5188_v63 = vpop.permute.xlu2 %218  ;;  %9788 = vst [vmem:[#allocation36_spill] sm:$0xff] %v5221_v41 }
  0x9d   :  { %9780 = vst [vmem:[#allocation28_spill] sm:$0xff] %v5188_v63  ;;  %v5190_v62 = vpop.permute.xlu1 %168  ;;  %v5192_v61 = vpop.permute.xlu0 %163 }
  0x9e   :  { %9781 = vst [vmem:[#allocation29_spill] sm:$0xff] %v5190_v62 }
  0x9f   :  { %9782 = vst [vmem:[#allocation30_spill] sm:$0xff] %v5192_v61 }
  0xa2   :  { %398 = vperm.xlu2 %4453, %v5197_v51  }
  0xa3   :  { %393 = vperm.xlu1 %4452, %v5202_v50   ;;  %388 = vperm.xlu0 %4451, %v5207_v45  }
  0xa4   :  { %v5212_v61 = vpop.permute.xlu2 %233 }
  0xa5   :  { %9785 = vst [vmem:[#allocation33_spill] sm:$0xff] %v5212_v61  ;;  %v5214_v62 = vpop.permute.xlu1 %183  ;;  %v5216_v63 = vpop.permute.xlu0 %178 }
  0xa6   :  { %9786 = vst [vmem:[#allocation34_spill] sm:$0xff] %v5214_v62 }
  0xa7   :  { %9787 = vst [vmem:[#allocation35_spill] sm:$0xff] %v5216_v63 }
  0xaa   :  { %4455 = vset.pattern.permute.xlu2 %v4759_v37 }
  0xab   :  { %4454 = vset.pattern.permute.xlu1 %v4759_v37  ;;  %403 = vperm.xlu0 %4451, %v5221_v41  }
  0xac   :  { %679 = vperm.xlu2 %4455, %v4823_v6   ;;  %675 = vperm.xlu1 %4454, %v4805_v3   ;;  %v5226_v51 = vpop.permute.xlu2 %248 }
  0xad   :  { %9789 = vst [vmem:[#allocation37_spill] sm:$0xff] %v5226_v51  ;;  %v5228_v61 = vpop.permute.xlu1 %198  ;;  %v5230_v62 = vpop.permute.xlu0 %193 }
  0xae   :  { %9790 = vst [vmem:[#allocation38_spill] sm:$0xff] %v5228_v61 }
  0xaf   :  { %9791 = vst [vmem:[#allocation39_spill] sm:$0xff] %v5230_v62 }
  0xb3   :  { %4456 = vset.pattern.permute.xlu0 %v4759_v37 }
  0xb4   :  { %691 = vperm.xlu2 %4455, %v4795_v1   ;;  %687 = vperm.xlu1 %4454, %v4818_v5   ;;  %v5234_v63 = vpop.permute.xlu2 %263 }
  0xb5   :  { %9792 = vst [vmem:[#allocation40_spill] sm:$0xff] %v5234_v63  ;;  %683 = vperm.xlu0 %4456, %v4800_v2   ;;  %v5237_v41 = vpop.permute.xlu1 %213  ;;  %v5239_v6 = vpop.permute.xlu0 %208 }
  0xb6   :  { %9793 = vst [vmem:[#allocation41_spill] sm:$0xff] %v5237_v41 }
  0xb7   :  { %9794 = vst [vmem:[#allocation42_spill] sm:$0xff] %v5239_v6 }
  0xbc   :  { %699 = vperm.xlu2 %4455, %v4841_v9   ;;  %695 = vperm.xlu1 %4454, %v4813_v4   ;;  %v5243_v61 = vpop.permute.xlu2 %278 }
  0xbd   :  { %9795 = vst [vmem:[#allocation43_spill] sm:$0xff] %v5243_v61  ;;  %703 = vperm.xlu0 %4456, %v4836_v8   ;;  %v5246_v37 = vpop.permute.xlu1 %228  ;;  %v5248_v62 = vpop.permute.xlu0 %223 }
  0xbe   :  { %9796 = vst [vmem:[#allocation44_spill] sm:$0xff] %v5246_v37 }
  0xbf   :  { %9797 = vst [vmem:[#allocation45_spill] sm:$0xff] %v5248_v62 }
  0xc4   :  { %711 = vperm.xlu2 %4455, %v4859_v12   ;;  %707 = vperm.xlu1 %4454, %v4831_v7   ;;  %v5252_v63 = vpop.permute.xlu2 %293 }
  0xc5   :  { %9798 = vst [vmem:[#allocation46_spill] sm:$0xff] %v5252_v63  ;;  %715 = vperm.xlu0 %4456, %v4854_v11   ;;  %v5255_v6 = vpop.permute.xlu1 %243  ;;  %v5257_v41 = vpop.permute.xlu0 %238 }
  0xc6   :  { %9799 = vst [vmem:[#allocation47_spill] sm:$0xff] %v5255_v6 }
  0xc7   :  { %9800 = vst [vmem:[#allocation48_spill] sm:$0xff] %v5257_v41 }
  0xcc   :  { %723 = vperm.xlu2 %4455, %v4877_v15   ;;  %719 = vperm.xlu1 %4454, %v4849_v10   ;;  %v5261_v61 = vpop.permute.xlu2 %308 }
  0xcd   :  { %9801 = vst [vmem:[#allocation49_spill] sm:$0xff] %v5261_v61  ;;  %727 = vperm.xlu0 %4456, %v4872_v14   ;;  %v5264_v62 = vpop.permute.xlu1 %258  ;;  %v5266_v37 = vpop.permute.xlu0 %253 }
  0xce   :  { %9802 = vst [vmem:[#allocation50_spill] sm:$0xff] %v5264_v62 }
  0xcf   :  { %9803 = vst [vmem:[#allocation51_spill] sm:$0xff] %v5266_v37 }
  0xd4   :  { %735 = vperm.xlu2 %4455, %v4895_v18   ;;  %731 = vperm.xlu1 %4454, %v4867_v13   ;;  %v5270_v63 = vpop.permute.xlu2 %323 }
  0xd5   :  { %9804 = vst [vmem:[#allocation52_spill] sm:$0xff] %v5270_v63  ;;  %739 = vperm.xlu0 %4456, %v4890_v17   ;;  %v5273_v41 = vpop.permute.xlu1 %273  ;;  %v5275_v6 = vpop.permute.xlu0 %268 }
  0xd6   :  { %9805 = vst [vmem:[#allocation53_spill] sm:$0xff] %v5273_v41 }
  0xd7   :  { %9806 = vst [vmem:[#allocation54_spill] sm:$0xff] %v5275_v6 }
  0xdc   :  { %747 = vperm.xlu2 %4455, %v4913_v21   ;;  %743 = vperm.xlu1 %4454, %v4885_v16   ;;  %v5279_v61 = vpop.permute.xlu2 %338 }
  0xdd   :  { %9807 = vst [vmem:[#allocation55_spill] sm:$0xff] %v5279_v61  ;;  %751 = vperm.xlu0 %4456, %v4908_v20   ;;  %v5282_v37 = vpop.permute.xlu1 %288  ;;  %v5284_v62 = vpop.permute.xlu0 %283 }
  0xde   :  { %9808 = vst [vmem:[#allocation56_spill] sm:$0xff] %v5282_v37 }
  0xdf   :  { %9809 = vst [vmem:[#allocation57_spill] sm:$0xff] %v5284_v62 }
  0xe4   :  { %759 = vperm.xlu2 %4455, %v4931_v24   ;;  %755 = vperm.xlu1 %4454, %v4903_v19   ;;  %v5288_v63 = vpop.permute.xlu2 %353 }
  0xe5   :  { %9810 = vst [vmem:[#allocation58_spill] sm:$0xff] %v5288_v63  ;;  %763 = vperm.xlu0 %4456, %v4926_v23   ;;  %v5291_v6 = vpop.permute.xlu1 %303  ;;  %v5293_v41 = vpop.permute.xlu0 %298 }
  0xe6   :  { %9811 = vst [vmem:[#allocation59_spill] sm:$0xff] %v5291_v6 }
  0xe7   :  { %9812 = vst [vmem:[#allocation60_spill] sm:$0xff] %v5293_v41 }
  0xec   :  { %771 = vperm.xlu2 %4455, %v4949_v27   ;;  %767 = vperm.xlu1 %4454, %v4921_v22   ;;  %v5297_v61 = vpop.permute.xlu2 %368 }
  0xed   :  { %9813 = vst [vmem:[#allocation61_spill] sm:$0xff] %v5297_v61  ;;  %775 = vperm.xlu0 %4456, %v4944_v26   ;;  %v5300_v62 = vpop.permute.xlu1 %318  ;;  %v5302_v37 = vpop.permute.xlu0 %313 }
  0xee   :  { %9814 = vst [vmem:[#allocation62_spill] sm:$0xff] %v5300_v62 }
  0xef   :  { %9815 = vst [vmem:[#allocation63_spill] sm:$0xff] %v5302_v37 }
  0xf4   :  { %783 = vperm.xlu2 %4455, %v4967_v30   ;;  %779 = vperm.xlu1 %4454, %v4939_v25   ;;  %v5306_v63 = vpop.permute.xlu2 %383 }
  0xf5   :  { %9816 = vst [vmem:[#allocation64_spill] sm:$0xff] %v5306_v63  ;;  %787 = vperm.xlu0 %4456, %v4962_v29   ;;  %v5309_v41 = vpop.permute.xlu1 %333  ;;  %v5311_v6 = vpop.permute.xlu0 %328 }
  0xf6   :  { %9817 = vst [vmem:[#allocation65_spill] sm:$0xff] %v5309_v41 }
  0xf7   :  { %9818 = vst [vmem:[#allocation66_spill] sm:$0xff] %v5311_v6 }
  0xfc   :  { %795 = vperm.xlu2 %4455, %v4985_v33   ;;  %791 = vperm.xlu1 %4454, %v4957_v28   ;;  %v5315_v61 = vpop.permute.xlu2 %398 }
  0xfd   :  { %9819 = vst [vmem:[#allocation67_spill] sm:$0xff] %v5315_v61  ;;  %799 = vperm.xlu0 %4456, %v4980_v32   ;;  %v5318_v37 = vpop.permute.xlu1 %348  ;;  %v5320_v62 = vpop.permute.xlu0 %343 }
  0xfe   :  { %9820 = vst [vmem:[#allocation68_spill] sm:$0xff] %v5318_v37 }
  0xff   :  { %9821 = vst [vmem:[#allocation69_spill] sm:$0xff] %v5320_v62 }
 0x104   :  { %807 = vperm.xlu2 %4455, %v5003_v36   ;;  %803 = vperm.xlu1 %4454, %v4975_v31  }
 0x105   :  { %811 = vperm.xlu0 %4456, %v4998_v35   ;;  %v5325_v63 = vpop.permute.xlu1 %363  ;;  %v5327_v6 = vpop.permute.xlu0 %358 }
 0x106   :  { %9822 = vst [vmem:[#allocation70_spill] sm:$0xff] %v5325_v63  ;;  %v5329_v41 = vpop.permute.xlu2 %679 }
 0x107   :  { %9823 = vst [vmem:[#allocation71_spill] sm:$0xff] %v5327_v6 }
 0x108   :  { %9824 = vst [vmem:[#allocation72_spill] sm:$0xff] %v5329_v41 }
 0x10c   :  { %819 = vperm.xlu2 %4455, %v5023_v40   ;;  %815 = vperm.xlu1 %4454, %v4993_v34  }
 0x10d   :  { %823 = vperm.xlu0 %4456, %v5018_v39   ;;  %v5334_v61 = vpop.permute.xlu1 %378  ;;  %v5336_v62 = vpop.permute.xlu0 %373 }
 0x10e   :  { %9825 = vst [vmem:[#allocation73_spill] sm:$0xff] %v5334_v61  ;;  %v5338_v37 = vpop.permute.xlu2 %691 }
 0x10f   :  { %9826 = vst [vmem:[#allocation74_spill] sm:$0xff] %v5336_v62 }
 0x110   :  { %9827 = vst [vmem:[#allocation75_spill] sm:$0xff] %v5338_v37 }
 0x114   :  { %831 = vperm.xlu2 %4455, %v5043_v44   ;;  %827 = vperm.xlu1 %4454, %v5013_v38  }
 0x115   :  { %835 = vperm.xlu0 %4456, %v5038_v43   ;;  %v5343_v63 = vpop.permute.xlu1 %393  ;;  %v5345_v6 = vpop.permute.xlu0 %388 }
 0x116   :  { %9828 = vst [vmem:[#allocation76_spill] sm:$0xff] %v5343_v63  ;;  %v5347_v51 = vpop.permute.xlu2 %699 }
 0x117   :  { %9829 = vst [vmem:[#allocation77_spill] sm:$0xff] %v5345_v6 }
 0x118   :  { %9830 = vst [vmem:[#allocation78_spill] sm:$0xff] %v5347_v51 }
 0x11c   :  { %843 = vperm.xlu2 %4455, %v5063_v48   ;;  %839 = vperm.xlu1 %4454, %v5033_v42  }
 0x11d   :  { %847 = vperm.xlu0 %4456, %v5058_v47   ;;  %v5352_v61 = vpop.permute.xlu0 %403 }
 0x11e   :  { %9831 = vst [vmem:[#allocation79_spill] sm:$0xff] %v5352_v61  ;;  %v5354_v62 = vpop.permute.xlu2 %711  ;;  %v5356_v37 = vpop.permute.xlu1 %675 }
 0x11f   :  { %9832 = vst [vmem:[#allocation80_spill] sm:$0xff] %v5354_v62 }
 0x120   :  { %9833 = vst [vmem:[#allocation81_spill] sm:$0xff] %v5356_v37  ;;  %v9846_v37 = vld [vmem:[#allocation27_spill] sm:$0xff] }
 0x124   :  { %855 = vperm.xlu2 %4455, %v5087_v54   ;;  %851 = vperm.xlu1 %4454, %v5053_v46  }
 0x125   :  { %859 = vperm.xlu0 %4456, %v5082_v53  }
 0x126   :  { %v5361_v63 = vpop.permute.xlu2 %723  ;;  %v5363_v6 = vpop.permute.xlu1 %687 }
 0x127   :  { %9834 = vst [vmem:[#allocation82_spill] sm:$0xff] %v5361_v63  ;;  %v5365_v51 = vpop.permute.xlu0 %683 }
 0x128   :  { %9835 = vst [vmem:[#allocation83_spill] sm:$0xff] %v5363_v6 }
 0x129   :  { %9836 = vst [vmem:[#allocation84_spill] sm:$0xff] %v5365_v51 }
 0x12c   :  { %867 = vperm.xlu2 %4455, %v5111_v60   ;;  %863 = vperm.xlu1 %4454, %v5077_v52  }
 0x12d   :  { %871 = vperm.xlu0 %4456, %v5106_v59  }
 0x12e   :  { %v5370_v61 = vpop.permute.xlu2 %735  ;;  %v5372_v62 = vpop.permute.xlu1 %695 }
 0x12f   :  { %9837 = vst [vmem:[#allocation85_spill] sm:$0xff] %v5370_v61  ;;  %v5374_v41 = vpop.permute.xlu0 %703 }
 0x130   :  { %9838 = vst [vmem:[#allocation86_spill] sm:$0xff] %v5372_v62 }
 0x131   :  { %9839 = vst [vmem:[#allocation87_spill] sm:$0xff] %v5374_v41 }
 0x134   :  { %879 = vperm.xlu2 %4455, %v5135_v55   ;;  %875 = vperm.xlu1 %4454, %v5101_v58   ;;  %v9847_v55 = vld [vmem:[#allocation19_spill] sm:$0xff] }
 0x135   :  { %883 = vperm.xlu0 %4456, %v5130_v56  }
 0x136   :  { %v5379_v63 = vpop.permute.xlu2 %747  ;;  %v5381_v6 = vpop.permute.xlu1 %707 }
 0x137   :  { %9840 = vst [vmem:[#allocation88_spill] sm:$0xff] %v5379_v63  ;;  %v5383_v51 = vpop.permute.xlu0 %715  ;;  %v9848_v63 = vld [vmem:[#allocation26_spill] sm:$0xff] }
 0x138   :  { %9841 = vst [vmem:[#allocation89_spill] sm:$0xff] %v5381_v6 }
 0x139   :  { %9842 = vst [vmem:[#allocation90_spill] sm:$0xff] %v5383_v51 }
 0x13c   :  { %891 = vperm.xlu2 %4455, %v5159_v57   ;;  %887 = vperm.xlu1 %4454, %v5125_v0  }
 0x13d   :  { %895 = vperm.xlu0 %4456, %v5154_v49   ;;  %v9852_v49 = vld [vmem:[#allocation25_spill] sm:$0xff] }
 0x13e   :  { %v5388_v61 = vpop.permute.xlu2 %759  ;;  %v5390_v41 = vpop.permute.xlu1 %719 }
 0x13f   :  { %9843 = vst [vmem:[#allocation91_spill] sm:$0xff] %v5388_v61  ;;  %v5392_v62 = vpop.permute.xlu0 %727 }
 0x140   :  { %9844 = vst [vmem:[#allocation92_spill] sm:$0xff] %v5390_v41 }
 0x141   :  { %9845 = vst [vmem:[#allocation93_spill] sm:$0xff] %v5392_v62 }
 0x144   :  { %903 = vperm.xlu2 %4455, %v9846_v37   ;;  %899 = vperm.xlu1 %4454, %v9847_v55   ;;  %v9856_v37 = vld [vmem:[#allocation36_spill] sm:$0xff] }
 0x145   :  { %907 = vperm.xlu0 %4456, %v9848_v63   ;;  %v9857_v63 = vld [vmem:[#allocation31_spill] sm:$0xff] }
 0x146   :  { %v5397_v6 = vpop.permute.xlu2 %771  ;;  %v5399_v51 = vpop.permute.xlu1 %731 }
 0x147   :  { %9849 = vst [vmem:[#allocation19_spill] sm:$0xff] %v5397_v6  ;;  %v5401_v57 = vpop.permute.xlu0 %739  ;;  %v4760_v6 = vmov 2  }
 0x148   :  { %9850 = vst [vmem:[#allocation94_spill] sm:$0xff] %v5399_v51 }
 0x149   :  { %9851 = vst [vmem:[#allocation95_spill] sm:$0xff] %v5401_v57 }
 0x14c   :  { %915 = vperm.xlu2 %4455, %v5207_v45   ;;  %911 = vperm.xlu1 %4454, %v9852_v49  }
 0x14d   :  { %919 = vperm.xlu0 %4456, %v5202_v50  }
 0x14e   :  { %v5406_v61 = vpop.permute.xlu2 %783  ;;  %v5408_v62 = vpop.permute.xlu1 %743 }
 0x14f   :  { %9853 = vst [vmem:[#allocation25_spill] sm:$0xff] %v5406_v61  ;;  %v5410_v41 = vpop.permute.xlu0 %751  ;;  %v9861_v61 = vld [vmem:[#allocation2_spill] sm:$0xff] }
 0x150   :  { %9854 = vst [vmem:[#allocation96_spill] sm:$0xff] %v5408_v62 }
 0x151   :  { %9855 = vst [vmem:[#allocation97_spill] sm:$0xff] %v5410_v41 }
 0x154   :  { %927 = vperm.xlu2 %4455, %v9856_v37   ;;  %923 = vperm.xlu1 %4454, %v9857_v63  }
 0x155   :  { %4457 = vset.pattern.permute.xlu0 %v4760_v6 }
 0x156   :  { %1193 = vperm.xlu0 %4457, %v4805_v3   ;;  %v5415_v57 = vpop.permute.xlu2 %795  ;;  %v5417_v51 = vpop.permute.xlu1 %755 }
 0x157   :  { %9858 = vst [vmem:[#allocation31_spill] sm:$0xff] %v5415_v57  ;;  %v5419_v45 = vpop.permute.xlu0 %763 }
 0x158   :  { %9859 = vst [vmem:[#allocation98_spill] sm:$0xff] %v5417_v51 }
 0x159   :  { %9860 = vst [vmem:[#allocation99_spill] sm:$0xff] %v5419_v45 }
 0x15c   :  { %4459 = vset.pattern.permute.xlu2 %v4760_v6  ;;  %4458 = vset.pattern.permute.xlu1 %v4760_v6 }
 0x15d   :  { %1201 = vperm.xlu2 %4459, %v4800_v2   ;;  %1197 = vperm.xlu1 %4458, %v9861_v61  }
 0x15e   :  { %1213 = vperm.xlu0 %4457, %v4813_v4   ;;  %v5424_v41 = vpop.permute.xlu2 %807  ;;  %v5426_v62 = vpop.permute.xlu1 %767 }
 0x15f   :  { %9862 = vst [vmem:[#allocation2_spill] sm:$0xff] %v5424_v41  ;;  %v5428_v37 = vpop.permute.xlu0 %775 }
 0x160   :  { %9863 = vst [vmem:[#allocation100_spill] sm:$0xff] %v5426_v62 }
 0x161   :  { %9864 = vst [vmem:[#allocation101_spill] sm:$0xff] %v5428_v37 }
 0x165   :  { %1209 = vperm.xlu2 %4459, %v4795_v1   ;;  %1205 = vperm.xlu1 %4458, %v4818_v5  }
 0x166   :  { %1225 = vperm.xlu0 %4457, %v4831_v7   ;;  %v5433_v45 = vpop.permute.xlu2 %819  ;;  %v5435_v6 = vpop.permute.xlu1 %779 }
 0x167   :  { %9865 = vst [vmem:[#allocation102_spill] sm:$0xff] %v5433_v45  ;;  %v5437_v51 = vpop.permute.xlu0 %787 }
 0x168   :  { %9866 = vst [vmem:[#allocation103_spill] sm:$0xff] %v5435_v6 }
 0x169   :  { %9867 = vst [vmem:[#allocation104_spill] sm:$0xff] %v5437_v51 }
 0x16d   :  { %1221 = vperm.xlu2 %4459, %v4836_v8   ;;  %1217 = vperm.xlu1 %4458, %v4841_v9  }
 0x16e   :  { %1237 = vperm.xlu0 %4457, %v4849_v10   ;;  %v5442_v62 = vpop.permute.xlu2 %831  ;;  %v5444_v37 = vpop.permute.xlu1 %791 }
 0x16f   :  { %9868 = vst [vmem:[#allocation105_spill] sm:$0xff] %v5442_v62  ;;  %v5446_v57 = vpop.permute.xlu0 %799 }
 0x170   :  { %9869 = vst [vmem:[#allocation106_spill] sm:$0xff] %v5444_v37 }
 0x171   :  { %9870 = vst [vmem:[#allocation107_spill] sm:$0xff] %v5446_v57 }
 0x175   :  { %1233 = vperm.xlu2 %4459, %v4854_v11   ;;  %1229 = vperm.xlu1 %4458, %v4859_v12  }
 0x176   :  { %1249 = vperm.xlu0 %4457, %v4867_v13   ;;  %v5451_v6 = vpop.permute.xlu2 %843  ;;  %v5453_v51 = vpop.permute.xlu1 %803 }
 0x177   :  { %9871 = vst [vmem:[#allocation108_spill] sm:$0xff] %v5451_v6  ;;  %v5455_v45 = vpop.permute.xlu0 %811 }
 0x178   :  { %9872 = vst [vmem:[#allocation109_spill] sm:$0xff] %v5455_v45 }
 0x17d   :  { %1245 = vperm.xlu2 %4459, %v4872_v14   ;;  %1241 = vperm.xlu1 %4458, %v4877_v15  }
 0x17e   :  { %1261 = vperm.xlu0 %4457, %v4885_v16   ;;  %v5460_v37 = vpop.permute.xlu2 %855  ;;  %v5462_v57 = vpop.permute.xlu1 %815 }
 0x17f   :  { %9873 = vst [vmem:[#allocation110_spill] sm:$0xff] %v5460_v37  ;;  %v5464_v62 = vpop.permute.xlu0 %823 }
 0x180   :  { %9874 = vst [vmem:[#allocation111_spill] sm:$0xff] %v5462_v57 }
 0x181   :  { %9875 = vst [vmem:[#allocation112_spill] sm:$0xff] %v5464_v62 }
 0x185   :  { %1257 = vperm.xlu2 %4459, %v4890_v17   ;;  %1253 = vperm.xlu1 %4458, %v4895_v18  }
 0x186   :  { %1273 = vperm.xlu0 %4457, %v4903_v19   ;;  %v5469_v6 = vpop.permute.xlu2 %867  ;;  %v5471_v45 = vpop.permute.xlu1 %827 }
 0x187   :  { %9876 = vst [vmem:[#allocation113_spill] sm:$0xff] %v5469_v6  ;;  %v5473_v41 = vpop.permute.xlu0 %835 }
 0x188   :  { %9877 = vst [vmem:[#allocation114_spill] sm:$0xff] %v5471_v45 }
 0x189   :  { %9878 = vst [vmem:[#allocation115_spill] sm:$0xff] %v5473_v41 }
 0x18d   :  { %1269 = vperm.xlu2 %4459, %v4908_v20   ;;  %1265 = vperm.xlu1 %4458, %v4913_v21  }
 0x18e   :  { %1285 = vperm.xlu0 %4457, %v4921_v22   ;;  %v5478_v37 = vpop.permute.xlu2 %879  ;;  %v5480_v62 = vpop.permute.xlu1 %839 }
 0x18f   :  { %9879 = vst [vmem:[#allocation116_spill] sm:$0xff] %v5478_v37  ;;  %v5482_v57 = vpop.permute.xlu0 %847 }
 0x190   :  { %9880 = vst [vmem:[#allocation117_spill] sm:$0xff] %v5480_v62 }
 0x191   :  { %9881 = vst [vmem:[#allocation118_spill] sm:$0xff] %v5482_v57 }
 0x195   :  { %1281 = vperm.xlu2 %4459, %v4926_v23   ;;  %1277 = vperm.xlu1 %4458, %v4931_v24  }
 0x196   :  { %1297 = vperm.xlu0 %4457, %v4939_v25   ;;  %v5487_v6 = vpop.permute.xlu2 %891  ;;  %v5489_v41 = vpop.permute.xlu1 %851 }
 0x197   :  { %9882 = vst [vmem:[#allocation119_spill] sm:$0xff] %v5487_v6  ;;  %v5491_v45 = vpop.permute.xlu0 %859 }
 0x198   :  { %9883 = vst [vmem:[#allocation120_spill] sm:$0xff] %v5489_v41  ;;  %v9967_v41 = vld [vmem:[#allocation7_spill] sm:$0xff] }
 0x199   :  { %9884 = vst [vmem:[#allocation121_spill] sm:$0xff] %v5491_v45 }
 0x19d   :  { %1293 = vperm.xlu2 %4459, %v4944_v26   ;;  %1289 = vperm.xlu1 %4458, %v4949_v27  }
 0x19e   :  { %1309 = vperm.xlu0 %4457, %v4957_v28   ;;  %v5496_v37 = vpop.permute.xlu2 %903  ;;  %v5498_v57 = vpop.permute.xlu1 %863 }
 0x19f   :  { %9885 = vst [vmem:[#allocation122_spill] sm:$0xff] %v5496_v37  ;;  %v5500_v62 = vpop.permute.xlu0 %871 }
 0x1a0   :  { %9886 = vst [vmem:[#allocation123_spill] sm:$0xff] %v5498_v57 }
 0x1a1   :  { %9887 = vst [vmem:[#allocation124_spill] sm:$0xff] %v5500_v62 }
 0x1a5   :  { %1305 = vperm.xlu2 %4459, %v4962_v29   ;;  %1301 = vperm.xlu1 %4458, %v4967_v30  }
 0x1a6   :  { %1321 = vperm.xlu0 %4457, %v4975_v31   ;;  %v5505_v25 = vpop.permute.xlu2 %915  ;;  %v5507_v6 = vpop.permute.xlu1 %875 }
 0x1a7   :  { %9888 = vst [vmem:[#allocation125_spill] sm:$0xff] %v5505_v25  ;;  %v5509_v26 = vpop.permute.xlu0 %883 }
 0x1a8   :  { %9889 = vst [vmem:[#allocation126_spill] sm:$0xff] %v5507_v6 }
 0x1a9   :  { %9890 = vst [vmem:[#allocation127_spill] sm:$0xff] %v5509_v26 }
 0x1ad   :  { %1317 = vperm.xlu2 %4459, %v4980_v32   ;;  %1313 = vperm.xlu1 %4458, %v4985_v33  }
 0x1ae   :  { %1333 = vperm.xlu0 %4457, %v4993_v34   ;;  %v5514_v28 = vpop.permute.xlu2 %927  ;;  %v5516_v37 = vpop.permute.xlu1 %887 }
 0x1af   :  { %9891 = vst [vmem:[#allocation128_spill] sm:$0xff] %v5514_v28  ;;  %v5518_v29 = vpop.permute.xlu0 %895 }
 0x1b0   :  { %9892 = vst [vmem:[#allocation129_spill] sm:$0xff] %v5516_v37 }
 0x1b1   :  { %9893 = vst [vmem:[#allocation130_spill] sm:$0xff] %v5518_v29 }
 0x1b5   :  { %1329 = vperm.xlu2 %4459, %v4998_v35   ;;  %1325 = vperm.xlu1 %4458, %v5003_v36  }
 0x1b6   :  { %1345 = vperm.xlu0 %4457, %v5013_v38   ;;  %v5523_v31 = vpop.permute.xlu1 %899 }
 0x1b7   :  { %9894 = vst [vmem:[#allocation131_spill] sm:$0xff] %v5523_v31  ;;  %v5525_v25 = vpop.permute.xlu0 %907  ;;  %v5527_v32 = vpop.permute.xlu2 %1201 }
 0x1b8   :  { %9895 = vst [vmem:[#allocation132_spill] sm:$0xff] %v5525_v25 }
 0x1bd   :  { %1341 = vperm.xlu2 %4459, %v5018_v39   ;;  %1337 = vperm.xlu1 %4458, %v5023_v40  }
 0x1be   :  { %1357 = vperm.xlu0 %4457, %v5033_v42   ;;  %v5532_v34 = vpop.permute.xlu1 %911 }
 0x1bf   :  { %9896 = vst [vmem:[#allocation133_spill] sm:$0xff] %v5532_v34  ;;  %v5534_v28 = vpop.permute.xlu0 %919  ;;  %v5536_v35 = vpop.permute.xlu2 %1209 }
 0x1c0   :  { %9897 = vst [vmem:[#allocation134_spill] sm:$0xff] %v5534_v28 }
 0x1c5   :  { %1353 = vperm.xlu2 %4459, %v5038_v43   ;;  %1349 = vperm.xlu1 %4458, %v5043_v44  }
 0x1c6   :  { %1369 = vperm.xlu0 %4457, %v5053_v46   ;;  %v5541_v38 = vpop.permute.xlu1 %923 }
 0x1c7   :  { %9898 = vst [vmem:[#allocation135_spill] sm:$0xff] %v5541_v38  ;;  %v5543_v25 = vpop.permute.xlu2 %1221 }
 0x1c8   :  { %v5545_v39 = vpop.permute.xlu0 %1193 }
 0x1cd   :  { %1365 = vperm.xlu2 %4459, %v5058_v47   ;;  %1361 = vperm.xlu1 %4458, %v5063_v48  }
 0x1ce   :  { %1381 = vperm.xlu0 %4457, %v5077_v52  }
 0x1cf   :  { %v5550_v40 = vpop.permute.xlu2 %1233  ;;  %v5552_v42 = vpop.permute.xlu1 %1197 }
 0x1d0   :  { %v5554_v43 = vpop.permute.xlu0 %1213 }
 0x1d5   :  { %1377 = vperm.xlu2 %4459, %v5082_v53   ;;  %1373 = vperm.xlu1 %4458, %v5087_v54   ;;  %v9902_v54 = vld [vmem:[#allocation15_spill] sm:$0xff] }
 0x1d6   :  { %1393 = vperm.xlu0 %4457, %v5101_v58  }
 0x1d7   :  { %v5559_v44 = vpop.permute.xlu2 %1245  ;;  %v5561_v46 = vpop.permute.xlu1 %1205 }
 0x1d8   :  { %9899 = vst [vmem:[#allocation136_spill] sm:$0xff] %v5559_v44  ;;  %v5563_v47 = vpop.permute.xlu0 %1225 }
 0x1dd   :  { %1389 = vperm.xlu2 %4459, %v5106_v59   ;;  %1385 = vperm.xlu1 %4458, %v5111_v60   ;;  %v9905_v60 = vld [vmem:[#allocation20_spill] sm:$0xff] }
 0x1de   :  { %1405 = vperm.xlu0 %4457, %v5125_v0   ;;  %v9906_v0 = vld [vmem:[#allocation21_spill] sm:$0xff] }
 0x1df   :  { %v5568_v48 = vpop.permute.xlu2 %1257  ;;  %v5570_v52 = vpop.permute.xlu1 %1217 }
 0x1e0   :  { %9900 = vst [vmem:[#allocation137_spill] sm:$0xff] %v5568_v48  ;;  %v5572_v53 = vpop.permute.xlu0 %1237 }
 0x1e1   :  { %9901 = vst [vmem:[#allocation138_spill] sm:$0xff] %v5572_v53 }
 0x1e5   :  { %1401 = vperm.xlu2 %4459, %v5130_v56   ;;  %1397 = vperm.xlu1 %4458, %v9902_v54   ;;  %v9910_v54 = vld [vmem:[#allocation26_spill] sm:$0xff] }
 0x1e6   :  { %1417 = vperm.xlu0 %4457, %v9847_v55   ;;  %v9911_v55 = vld [vmem:[#allocation27_spill] sm:$0xff] }
 0x1e7   :  { %v5577_v58 = vpop.permute.xlu2 %1269  ;;  %v5579_v38 = vpop.permute.xlu1 %1229 }
 0x1e8   :  { %9903 = vst [vmem:[#allocation15_spill] sm:$0xff] %v5577_v58  ;;  %v5581_v59 = vpop.permute.xlu0 %1249 }
 0x1e9   :  { %9904 = vst [vmem:[#allocation139_spill] sm:$0xff] %v5581_v59 }
 0x1ed   :  { %1413 = vperm.xlu2 %4459, %v9905_v60   ;;  %1409 = vperm.xlu1 %4458, %v9906_v0   ;;  %v4761_v0 = vmov 3  }
 0x1ee   :  { %1429 = vperm.xlu0 %4457, %v9852_v49   ;;  %v9915_v49 = vld [vmem:[#allocation32_spill] sm:$0xff] }
 0x1ef   :  { %v5586_v28 = vpop.permute.xlu2 %1281  ;;  %v5588_v34 = vpop.permute.xlu1 %1241 }
 0x1f0   :  { %9907 = vst [vmem:[#allocation20_spill] sm:$0xff] %v5586_v28  ;;  %v5590_v56 = vpop.permute.xlu0 %1261  ;;  %v9968_v28 = vld [vmem:[#allocation9_spill] sm:$0xff] }
 0x1f1   :  { %9908 = vst [vmem:[#allocation21_spill] sm:$0xff] %v5588_v34 }
 0x1f2   :  { %9909 = vst [vmem:[#allocation140_spill] sm:$0xff] %v5590_v56 }
 0x1f5   :  { %1425 = vperm.xlu2 %4459, %v9910_v54   ;;  %1421 = vperm.xlu1 %4458, %v9911_v55  }
 0x1f6   :  { %1441 = vperm.xlu0 %4457, %v9857_v63   ;;  %v9919_v63 = vld [vmem:[#allocation36_spill] sm:$0xff] }
 0x1f7   :  { %v5595_v31 = vpop.permute.xlu2 %1293  ;;  %v5597_v29 = vpop.permute.xlu1 %1253 }
 0x1f8   :  { %9912 = vst [vmem:[#allocation26_spill] sm:$0xff] %v5595_v31  ;;  %v5599_v60 = vpop.permute.xlu0 %1273 }
 0x1f9   :  { %9913 = vst [vmem:[#allocation27_spill] sm:$0xff] %v5597_v29  ;;  %v9985_v29 = vld [vmem:[#allocation23_spill] sm:$0xff] }
 0x1fa   :  { %9914 = vst [vmem:[#allocation141_spill] sm:$0xff] %v5599_v60 }
 0x1fd   :  { %1437 = vperm.xlu2 %4459, %v5202_v50   ;;  %1433 = vperm.xlu1 %4458, %v9915_v49  }
 0x1fe   :  { %4461 = vset.pattern.permute.xlu0 %v4761_v0 }
 0x1ff   :  { %1715 = vperm.xlu0 %4461, %v9861_v61   ;;  %v5604_v37 = vpop.permute.xlu2 %1305  ;;  %v5606_v54 = vpop.permute.xlu1 %1265 }
 0x200   :  { %9916 = vst [vmem:[#allocation32_spill] sm:$0xff] %v5604_v37  ;;  %v5608_v55 = vpop.permute.xlu0 %1285  ;;  %v2364_v37 = vld [vmem:[%s9461_s3 + $0x40] sm:$0xff] }
 0x201   :  { %9917 = vst [vmem:[#allocation142_spill] sm:$0xff] %v5606_v54 }
 0x202   :  { %9918 = vst [vmem:[#allocation143_spill] sm:$0xff] %v5608_v55 }
 0x205   :  { %4460 = vset.pattern.permute.xlu2 %v4761_v0  ;;  %1445 = vperm.xlu1 %4458, %v9919_v63  }
 0x206   :  { %1711 = vperm.xlu2 %4460, %v4805_v3  }
 0x207   :  { %1735 = vperm.xlu0 %4461, %v4841_v9   ;;  %v5613_v50 = vpop.permute.xlu2 %1317  ;;  %v5615_v49 = vpop.permute.xlu1 %1277 }
 0x208   :  { %9920 = vst [vmem:[#allocation36_spill] sm:$0xff] %v5613_v50  ;;  %v5617_v26 = vpop.permute.xlu0 %1297  ;;  %v2385_v50 = vld [vmem:[%s9461_s3 + $0xe8] sm:$0xff] }
 0x209   :  { %9921 = vst [vmem:[#allocation144_spill] sm:$0xff] %v5615_v49 }
 0x20a   :  { %9922 = vst [vmem:[#allocation145_spill] sm:$0xff] %v5617_v26 }
 0x20d   :  { %4462 = vset.pattern.permute.xlu1 %v4761_v0 }
 0x20e   :  { %1723 = vperm.xlu2 %4460, %v4818_v5   ;;  %1719 = vperm.xlu1 %4462, %v4800_v2  }
 0x20f   :  { %1747 = vperm.xlu0 %4461, %v4859_v12   ;;  %v5622_v61 = vpop.permute.xlu2 %1329  ;;  %v5624_v63 = vpop.permute.xlu1 %1289 }
 0x210   :  { %9923 = vst [vmem:[#allocation146_spill] sm:$0xff] %v5622_v61  ;;  %v5626_v3 = vpop.permute.xlu0 %1309 }
 0x211   :  { %9924 = vst [vmem:[#allocation147_spill] sm:$0xff] %v5624_v63 }
 0x212   :  { %9925 = vst [vmem:[#allocation148_spill] sm:$0xff] %v5626_v3  ;;  %v2384_v3 = vld [vmem:[%s9461_s3 + $0xe0] sm:$0xff] }
 0x216   :  { %1731 = vperm.xlu2 %4460, %v4813_v4   ;;  %1727 = vperm.xlu1 %4462, %v4795_v1  }
 0x217   :  { %1759 = vperm.xlu0 %4461, %v4877_v15   ;;  %v5631_v9 = vpop.permute.xlu2 %1341  ;;  %v5633_v0 = vpop.permute.xlu1 %1301 }
 0x218   :  { %9926 = vst [vmem:[#allocation149_spill] sm:$0xff] %v5631_v9  ;;  %v5635_v5 = vpop.permute.xlu0 %1321 }
 0x219   :  { %9927 = vst [vmem:[#allocation150_spill] sm:$0xff] %v5633_v0 }
 0x21e   :  { %1743 = vperm.xlu2 %4460, %v4831_v7   ;;  %1739 = vperm.xlu1 %4462, %v4836_v8   ;;  %v2371_v8 = vld [vmem:[%s9461_s3 + $0x78] sm:$0xff] }
 0x21f   :  { %1771 = vperm.xlu0 %4461, %v4895_v18   ;;  %v5640_v2 = vpop.permute.xlu2 %1353  ;;  %v5642_v12 = vpop.permute.xlu1 %1313  ;;  %v2387_v18 = vld [vmem:[%s9461_s3 + $0xf8] sm:$0xff]  ;;  %2392 = vmatpush.msra.mxu0 %v2371_v8 }
 0x220   :  { %9928 = vst [vmem:[#allocation151_spill] sm:$0xff] %v5640_v2  ;;  %v5644_v4 = vpop.permute.xlu0 %1333  ;;  %2601 = vmatpush.msra.mxu1 %v2387_v18  ;;  %4415 = vmatpush.msra.mxu2 %v2371_v8 }
 0x221   :  { %9929 = vst [vmem:[#allocation152_spill] sm:$0xff] %v5642_v12  ;;  %4431 = vmatpush.msra.mxu3 %v2387_v18  ;;  %v2368_v12 = vld [vmem:[%s9461_s3 + $0x60] sm:$0xff] }
 0x222   :  { %9930 = vst [vmem:[#allocation153_spill] sm:$0xff] %v5644_v4 }
 0x226   :  { %1755 = vperm.xlu2 %4460, %v4849_v10   ;;  %1751 = vperm.xlu1 %4462, %v4854_v11   ;;  %v2370_v10 = vld [vmem:[%s9461_s3 + $0x70] sm:$0xff] }
 0x227   :  { %1783 = vperm.xlu0 %4461, %v4913_v21   ;;  %v5649_v1 = vpop.permute.xlu2 %1365  ;;  %v5651_v15 = vpop.permute.xlu1 %1325  ;;  %v2386_v11 = vld [vmem:[%s9461_s3 + $0xf0] sm:$0xff]  ;;  %v2369_v21 = vld [vmem:[%s9461_s3 + $0x68] sm:$0xff]  ;;  %2393 = vmatpush.msra.mxu0 %v2370_v10 }
 0x228   :  { %9931 = vst [vmem:[#allocation154_spill] sm:$0xff] %v5649_v1  ;;  %v5653_v7 = vpop.permute.xlu0 %1345  ;;  %2602 = vmatpush.msra.mxu1 %v2386_v11  ;;  %4416 = vmatpush.msra.mxu2 %v2370_v10  ;;  %v2367_v10 = vld [vmem:[%s9461_s3 + $0x58] sm:$0xff] }
 0x229   :  { %9932 = vst [vmem:[#allocation155_spill] sm:$0xff] %v5653_v7  ;;  %4432 = vmatpush.msra.mxu3 %v2386_v11  ;;  %2394 = vmatpush.msra.mxu0 %v2369_v21  ;;  %v2365_v11 = vld [vmem:[%s9461_s3 + $0x48] sm:$0xff] }
 0x22a   :  { %2603 = vmatpush.msra.mxu1 %v2385_v50  ;;  %4417 = vmatpush.msra.mxu2 %v2369_v21  ;;  %v2381_v21 = vld [vmem:[%s9461_s3 + $0xc8] sm:$0xff] }
 0x22b   :  { %2395 = vmatpush.msra.mxu0 %v2368_v12  ;;  %4433 = vmatpush.msra.mxu3 %v2385_v50  ;;  %v2380_v50 = vld [vmem:[%s9461_s3 + $0xc0] sm:$0xff] }
 0x22c   :  { %2604 = vmatpush.msra.mxu1 %v2384_v3  ;;  %4418 = vmatpush.msra.mxu2 %v2368_v12 }
 0x22d   :  { %2396 = vmatpush.msra.mxu0 %v2367_v10  ;;  %4434 = vmatpush.msra.mxu3 %v2384_v3 }
 0x22e   :  { %1767 = vperm.xlu2 %4460, %v4867_v13   ;;  %1763 = vperm.xlu1 %4462, %v4872_v14   ;;  %v2383_v13 = vld [vmem:[%s9461_s3 + $0xd8] sm:$0xff]  ;;  %v2366_v14 = vld [vmem:[%s9461_s3 + $0x50] sm:$0xff] }
 0x22f   :  { %1795 = vperm.xlu0 %4461, %v4931_v24   ;;  %v5682_v8 = vpop.permute.xlu2 %1377  ;;  %v5684_v18 = vpop.permute.xlu1 %1337  ;;  %2605 = vmatpush.msra.mxu1 %v2383_v13  ;;  %v2382_v24 = vld [vmem:[%s9461_s3 + $0xd0] sm:$0xff] }
 0x230   :  { %9933 = vst [vmem:[#allocation156_spill] sm:$0xff] %v5682_v8  ;;  %v5686_v6 = vpop.permute.xlu0 %1357  ;;  %2397 = vmatpush.msra.mxu0 %v2366_v14  ;;  %4419 = vmatpush.msra.mxu2 %v2367_v10  ;;  %v2378_v10 = vld [vmem:[%s9461_s3 + $0xb0] sm:$0xff] }
 0x231   :  { %9934 = vst [vmem:[#allocation157_spill] sm:$0xff] %v5684_v18  ;;  %2606 = vmatpush.msra.mxu1 %v2382_v24  ;;  %4435 = vmatpush.msra.mxu3 %v2383_v13  ;;  %v2377_v13 = vld [vmem:[%s9461_s3 + $0xa8] sm:$0xff]  ;;  %v9980_v18 = vld [vmem:[#allocation17_spill] sm:$0xff] }
 0x232   :  { %9935 = vst [vmem:[#allocation158_spill] sm:$0xff] %v5686_v6  ;;  %2398 = vmatpush.msra.mxu0 %v2365_v11  ;;  %4420 = vmatpush.msra.mxu2 %v2366_v14  ;;  %v2360_v14 = vld [vmem:[%s9461_s3 + $0x20] sm:$0xff] }
 0x233   :  { %2607 = vmatpush.msra.mxu1 %v2381_v21  ;;  %4436 = vmatpush.msra.mxu3 %v2382_v24 }
 0x234   :  { %2399 = vmatpush.msra.mxu0 %v2364_v37  ;;  %4421 = vmatpush.msra.mxu2 %v2365_v11  ;;  %v2376_v11 = vld [vmem:[%s9461_s3 + $0xa0] sm:$0xff] }
 0x235   :  { %2608 = vmatpush.msra.mxu1 %v2380_v50  ;;  %4437 = vmatpush.msra.mxu3 %v2381_v21 }
 0x236   :  { %1779 = vperm.xlu2 %4460, %v4885_v16   ;;  %1775 = vperm.xlu1 %4462, %v4890_v17   ;;  %v2363_v16 = vld [vmem:[%s9461_s3 + $0x38] sm:$0xff] }
 0x237   :  { %1807 = vperm.xlu0 %4461, %v4949_v27   ;;  %v5715_v12 = vpop.permute.xlu2 %1389  ;;  %v5717_v62 = vpop.permute.xlu1 %1349  ;;  %v2379_v17 = vld [vmem:[%s9461_s3 + $0xb8] sm:$0xff]  ;;  %2400 = vmatpush.msra.mxu0 %v2363_v16  ;;  %v2362_v27 = vld [vmem:[%s9461_s3 + $0x30] sm:$0xff] }
 0x238   :  { %9936 = vst [vmem:[#allocation159_spill] sm:$0xff] %v5715_v12  ;;  %v5719_v3 = vpop.permute.xlu0 %1369  ;;  %2609 = vmatpush.msra.mxu1 %v2379_v17  ;;  %v2361_v12 = vld [vmem:[%s9461_s3 + $0x28] sm:$0xff]  ;;  %4422 = vmatpush.msra.mxu2 %v2364_v37 }
 0x239   :  { %9937 = vst [vmem:[#allocation160_spill] sm:$0xff] %v5717_v62  ;;  %2401 = vmatpush.msra.mxu0 %v2362_v27  ;;  %4438 = vmatpush.msra.mxu3 %v2380_v50  ;;  %v2373_v37 = vld [vmem:[%s9461_s3 + $0x88] sm:$0xff] }
 0x23a   :  { %9938 = vst [vmem:[#allocation161_spill] sm:$0xff] %v5719_v3  ;;  %2610 = vmatpush.msra.mxu1 %v2378_v10  ;;  %4423 = vmatpush.msra.mxu2 %v2363_v16 }
 0x23b   :  { %2402 = vmatpush.msra.mxu0 %v2361_v12  ;;  %4439 = vmatpush.msra.mxu3 %v2379_v17  ;;  %v2356_v17 = vld [vmem:[%s9461_s3] sm:$0xff] }
 0x23c   :  { %2611 = vmatpush.msra.mxu1 %v2377_v13  ;;  %4424 = vmatpush.msra.mxu2 %v2362_v27 }
 0x23d   :  { %2403 = vmatpush.msra.mxu0 %v2360_v14  ;;  %4440 = vmatpush.msra.mxu3 %v2378_v10  ;;  %v84_v10 = vld [vmem:[%s9462_s1] sm:$0xff] }
 0x23e   :  { %1791 = vperm.xlu2 %4460, %v4903_v19   ;;  %1787 = vperm.xlu1 %4462, %v4908_v20   ;;  %v2359_v19 = vld [vmem:[%s9461_s3 + $0x18] sm:$0xff]  ;;  %v1966_v26 = vperm.slane %v84_v10, 3  ;;  %v1967_v57 = vperm.slane %v84_v10, 7 }
 0x23f   :  { %1819 = vperm.xlu0 %4461, %v4967_v30   ;;  %v5745_v24 = vpop.permute.xlu2 %1401  ;;  %v5747_v0 = vpop.permute.xlu1 %1361  ;;  %v2375_v20 = vld [vmem:[%s9461_s3 + $0x98] sm:$0xff]  ;;  %2612 = vmatpush.msra.mxu1 %v2376_v11  ;;  %v2358_v30 = vld [vmem:[%s9461_s3 + $0x10] sm:$0xff] }
 0x240   :  { %9939 = vst [vmem:[#allocation162_spill] sm:$0xff] %v5745_v24  ;;  %v5752_v21 = vpop.permute.xlu0 %1381  ;;  %2404 = vmatpush.msra.mxu0 %v2359_v19  ;;  %v2374_v24 = vld [vmem:[%s9461_s3 + $0x90] sm:$0xff]  ;;  %4425 = vmatpush.msra.mxu2 %v2361_v12 }
 0x241   :  { %9940 = vst [vmem:[#allocation163_spill] sm:$0xff] %v5747_v0  ;;  %2613 = vmatpush.msra.mxu1 %v2375_v20  ;;  %4441 = vmatpush.msra.mxu3 %v2377_v13 }
 0x242   :  { %9941 = vst [vmem:[#allocation164_spill] sm:$0xff] %v5752_v21  ;;  %2405 = vmatpush.msra.mxu0 %v2358_v30  ;;  %v2357_v21 = vld [vmem:[%s9461_s3 + $0x8] sm:$0xff]  ;;  %4426 = vmatpush.msra.mxu2 %v2360_v14 }
 0x243   :  { %2614 = vmatpush.msra.mxu1 %v2374_v24  ;;  %4442 = vmatpush.msra.mxu3 %v2376_v11  ;;  %v407_v11 = vperm.slane %v84_v10, 0 }
 0x244   :  { %2406 = vmatpush.msra.mxu0 %v2357_v21  ;;  %4427 = vmatpush.msra.mxu2 %v2359_v19  ;;  %v4722_v19 = vld [vmem:[%s9460_s0 + $0xe8] sm:$0xff] }
 0x245   :  { %2615 = vmatpush.msra.mxu1 %v2373_v37  ;;  %4443 = vmatpush.msra.mxu3 %v2375_v20  ;;  %v4723_v20 = vld [vmem:[%s9460_s0 + $0xe0] sm:$0xff] }
 0x246   :  { %1803 = vperm.xlu2 %4460, %v4921_v22   ;;  %1799 = vperm.xlu1 %4462, %v4926_v23   ;;  %v2372_v22 = vld [vmem:[%s9461_s3 + $0x80] sm:$0xff]  ;;  %v4720_v23 = vld [vmem:[%s9460_s0 + $0xd0] sm:$0xff] }
 0x247   :  { %1831 = vperm.xlu0 %4461, %v4985_v33   ;;  %v5775_v50 = vpop.permute.xlu2 %1413  ;;  %v5777_v16 = vpop.permute.xlu1 %1373  ;;  %2407 = vmatpush.msra.mxu0 %v2356_v17  ;;  %v4721_v33 = vld [vmem:[%s9460_s0 + $0xc8] sm:$0xff] }
 0x248   :  { %9942 = vst [vmem:[#allocation165_spill] sm:$0xff] %v5775_v50  ;;  %v5782_v27 = vpop.permute.xlu0 %1393  ;;  %2616 = vmatpush.msra.mxu1 %v2372_v22  ;;  %4428 = vmatpush.msra.mxu2 %v2358_v30  ;;  %v931_v50 = vperm.slane %v84_v10, 5  ;;  %v1449_v30 = vperm.slane %v84_v10, 6 }
 0x249   :  { %9943 = vst [vmem:[#allocation166_spill] sm:$0xff] %v5777_v16  ;;  %4444 = vmatpush.msra.mxu3 %v2374_v24  ;;  %v85_v24 = vld [vmem:[%s9463_s2] sm:$0x3]  ;;  %v5853_v16 = vperm.slane %v1967_v57, 3 }
 0x24a   :  { %9944 = vst [vmem:[#allocation167_spill] sm:$0xff] %v5782_v27  ;;  %4429 = vmatpush.msra.mxu2 %v2357_v21  ;;  %v5803_v27 = vperm.slane %v407_v11, 0  ;;  %v1448_v21 = vperm.slane %v84_v10, 2 }
 0x24b   :  { %4445 = vmatpush.msra.mxu3 %v2373_v37  ;;  %v4724_v37 = vld [vmem:[%s9460_s0 + $0x120] sm:$0xff] }
 0x24c   :  { %4430 = vmatpush.msra.mxu2 %v2356_v17  ;;  %9948 = vst [vmem:[#allocation171_spill] sm:$0xff] %v5803_v27  ;;  %v5841_v31 = vperm.slane %v1448_v21, 2  ;;  %v4725_v21 = vld [vmem:[%s9460_s0 + $0x100] sm:$0xff]  ;;  %v439_v4 = vmul.f32 %v5803_v27, %v9985_v29 }
 0x24d   :  { %4446 = vmatpush.msra.mxu3 %v2372_v22 }
 0x24e   :  { %1815 = vperm.xlu2 %4460, %v4720_v23   ;;  %1811 = vperm.xlu1 %4462, %v4721_v33   ;;  %v408_v23 = vperm.slane %v84_v10, 4  ;;  %v930_v33 = vperm.slane %v84_v10, 1  ;;  %v1454_v10 = vmul.f32 %v5841_v31, %v5545_v39  ;;  %v1456_v0 = vmul.f32 %v5841_v31, %v5552_v42 }
 0x24f   :  { %1843 = vperm.xlu0 %4461, %v5003_v36   ;;  %v5797_v12 = vpop.permute.xlu2 %1425  ;;  %v5799_v13 = vpop.permute.xlu1 %1385 }
 0x250   :  { %9945 = vst [vmem:[#allocation168_spill] sm:$0xff] %v5797_v12  ;;  %v5801_v14 = vpop.permute.xlu0 %1405  ;;  %v5805_v36 = vperm.slane %v408_v23, 0  ;;  %v9952_v23 = vld [vmem:[#allocation8_spill] sm:$0xff] }
 0x251   :  { %9946 = vst [vmem:[#allocation169_spill] sm:$0xff] %v5799_v13  ;;  %v5831_v13 = vperm.slane %v931_v50, 1 }
 0x252   :  { %9947 = vst [vmem:[#allocation170_spill] sm:$0xff] %v5801_v14  ;;  %v5829_v14 = vperm.slane %v930_v33, 1  ;;  %v418_v1 = vmul.f32 %v5805_v36, %v9967_v41 }
 0x253   :  { %9949 = vst [vmem:[#allocation172_spill] sm:$0xff] %v5805_v36 }
 0x256   :  { %1827 = vperm.xlu2 %4460, %v4722_v19   ;;  %1823 = vperm.xlu1 %4462, %v4723_v20   ;;  %v413_v19 = vmul.f32 %v5803_v27, %v9952_v23  ;;  %v414_v20 = vmul.f32 %v5805_v36, %v9952_v23  ;;  %v5843_v23 = vperm.slane %v1449_v30, 2  ;;  %v4726_v30 = vld [vmem:[%s9460_s0 + $0xf8] sm:$0xff] }
 0x257   :  { %1855 = vperm.xlu0 %4461, %v4724_v37   ;;  %v5819_v17 = vpop.permute.xlu2 %1437  ;;  %v5821_v11 = vpop.permute.xlu1 %1397  ;;  %v5833_v37 = vperm.slane %v85_v24, 0 }
 0x258   :  { %9950 = vst [vmem:[#allocation173_spill] sm:$0xff] %v5819_v17  ;;  %v5827_v12 = vpop.permute.xlu0 %1417  ;;  %v5835_v17 = vperm.slane %v85_v24, 1  ;;  %v1455_v24 = vmul.f32 %v5843_v23, %v5545_v39  ;;  %v4727_v39 = vld [vmem:[%s9460_s0 + $0x138] sm:$0xff]  ;;  %v1457_v49 = vmul.f32 %v5843_v23, %v5552_v42  ;;  %v442_v42 = vmul.f32 %v5805_v36, %v9968_v28 }
 0x259   :  { %9951 = vst [vmem:[#allocation174_spill] sm:$0xff] %v5821_v11  ;;  %v9956_v11 = vld [vmem:[#allocation81_spill] sm:$0xff]  ;;  %v546_v33 = vadd.f32 %v5833_v37, %v413_v19 }
 0x25a   :  { %9953 = vst [vmem:[#allocation8_spill] sm:$0xff] %v5827_v12  ;;  %v936_v22 = vmul.f32 %v5829_v14, %v9956_v11  ;;  %v937_v8 = vmul.f32 %v5831_v13, %v9956_v11  ;;  %v547_v50 = vadd.f32 %v5835_v17, %v414_v20  ;;  %v5851_v12 = vperm.slane %v1966_v26, 3 }
 0x25b   :  { %9954 = vst [vmem:[#allocation175_spill] sm:$0xff] %v5833_v37 }
 0x25c   :  { %9955 = vst [vmem:[#allocation176_spill] sm:$0xff] %v5835_v17  ;;  %v1064_v11 = vadd.f32 %v936_v22, %v546_v33  ;;  %v1065_v19 = vadd.f32 %v937_v8, %v547_v50  ;;  %v9959_v33 = vld [vmem:[#allocation3_spill] sm:$0xff] }
 0x25d   :  { %v421_v50 = vmul.f32 %v5803_v27, %v9959_v33 }
 0x25e   :  { %1839 = vperm.xlu2 %4460, %v4725_v21   ;;  %1835 = vperm.xlu1 %4462, %v4726_v30   ;;  %v1582_v63 = vadd.f32 %v1454_v10, %v1064_v11  ;;  %v1583_v3 = vadd.f32 %v1455_v24, %v1065_v19  ;;  %v4729_v10 = vld [vmem:[%s9460_s0 + $0x110] sm:$0xff]  ;;  %v9962_v11 = vld [vmem:[#allocation5_spill] sm:$0xff] }
 0x25f   :  { %1867 = vperm.xlu0 %4461, %v4727_v39   ;;  %v5864_v26 = vpop.permute.xlu1 %1409  ;;  %v422_v39 = vmul.f32 %v5805_v36, %v9959_v33  ;;  %v429_v19 = vmul.f32 %v5803_v27, %v9962_v11  ;;  %v5898_v33 = vadd.f32 %v5833_v37, %v421_v50 }
 0x260   :  { %9957 = vst [vmem:[#allocation81_spill] sm:$0xff] %v5864_v26  ;;  %v5866_v57 = vpop.permute.xlu0 %1429  ;;  %v1712_v20 = vpop.permute.xlu2 %1711  ;;  %v9966_v26 = vld [vmem:[#allocation72_spill] sm:$0xff] }
 0x261   :  { %9958 = vst [vmem:[#allocation177_spill] sm:$0xff] %v5866_v57  ;;  %v1972_v45 = vmul.f32 %v5851_v12, %v1712_v20  ;;  %v1973_v21 = vmul.f32 %v5853_v16, %v1712_v20  ;;  %v4728_v57 = vld [vmem:[%s9460_s0 + $0x118] sm:$0xff] }
 0x263   :  { %v2100_v55 = vadd.f32 %v1972_v45, %v1582_v63  ;;  %v2101_v30 = vadd.f32 %v1973_v21, %v1583_v3  ;;  %v9960_v45 = vld [vmem:[#allocation4_spill] sm:$0xff]  ;;  %v9964_v21 = vld [vmem:[#allocation11_spill] sm:$0xff] }
 0x264   :  { %v4730_v63 = vld [vmem:[%s9460_s0 + $0x150] sm:$0xff]  ;;  %v424_v24 = vmul.f32 %v5805_v36, %v9960_v45 }
 0x265   :  { %v2228_v22 = vmax.f32 %v2100_v55, 0.0  ;;  %v2229_v8 = vmax.f32 %v2101_v30, 0.0  ;;  %v423_v55 = vmul.f32 %v5803_v27, %v9960_v45  ;;  %v415_v30 = vmul.f32 %v5803_v27, %v9964_v21 }
 0x266   :  { %1851 = vperm.xlu2 %4460, %v4728_v57   ;;  %1847 = vperm.xlu1 %4462, %v4729_v10   ;;  %v5901_v10 = vadd.f32 %v5835_v17, %v422_v39  ;;  %v5915_v50 = vadd.f32 %v5835_v17, %v424_v24  ;;  %v5918_v39 = vadd.f32 %v5833_v37, %v429_v19 }
 0x267   :  { %1879 = vperm.xlu0 %4461, %v4730_v63   ;;  %v5885_v3 = vpop.permute.xlu1 %1421  ;;  %2408 = vmatmul.f32.vlgmr.msra.gmra.mxu0 %v2228_v22  ;;  %v416_v22 = vmul.f32 %v5805_v36, %v9964_v21  ;;  %v5906_v45 = vadd.f32 %v5833_v37, %v423_v55  ;;  %v9965_v63 = vld [vmem:[#allocation6_spill] sm:$0xff]  ;;  %v938_v21 = vmul.f32 %v5829_v14, %v9966_v26 }
 0x268   :  { %9961 = vst [vmem:[#allocation3_spill] sm:$0xff] %v5885_v3  ;;  %2617 = vmatmul.f32.vlgmr.msra.gmra.mxu1 %v2229_v8  ;;  %v5891_v57 = vpop.permute.xlu0 %1441  ;;  %v5893_v20 = vpop.permute.xlu2 %1723  ;;  %v430_v8 = vmul.f32 %v5805_v36, %v9962_v11  ;;  %v436_v3 = vmul.f32 %v5805_v36, %v9965_v63  ;;  %v939_v55 = vmul.f32 %v5831_v13, %v9966_v26  ;;  %v4731_v26 = vld [vmem:[%s9460_s0 + $0x130] sm:$0xff] }
 0x269   :  { %9963 = vst [vmem:[#allocation4_spill] sm:$0xff] %v5891_v57  ;;  %v435_v57 = vmul.f32 %v5803_v27, %v9965_v63  ;;  %v417_v11 = vmul.f32 %v5803_v27, %v9967_v41  ;;  %v441_v63 = vmul.f32 %v5803_v27, %v9968_v28  ;;  %v548_v24 = vadd.f32 %v5833_v37, %v415_v30  ;;  %v4732_v41 = vld [vmem:[%s9460_s0 + $0x128] sm:$0xff] }
 0x26a   :  { %v549_v19 = vadd.f32 %v5835_v17, %v416_v22  ;;  %v5943_v30 = vadd.f32 %v5835_v17, %v430_v8  ;;  %v5949_v6 = vadd.f32 %v5835_v17, %v436_v3  ;;  %v5968_v28 = vadd.f32 %v5835_v17, %v418_v1 }
 0x26b   :  { %v5946_v22 = vadd.f32 %v5833_v37, %v435_v57  ;;  %v1066_v2 = vadd.f32 %v938_v21, %v548_v24  ;;  %v5965_v62 = vadd.f32 %v5833_v37, %v417_v11  ;;  %v9976_v11 = vld [vmem:[#allocation13_spill] sm:$0xff] }
 0x26c   :  { %9970 = vst [vmem:[#allocation11_spill] sm:$0xff] %v5949_v6  ;;  %v1067_v58 = vadd.f32 %v939_v55, %v549_v19  ;;  %v5978_v19 = vadd.f32 %v5835_v17, %v442_v42  ;;  %v9979_v42 = vld [vmem:[#allocation16_spill] sm:$0xff] }
 0x26d   :  { %9969 = vst [vmem:[#allocation5_spill] sm:$0xff] %v5946_v22  ;;  %v1584_v55 = vadd.f32 %v1456_v0, %v1066_v2  ;;  %v9978_v2 = vld [vmem:[#allocation14_spill] sm:$0xff] }
 0x26e   :  { %1863 = vperm.xlu2 %4460, %v4731_v26   ;;  %1859 = vperm.xlu1 %4462, %v4732_v41   ;;  %v4733_v26 = vld [vmem:[%s9460_s0 + $0x168] sm:$0xff]  ;;  %v9972_v41 = vld [vmem:[#allocation10_spill] sm:$0xff]  ;;  %v1585_v24 = vadd.f32 %v1457_v49, %v1067_v58  ;;  %9975 = vst [vmem:[#allocation7_spill] sm:$0xff] %v5978_v19 }
 0x26f   :  { %1891 = vperm.xlu0 %4461, %v4733_v26   ;;  %v5956_v60 = vpop.permute.xlu1 %1433  ;;  %v419_v8 = vmul.f32 %v5803_v27, %v9972_v41  ;;  %v420_v57 = vmul.f32 %v5805_v36, %v9972_v41  ;;  %v5971_v26 = vadd.f32 %v5833_v37, %v441_v63  ;;  %v427_v63 = vmul.f32 %v5803_v27, %v9976_v11 }
 0x270   :  { %9971 = vst [vmem:[#allocation6_spill] sm:$0xff] %v5956_v60  ;;  %v5962_v3 = vpop.permute.xlu2 %1731  ;;  %v9974_v60 = vld [vmem:[#allocation12_spill] sm:$0xff]  ;;  %v428_v41 = vmul.f32 %v5805_v36, %v9976_v11  ;;  %v453_v11 = vmul.f32 %v5803_v27, %v9979_v42 }
 0x271   :  { %9973 = vst [vmem:[#allocation72_spill] sm:$0xff] %v5971_v26  ;;  %v447_v54 = vmul.f32 %v5803_v27, %v9974_v60  ;;  %v1716_v7 = vpop.permute.xlu0 %1715  ;;  %v448_v1 = vmul.f32 %v5805_v36, %v9974_v60  ;;  %v5987_v9 = vadd.f32 %v5833_v37, %v419_v8  ;;  %v5990_v48 = vadd.f32 %v5835_v17, %v420_v57  ;;  %v9989_v26 = vld [vmem:[#allocation84_spill] sm:$0xff] }
 0x272   :  { %v1974_v56 = vmul.f32 %v5851_v12, %v1716_v7  ;;  %v1975_v21 = vmul.f32 %v5853_v16, %v1716_v7  ;;  %v425_v60 = vmul.f32 %v5803_v27, %v9978_v2  ;;  %v426_v7 = vmul.f32 %v5805_v36, %v9978_v2 }
 0x273   :  { %v5993_v49 = vadd.f32 %v5833_v37, %v447_v54  ;;  %v454_v8 = vmul.f32 %v5805_v36, %v9979_v42  ;;  %v433_v57 = vmul.f32 %v5803_v27, %v9980_v18  ;;  %v4735_v54 = vld [vmem:[%s9460_s0 + $0x140] sm:$0xff]  ;;  %v6015_v2 = vadd.f32 %v5833_v37, %v427_v63 }
 0x274   :  { %v2102_v0 = vadd.f32 %v1974_v56, %v1584_v55  ;;  %v2103_v58 = vadd.f32 %v1975_v21, %v1585_v24  ;;  %v4734_v56 = vld [vmem:[%s9460_s0 + $0x148] sm:$0xff]  ;;  %v6012_v24 = vadd.f32 %v5835_v17, %v448_v1  ;;  %v6018_v42 = vadd.f32 %v5835_v17, %v428_v41 }
 0x275   :  { %9977 = vst [vmem:[#allocation9_spill] sm:$0xff] %v5993_v49  ;;  %v434_v49 = vmul.f32 %v5805_v36, %v9980_v18  ;;  %v6036_v18 = vadd.f32 %v5833_v37, %v425_v60  ;;  %v6048_v59 = vadd.f32 %v5833_v37, %v453_v11  ;;  %v6054_v60 = vadd.f32 %v5833_v37, %v433_v57 }
 0x276   :  { %1875 = vperm.xlu2 %4460, %v4734_v56   ;;  %1871 = vperm.xlu1 %4462, %v4735_v54   ;;  %v2230_v21 = vmax.f32 %v2102_v0, 0.0  ;;  %v2231_v55 = vmax.f32 %v2103_v58, 0.0  ;;  %9981 = vst [vmem:[#allocation10_spill] sm:$0xff] %v6012_v24  ;;  %v4736_v56 = vld [vmem:[%s9460_s0 + $0x180] sm:$0xff]  ;;  %v940_v61 = vmul.f32 %v5829_v14, %v9989_v26  ;;  %v941_v11 = vmul.f32 %v5831_v13, %v9989_v26 }
 0x277   :  { %1903 = vperm.xlu0 %4461, %v4736_v56   ;;  %v6025_v54 = vpop.permute.xlu1 %1445  ;;  %v9983_v0 = vld [vmem:[#allocation18_spill] sm:$0xff]  ;;  %v6039_v56 = vadd.f32 %v5835_v17, %v426_v7  ;;  %9986 = vst [vmem:[#allocation13_spill] sm:$0xff] %v6048_v59  ;;  %v440_v7 = vmul.f32 %v5805_v36, %v9985_v29  ;;  %v6082_v59 = vadd.f32 %v5833_v37, %v439_v4 }
 0x278   :  { %9982 = vst [vmem:[#allocation12_spill] sm:$0xff] %v6025_v54  ;;  %v431_v1 = vmul.f32 %v5803_v27, %v9983_v0  ;;  %v432_v63 = vmul.f32 %v5805_v36, %v9983_v0  ;;  %v9984_v58 = vld [vmem:[#allocation22_spill] sm:$0xff]  ;;  %2411 = vmatmul.f32.gmra.mxu0 %v2230_v21  ;;  %2620 = vmatmul.f32.gmra.mxu1 %v2231_v55  ;;  %v6033_v24 = vpop.permute.xlu2 %1743 }
 0x279   :  { %v459_v41 = vmul.f32 %v5803_v27, %v9984_v58  ;;  %v460_v54 = vmul.f32 %v5805_v36, %v9984_v58  ;;  %v6045_v0 = vpop.permute.xlu0 %1735  ;;  %v6051_v21 = vadd.f32 %v5835_v17, %v454_v8  ;;  %v6059_v55 = vadd.f32 %v5835_v17, %v434_v49  ;;  %v9988_v58 = vld [vmem:[#allocation24_spill] sm:$0xff]  ;;  %9992 = vst [vmem:[#allocation18_spill] sm:$0xff] %v6082_v59  ;;  %v4737_v4 = vld [vmem:[%s9460_s0 + $0x160] sm:$0xff]  ;;  %v4739_v59 = vld [vmem:[%s9460_s0 + $0x198] sm:$0xff] }
 0x27a   :  { %v437_v19 = vmul.f32 %v5803_v27, %v9988_v58  ;;  %v6068_v8 = vadd.f32 %v5833_v37, %v431_v1  ;;  %v6071_v57 = vadd.f32 %v5835_v17, %v432_v63  ;;  %v438_v49 = vmul.f32 %v5805_v36, %v9988_v58 }
 0x27b   :  { %9987 = vst [vmem:[#allocation14_spill] sm:$0xff] %v6051_v21  ;;  %v6074_v29 = vadd.f32 %v5833_v37, %v459_v41  ;;  %v6079_v21 = vadd.f32 %v5835_v17, %v460_v54  ;;  %v1458_v26 = vmul.f32 %v5841_v31, %v5527_v32  ;;  %v1459_v1 = vmul.f32 %v5843_v23, %v5527_v32  ;;  %v9994_v41 = vld [vmem:[#allocation28_spill] sm:$0xff]  ;;  %v4738_v54 = vld [vmem:[%s9460_s0 + $0x158] sm:$0xff] }
 0x27c   :  { %v6089_v63 = vadd.f32 %v5835_v17, %v440_v7  ;;  %v466_v58 = vmul.f32 %v5805_v36, %v9994_v41  ;;  %v6102_v32 = vadd.f32 %v5833_v37, %v437_v19  ;;  %v9996_v7 = vld [vmem:[#allocation29_spill] sm:$0xff]  ;;  %v9998_v19 = vld [vmem:[#allocation30_spill] sm:$0xff] }
 0x27d   :  { %9990 = vst [vmem:[#allocation16_spill] sm:$0xff] %v6074_v29  ;;  %v465_v29 = vmul.f32 %v5803_v27, %v9994_v41  ;;  %v1069_v41 = vadd.f32 %v941_v11, %v5968_v28  ;;  %v443_v44 = vmul.f32 %v5803_v27, %v9998_v19  ;;  %v444_v22 = vmul.f32 %v5805_v36, %v9998_v19 }
 0x27e   :  { %9991 = vst [vmem:[#allocation17_spill] sm:$0xff] %v6079_v21  ;;  %1887 = vperm.xlu2 %4460, %v4737_v4   ;;  %1883 = vperm.xlu1 %4462, %v4738_v54   ;;  %v445_v21 = vmul.f32 %v5803_v27, %v9996_v7  ;;  %v6112_v4 = vadd.f32 %v5835_v17, %v438_v49 }
 0x27f   :  { %9993 = vst [vmem:[#allocation22_spill] sm:$0xff] %v6089_v63  ;;  %v1068_v63 = vadd.f32 %v940_v61, %v5965_v62  ;;  %1915 = vperm.xlu0 %4461, %v4739_v59   ;;  %v446_v54 = vmul.f32 %v5805_v36, %v9996_v7  ;;  %v6127_v6 = vadd.f32 %v5833_v37, %v465_v29 }
 0x280   :  { %9995 = vst [vmem:[#allocation23_spill] sm:$0xff] %v6102_v32  ;;  %v9999_v32 = vld [vmem:[#allocation83_spill] sm:$0xff]  ;;  %v6120_v62 = vpop.permute.xlu2 %1755  ;;  %v1720_v61 = vpop.permute.xlu1 %1719  ;;  %v6130_v7 = vadd.f32 %v5835_v17, %v466_v58  ;;  %v6137_v53 = vadd.f32 %v5833_v37, %v445_v21 }
 0x281   :  { %9997 = vst [vmem:[#allocation24_spill] sm:$0xff] %v6112_v4  ;;  %v942_v34 = vmul.f32 %v5829_v14, %v9999_v32  ;;  %v1976_v28 = vmul.f32 %v5851_v12, %v1720_v61  ;;  %v1977_v11 = vmul.f32 %v5853_v16, %v1720_v61  ;;  %v6124_v59 = vpop.permute.xlu0 %1747  ;;  %v1586_v49 = vadd.f32 %v1458_v26, %v1068_v63  ;;  %v10004_v63 = vld [vmem:[#allocation33_spill] sm:$0xff] }
 0x282   :  { %10000 = vst [vmem:[#allocation84_spill] sm:$0xff] %v6120_v62  ;;  %v1587_v4 = vadd.f32 %v1459_v1, %v1069_v41  ;;  %v943_v62 = vmul.f32 %v5831_v13, %v9999_v32  ;;  %v1460_v61 = vmul.f32 %v5841_v31, %v5561_v46  ;;  %v471_v29 = vmul.f32 %v5803_v27, %v10004_v63  ;;  %v10005_v41 = vld [vmem:[#allocation34_spill] sm:$0xff] }
 0x283   :  { %10001 = vst [vmem:[#allocation28_spill] sm:$0xff] %v6127_v6  ;;  %v2104_v26 = vadd.f32 %v1976_v28, %v1586_v49  ;;  %v472_v58 = vmul.f32 %v5805_v36, %v10004_v63  ;;  %v451_v19 = vmul.f32 %v5803_v27, %v10005_v41  ;;  %v1461_v32 = vmul.f32 %v5843_v23, %v5561_v46  ;;  %v4740_v63 = vld [vmem:[%s9460_s0 + $0x178] sm:$0xff] }
 0x284   :  { %10002 = vst [vmem:[#allocation29_spill] sm:$0xff] %v6130_v7  ;;  %v2105_v1 = vadd.f32 %v1977_v11, %v1587_v4  ;;  %v1070_v21 = vadd.f32 %v942_v34, %v5987_v9  ;;  %v1978_v7 = vmul.f32 %v5851_v12, %v5893_v20  ;;  %v452_v4 = vmul.f32 %v5805_v36, %v10005_v41  ;;  %v4741_v34 = vld [vmem:[%s9460_s0 + $0x170] sm:$0xff]  ;;  %v10007_v9 = vld [vmem:[#allocation35_spill] sm:$0xff] }
 0x285   :  { %10003 = vst [vmem:[#allocation30_spill] sm:$0xff] %v6137_v53  ;;  %v2232_v6 = vmax.f32 %v2104_v26, 0.0  ;;  %v1071_v11 = vadd.f32 %v943_v62, %v5990_v48  ;;  %v1979_v49 = vmul.f32 %v5853_v16, %v5893_v20  ;;  %v6164_v46 = vadd.f32 %v5835_v17, %v446_v54  ;;  %v4742_v48 = vld [vmem:[%s9460_s0 + $0x1b0] sm:$0xff] }
 0x286   :  { %v2233_v28 = vmax.f32 %v2105_v1, 0.0  ;;  %1899 = vperm.xlu2 %4460, %v4740_v63   ;;  %1895 = vperm.xlu1 %4462, %v4741_v34   ;;  %v449_v26 = vmul.f32 %v5803_v27, %v10007_v9  ;;  %v1588_v20 = vadd.f32 %v1460_v61, %v1070_v21  ;;  %v6172_v62 = vadd.f32 %v5833_v37, %v443_v44  ;;  %v10011_v61 = vld [vmem:[#allocation75_spill] sm:$0xff] }
 0x287   :  { %10006 = vst [vmem:[#allocation83_spill] sm:$0xff] %v6164_v46  ;;  %1927 = vperm.xlu0 %4461, %v4742_v48   ;;  %2414 = vmatmul.f32.gmra.mxu0 %v2232_v6  ;;  %v6175_v1 = vadd.f32 %v5835_v17, %v444_v22  ;;  %v450_v54 = vmul.f32 %v5805_v36, %v10007_v9 }
 0x288   :  { %2623 = vmatmul.f32.gmra.mxu1 %v2233_v28  ;;  %v6179_v41 = vpop.permute.xlu2 %1767  ;;  %v1728_v63 = vpop.permute.xlu1 %1727  ;;  %v1589_v34 = vadd.f32 %v1461_v32, %v1071_v11  ;;  %v6182_v46 = vadd.f32 %v5833_v37, %v471_v29  ;;  %v6185_v6 = vadd.f32 %v5835_v17, %v472_v58  ;;  %v944_v44 = vmul.f32 %v5829_v14, %v10011_v61  ;;  %v10015_v58 = vld [vmem:[#allocation37_spill] sm:$0xff] }
 0x289   :  { %10008 = vst [vmem:[#allocation33_spill] sm:$0xff] %v6179_v41  ;;  %v6189_v21 = vpop.permute.xlu0 %1759  ;;  %v2106_v22 = vadd.f32 %v1978_v7, %v1588_v20  ;;  %v6192_v48 = vadd.f32 %v5833_v37, %v451_v19  ;;  %v6195_v28 = vadd.f32 %v5835_v17, %v452_v4  ;;  %v945_v32 = vmul.f32 %v5831_v13, %v10011_v61  ;;  %v10017_v4 = vld [vmem:[#allocation38_spill] sm:$0xff] }
 0x28a   :  { %10009 = vst [vmem:[#allocation34_spill] sm:$0xff] %v6182_v46  ;;  %v2107_v29 = vadd.f32 %v1979_v49, %v1589_v34  ;;  %v6200_v11 = vadd.f32 %v5833_v37, %v449_v26  ;;  %v477_v9 = vmul.f32 %v5803_v27, %v10015_v58  ;;  %v1462_v7 = vmul.f32 %v5841_v31, %v5536_v35  ;;  %v10018_v34 = vld [vmem:[#allocation39_spill] sm:$0xff] }
 0x28b   :  { %10010 = vst [vmem:[#allocation35_spill] sm:$0xff] %v6185_v6  ;;  %v478_v6 = vmul.f32 %v5805_v36, %v10015_v58  ;;  %v6209_v19 = vadd.f32 %v5835_v17, %v450_v54  ;;  %v457_v20 = vmul.f32 %v5803_v27, %v10017_v4  ;;  %v458_v49 = vmul.f32 %v5805_v36, %v10017_v4  ;;  %v4743_v4 = vld [vmem:[%s9460_s0 + $0x190] sm:$0xff] }
 0x28c   :  { %10012 = vst [vmem:[#allocation75_spill] sm:$0xff] %v6192_v48  ;;  %v1463_v26 = vmul.f32 %v5843_v23, %v5536_v35  ;;  %v455_v61 = vmul.f32 %v5803_v27, %v10018_v34  ;;  %v1072_v58 = vadd.f32 %v944_v44, %v5898_v33  ;;  %v1980_v46 = vmul.f32 %v5851_v12, %v1728_v63  ;;  %v4744_v35 = vld [vmem:[%s9460_s0 + $0x188] sm:$0xff] }
 0x28d   :  { %10013 = vst [vmem:[#allocation178_spill] sm:$0xff] %v6195_v28  ;;  %v2234_v28 = vmax.f32 %v2106_v22, 0.0  ;;  %v456_v54 = vmul.f32 %v5805_v36, %v10018_v34  ;;  %v1073_v48 = vadd.f32 %v945_v32, %v5901_v10  ;;  %v1981_v53 = vmul.f32 %v5853_v16, %v1728_v63  ;;  %v4745_v10 = vld [vmem:[%s9460_s0 + $0x1c8] sm:$0xff]  ;;  %v10020_v34 = vld [vmem:[#allocation40_spill] sm:$0xff] }
 0x28e   :  { %10014 = vst [vmem:[#allocation179_spill] sm:$0xff] %v6200_v11  ;;  %1911 = vperm.xlu2 %4460, %v4743_v4   ;;  %1907 = vperm.xlu1 %4462, %v4744_v35   ;;  %v2235_v33 = vmax.f32 %v2107_v29, 0.0  ;;  %v6232_v44 = vadd.f32 %v5833_v37, %v477_v9  ;;  %v6235_v22 = vadd.f32 %v5835_v17, %v478_v6 }
 0x28f   :  { %10016 = vst [vmem:[#allocation37_spill] sm:$0xff] %v6209_v19  ;;  %1939 = vperm.xlu0 %4461, %v4745_v10   ;;  %2417 = vmatmul.f32.gmra.mxu0 %v2234_v28  ;;  %v1590_v63 = vadd.f32 %v1462_v7, %v1072_v58  ;;  %v6241_v32 = vadd.f32 %v5833_v37, %v457_v20  ;;  %v10024_v7 = vld [vmem:[#allocation86_spill] sm:$0xff] }
 0x290   :  { %v483_v4 = vmul.f32 %v5803_v27, %v10020_v34  ;;  %v484_v29 = vmul.f32 %v5805_v36, %v10020_v34  ;;  %2626 = vmatmul.f32.gmra.mxu1 %v2235_v33  ;;  %v6247_v9 = vpop.permute.xlu2 %1779  ;;  %v6249_v6 = vpop.permute.xlu1 %1739  ;;  %v1591_v35 = vadd.f32 %v1463_v26, %v1073_v48  ;;  %v6252_v41 = vadd.f32 %v5835_v17, %v458_v49  ;;  %v10027_v33 = vld [vmem:[#allocation41_spill] sm:$0xff] }
 0x291   :  { %10019 = vst [vmem:[#allocation38_spill] sm:$0xff] %v6241_v32  ;;  %v6255_v28 = vadd.f32 %v5833_v37, %v455_v61  ;;  %v946_v20 = vmul.f32 %v5829_v14, %v10024_v7  ;;  %v6259_v58 = vpop.permute.xlu0 %1771  ;;  %v2108_v10 = vadd.f32 %v1980_v46, %v1590_v63  ;;  %v6262_v34 = vadd.f32 %v5835_v17, %v456_v54  ;;  %v10028_v61 = vld [vmem:[#allocation42_spill] sm:$0xff] }
 0x292   :  { %10021 = vst [vmem:[#allocation39_spill] sm:$0xff] %v6247_v9  ;;  %v463_v32 = vmul.f32 %v5803_v27, %v10027_v33  ;;  %v947_v48 = vmul.f32 %v5831_v13, %v10024_v7  ;;  %v2109_v49 = vadd.f32 %v1981_v53, %v1591_v35  ;;  %v464_v26 = vmul.f32 %v5805_v36, %v10027_v33  ;;  %v10031_v7 = vld [vmem:[#allocation43_spill] sm:$0xff] }
 0x293   :  { %10022 = vst [vmem:[#allocation40_spill] sm:$0xff] %v6252_v41  ;;  %v461_v41 = vmul.f32 %v5803_v27, %v10028_v61  ;;  %v462_v9 = vmul.f32 %v5805_v36, %v10028_v61  ;;  %v1464_v46 = vmul.f32 %v5841_v31, %v5554_v43  ;;  %v6277_v54 = vadd.f32 %v5833_v37, %v483_v4  ;;  %v10032_v4 = vld [vmem:[#allocation44_spill] sm:$0xff] }
 0x294   :  { %10023 = vst [vmem:[#allocation180_spill] sm:$0xff] %v6255_v28  ;;  %v6280_v63 = vadd.f32 %v5835_v17, %v484_v29  ;;  %v489_v53 = vmul.f32 %v5803_v27, %v10031_v7  ;;  %v1465_v35 = vmul.f32 %v5843_v23, %v5554_v43  ;;  %v490_v33 = vmul.f32 %v5805_v36, %v10031_v7  ;;  %v4746_v43 = vld [vmem:[%s9460_s0 + $0x1a8] sm:$0xff]  ;;  %v10033_v7 = vld [vmem:[#allocation45_spill] sm:$0xff] }
 0x295   :  { %10025 = vst [vmem:[#allocation86_spill] sm:$0xff] %v6259_v58  ;;  %v1074_v61 = vadd.f32 %v946_v20, %v5906_v45  ;;  %v1982_v58 = vmul.f32 %v5851_v12, %v5962_v3  ;;  %v1075_v29 = vadd.f32 %v947_v48, %v5915_v50  ;;  %v4747_v45 = vld [vmem:[%s9460_s0 + $0x1a0] sm:$0xff]  ;;  %v2237_v20 = vmax.f32 %v2109_v49, 0.0 }
 0x296   :  { %10026 = vst [vmem:[#allocation181_spill] sm:$0xff] %v6262_v34  ;;  %v2236_v34 = vmax.f32 %v2108_v10, 0.0  ;;  %1923 = vperm.xlu2 %4460, %v4746_v43   ;;  %1919 = vperm.xlu1 %4462, %v4747_v45   ;;  %v470_v10 = vmul.f32 %v5805_v36, %v10032_v4  ;;  %v467_v50 = vmul.f32 %v5803_v27, %v10033_v7 }
 0x297   :  { %10029 = vst [vmem:[#allocation41_spill] sm:$0xff] %v6277_v54  ;;  %v469_v54 = vmul.f32 %v5803_v27, %v10032_v4  ;;  %v1592_v48 = vadd.f32 %v1464_v46, %v1074_v61  ;;  %v6310_v43 = vadd.f32 %v5833_v37, %v463_v32  ;;  %v6313_v28 = vadd.f32 %v5835_v17, %v464_v26  ;;  %v10037_v32 = vld [vmem:[#allocation78_spill] sm:$0xff] }
 0x298   :  { %10030 = vst [vmem:[#allocation42_spill] sm:$0xff] %v6280_v63  ;;  %v1983_v63 = vmul.f32 %v5853_v16, %v5962_v3  ;;  %v4748_v3 = vld [vmem:[%s9460_s0 + $0x1e0] sm:$0xff]  ;;  %2420 = vmatmul.f32.gmra.mxu0 %v2236_v34  ;;  %v6316_v49 = vadd.f32 %v5833_v37, %v461_v41  ;;  %2629 = vmatmul.f32.gmra.mxu1 %v2237_v20  ;;  %v6318_v4 = vpop.permute.xlu2 %1791  ;;  %v6320_v45 = vpop.permute.xlu1 %1751 }
 0x299   :  { %1951 = vperm.xlu0 %4461, %v4748_v3   ;;  %10034 = vst [vmem:[#allocation43_spill] sm:$0xff] %v6310_v43  ;;  %v1593_v19 = vadd.f32 %v1465_v35, %v1075_v29  ;;  %v6323_v11 = vadd.f32 %v5835_v17, %v462_v9  ;;  %v468_v34 = vmul.f32 %v5805_v36, %v10033_v7  ;;  %v6329_v26 = vpop.permute.xlu0 %1783 }
 0x29a   :  { %10035 = vst [vmem:[#allocation44_spill] sm:$0xff] %v6313_v28  ;;  %v948_v46 = vmul.f32 %v5829_v14, %v10037_v32  ;;  %v2110_v61 = vadd.f32 %v1982_v58, %v1592_v48  ;;  %v6332_v41 = vadd.f32 %v5833_v37, %v489_v53  ;;  %v6335_v20 = vadd.f32 %v5835_v17, %v490_v33  ;;  %v10041_v53 = vld [vmem:[#allocation46_spill] sm:$0xff] }
 0x29b   :  { %10036 = vst [vmem:[#allocation45_spill] sm:$0xff] %v6318_v4  ;;  %v949_v35 = vmul.f32 %v5831_v13, %v10037_v32  ;;  %v2111_v9 = vadd.f32 %v1983_v63, %v1593_v19  ;;  %v6340_v29 = vadd.f32 %v5833_v37, %v469_v54  ;;  %v6343_v7 = vadd.f32 %v5835_v17, %v470_v10  ;;  %v10042_v32 = vld [vmem:[#allocation47_spill] sm:$0xff] }
 0x29c   :  { %10038 = vst [vmem:[#allocation78_spill] sm:$0xff] %v6329_v26  ;;  %v6346_v3 = vadd.f32 %v5833_v37, %v467_v50  ;;  %v1466_v58 = vmul.f32 %v5841_v31, %v5570_v52  ;;  %v495_v33 = vmul.f32 %v5803_v27, %v10041_v53  ;;  %v496_v48 = vmul.f32 %v5805_v36, %v10041_v53 }
 0x29d   :  { %10039 = vst [vmem:[#allocation182_spill] sm:$0xff] %v6340_v29  ;;  %v475_v19 = vmul.f32 %v5803_v27, %v10042_v32  ;;  %v1467_v54 = vmul.f32 %v5843_v23, %v5570_v52  ;;  %v476_v63 = vmul.f32 %v5805_v36, %v10042_v32  ;;  %v1076_v10 = vadd.f32 %v948_v46, %v6036_v18  ;;  %v10043_v29 = vld [vmem:[#allocation48_spill] sm:$0xff]  ;;  %v4749_v52 = vld [vmem:[%s9460_s0 + $0x1c0] sm:$0xff]  ;;  %v4750_v18 = vld [vmem:[%s9460_s0 + $0x1b8] sm:$0xff] }
 0x29e   :  { %10040 = vst [vmem:[#allocation183_spill] sm:$0xff] %v6343_v7  ;;  %v1984_v50 = vmul.f32 %v5851_v12, %v6045_v0  ;;  %v2238_v7 = vmax.f32 %v2110_v61, 0.0  ;;  %v473_v28 = vmul.f32 %v5803_v27, %v10043_v29  ;;  %v1077_v53 = vadd.f32 %v949_v35, %v6039_v56  ;;  %1935 = vperm.xlu2 %4460, %v4749_v52  }
 0x29f   :  { %v1985_v43 = vmul.f32 %v5853_v16, %v6045_v0  ;;  %1931 = vperm.xlu1 %4462, %v4750_v18   ;;  %v2239_v46 = vmax.f32 %v2111_v9, 0.0  ;;  %v6375_v61 = vadd.f32 %v5835_v17, %v468_v34  ;;  %v474_v56 = vmul.f32 %v5805_v36, %v10043_v29  ;;  %v4751_v0 = vld [vmem:[%s9460_s0 + $0x1f8] sm:$0xff] }
 0x2a0   :  { %2423 = vmatmul.f32.gmra.mxu0 %v2238_v7  ;;  %v1594_v35 = vadd.f32 %v1466_v58, %v1076_v10  ;;  %v6383_v32 = vadd.f32 %v5833_v37, %v495_v33  ;;  %v6386_v52 = vadd.f32 %v5835_v17, %v496_v48  ;;  %v10046_v9 = vld [vmem:[#allocation49_spill] sm:$0xff]  ;;  %v6390_v18 = vpop.permute.xlu2 %1803  ;;  %v6392_v29 = vpop.permute.xlu1 %1763  ;;  %v1595_v4 = vadd.f32 %v1467_v54, %v1077_v53  ;;  %v10049_v58 = vld [vmem:[#allocation87_spill] sm:$0xff] }
 0x2a1   :  { %1963 = vperm.xlu0 %4461, %v4751_v0   ;;  %v501_v34 = vmul.f32 %v5803_v27, %v10046_v9  ;;  %2632 = vmatmul.f32.gmra.mxu1 %v2239_v46  ;;  %10047 = vst [vmem:[#allocation48_spill] sm:$0xff] %v6390_v18  ;;  %v6395_v26 = vadd.f32 %v5833_v37, %v475_v19  ;;  %v6401_v48 = vpop.permute.xlu0 %1795 }
 0x2a2   :  { %10044 = vst [vmem:[#allocation46_spill] sm:$0xff] %v6383_v32  ;;  %v502_v7 = vmul.f32 %v5805_v36, %v10046_v9  ;;  %v950_v33 = vmul.f32 %v5829_v14, %v10049_v58  ;;  %v2112_v10 = vadd.f32 %v1984_v50, %v1594_v35  ;;  %v6404_v0 = vadd.f32 %v5835_v17, %v476_v63  ;;  %v10054_v9 = vld [vmem:[#allocation50_spill] sm:$0xff] }
 0x2a3   :  { %10045 = vst [vmem:[#allocation47_spill] sm:$0xff] %v6386_v52  ;;  %v6407_v46 = vadd.f32 %v5833_v37, %v473_v28  ;;  %v951_v54 = vmul.f32 %v5831_v13, %v10049_v58  ;;  %v2113_v19 = vadd.f32 %v1985_v43, %v1595_v4  ;;  %v6412_v53 = vadd.f32 %v5835_v17, %v474_v56  ;;  %v10056_v28 = vld [vmem:[#allocation51_spill] sm:$0xff] }
 0x2a4   :  { %10048 = vst [vmem:[#allocation49_spill] sm:$0xff] %v6395_v26  ;;  %v481_v26 = vmul.f32 %v5803_v27, %v10054_v9  ;;  %v482_v18 = vmul.f32 %v5805_v36, %v10054_v9  ;;  %v1468_v63 = vmul.f32 %v5841_v31, %v5543_v25  ;;  %v6421_v50 = vadd.f32 %v5833_v37, %v501_v34  ;;  %v10058_v34 = vld [vmem:[#allocation52_spill] sm:$0xff]  ;;  %v10066_v52 = vld [vmem:[#allocation55_spill] sm:$0xff] }
 0x2a5   :  { %10050 = vst [vmem:[#allocation87_spill] sm:$0xff] %v6401_v48  ;;  %v479_v35 = vmul.f32 %v5803_v27, %v10056_v28  ;;  %v480_v43 = vmul.f32 %v5805_v36, %v10056_v28  ;;  %v1469_v4 = vmul.f32 %v5843_v23, %v5543_v25  ;;  %v6430_v56 = vadd.f32 %v5835_v17, %v502_v7  ;;  %v4752_v25 = vld [vmem:[%s9460_s0 + $0x1d8] sm:$0xff] }
 0x2a6   :  { %10051 = vst [vmem:[#allocation184_spill] sm:$0xff] %v6404_v0  ;;  %v1078_v58 = vadd.f32 %v950_v33, %v6015_v2  ;;  %v1986_v9 = vmul.f32 %v5851_v12, %v6249_v6  ;;  %v2240_v0 = vmax.f32 %v2112_v10, 0.0  ;;  %v1987_v28 = vmul.f32 %v5853_v16, %v6249_v6  ;;  %1947 = vperm.xlu2 %4460, %v4752_v25   ;;  %v4753_v2 = vld [vmem:[%s9460_s0 + $0x1d0] sm:$0xff]  ;;  %v10059_v10 = vld [vmem:[#allocation53_spill] sm:$0xff] }
 0x2a7   :  { %10052 = vst [vmem:[#allocation185_spill] sm:$0xff] %v6407_v46  ;;  %v1079_v46 = vadd.f32 %v951_v54, %v6018_v42  ;;  %1943 = vperm.xlu1 %4462, %v4753_v2   ;;  %v2241_v7 = vmax.f32 %v2113_v19, 0.0  ;;  %v6447_v33 = vadd.f32 %v5833_v37, %v481_v26  ;;  %v508_v42 = vmul.f32 %v5805_v36, %v10058_v34 }
 0x2a8   :  { %10053 = vst [vmem:[#allocation186_spill] sm:$0xff] %v6412_v53  ;;  %v507_v53 = vmul.f32 %v5803_v27, %v10058_v34  ;;  %v487_v6 = vmul.f32 %v5803_v27, %v10059_v10  ;;  %2426 = vmatmul.f32.gmra.mxu0 %v2240_v0  ;;  %v1596_v54 = vadd.f32 %v1468_v63, %v1078_v58  ;;  %v6462_v26 = vpop.permute.xlu2 %1815  ;;  %v6464_v19 = vpop.permute.xlu1 %1775  ;;  %v10061_v0 = vld [vmem:[#allocation54_spill] sm:$0xff] }
 0x2a9   :  { %10055 = vst [vmem:[#allocation50_spill] sm:$0xff] %v6421_v50  ;;  %v6457_v25 = vadd.f32 %v5833_v37, %v479_v35  ;;  %v6460_v2 = vadd.f32 %v5835_v17, %v480_v43  ;;  %2635 = vmatmul.f32.gmra.mxu1 %v2241_v7  ;;  %v1597_v34 = vadd.f32 %v1469_v4, %v1079_v46  ;;  %v6472_v35 = vpop.permute.xlu0 %1807 }
 0x2aa   :  { %10057 = vst [vmem:[#allocation51_spill] sm:$0xff] %v6430_v56  ;;  %v6454_v56 = vadd.f32 %v5835_v17, %v482_v18  ;;  %v488_v50 = vmul.f32 %v5805_v36, %v10059_v10  ;;  %v485_v63 = vmul.f32 %v5803_v27, %v10061_v0  ;;  %v10062_v18 = vld [vmem:[#allocation89_spill] sm:$0xff]  ;;  %v2114_v48 = vadd.f32 %v1986_v9, %v1596_v54  ;;  %v10067_v54 = vld [vmem:[#allocation56_spill] sm:$0xff] }
 0x2ab   :  { %10060 = vst [vmem:[#allocation52_spill] sm:$0xff] %v6462_v26  ;;  %v952_v58 = vmul.f32 %v5829_v14, %v10062_v18  ;;  %v6475_v43 = vadd.f32 %v5833_v37, %v507_v53  ;;  %v486_v7 = vmul.f32 %v5805_v36, %v10061_v0  ;;  %v953_v46 = vmul.f32 %v5831_v13, %v10062_v18 }
 0x2ac   :  { %10063 = vst [vmem:[#allocation53_spill] sm:$0xff] %v6472_v35  ;;  %v2115_v4 = vadd.f32 %v1987_v28, %v1597_v34  ;;  %v6482_v10 = vadd.f32 %v5835_v17, %v508_v42  ;;  %v6485_v26 = vadd.f32 %v5833_v37, %v487_v6  ;;  %v513_v35 = vmul.f32 %v5803_v27, %v10066_v52  ;;  %v10068_v6 = vld [vmem:[#allocation57_spill] sm:$0xff] }
 0x2ad   :  { %10064 = vst [vmem:[#allocation54_spill] sm:$0xff] %v6475_v43  ;;  %v1470_v53 = vmul.f32 %v5841_v31, %v5563_v47  ;;  %v514_v9 = vmul.f32 %v5805_v36, %v10066_v52  ;;  %v493_v0 = vmul.f32 %v5803_v27, %v10067_v54  ;;  %v494_v28 = vmul.f32 %v5805_v36, %v10067_v54 }
 0x2ae   :  { %10065 = vst [vmem:[#allocation89_spill] sm:$0xff] %v6482_v10  ;;  %v1471_v42 = vmul.f32 %v5843_v23, %v5563_v47  ;;  %v491_v34 = vmul.f32 %v5803_v27, %v10068_v6  ;;  %v1080_v18 = vadd.f32 %v952_v58, %v5918_v39  ;;  %v1988_v10 = vmul.f32 %v5851_v12, %v6033_v24  ;;  %v4754_v47 = vld [vmem:[%s9460_s0 + $0x1f0] sm:$0xff]  ;;  %v4755_v39 = vld [vmem:[%s9460_s0 + $0x1e8] sm:$0xff] }
 0x2af   :  { %v2242_v43 = vmax.f32 %v2114_v48, 0.0  ;;  %v492_v52 = vmul.f32 %v5805_v36, %v10068_v6  ;;  %v1081_v32 = vadd.f32 %v953_v46, %v5943_v30  ;;  %v1989_v54 = vmul.f32 %v5853_v16, %v6033_v24  ;;  %1959 = vperm.xlu2 %4460, %v4754_v47   ;;  %1955 = vperm.xlu1 %4462, %v4755_v39  }
 0x2b0   :  { %v2243_v58 = vmax.f32 %v2115_v4, 0.0  ;;  %v6516_v48 = vadd.f32 %v5835_v17, %v488_v50  ;;  %v6519_v6 = vadd.f32 %v5833_v37, %v485_v63  ;;  %v6522_v30 = vadd.f32 %v5835_v17, %v486_v7  ;;  %v6533_v50 = vpop.permute.xlu2 %1827  ;;  %v6535_v4 = vpop.permute.xlu1 %1787 }
 0x2b1   :  { %2429 = vmatmul.f32.gmra.mxu0 %v2242_v43  ;;  %v1598_v24 = vadd.f32 %v1470_v53, %v1080_v18  ;;  %v6525_v46 = vadd.f32 %v5833_v37, %v513_v35  ;;  %v6528_v47 = vadd.f32 %v5835_v17, %v514_v9  ;;  %v6531_v39 = vadd.f32 %v5833_v37, %v493_v0  ;;  %v10075_v35 = vld [vmem:[#allocation80_spill] sm:$0xff]  ;;  %v6545_v9 = vpop.permute.xlu0 %1819 }
 0x2b2   :  { %2638 = vmatmul.f32.gmra.mxu1 %v2243_v58  ;;  %10072 = vst [vmem:[#allocation187_spill] sm:$0xff] %v6533_v50  ;;  %v1599_v63 = vadd.f32 %v1471_v42, %v1081_v32  ;;  %v6538_v7 = vadd.f32 %v5835_v17, %v494_v28  ;;  %v6541_v43 = vadd.f32 %v5833_v37, %v491_v34  ;;  %v10078_v42 = vld [vmem:[#allocation58_spill] sm:$0xff]  ;;  %v10080_v50 = vld [vmem:[#allocation59_spill] sm:$0xff] }
 0x2b3   :  { %10069 = vst [vmem:[#allocation55_spill] sm:$0xff] %v6525_v46  ;;  %v954_v53 = vmul.f32 %v5829_v14, %v10075_v35  ;;  %v2116_v18 = vadd.f32 %v1988_v10, %v1598_v24  ;;  %v6548_v0 = vadd.f32 %v5835_v17, %v492_v52  ;;  %v955_v58 = vmul.f32 %v5831_v13, %v10075_v35  ;;  %v10081_v35 = vld [vmem:[#allocation60_spill] sm:$0xff] }
 0x2b4   :  { %10070 = vst [vmem:[#allocation56_spill] sm:$0xff] %v6528_v47  ;;  %v1000_v32 = vmul.f32 %v5829_v14, %v5453_v51  ;;  %v2117_v28 = vadd.f32 %v1989_v54, %v1599_v63  ;;  %v6556_v34 = vmul.f32 %v5803_v27, %v10078_v42  ;;  %v499_v47 = vmul.f32 %v5803_v27, %v10080_v50 }
 0x2b5   :  { %10071 = vst [vmem:[#allocation57_spill] sm:$0xff] %v6531_v39  ;;  %v1001_v10 = vmul.f32 %v5831_v13, %v5453_v51  ;;  %v1472_v52 = vmul.f32 %v5841_v31, %v5579_v38  ;;  %v500_v24 = vmul.f32 %v5805_v36, %v10080_v50  ;;  %v497_v46 = vmul.f32 %v5803_v27, %v10081_v35 }
 0x2b6   :  { %10073 = vst [vmem:[#allocation188_spill] sm:$0xff] %v6535_v4  ;;  %v1473_v54 = vmul.f32 %v5843_v23, %v5579_v38  ;;  %v1518_v63 = vmul.f32 %v5841_v31, %v5635_v5  ;;  %v1519_v51 = vmul.f32 %v5843_v23, %v5635_v5  ;;  %v2244_v4 = vmax.f32 %v2116_v18, 0.0 }
 0x2b7   :  { %10074 = vst [vmem:[#allocation189_spill] sm:$0xff] %v6538_v7  ;;  %v1083_v50 = vadd.f32 %v955_v58, %v6071_v57  ;;  %v1128_v7 = vadd.f32 %v1000_v32, %v6232_v44  ;;  %v1991_v39 = vmul.f32 %v5853_v16, %v6124_v59  ;;  %v2245_v38 = vmax.f32 %v2117_v28, 0.0  ;;  %v10083_v44 = vld [vmem:[#allocation90_spill] sm:$0xff] }
 0x2b8   :  { %10076 = vst [vmem:[#allocation80_spill] sm:$0xff] %v6545_v9  ;;  %v1990_v9 = vmul.f32 %v5851_v12, %v6124_v59  ;;  %v1129_v5 = vadd.f32 %v1001_v10, %v6235_v22  ;;  %v6591_v57 = vadd.f32 %v5833_v37, %v499_v47  ;;  %v956_v18 = vmul.f32 %v5829_v14, %v10083_v44  ;;  %v1840_v59 = vpop.permute.xlu2 %1839  ;;  %v6595_v58 = vpop.permute.xlu1 %1799 }
 0x2b9   :  { %10077 = vst [vmem:[#allocation190_spill] sm:$0xff] %v6548_v0  ;;  %v6583_v0 = vmul.f32 %v5805_v36, %v10078_v42  ;;  %2432 = vmatmul.f32.gmra.mxu0 %v2244_v4  ;;  %v1646_v32 = vadd.f32 %v1518_v63, %v1128_v7  ;;  %v1601_v28 = vadd.f32 %v1473_v54, %v1083_v50  ;;  %v10085_v7 = vld [vmem:[#allocation2_spill] sm:$0xff] }
 0x2ba   :  { %10079 = vst [vmem:[#allocation58_spill] sm:$0xff] %v6556_v34  ;;  %v1082_v34 = vadd.f32 %v954_v53, %v6068_v8  ;;  %v6587_v8 = vmul.f32 %v5805_v36, %v10081_v35  ;;  %2641 = vmatmul.f32.gmra.mxu1 %v2245_v38  ;;  %v2036_v42 = vmul.f32 %v5851_v12, %v1840_v59 }
 0x2bb   :  { %10082 = vst [vmem:[#allocation59_spill] sm:$0xff] %v6583_v0  ;;  %v2037_v35 = vmul.f32 %v5853_v16, %v1840_v59  ;;  %v6599_v0 = vpop.permute.xlu0 %1831  ;;  %v1647_v4 = vadd.f32 %v1519_v51, %v1129_v5  ;;  %v6602_v47 = vadd.f32 %v5835_v17, %v500_v24  ;;  %v957_v10 = vmul.f32 %v5831_v13, %v10083_v44 }
 0x2bc   :  { %v1600_v53 = vadd.f32 %v1472_v52, %v1082_v34  ;;  %10084 = vst [vmem:[#allocation60_spill] sm:$0xff] %v6599_v0  ;;  %v6605_v34 = vadd.f32 %v5833_v37, %v497_v46  ;;  %v2119_v52 = vadd.f32 %v1991_v39, %v1601_v28  ;;  %v1002_v54 = vmul.f32 %v5829_v14, %v10085_v7  ;;  %v10086_v28 = vld [vmem:[#allocation62_spill] sm:$0xff] }
 0x2bd   :  { %v1474_v63 = vmul.f32 %v5841_v31, %v5550_v40  ;;  %v2164_v50 = vadd.f32 %v2036_v42, %v1646_v32  ;;  %v2165_v38 = vadd.f32 %v2037_v35, %v1647_v4  ;;  %v1003_v24 = vmul.f32 %v5831_v13, %v10085_v7 }
 0x2be   :  { %v2118_v22 = vadd.f32 %v1990_v9, %v1600_v53  ;;  %v1084_v9 = vadd.f32 %v956_v18, %v6054_v60  ;;  %v1475_v46 = vmul.f32 %v5843_v23, %v5550_v40  ;;  %v1520_v51 = vmul.f32 %v5841_v31, %v5651_v15 }
 0x2bf   :  { %v1992_v39 = vmul.f32 %v5851_v12, %v6320_v45  ;;  %v2292_v53 = vmax.f32 %v2164_v50, 0.0  ;;  %v2293_v44 = vmax.f32 %v2165_v38, 0.0  ;;  %v1085_v59 = vadd.f32 %v957_v10, %v6059_v55 }
 0x2c0   :  { %v2246_v5 = vmax.f32 %v2118_v22, 0.0  ;;  %v1521_v60 = vmul.f32 %v5843_v23, %v5651_v15  ;;  %v1993_v18 = vmul.f32 %v5853_v16, %v6320_v45  ;;  %v2247_v32 = vmax.f32 %v2119_v52, 0.0  ;;  %v6633_v15 = vpop.permute.xlu1 %1811  ;;  %v10088_v45 = vld [vmem:[#allocation92_spill] sm:$0xff] }
 0x2c1   :  { %v505_v40 = vmul.f32 %v5803_v27, %v10086_v28  ;;  %v1130_v42 = vadd.f32 %v1002_v54, %v6457_v25  ;;  %2504 = vmatmul.f32.vlgmr.msra.gmra.mxu2 %v2292_v53  ;;  %v1602_v35 = vadd.f32 %v1474_v63, %v1084_v9  ;;  %v506_v22 = vmul.f32 %v5805_v36, %v10086_v28  ;;  %v10089_v9 = vld [vmem:[#allocation63_spill] sm:$0xff] }
 0x2c2   :  { %2435 = vmatmul.f32.gmra.mxu0 %v2246_v5  ;;  %v1131_v55 = vadd.f32 %v1003_v24, %v6460_v2  ;;  %2644 = vmatmul.f32.gmra.mxu1 %v2247_v32  ;;  %10087 = vst [vmem:[#allocation90_spill] sm:$0xff] %v6633_v15  ;;  %v1603_v4 = vadd.f32 %v1475_v46, %v1085_v59  ;;  %v10090_v5 = vld [vmem:[#allocation65_spill] sm:$0xff] }
 0x2c3   :  { %2713 = vmatmul.f32.vlgmr.msra.gmra.mxu3 %v2293_v44  ;;  %v958_v10 = vmul.f32 %v5829_v14, %v10088_v45  ;;  %v959_v52 = vmul.f32 %v5831_v13, %v10088_v45  ;;  %v1844_v25 = vpop.permute.xlu0 %1843  ;;  %v2120_v7 = vadd.f32 %v1992_v39, %v1602_v35  ;;  %v1648_v54 = vadd.f32 %v1520_v51, %v1130_v42  ;;  %v10091_v44 = vld [vmem:[#allocation138_spill] sm:$0xff]  ;;  %v10092_v32 = vld [vmem:[#allocation5_spill] sm:$0xff]  ;;  %v10093_v42 = vld [vmem:[#allocation11_spill] sm:$0xff] }
 0x2c4   :  { %v2038_v63 = vmul.f32 %v5851_v12, %v1844_v25  ;;  %v2039_v50 = vmul.f32 %v5853_v16, %v1844_v25  ;;  %v2121_v38 = vadd.f32 %v1993_v18, %v1603_v4  ;;  %v1649_v2 = vadd.f32 %v1521_v60, %v1131_v55  ;;  %v10094_v55 = vld [vmem:[#allocation84_spill] sm:$0xff] }
 0x2c5   :  { %v503_v24 = vmul.f32 %v5803_v27, %v10089_v9  ;;  %v504_v46 = vmul.f32 %v5805_v36, %v10089_v9  ;;  %v511_v53 = vmul.f32 %v5803_v27, %v10090_v5  ;;  %v1476_v59 = vmul.f32 %v5841_v31, %v10091_v44 }
 0x2c6   :  { %v512_v51 = vmul.f32 %v5805_v36, %v10090_v5  ;;  %v1477_v39 = vmul.f32 %v5843_v23, %v10091_v44  ;;  %v2166_v18 = vadd.f32 %v2038_v63, %v1648_v54  ;;  %v2167_v60 = vadd.f32 %v2039_v50, %v1649_v2  ;;  %v10097_v50 = vld [vmem:[#allocation82_spill] sm:$0xff] }
 0x2c7   :  { %v1086_v28 = vadd.f32 %v958_v10, %v10092_v32  ;;  %v1087_v35 = vadd.f32 %v959_v52, %v10093_v42  ;;  %v1994_v4 = vmul.f32 %v5851_v12, %v10094_v55  ;;  %v2248_v45 = vmax.f32 %v2120_v7, 0.0  ;;  %v10096_v10 = vld [vmem:[#allocation66_spill] sm:$0xff]  ;;  %v10105_v42 = vld [vmem:[#allocation21_spill] sm:$0xff] }
 0x2c8   :  { %v1995_v25 = vmul.f32 %v5853_v16, %v10094_v55  ;;  %v2294_v9 = vmax.f32 %v2166_v18, 0.0  ;;  %v2249_v0 = vmax.f32 %v2121_v38, 0.0  ;;  %v2295_v15 = vmax.f32 %v2167_v60, 0.0  ;;  %v6672_v38 = vpop.permute.xlu1 %1823 }
 0x2c9   :  { %v6661_v5 = vadd.f32 %v5835_v17, %v6587_v8  ;;  %v6664_v54 = vadd.f32 %v5833_v37, %v505_v40  ;;  %v509_v52 = vmul.f32 %v5803_v27, %v10096_v10  ;;  %v1604_v63 = vadd.f32 %v1476_v59, %v1086_v28  ;;  %10098 = vst [vmem:[#allocation62_spill] sm:$0xff] %v6672_v38 }
 0x2ca   :  { %2438 = vmatmul.f32.gmra.mxu0 %v2248_v45  ;;  %v960_v7 = vmul.f32 %v5829_v14, %v10097_v50  ;;  %v961_v2 = vmul.f32 %v5831_v13, %v10097_v50  ;;  %2507 = vmatmul.f32.gmra.mxu2 %v2294_v9  ;;  %v1605_v8 = vadd.f32 %v1477_v39, %v1087_v35  ;;  %v10106_v35 = vld [vmem:[#allocation23_spill] sm:$0xff]  ;;  %v10108_v9 = vld [vmem:[#allocation85_spill] sm:$0xff] }
 0x2cb   :  { %10095 = vst [vmem:[#allocation2_spill] sm:$0xff] %v6664_v54  ;;  %2647 = vmatmul.f32.gmra.mxu1 %v2249_v0  ;;  %v6675_v44 = vadd.f32 %v5835_v17, %v506_v22  ;;  %v6678_v40 = vadd.f32 %v5833_v37, %v503_v24  ;;  %v6681_v18 = vadd.f32 %v5835_v17, %v504_v46  ;;  %v10103_v24 = vld [vmem:[#allocation68_spill] sm:$0xff]  ;;  %v10104_v46 = vld [vmem:[#allocation69_spill] sm:$0xff] }
 0x2cc   :  { %2716 = vmatmul.f32.gmra.mxu3 %v2295_v15  ;;  %v2122_v59 = vadd.f32 %v1994_v4, %v1604_v63  ;;  %v6684_v60 = vadd.f32 %v5833_v37, %v511_v53  ;;  %v6687_v32 = vadd.f32 %v5835_v17, %v512_v51  ;;  %v510_v0 = vmul.f32 %v5805_v36, %v10096_v10  ;;  %v10107_v4 = vld [vmem:[#allocation24_spill] sm:$0xff]  ;;  %v10133_v54 = vld [vmem:[#allocation153_spill] sm:$0xff] }
 0x2cd   :  { %10099 = vst [vmem:[#allocation92_spill] sm:$0xff] %v6675_v44  ;;  %v2123_v39 = vadd.f32 %v1995_v25, %v1605_v8  ;;  %v6692_v22 = vadd.f32 %v5833_v37, %v509_v52  ;;  %v517_v28 = vmul.f32 %v5803_v27, %v10103_v24  ;;  %v515_v15 = vmul.f32 %v5803_v27, %v10104_v46  ;;  %v10109_v8 = vld [vmem:[#allocation88_spill] sm:$0xff] }
 0x2ce   :  { %10100 = vst [vmem:[#allocation63_spill] sm:$0xff] %v6684_v60  ;;  %v1478_v53 = vmul.f32 %v5841_v31, %v10105_v42  ;;  %v516_v51 = vmul.f32 %v5805_v36, %v10104_v46  ;;  %v1088_v55 = vadd.f32 %v960_v7, %v10106_v35  ;;  %v1089_v45 = vadd.f32 %v961_v2, %v10107_v4 }
 0x2cf   :  { %10101 = vst [vmem:[#allocation65_spill] sm:$0xff] %v6687_v32  ;;  %v1479_v25 = vmul.f32 %v5843_v23, %v10105_v42  ;;  %v966_v10 = vmul.f32 %v5829_v14, %v10108_v9  ;;  %v967_v52 = vmul.f32 %v5831_v13, %v10108_v9  ;;  %v1996_v63 = vmul.f32 %v5851_v12, %v6189_v21 }
 0x2d0   :  { %10102 = vst [vmem:[#allocation138_spill] sm:$0xff] %v6692_v22  ;;  %v2250_v50 = vmax.f32 %v2122_v59, 0.0  ;;  %v972_v46 = vmul.f32 %v5829_v14, %v10109_v8  ;;  %v973_v7 = vmul.f32 %v5831_v13, %v10109_v8  ;;  %v1997_v2 = vmul.f32 %v5853_v16, %v6189_v21  ;;  %v10114_v8 = vld [vmem:[#allocation93_spill] sm:$0xff]  ;;  %v1852_v22 = vpop.permute.xlu2 %1851 }
 0x2d1   :  { %v2251_v42 = vmax.f32 %v2123_v39, 0.0  ;;  %v6719_v35 = vadd.f32 %v5835_v17, %v510_v0  ;;  %v6723_v4 = vmul.f32 %v5805_v36, %v10103_v24  ;;  %v6726_v9 = vadd.f32 %v5833_v37, %v517_v28  ;;  %v6735_v0 = vpop.permute.xlu1 %1835  ;;  %v10118_v36 = vld [vmem:[#allocation37_spill] sm:$0xff] }
 0x2d2   :  { %2441 = vmatmul.f32.gmra.mxu0 %v2250_v50  ;;  %v1606_v59 = vadd.f32 %v1478_v53, %v1088_v55  ;;  %v6729_v27 = vadd.f32 %v5833_v37, %v515_v15  ;;  %v962_v38 = vmul.f32 %v5829_v14, %v10114_v8  ;;  %v963_v21 = vmul.f32 %v5831_v13, %v10114_v8  ;;  %v10117_v55 = vld [vmem:[#allocation179_spill] sm:$0xff] }
 0x2d3   :  { %10110 = vst [vmem:[#allocation5_spill] sm:$0xff] %v6719_v35  ;;  %2650 = vmatmul.f32.gmra.mxu1 %v2251_v42  ;;  %v1607_v39 = vadd.f32 %v1479_v25, %v1089_v45  ;;  %v6738_v24 = vadd.f32 %v5835_v17, %v516_v51  ;;  %v6741_v28 = vadd.f32 %v966_v10, %v6172_v62  ;;  %v10119_v42 = vld [vmem:[#allocation109_spill] sm:$0xff]  ;;  %v10120_v25 = vld [vmem:[#allocation91_spill] sm:$0xff]  ;;  %v10121_v10 = vld [vmem:[#allocation136_spill] sm:$0xff] }
 0x2d4   :  { %10111 = vst [vmem:[#allocation11_spill] sm:$0xff] %v6723_v4  ;;  %v6744_v53 = vadd.f32 %v967_v52, %v6175_v1  ;;  %v2124_v15 = vadd.f32 %v1996_v63, %v1606_v59  ;;  %v6747_v50 = vadd.f32 %v972_v46, %v10117_v55  ;;  %v6750_v37 = vadd.f32 %v973_v7, %v10118_v36  ;;  %v10122_v63 = vld [vmem:[#allocation18_spill] sm:$0xff] }
 0x2d5   :  { %10112 = vst [vmem:[#allocation84_spill] sm:$0xff] %v6726_v9  ;;  %v1004_v8 = vmul.f32 %v5829_v14, %v10119_v42  ;;  %v2125_v45 = vadd.f32 %v1997_v2, %v1607_v39  ;;  %v978_v51 = vmul.f32 %v5829_v14, %v10120_v25  ;;  %v979_v62 = vmul.f32 %v5831_v13, %v10120_v25  ;;  %v10123_v36 = vld [vmem:[#allocation22_spill] sm:$0xff] }
 0x2d6   :  { %10113 = vst [vmem:[#allocation66_spill] sm:$0xff] %v6729_v27  ;;  %v1005_v1 = vmul.f32 %v5831_v13, %v10119_v42  ;;  %v1480_v52 = vmul.f32 %v5841_v31, %v10121_v10  ;;  %v1090_v46 = vadd.f32 %v962_v38, %v10122_v63  ;;  %v1091_v7 = vadd.f32 %v963_v21, %v10123_v36  ;;  %v10124_v2 = vld [vmem:[#allocation146_spill] sm:$0xff]  ;;  %v10126_v36 = vld [vmem:[#allocation180_spill] sm:$0xff] }
 0x2d7   :  { %10115 = vst [vmem:[#allocation82_spill] sm:$0xff] %v6735_v0  ;;  %v1481_v59 = vmul.f32 %v5843_v23, %v10121_v10  ;;  %v1522_v39 = vmul.f32 %v5841_v31, %v10124_v2  ;;  %v10125_v55 = vld [vmem:[#allocation94_spill] sm:$0xff]  ;;  %v1523_v25 = vmul.f32 %v5843_v23, %v10124_v2  ;;  %v1998_v42 = vmul.f32 %v5851_v12, %v6392_v29 }
 0x2d8   :  { %10116 = vst [vmem:[#allocation68_spill] sm:$0xff] %v6738_v24  ;;  %v964_v0 = vmul.f32 %v5829_v14, %v10125_v55  ;;  %v2252_v9 = vmax.f32 %v2124_v15, 0.0  ;;  %v965_v38 = vmul.f32 %v5831_v13, %v10125_v55  ;;  %v1132_v21 = vadd.f32 %v1004_v8, %v6447_v33  ;;  %v10127_v24 = vld [vmem:[#allocation111_spill] sm:$0xff] }
 0x2d9   :  { %v1999_v10 = vmul.f32 %v5853_v16, %v6392_v29  ;;  %v2253_v63 = vmax.f32 %v2125_v45, 0.0  ;;  %v6780_v17 = vadd.f32 %v978_v51, %v10126_v36  ;;  %v1133_v4 = vadd.f32 %v1005_v1, %v6454_v56  ;;  %v10128_v15 = vld [vmem:[#allocation19_spill] sm:$0xff]  ;;  %v1848_v8 = vpop.permute.xlu1 %1847  ;;  %v10129_v36 = vld [vmem:[#allocation72_spill] sm:$0xff] }
 0x2da   :  { %v1006_v2 = vmul.f32 %v5829_v14, %v10127_v24  ;;  %2444 = vmatmul.f32.gmra.mxu0 %v2252_v9  ;;  %v1608_v27 = vadd.f32 %v1480_v52, %v1090_v46  ;;  %v984_v32 = vmul.f32 %v5829_v14, %v10128_v15  ;;  %v1007_v33 = vmul.f32 %v5831_v13, %v10127_v24  ;;  %v10130_v9 = vld [vmem:[#allocation7_spill] sm:$0xff]  ;;  %v10132_v24 = vld [vmem:[#allocation41_spill] sm:$0xff] }
 0x2db   :  { %2653 = vmatmul.f32.gmra.mxu1 %v2253_v63  ;;  %v1650_v29 = vadd.f32 %v1522_v39, %v1132_v21  ;;  %v1609_v45 = vadd.f32 %v1481_v59, %v1091_v7  ;;  %v2040_v51 = vmul.f32 %v5851_v12, %v1848_v8  ;;  %v2041_v55 = vmul.f32 %v5853_v16, %v1848_v8  ;;  %v10131_v46 = vld [vmem:[#allocation139_spill] sm:$0xff]  ;;  %v10134_v21 = vld [vmem:[#allocation42_spill] sm:$0xff] }
 0x2dc   :  { %v2126_v56 = vadd.f32 %v1998_v42, %v1608_v27  ;;  %v1651_v1 = vadd.f32 %v1523_v25, %v1133_v4  ;;  %v1092_v60 = vadd.f32 %v964_v0, %v10129_v36  ;;  %v1093_v52 = vadd.f32 %v965_v38, %v10130_v9  ;;  %v10135_v0 = vld [vmem:[#allocation33_spill] sm:$0xff] }
 0x2dd   :  { %v1482_v35 = vmul.f32 %v5841_v31, %v10131_v46  ;;  %v2127_v44 = vadd.f32 %v1999_v10, %v1609_v45  ;;  %v1134_v63 = vadd.f32 %v1006_v2, %v10132_v24  ;;  %v1524_v7 = vmul.f32 %v5841_v31, %v10133_v54  ;;  %v10137_v24 = vld [vmem:[#allocation181_spill] sm:$0xff] }
 0x2de   :  { %v2168_v59 = vadd.f32 %v2040_v51, %v1650_v29  ;;  %v2169_v39 = vadd.f32 %v2041_v55, %v1651_v1  ;;  %v1135_v8 = vadd.f32 %v1007_v33, %v10134_v21  ;;  %v1483_v27 = vmul.f32 %v5843_v23, %v10131_v46  ;;  %v10136_v55 = vld [vmem:[#allocation102_spill] sm:$0xff] }
 0x2df   :  { %v1525_v4 = vmul.f32 %v5843_v23, %v10133_v54  ;;  %v2000_v25 = vmul.f32 %v5851_v12, %v10135_v0  ;;  %v2042_v42 = vmul.f32 %v5851_v12, %v1852_v22  ;;  %v2254_v38 = vmax.f32 %v2126_v56, 0.0 }
 0x2e0   :  { %v2296_v10 = vmax.f32 %v2168_v59, 0.0  ;;  %v2297_v2 = vmax.f32 %v2169_v39, 0.0  ;;  %v2001_v29 = vmul.f32 %v5853_v16, %v10135_v0  ;;  %v2043_v45 = vmul.f32 %v5853_v16, %v1852_v22  ;;  %v10140_v0 = vld [vmem:[#allocation157_spill] sm:$0xff] }
 0x2e1   :  { %v2255_v33 = vmax.f32 %v2127_v44, 0.0  ;;  %v1610_v51 = vadd.f32 %v1482_v35, %v1092_v60  ;;  %v1008_v1 = vmul.f32 %v5829_v14, %v10136_v55  ;;  %v1009_v54 = vmul.f32 %v5831_v13, %v10136_v55  ;;  %v10138_v60 = vld [vmem:[#allocation95_spill] sm:$0xff]  ;;  %v6823_v35 = vld [vmem:[%s9464_s4] ss:$0 sm:$0xff] }
 0x2e2   :  { %2447 = vmatmul.f32.gmra.mxu0 %v2254_v38  ;;  %2510 = vmatmul.f32.gmra.mxu2 %v2296_v10  ;;  %v1652_v36 = vadd.f32 %v1524_v7, %v1134_v63  ;;  %v1611_v9 = vadd.f32 %v1483_v27, %v1093_v52  ;;  %v1653_v46 = vadd.f32 %v1525_v4, %v1135_v8  ;;  %v10139_v27 = vld [vmem:[#allocation27_spill] sm:$0xff] }
 0x2e3   :  { %2656 = vmatmul.f32.gmra.mxu1 %v2255_v33  ;;  %2719 = vmatmul.f32.gmra.mxu3 %v2297_v2  ;;  %v2128_v56 = vadd.f32 %v2000_v25, %v1610_v51  ;;  %v6814_v59 = vadd.f32 %v979_v62, %v10137_v24  ;;  %v985_v44 = vmul.f32 %v5831_v13, %v10128_v15  ;;  %v1856_v62 = vpop.permute.xlu0 %1855 }
 0x2e4   :  { %v968_v22 = vmul.f32 %v5829_v14, %v10138_v60  ;;  %v2170_v63 = vadd.f32 %v2042_v42, %v1652_v36  ;;  %v6826_v7 = vadd.f32 %v984_v32, %v6316_v49  ;;  %v969_v52 = vmul.f32 %v5831_v13, %v10138_v60  ;;  %v10141_v42 = vld [vmem:[#allocation112_spill] sm:$0xff]  ;;  %v2409_v10 = vpop.f32.mrf.mxu0 }
 0x2e5   :  { %v2129_v39 = vadd.f32 %v2001_v29, %v1611_v9  ;;  %v2171_v21 = vadd.f32 %v2043_v45, %v1653_v46  ;;  %v1136_v15 = vadd.f32 %v1008_v1, %v6519_v6  ;;  %v1137_v8 = vadd.f32 %v1009_v54, %v6522_v30  ;;  %v10142_v6 = vld [vmem:[#allocation86_spill] sm:$0xff]  ;;  %v2618_v1 = vpop.f32.mrf.mxu1 }
 0x2e6   :  { %v1484_v4 = vmul.f32 %v5841_v31, %v10139_v27  ;;  %v1526_v25 = vmul.f32 %v5841_v31, %v10140_v0  ;;  %v1010_v49 = vmul.f32 %v5829_v14, %v10141_v42  ;;  %v1485_v32 = vmul.f32 %v5843_v23, %v10139_v27 }
 0x2e7   :  { %v1527_v38 = vmul.f32 %v5843_v23, %v10140_v0  ;;  %v2256_v2 = vmax.f32 %v2128_v56, 0.0  ;;  %v2002_v30 = vmul.f32 %v5851_v12, %v10142_v6  ;;  %v2044_v29 = vmul.f32 %v5851_v12, %v1856_v62 }
 0x2e8   :  { %v2410_v45 = vadd.f32 %v6823_v35, %v2409_v10  ;;  %v2298_v33 = vmax.f32 %v2170_v63, 0.0  ;;  %v2003_v51 = vmul.f32 %v5853_v16, %v10142_v6  ;;  %v2045_v55 = vmul.f32 %v5853_v16, %v1856_v62  ;;  %v10144_v10 = vld [vmem:[#allocation83_spill] sm:$0xff]  ;;  %v1860_v6 = vpop.permute.xlu1 %1859 }
 0x2e9   :  { %v2257_v54 = vmax.f32 %v2129_v39, 0.0  ;;  %v2299_v36 = vmax.f32 %v2171_v21, 0.0  ;;  %v1612_v56 = vadd.f32 %v1484_v4, %v6741_v28  ;;  %v1654_v46 = vadd.f32 %v1526_v25, %v1136_v15  ;;  %v10143_v39 = vld [vmem:[#allocation30_spill] sm:$0xff]  ;;  %v10145_v25 = vld [vmem:[#allocation96_spill] sm:$0xff] }
 0x2ea   :  { %v6849_v9 = vadd.f32 %v2618_v1, %v2410_v45  ;;  %2450 = vmatmul.f32.gmra.mxu0 %v2256_v2  ;;  %2513 = vmatmul.f32.gmra.mxu2 %v2298_v33  ;;  %v1011_v24 = vmul.f32 %v5831_v13, %v10141_v42  ;;  %v1613_v60 = vadd.f32 %v1485_v32, %v6744_v53  ;;  %v10148_v1 = vld [vmem:[#allocation114_spill] sm:$0xff] }
 0x2eb   :  { %2659 = vmatmul.f32.gmra.mxu1 %v2257_v54  ;;  %2722 = vmatmul.f32.gmra.mxu3 %v2299_v36  ;;  %v1655_v63 = vadd.f32 %v1527_v38, %v1137_v8  ;;  %v6856_v62 = vadd.f32 %v985_v44, %v6323_v11  ;;  %v1096_v21 = vadd.f32 %v968_v22, %v10143_v39  ;;  %v10146_v11 = vld [vmem:[#allocation137_spill] sm:$0xff] }
 0x2ec   :  { %v2130_v27 = vadd.f32 %v2002_v30, %v1612_v56  ;;  %v2172_v0 = vadd.f32 %v2044_v29, %v1654_v46  ;;  %v1097_v2 = vadd.f32 %v969_v52, %v10144_v10  ;;  %v2811_v28 = vsel %vm2810_vm0, %v6849_v9, -inf  ;;  %v10147_v22 = vld [vmem:[#allocation149_spill] sm:$0xff] }
 0x2ed   :  { %v2131_v15 = vadd.f32 %v2003_v51, %v1613_v60  ;;  %v2173_v4 = vadd.f32 %v2045_v55, %v1655_v63  ;;  %v970_v42 = vmul.f32 %v5829_v14, %v10145_v25  ;;  %v971_v53 = vmul.f32 %v5831_v13, %v10145_v25  ;;  %2812 = vmax.xlane.f32.xlu1 %v2811_v28  ;;  %v10149_v63 = vld [vmem:[#allocation25_spill] sm:$0xff]  ;;  %v10151_v28 = vld [vmem:[#allocation10_spill] sm:$0xff] }
 0x2ee   :  { %v1486_v44 = vmul.f32 %v5841_v31, %v10146_v11  ;;  %v1528_v8 = vmul.f32 %v5841_v31, %v10147_v22  ;;  %v1138_v52 = vadd.f32 %v1010_v49, %v6485_v26  ;;  %v1139_v32 = vadd.f32 %v1011_v24, %v6516_v48  ;;  %v10150_v10 = vld [vmem:[#allocation9_spill] sm:$0xff] }
 0x2ef   :  { %v1487_v38 = vmul.f32 %v5843_v23, %v10146_v11  ;;  %v1529_v30 = vmul.f32 %v5843_v23, %v10147_v22  ;;  %v2004_v29 = vmul.f32 %v5851_v12, %v6464_v19  ;;  %v2046_v45 = vmul.f32 %v5851_v12, %v1860_v6  ;;  %v10152_v11 = vld [vmem:[#allocation105_spill] sm:$0xff]  ;;  %v10153_v22 = vld [vmem:[#allocation140_spill] sm:$0xff] }
 0x2f0   :  { %v2258_v33 = vmax.f32 %v2130_v27, 0.0  ;;  %v2300_v51 = vmax.f32 %v2172_v0, 0.0  ;;  %v2005_v55 = vmul.f32 %v5853_v16, %v6464_v19  ;;  %v2047_v26 = vmul.f32 %v5853_v16, %v1860_v6 }
 0x2f1   :  { %v2259_v49 = vmax.f32 %v2131_v15, 0.0  ;;  %v2301_v48 = vmax.f32 %v2173_v4, 0.0  ;;  %v1012_v54 = vmul.f32 %v5829_v14, %v10148_v1  ;;  %v1614_v36 = vadd.f32 %v1486_v44, %v1096_v21  ;;  %v1864_v15 = vpop.permute.xlu2 %1863 }
 0x2f2   :  { %2453 = vmatmul.f32.gmra.mxu0 %v2258_v33  ;;  %2516 = vmatmul.f32.gmra.mxu2 %v2300_v51  ;;  %v1656_v56 = vadd.f32 %v1528_v8, %v1138_v52  ;;  %v1013_v46 = vmul.f32 %v5831_v13, %v10148_v1  ;;  %v1615_v24 = vadd.f32 %v1487_v38, %v1097_v2  ;;  %v10154_v52 = vld [vmem:[#allocation155_spill] sm:$0xff] }
 0x2f3   :  { %2662 = vmatmul.f32.gmra.mxu1 %v2259_v49  ;;  %2725 = vmatmul.f32.gmra.mxu3 %v2301_v48  ;;  %v1657_v60 = vadd.f32 %v1529_v30, %v1139_v32  ;;  %v990_v19 = vmul.f32 %v5829_v14, %v10149_v63  ;;  %v991_v39 = vmul.f32 %v5831_v13, %v10149_v63  ;;  %v10155_v30 = vld [vmem:[#allocation39_spill] sm:$0xff]  ;;  %v10156_v63 = vld [vmem:[#allocation97_spill] sm:$0xff] }
 0x2f4   :  { %v2132_v27 = vadd.f32 %v2004_v29, %v1614_v36  ;;  %v2174_v0 = vadd.f32 %v2046_v45, %v1656_v56  ;;  %v1098_v6 = vadd.f32 %v970_v42, %v10150_v10  ;;  %v1099_v21 = vadd.f32 %v971_v53, %v10151_v28 }
 0x2f5   :  { %v2133_v4 = vadd.f32 %v2005_v55, %v1615_v24  ;;  %v2175_v25 = vadd.f32 %v2047_v26, %v1657_v60  ;;  %v1014_v44 = vmul.f32 %v5829_v14, %v10152_v11  ;;  %v1140_v2 = vadd.f32 %v1012_v54, %v6332_v41  ;;  %v2412_v33 = vpop.f32.mrf.mxu0  ;;  %v2621_v54 = vpop.f32.mrf.mxu1 }
 0x2f6   :  { %v1488_v8 = vmul.f32 %v5841_v31, %v10153_v22  ;;  %v1530_v32 = vmul.f32 %v5841_v31, %v10154_v52  ;;  %v1141_v38 = vadd.f32 %v1013_v46, %v6335_v20  ;;  %v1489_v42 = vmul.f32 %v5843_v23, %v10153_v22 }
 0x2f7   :  { %v1531_v53 = vmul.f32 %v5843_v23, %v10154_v52  ;;  %v2006_v29 = vmul.f32 %v5851_v12, %v10155_v30  ;;  %v2007_v41 = vmul.f32 %v5853_v16, %v10155_v30  ;;  %v2048_v45 = vmul.f32 %v5851_v12, %v1864_v15  ;;  %v10158_v52 = vld [vmem:[#allocation160_spill] sm:$0xff] }
 0x2f8   :  { %v2260_v51 = vmax.f32 %v2132_v27, 0.0  ;;  %v2302_v55 = vmax.f32 %v2174_v0, 0.0  ;;  %v2049_v26 = vmul.f32 %v5853_v16, %v1864_v15  ;;  %v2413_v20 = vadd.f32 %v6823_v35, %v2412_v33  ;;  %v10157_v0 = vld [vmem:[#allocation142_spill] sm:$0xff] }
 0x2f9   :  { %v2261_v49 = vmax.f32 %v2133_v4, 0.0  ;;  %v2303_v48 = vmax.f32 %v2175_v25, 0.0  ;;  %v1015_v1 = vmul.f32 %v5831_v13, %v10152_v11  ;;  %v1616_v36 = vadd.f32 %v1488_v8, %v1098_v6  ;;  %v1868_v25 = vpop.permute.xlu0 %1867 }
 0x2fa   :  { %2456 = vmatmul.f32.gmra.mxu0 %v2260_v51  ;;  %2519 = vmatmul.f32.gmra.mxu2 %v2302_v55  ;;  %v1658_v56 = vadd.f32 %v1530_v32, %v1140_v2  ;;  %v6913_v46 = vadd.f32 %v2621_v54, %v2413_v20  ;;  %v1617_v24 = vadd.f32 %v1489_v42, %v1099_v21  ;;  %v10161_v51 = vld [vmem:[#allocation115_spill] sm:$0xff] }
 0x2fb   :  { %2665 = vmatmul.f32.gmra.mxu1 %v2261_v49  ;;  %2728 = vmatmul.f32.gmra.mxu3 %v2303_v48  ;;  %v1659_v60 = vadd.f32 %v1531_v53, %v1141_v38  ;;  %v974_v27 = vmul.f32 %v5829_v14, %v10156_v63  ;;  %v1490_v10 = vmul.f32 %v5841_v31, %v10157_v0  ;;  %v10159_v38 = vld [vmem:[#allocation190_spill] sm:$0xff] }
 0x2fc   :  { %v2134_v28 = vadd.f32 %v2006_v29, %v1616_v36  ;;  %v2176_v15 = vadd.f32 %v2048_v45, %v1658_v56  ;;  %v975_v4 = vmul.f32 %v5831_v13, %v10156_v63  ;;  %v2814_v6 = vsel %vm2810_vm0, %v6913_v46, -inf  ;;  %v10160_v29 = vld [vmem:[#allocation78_spill] sm:$0xff] }
 0x2fd   :  { %v2135_v11 = vadd.f32 %v2007_v41, %v1617_v24  ;;  %v2177_v2 = vadd.f32 %v2049_v26, %v1659_v60  ;;  %v6924_v21 = vadd.f32 %v990_v19, %v6346_v3  ;;  %v6927_v22 = vadd.f32 %v991_v39, %v6375_v61  ;;  %2815 = vmax.xlane.f32.xlu2 %v2814_v6  ;;  %v10163_v36 = vld [vmem:[#allocation178_spill] sm:$0xff]  ;;  %v10164_v24 = vld [vmem:[#allocation31_spill] sm:$0xff] }
 0x2fe   :  { %v1142_v8 = vadd.f32 %v1014_v44, %v6541_v43  ;;  %v1532_v32 = vmul.f32 %v5841_v31, %v10158_v52  ;;  %v1143_v42 = vadd.f32 %v1015_v1, %v10159_v38  ;;  %v1491_v53 = vmul.f32 %v5843_v23, %v10157_v0  ;;  %v10162_v1 = vld [vmem:[#allocation75_spill] sm:$0xff]  ;;  %v10165_v0 = vld [vmem:[#allocation98_spill] sm:$0xff]  ;;  %v10170_v38 = vld [vmem:[#allocation117_spill] sm:$0xff] }
 0x2ff   :  { %v1533_v30 = vmul.f32 %v5843_v23, %v10158_v52  ;;  %v2008_v3 = vmul.f32 %v5851_v12, %v10160_v29  ;;  %v2050_v61 = vmul.f32 %v5851_v12, %v1868_v25  ;;  %v2262_v19 = vmax.f32 %v2134_v28, 0.0  ;;  %v10169_v52 = vld [vmem:[#allocation151_spill] sm:$0xff] }
 0x300   :  { %v2304_v39 = vmax.f32 %v2176_v15, 0.0  ;;  %v1618_v43 = vadd.f32 %v1490_v10, %v6747_v50  ;;  %v2009_v44 = vmul.f32 %v5853_v16, %v10160_v29  ;;  %v2051_v41 = vmul.f32 %v5853_v16, %v1868_v25  ;;  %v1872_v15 = vpop.permute.xlu1 %1871 }
 0x301   :  { %v2263_v45 = vmax.f32 %v2135_v11, 0.0  ;;  %v2305_v33 = vmax.f32 %v2177_v2, 0.0  ;;  %v1016_v55 = vmul.f32 %v5829_v14, %v10161_v51  ;;  %v1017_v26 = vmul.f32 %v5831_v13, %v10161_v51  ;;  %v10167_v2 = vld [vmem:[#allocation189_spill] sm:$0xff] }
 0x302   :  { %2459 = vmatmul.f32.gmra.mxu0 %v2262_v19  ;;  %2522 = vmatmul.f32.gmra.mxu2 %v2304_v39  ;;  %v1660_v20 = vadd.f32 %v1532_v32, %v1142_v8  ;;  %v2136_v49 = vadd.f32 %v2008_v3, %v1618_v43  ;;  %v1619_v50 = vadd.f32 %v1491_v53, %v6750_v37  ;;  %v10166_v37 = vld [vmem:[#allocation57_spill] sm:$0xff]  ;;  %v10168_v8 = vld [vmem:[#allocation15_spill] sm:$0xff] }
 0x303   :  { %2668 = vmatmul.f32.gmra.mxu1 %v2263_v45  ;;  %2731 = vmatmul.f32.gmra.mxu3 %v2305_v33  ;;  %v1661_v48 = vadd.f32 %v1533_v30, %v1143_v42  ;;  %v1102_v54 = vadd.f32 %v974_v27, %v10162_v1  ;;  %v1103_v56 = vadd.f32 %v975_v4, %v10163_v36  ;;  %v10172_v36 = vld [vmem:[#allocation13_spill] sm:$0xff] }
 0x304   :  { %v6953_v60 = vmul.f32 %v5829_v14, %v10164_v24  ;;  %v2178_v63 = vadd.f32 %v2050_v61, %v1660_v20  ;;  %v976_v10 = vmul.f32 %v5829_v14, %v10165_v0  ;;  %v977_v28 = vmul.f32 %v5831_v13, %v10165_v0  ;;  %v2415_v29 = vpop.f32.mrf.mxu0  ;;  %v10171_v61 = vld [vmem:[#allocation188_spill] sm:$0xff]  ;;  %v10173_v0 = vld [vmem:[#allocation14_spill] sm:$0xff] }
 0x305   :  { %v2137_v25 = vadd.f32 %v2009_v44, %v1619_v50  ;;  %v2179_v6 = vadd.f32 %v2051_v41, %v1661_v48  ;;  %v1144_v11 = vadd.f32 %v1016_v55, %v10166_v37  ;;  %v1145_v27 = vadd.f32 %v1017_v26, %v10167_v2  ;;  %v2624_v44 = vpop.f32.mrf.mxu1 }
 0x306   :  { %v1492_v4 = vmul.f32 %v5841_v31, %v10168_v8  ;;  %v1534_v32 = vmul.f32 %v5841_v31, %v10169_v52  ;;  %v1018_v42 = vmul.f32 %v5829_v14, %v10170_v38  ;;  %v1493_v53 = vmul.f32 %v5843_v23, %v10168_v8  ;;  %v1876_v8 = vpop.permute.xlu2 %1875 }
 0x307   :  { %v1535_v30 = vmul.f32 %v5843_v23, %v10169_v52  ;;  %v2264_v3 = vmax.f32 %v2136_v49, 0.0  ;;  %v2010_v19 = vmul.f32 %v5851_v12, %v10171_v61  ;;  %v2052_v39 = vmul.f32 %v5851_v12, %v1872_v15 }
 0x308   :  { %v2416_v43 = vadd.f32 %v6823_v35, %v2415_v29  ;;  %v2306_v41 = vmax.f32 %v2178_v63, 0.0  ;;  %v2011_v45 = vmul.f32 %v5853_v16, %v10171_v61  ;;  %v2053_v33 = vmul.f32 %v5853_v16, %v1872_v15  ;;  %v10179_v61 = vld [vmem:[#allocation45_spill] sm:$0xff] }
 0x309   :  { %v2265_v51 = vmax.f32 %v2137_v25, 0.0  ;;  %v2307_v55 = vmax.f32 %v2179_v6, 0.0  ;;  %v1620_v20 = vadd.f32 %v1492_v4, %v1102_v54  ;;  %v1662_v49 = vadd.f32 %v1534_v32, %v1144_v11  ;;  %v10174_v6 = vld [vmem:[#allocation108_spill] sm:$0xff]  ;;  %v10176_v32 = vld [vmem:[#allocation141_spill] sm:$0xff] }
 0x30a   :  { %v6978_v26 = vadd.f32 %v2624_v44, %v2416_v43  ;;  %2462 = vmatmul.f32.gmra.mxu0 %v2264_v3  ;;  %2525 = vmatmul.f32.gmra.mxu2 %v2306_v41  ;;  %v1019_v50 = vmul.f32 %v5831_v13, %v10170_v38  ;;  %v1621_v48 = vadd.f32 %v1493_v53, %v1103_v56  ;;  %v10175_v56 = vld [vmem:[#allocation46_spill] sm:$0xff]  ;;  %v10178_v53 = vld [vmem:[#allocation47_spill] sm:$0xff] }
 0x30b   :  { %2671 = vmatmul.f32.gmra.mxu1 %v2265_v51  ;;  %2734 = vmatmul.f32.gmra.mxu3 %v2307_v55  ;;  %v1663_v1 = vadd.f32 %v1535_v30, %v1145_v27  ;;  %v1104_v63 = vadd.f32 %v976_v10, %v10172_v36  ;;  %v1105_v37 = vadd.f32 %v977_v28, %v10173_v0  ;;  %v10177_v28 = vld [vmem:[#allocation158_spill] sm:$0xff] }
 0x30c   :  { %v2138_v15 = vadd.f32 %v2010_v19, %v1620_v20  ;;  %v2180_v25 = vadd.f32 %v2052_v39, %v1662_v49  ;;  %v1020_v2 = vmul.f32 %v5829_v14, %v10174_v6  ;;  %v2817_v54 = vsel %vm2810_vm0, %v6978_v26, -inf  ;;  %v2418_v39 = vpop.f32.mrf.mxu0 }
 0x30d   :  { %v2139_v11 = vadd.f32 %v2011_v45, %v1621_v48  ;;  %v2181_v4 = vadd.f32 %v2053_v33, %v1663_v1  ;;  %v1021_v52 = vmul.f32 %v5831_v13, %v10174_v6  ;;  %v1146_v27 = vadd.f32 %v1018_v42, %v10175_v56  ;;  %2818 = vmax.xlane.f32.xlu0 %v2817_v54  ;;  %v2627_v44 = vpop.f32.mrf.mxu1  ;;  %v10180_v1 = vld [vmem:[#allocation144_spill] sm:$0xff]  ;;  %v1880_v56 = vpop.permute.xlu0 %1879 }
 0x30e   :  { %v1494_v10 = vmul.f32 %v5841_v31, %v10176_v32  ;;  %v1536_v38 = vmul.f32 %v5841_v31, %v10177_v28  ;;  %v1147_v30 = vadd.f32 %v1019_v50, %v10178_v53  ;;  %v1495_v29 = vmul.f32 %v5843_v23, %v10176_v32 }
 0x30f   :  { %v1537_v3 = vmul.f32 %v5843_v23, %v10177_v28  ;;  %v2012_v19 = vmul.f32 %v5851_v12, %v10179_v61  ;;  %v2054_v42 = vmul.f32 %v5851_v12, %v1876_v8  ;;  %v2419_v43 = vadd.f32 %v6823_v35, %v2418_v39 }
 0x310   :  { %v2266_v41 = vmax.f32 %v2138_v15, 0.0  ;;  %v2308_v45 = vmax.f32 %v2180_v25, 0.0  ;;  %v2013_v33 = vmul.f32 %v5853_v16, %v10179_v61  ;;  %v2055_v51 = vmul.f32 %v5853_v16, %v1876_v8 }
 0x311   :  { %v2267_v55 = vmax.f32 %v2139_v11, 0.0  ;;  %v2309_v20 = vmax.f32 %v2181_v4, 0.0  ;;  %v7007_v49 = vadd.f32 %v2627_v44, %v2419_v43  ;;  %v1622_v50 = vadd.f32 %v1494_v10, %v1104_v63  ;;  %v10181_v11 = vld [vmem:[#allocation99_spill] sm:$0xff]  ;;  %v10182_v10 = vld [vmem:[#allocation118_spill] sm:$0xff] }
 0x312   :  { %2465 = vmatmul.f32.gmra.mxu0 %v2266_v41  ;;  %2528 = vmatmul.f32.gmra.mxu2 %v2308_v45  ;;  %v1664_v48 = vadd.f32 %v1536_v38, %v1146_v27  ;;  %v1496_v36 = vmul.f32 %v5841_v31, %v10180_v1  ;;  %v1623_v0 = vadd.f32 %v1495_v29, %v1105_v37  ;;  %v10183_v38 = vld [vmem:[#allocation163_spill] sm:$0xff] }
 0x313   :  { %2674 = vmatmul.f32.gmra.mxu1 %v2267_v55  ;;  %2737 = vmatmul.f32.gmra.mxu3 %v2309_v20  ;;  %v1665_v15 = vadd.f32 %v1537_v3, %v1147_v30  ;;  %v7013_v25 = vmul.f32 %v5831_v13, %v10164_v24  ;;  %v2820_v6 = vsel %vm2810_vm0, %v7007_v49, -inf  ;;  %v2140_v8 = vadd.f32 %v2012_v19, %v1622_v50  ;;  %v10184_v3 = vld [vmem:[#allocation87_spill] sm:$0xff] }
 0x314   :  { %v2182_v54 = vadd.f32 %v2054_v42, %v1664_v48  ;;  %v980_v63 = vmul.f32 %v5829_v14, %v10181_v11  ;;  %v981_v4 = vmul.f32 %v5831_v13, %v10181_v11  ;;  %2821 = vmax.xlane.f32.xlu2 %v2820_v6  ;;  %v2141_v27 = vadd.f32 %v2013_v33, %v1623_v0  ;;  %v10185_v48 = vld [vmem:[#allocation38_spill] sm:$0xff] }
 0x315   :  { %v2183_v37 = vadd.f32 %v2055_v51, %v1665_v15  ;;  %v1148_v32 = vadd.f32 %v1020_v2, %v6605_v34  ;;  %v1149_v24 = vadd.f32 %v1021_v52, %v6661_v5  ;;  %v1022_v28 = vmul.f32 %v5829_v14, %v10182_v10  ;;  %v2421_v19 = vpop.f32.mrf.mxu0  ;;  %v2630_v52 = vpop.f32.mrf.mxu1 }
 0x316   :  { %v1538_v53 = vmul.f32 %v5841_v31, %v10183_v38  ;;  %v1497_v30 = vmul.f32 %v5843_v23, %v10180_v1  ;;  %v1539_v29 = vmul.f32 %v5843_v23, %v10183_v38  ;;  %v2014_v61 = vmul.f32 %v5851_v12, %v10184_v3  ;;  %v10190_v38 = vld [vmem:[#allocation120_spill] sm:$0xff] }
 0x317   :  { %v1624_v34 = vadd.f32 %v1496_v36, %v6780_v17  ;;  %v2056_v5 = vmul.f32 %v5851_v12, %v1880_v56  ;;  %v2422_v2 = vadd.f32 %v6823_v35, %v2421_v19  ;;  %v2268_v39 = vmax.f32 %v2140_v8, 0.0  ;;  %v10186_v36 = vld [vmem:[#allocation40_spill] sm:$0xff] }
 0x318   :  { %v2310_v42 = vmax.f32 %v2182_v54, 0.0  ;;  %v2015_v43 = vmul.f32 %v5853_v16, %v10184_v3  ;;  %v2057_v44 = vmul.f32 %v5853_v16, %v1880_v56  ;;  %v2269_v41 = vmax.f32 %v2141_v27, 0.0  ;;  %v10187_v8 = vld [vmem:[#allocation100_spill] sm:$0xff]  ;;  %v1884_v56 = vpop.permute.xlu1 %1883 }
 0x319   :  { %v2311_v45 = vmax.f32 %v2183_v37, 0.0  ;;  %v1023_v33 = vmul.f32 %v5831_v13, %v10182_v10  ;;  %v7041_v51 = vadd.f32 %v2630_v52, %v2422_v2  ;;  %v1666_v17 = vadd.f32 %v1538_v53, %v1148_v32  ;;  %v10188_v32 = vld [vmem:[#allocation20_spill] sm:$0xff] }
 0x31a   :  { %2468 = vmatmul.f32.gmra.mxu0 %v2268_v39  ;;  %2531 = vmatmul.f32.gmra.mxu2 %v2310_v42  ;;  %v2142_v55 = vadd.f32 %v2014_v61, %v1624_v34  ;;  %v1625_v20 = vadd.f32 %v1497_v30, %v6814_v59  ;;  %v1667_v50 = vadd.f32 %v1539_v29, %v1149_v24  ;;  %v10189_v24 = vld [vmem:[#allocation154_spill] sm:$0xff] }
 0x31b   :  { %2677 = vmatmul.f32.gmra.mxu1 %v2269_v41  ;;  %2740 = vmatmul.f32.gmra.mxu3 %v2311_v45  ;;  %v1108_v1 = vadd.f32 %v980_v63, %v10185_v48  ;;  %v1109_v0 = vadd.f32 %v981_v4, %v10186_v36  ;;  %v2823_v15 = vsel %vm2810_vm0, %v7041_v51, -inf  ;;  %v2184_v6 = vadd.f32 %v2056_v5, %v1666_v17  ;;  %v10191_v17 = vld [vmem:[#allocation16_spill] sm:$0xff]  ;;  %v10192_v48 = vld [vmem:[#allocation17_spill] sm:$0xff] }
 0x31c   :  { %v982_v54 = vmul.f32 %v5829_v14, %v10187_v8  ;;  %v983_v11 = vmul.f32 %v5831_v13, %v10187_v8  ;;  %2824 = vmax.xlane.f32.xlu1 %v2823_v15  ;;  %v2143_v27 = vadd.f32 %v2015_v43, %v1625_v20  ;;  %v2185_v37 = vadd.f32 %v2057_v44, %v1667_v50  ;;  %v10193_v15 = vld [vmem:[#allocation110_spill] sm:$0xff] }
 0x31d   :  { %v1150_v59 = vadd.f32 %v1022_v28, %v6591_v57  ;;  %v1151_v63 = vadd.f32 %v1023_v33, %v6602_v47  ;;  %v1498_v4 = vmul.f32 %v5841_v31, %v10188_v32  ;;  %v1540_v10 = vmul.f32 %v5841_v31, %v10189_v24  ;;  %v2424_v3 = vpop.f32.mrf.mxu0 }
 0x31e   :  { %v1024_v53 = vmul.f32 %v5829_v14, %v10190_v38  ;;  %v1499_v30 = vmul.f32 %v5843_v23, %v10188_v32  ;;  %v1541_v29 = vmul.f32 %v5843_v23, %v10189_v24  ;;  %v2270_v61 = vmax.f32 %v2142_v55, 0.0  ;;  %v2633_v19 = vpop.f32.mrf.mxu1 }
 0x31f   :  { %v2016_v57 = vmul.f32 %v5851_v12, %v6595_v58  ;;  %v2058_v47 = vmul.f32 %v5851_v12, %v1884_v56  ;;  %v2425_v28 = vadd.f32 %v6823_v35, %v2424_v3  ;;  %v2312_v34 = vmax.f32 %v2184_v6, 0.0  ;;  %v1888_v6 = vpop.permute.xlu2 %1887 }
 0x320   :  { %v2017_v5 = vmul.f32 %v5853_v16, %v6595_v58  ;;  %v2059_v2 = vmul.f32 %v5853_v16, %v1884_v56  ;;  %v2271_v52 = vmax.f32 %v2143_v27, 0.0  ;;  %v2313_v39 = vmax.f32 %v2185_v37, 0.0  ;;  %v10194_v27 = vld [vmem:[#allocation50_spill] sm:$0xff] }
 0x321   :  { %v7071_v42 = vadd.f32 %v2633_v19, %v2425_v28  ;;  %v1626_v43 = vadd.f32 %v1498_v4, %v1108_v1  ;;  %v1668_v44 = vadd.f32 %v1540_v10, %v1150_v59  ;;  %v1025_v41 = vmul.f32 %v5831_v13, %v10190_v38  ;;  %v10197_v4 = vld [vmem:[#allocation51_spill] sm:$0xff]  ;;  %v10198_v38 = vld [vmem:[#allocation48_spill] sm:$0xff] }
 0x322   :  { %2471 = vmatmul.f32.gmra.mxu0 %v2270_v61  ;;  %2534 = vmatmul.f32.gmra.mxu2 %v2312_v34  ;;  %v1627_v45 = vadd.f32 %v1499_v30, %v1109_v0  ;;  %v1669_v33 = vadd.f32 %v1541_v29, %v1151_v63  ;;  %v1110_v55 = vadd.f32 %v982_v54, %v10191_v17  ;;  %v10195_v54 = vld [vmem:[#allocation143_spill] sm:$0xff]  ;;  %v10196_v63 = vld [vmem:[#allocation161_spill] sm:$0xff] }
 0x323   :  { %2680 = vmatmul.f32.gmra.mxu1 %v2271_v52  ;;  %2743 = vmatmul.f32.gmra.mxu3 %v2313_v39  ;;  %v2826_v58 = vsel %vm2810_vm0, %v7071_v42, -inf  ;;  %v2144_v20 = vadd.f32 %v2016_v57, %v1626_v43  ;;  %v2186_v50 = vadd.f32 %v2058_v47, %v1668_v44  ;;  %v1111_v36 = vadd.f32 %v983_v11, %v10192_v48  ;;  %v10199_v43 = vld [vmem:[#allocation147_spill] sm:$0xff]  ;;  %v10201_v48 = vld [vmem:[#allocation101_spill] sm:$0xff] }
 0x324   :  { %v1026_v1 = vmul.f32 %v5829_v14, %v10193_v15  ;;  %2827 = vmax.xlane.f32.xlu2 %v2826_v58  ;;  %v2145_v8 = vadd.f32 %v2017_v5, %v1627_v45  ;;  %v2187_v56 = vadd.f32 %v2059_v2, %v1669_v33  ;;  %v1027_v0 = vmul.f32 %v5831_v13, %v10193_v15  ;;  %v10200_v33 = vld [vmem:[#allocation185_spill] sm:$0xff] }
 0x325   :  { %v1152_v37 = vadd.f32 %v1024_v53, %v10194_v27  ;;  %v1500_v59 = vmul.f32 %v5841_v31, %v10195_v54  ;;  %v1542_v32 = vmul.f32 %v5841_v31, %v10196_v63  ;;  %v1153_v11 = vadd.f32 %v1025_v41, %v10197_v4  ;;  %v2427_v29 = vpop.f32.mrf.mxu0  ;;  %v10202_v27 = vld [vmem:[#allocation121_spill] sm:$0xff] }
 0x326   :  { %v1501_v24 = vmul.f32 %v5843_v23, %v10195_v54  ;;  %v1543_v10 = vmul.f32 %v5843_v23, %v10196_v63  ;;  %v2018_v30 = vmul.f32 %v5851_v12, %v10198_v38  ;;  %v2060_v53 = vmul.f32 %v5851_v12, %v1888_v6  ;;  %v2636_v61 = vpop.f32.mrf.mxu1  ;;  %v10203_v54 = vld [vmem:[#allocation166_spill] sm:$0xff] }
 0x327   :  { %v2428_v3 = vadd.f32 %v6823_v35, %v2427_v29  ;;  %v2272_v57 = vmax.f32 %v2144_v20, 0.0  ;;  %v2314_v47 = vmax.f32 %v2186_v50, 0.0  ;;  %v2019_v28 = vmul.f32 %v5853_v16, %v10198_v38 }
 0x328   :  { %v2061_v19 = vmul.f32 %v5853_v16, %v1888_v6  ;;  %v2273_v34 = vmax.f32 %v2145_v8, 0.0  ;;  %v2315_v5 = vmax.f32 %v2187_v56, 0.0  ;;  %v1628_v52 = vadd.f32 %v1500_v59, %v1110_v55  ;;  %v1892_v6 = vpop.permute.xlu0 %1891 }
 0x329   :  { %v7100_v2 = vadd.f32 %v2636_v61, %v2428_v3  ;;  %v1670_v39 = vadd.f32 %v1542_v32, %v1152_v37  ;;  %v1502_v44 = vmul.f32 %v5841_v31, %v10199_v43  ;;  %v1629_v41 = vadd.f32 %v1501_v24, %v1111_v36 }
 0x32a   :  { %2474 = vmatmul.f32.gmra.mxu0 %v2272_v57  ;;  %2537 = vmatmul.f32.gmra.mxu2 %v2314_v47  ;;  %v1671_v45 = vadd.f32 %v1543_v10, %v1153_v11  ;;  %v7106_v17 = vadd.f32 %v6953_v60, %v10200_v33  ;;  %v2146_v20 = vadd.f32 %v2018_v30, %v1628_v52  ;;  %v10204_v11 = vld [vmem:[#allocation53_spill] sm:$0xff]  ;;  %v10206_v52 = vld [vmem:[#allocation44_spill] sm:$0xff] }
 0x32b   :  { %2683 = vmatmul.f32.gmra.mxu1 %v2273_v34  ;;  %2746 = vmatmul.f32.gmra.mxu3 %v2315_v5  ;;  %v2829_v58 = vsel %vm2810_vm0, %v7100_v2, -inf  ;;  %v2188_v50 = vadd.f32 %v2060_v53, %v1670_v39  ;;  %v986_v55 = vmul.f32 %v5829_v14, %v10201_v48  ;;  %v987_v15 = vmul.f32 %v5831_v13, %v10201_v48  ;;  %v10205_v34 = vld [vmem:[#allocation43_spill] sm:$0xff] }
 0x32c   :  { %2830 = vmax.xlane.f32.xlu0 %v2829_v58  ;;  %v2147_v8 = vadd.f32 %v2019_v28, %v1629_v41  ;;  %v2189_v36 = vadd.f32 %v2061_v19, %v1671_v45  ;;  %v1154_v56 = vadd.f32 %v1026_v1, %v6678_v40  ;;  %v1155_v60 = vadd.f32 %v1027_v0, %v6681_v18  ;;  %v10207_v41 = vld [vmem:[#allocation103_spill] sm:$0xff]  ;;  %v1896_v58 = vpop.permute.xlu1 %1895 }
 0x32d   :  { %v1028_v37 = vmul.f32 %v5829_v14, %v10202_v27  ;;  %v1544_v59 = vmul.f32 %v5841_v31, %v10203_v54  ;;  %v1503_v63 = vmul.f32 %v5843_v23, %v10199_v43  ;;  %v1630_v32 = vadd.f32 %v1502_v44, %v6826_v7 }
 0x32e   :  { %v1545_v4 = vmul.f32 %v5843_v23, %v10203_v54  ;;  %v2020_v24 = vmul.f32 %v5851_v12, %v10204_v11  ;;  %v2430_v40 = vpop.f32.mrf.mxu0  ;;  %v2062_v18 = vmul.f32 %v5851_v12, %v1892_v6  ;;  %v2274_v10 = vmax.f32 %v2146_v20, 0.0 }
 0x32f   :  { %v2431_v1 = vadd.f32 %v6823_v35, %v2430_v40  ;;  %v2639_v0 = vpop.f32.mrf.mxu1  ;;  %v2316_v38 = vmax.f32 %v2188_v50, 0.0  ;;  %v2021_v30 = vmul.f32 %v5853_v16, %v10204_v11  ;;  %v2063_v29 = vmul.f32 %v5853_v16, %v1892_v6  ;;  %v10208_v50 = vld [vmem:[#allocation2_spill] sm:$0xff]  ;;  %v10209_v6 = vld [vmem:[#allocation92_spill] sm:$0xff] }
 0x330   :  { %v2275_v7 = vmax.f32 %v2147_v8, 0.0  ;;  %v2317_v53 = vmax.f32 %v2189_v36, 0.0  ;;  %v1029_v3 = vmul.f32 %v5831_v13, %v10202_v27  ;;  %v1672_v57 = vadd.f32 %v1544_v59, %v1154_v56  ;;  %v10210_v8 = vld [vmem:[#allocation26_spill] sm:$0xff]  ;;  %v10211_v36 = vld [vmem:[#allocation156_spill] sm:$0xff] }
 0x331   :  { %v7134_v61 = vadd.f32 %v2639_v0, %v2431_v1  ;;  %v1631_v47 = vadd.f32 %v1503_v63, %v6856_v62  ;;  %v2148_v28 = vadd.f32 %v2020_v24, %v1630_v32  ;;  %v1673_v19 = vadd.f32 %v1545_v4, %v1155_v60  ;;  %v10212_v60 = vld [vmem:[#allocation123_spill] sm:$0xff] }
 0x332   :  { %2477 = vmatmul.f32.gmra.mxu0 %v2274_v10  ;;  %2540 = vmatmul.f32.gmra.mxu2 %v2316_v38  ;;  %v1114_v5 = vadd.f32 %v986_v55, %v10205_v34  ;;  %v1115_v39 = vadd.f32 %v987_v15, %v10206_v52  ;;  %v2190_v44 = vadd.f32 %v2062_v18, %v1672_v57 }
 0x333   :  { %2686 = vmatmul.f32.gmra.mxu1 %v2275_v7  ;;  %2749 = vmatmul.f32.gmra.mxu3 %v2317_v53  ;;  %v2832_v43 = vsel %vm2810_vm0, %v7134_v61, -inf  ;;  %v988_v45 = vmul.f32 %v5829_v14, %v10207_v41  ;;  %v989_v33 = vmul.f32 %v5831_v13, %v10207_v41  ;;  %v2149_v62 = vadd.f32 %v2021_v30, %v1631_v47  ;;  %v10214_v47 = vld [vmem:[#allocation28_spill] sm:$0xff] }
 0x334   :  { %2833 = vmax.xlane.f32.xlu1 %v2832_v43  ;;  %v2191_v20 = vadd.f32 %v2063_v29, %v1673_v19  ;;  %v1156_v48 = vadd.f32 %v1028_v37, %v10208_v50  ;;  %v1157_v55 = vadd.f32 %v1029_v3, %v10209_v6  ;;  %v1504_v15 = vmul.f32 %v5841_v31, %v10210_v8  ;;  %v10213_v37 = vld [vmem:[#allocation90_spill] sm:$0xff] }
 0x335   :  { %v1546_v56 = vmul.f32 %v5841_v31, %v10211_v36  ;;  %v1030_v27 = vmul.f32 %v5829_v14, %v10212_v60  ;;  %v1505_v54 = vmul.f32 %v5843_v23, %v10210_v8  ;;  %v1547_v59 = vmul.f32 %v5843_v23, %v10211_v36  ;;  %v10217_v50 = vld [vmem:[#allocation54_spill] sm:$0xff] }
 0x336   :  { %v2433_v63 = vpop.f32.mrf.mxu0  ;;  %v2276_v32 = vmax.f32 %v2148_v28, 0.0  ;;  %v2022_v4 = vmul.f32 %v5851_v12, %v10213_v37  ;;  %v2064_v11 = vmul.f32 %v5851_v12, %v1896_v58  ;;  %v2318_v18 = vmax.f32 %v2190_v44, 0.0  ;;  %v10216_v44 = vld [vmem:[#allocation113_spill] sm:$0xff] }
 0x337   :  { %v2434_v24 = vadd.f32 %v6823_v35, %v2433_v63  ;;  %v2642_v40 = vpop.f32.mrf.mxu1  ;;  %v2023_v1 = vmul.f32 %v5853_v16, %v10213_v37  ;;  %v2065_v0 = vmul.f32 %v5853_v16, %v1896_v58  ;;  %v2277_v10 = vmax.f32 %v2149_v62, 0.0  ;;  %v1900_v58 = vpop.permute.xlu2 %1899 }
 0x338   :  { %v2319_v38 = vmax.f32 %v2191_v20, 0.0  ;;  %v1632_v30 = vadd.f32 %v1504_v15, %v1114_v5  ;;  %v1674_v7 = vadd.f32 %v1546_v56, %v1156_v48  ;;  %v1031_v53 = vmul.f32 %v5831_v13, %v10212_v60  ;;  %v10215_v5 = vld [vmem:[#allocation29_spill] sm:$0xff]  ;;  %v10221_v60 = vld [vmem:[#allocation52_spill] sm:$0xff] }
 0x339   :  { %v7164_v29 = vadd.f32 %v2642_v40, %v2434_v24  ;;  %v1633_v3 = vadd.f32 %v1505_v54, %v1115_v39  ;;  %v1675_v57 = vadd.f32 %v1547_v59, %v1157_v55  ;;  %v1116_v28 = vadd.f32 %v988_v45, %v10214_v47  ;;  %v10218_v45 = vld [vmem:[#allocation145_spill] sm:$0xff]  ;;  %v10219_v55 = vld [vmem:[#allocation164_spill] sm:$0xff] }
 0x33a   :  { %2480 = vmatmul.f32.gmra.mxu0 %v2276_v32  ;;  %2543 = vmatmul.f32.gmra.mxu2 %v2318_v18  ;;  %v2150_v34 = vadd.f32 %v2022_v4, %v1632_v30  ;;  %v2192_v52 = vadd.f32 %v2064_v11, %v1674_v7  ;;  %v1117_v43 = vadd.f32 %v989_v33, %v10215_v5  ;;  %v10220_v15 = vld [vmem:[#allocation89_spill] sm:$0xff]  ;;  %v10222_v30 = vld [vmem:[#allocation150_spill] sm:$0xff] }
 0x33b   :  { %2689 = vmatmul.f32.gmra.mxu1 %v2277_v10  ;;  %2752 = vmatmul.f32.gmra.mxu3 %v2319_v38  ;;  %v2835_v19 = vsel %vm2810_vm0, %v7164_v29, -inf  ;;  %v1032_v41 = vmul.f32 %v5829_v14, %v10216_v44  ;;  %v2151_v62 = vadd.f32 %v2023_v1, %v1633_v3  ;;  %v2193_v20 = vadd.f32 %v2065_v0, %v1675_v57  ;;  %v10223_v3 = vld [vmem:[#allocation186_spill] sm:$0xff] }
 0x33c   :  { %2836 = vmax.xlane.f32.xlu2 %v2835_v19  ;;  %v1033_v39 = vmul.f32 %v5831_v13, %v10216_v44  ;;  %v1158_v48 = vadd.f32 %v1030_v27, %v10217_v50  ;;  %v1506_v6 = vmul.f32 %v5841_v31, %v10218_v45  ;;  %v1548_v8 = vmul.f32 %v5841_v31, %v10219_v55  ;;  %v10226_v50 = vld [vmem:[#allocation5_spill] sm:$0xff] }
 0x33d   :  { %v1159_v33 = vadd.f32 %v1031_v53, %v10220_v15  ;;  %v1507_v36 = vmul.f32 %v5843_v23, %v10218_v45  ;;  %v1549_v56 = vmul.f32 %v5843_v23, %v10219_v55  ;;  %v2024_v54 = vmul.f32 %v5851_v12, %v10221_v60 }
 0x33e   :  { %v2066_v27 = vmul.f32 %v5851_v12, %v1900_v58  ;;  %v2278_v37 = vmax.f32 %v2150_v34, 0.0  ;;  %v2320_v4 = vmax.f32 %v2192_v52, 0.0  ;;  %v2025_v11 = vmul.f32 %v5853_v16, %v10221_v60  ;;  %v10224_v34 = vld [vmem:[#allocation104_spill] sm:$0xff] }
 0x33f   :  { %v2436_v59 = vpop.f32.mrf.mxu0  ;;  %v2645_v32 = vpop.f32.mrf.mxu1  ;;  %v2067_v24 = vmul.f32 %v5853_v16, %v1900_v58  ;;  %v2279_v40 = vmax.f32 %v2151_v62, 0.0  ;;  %v2321_v18 = vmax.f32 %v2193_v20, 0.0  ;;  %v1634_v1 = vadd.f32 %v1506_v6, %v1116_v28  ;;  %v10225_v62 = vld [vmem:[#allocation138_spill] sm:$0xff]  ;;  %v10228_v6 = vld [vmem:[#allocation169_spill] sm:$0xff] }
 0x340   :  { %v2437_v63 = vadd.f32 %v6823_v35, %v2436_v59  ;;  %v1676_v10 = vadd.f32 %v1548_v8, %v1158_v48  ;;  %v1635_v38 = vadd.f32 %v1507_v36, %v1117_v43  ;;  %v1508_v7 = vmul.f32 %v5841_v31, %v10222_v30  ;;  %v1904_v43 = vpop.permute.xlu0 %1903  ;;  %v10227_v48 = vld [vmem:[#allocation124_spill] sm:$0xff] }
 0x341   :  { %v1677_v53 = vadd.f32 %v1549_v56, %v1159_v33  ;;  %v7199_v57 = vadd.f32 %v7013_v25, %v10223_v3  ;;  %v2152_v28 = vadd.f32 %v2024_v54, %v1634_v1  ;;  %v992_v52 = vmul.f32 %v5829_v14, %v10224_v34  ;;  %v10229_v36 = vld [vmem:[#allocation80_spill] sm:$0xff] }
 0x342   :  { %v7193_v0 = vadd.f32 %v2645_v32, %v2437_v63  ;;  %2483 = vmatmul.f32.gmra.mxu0 %v2278_v37  ;;  %2546 = vmatmul.f32.gmra.mxu2 %v2320_v4  ;;  %v2194_v19 = vadd.f32 %v2066_v27, %v1676_v10  ;;  %v993_v5 = vmul.f32 %v5831_v13, %v10224_v34  ;;  %v10230_v10 = vld [vmem:[#allocation182_spill] sm:$0xff]  ;;  %v1908_v34 = vpop.permute.xlu1 %1907 }
 0x343   :  { %2692 = vmatmul.f32.gmra.mxu1 %v2279_v40  ;;  %2755 = vmatmul.f32.gmra.mxu3 %v2321_v18  ;;  %v2153_v44 = vadd.f32 %v2025_v11, %v1635_v38  ;;  %v2195_v58 = vadd.f32 %v2067_v24, %v1677_v53  ;;  %v1160_v20 = vadd.f32 %v1032_v41, %v10225_v62  ;;  %v2280_v59 = vmax.f32 %v2152_v28, 0.0  ;;  %v10234_v62 = vld [vmem:[#allocation65_spill] sm:$0xff] }
 0x344   :  { %v2838_v47 = vsel %vm2810_vm0, %v7193_v0, -inf  ;;  %v1161_v25 = vadd.f32 %v1033_v39, %v10226_v50  ;;  %v1034_v45 = vmul.f32 %v5829_v14, %v10227_v48  ;;  %v1550_v55 = vmul.f32 %v5841_v31, %v10228_v6  ;;  %v10236_v50 = vld [vmem:[#allocation159_spill] sm:$0xff] }
 0x345   :  { %2839 = vmax.xlane.f32.xlu0 %v2838_v47  ;;  %v1509_v8 = vmul.f32 %v5843_v23, %v10222_v30  ;;  %v1636_v15 = vadd.f32 %v1508_v7, %v6924_v21  ;;  %v1551_v33 = vmul.f32 %v5843_v23, %v10228_v6  ;;  %v2026_v56 = vmul.f32 %v5851_v12, %v10229_v36  ;;  %v10231_v30 = vld [vmem:[#allocation183_spill] sm:$0xff]  ;;  %v10232_v47 = vld [vmem:[#allocation106_spill] sm:$0xff] }
 0x346   :  { %v2068_v39 = vmul.f32 %v5851_v12, %v1904_v43  ;;  %v2322_v27 = vmax.f32 %v2194_v19, 0.0  ;;  %v2027_v63 = vmul.f32 %v5853_v16, %v10229_v36  ;;  %v2069_v32 = vmul.f32 %v5853_v16, %v1904_v43 }
 0x347   :  { %v2439_v41 = vpop.f32.mrf.mxu0  ;;  %v2281_v21 = vmax.f32 %v2153_v44, 0.0  ;;  %v2323_v37 = vmax.f32 %v2195_v58, 0.0  ;;  %v1035_v4 = vmul.f32 %v5831_v13, %v10227_v48  ;;  %v1678_v24 = vadd.f32 %v1550_v55, %v1160_v20  ;;  %v10233_v44 = vld [vmem:[#allocation63_spill] sm:$0xff]  ;;  %v10235_v20 = vld [vmem:[#allocation32_spill] sm:$0xff]  ;;  %v10237_v48 = vld [vmem:[#allocation126_spill] sm:$0xff] }
 0x348   :  { %v2440_v60 = vadd.f32 %v6823_v35, %v2439_v41  ;;  %v2648_v54 = vpop.f32.mrf.mxu1  ;;  %v1637_v40 = vadd.f32 %v1509_v8, %v6927_v22  ;;  %v2154_v18 = vadd.f32 %v2026_v56, %v1636_v15  ;;  %v1679_v1 = vadd.f32 %v1551_v33, %v1161_v25 }
 0x349   :  { %v1120_v38 = vadd.f32 %v992_v52, %v10230_v10  ;;  %v1121_v7 = vadd.f32 %v993_v5, %v10231_v30  ;;  %v2196_v3 = vadd.f32 %v2068_v39, %v1678_v24  ;;  %v994_v28 = vmul.f32 %v5829_v14, %v10232_v47  ;;  %v7264_v10 = vpop.f32.mrf.mxu3 }
 0x34a   :  { %v7227_v11 = vadd.f32 %v2648_v54, %v2440_v60  ;;  %2486 = vmatmul.f32.gmra.mxu0 %v2280_v59  ;;  %2549 = vmatmul.f32.gmra.mxu2 %v2322_v27  ;;  %v995_v19 = vmul.f32 %v5831_v13, %v10232_v47  ;;  %v2155_v22 = vadd.f32 %v2027_v63, %v1637_v40  ;;  %v2282_v33 = vmax.f32 %v2154_v18, 0.0  ;;  %v10239_v18 = vld [vmem:[#allocation34_spill] sm:$0xff] }
 0x34b   :  { %2695 = vmatmul.f32.gmra.mxu1 %v2281_v21  ;;  %2758 = vmatmul.f32.gmra.mxu3 %v2323_v37  ;;  %v2197_v43 = vadd.f32 %v2069_v32, %v1679_v1  ;;  %v1162_v58 = vadd.f32 %v1034_v45, %v10233_v44  ;;  %v1163_v52 = vadd.f32 %v1035_v4, %v10234_v62  ;;  %v10238_v45 = vld [vmem:[#allocation62_spill] sm:$0xff]  ;;  %v2324_v60 = vmax.f32 %v2196_v3, 0.0  ;;  %v10240_v3 = vld [vmem:[#allocation35_spill] sm:$0xff] }
 0x34c   :  { %v2841_v53 = vsel %vm2810_vm0, %v7227_v11, -inf  ;;  %v1510_v5 = vmul.f32 %v5841_v31, %v10235_v20  ;;  %v1552_v25 = vmul.f32 %v5841_v31, %v10236_v50  ;;  %v1036_v6 = vmul.f32 %v5829_v14, %v10237_v48 }
 0x34d   :  { %2842 = vmax.xlane.f32.xlu1 %v2841_v53  ;;  %v1511_v55 = vmul.f32 %v5843_v23, %v10235_v20  ;;  %v1553_v8 = vmul.f32 %v5843_v23, %v10236_v50  ;;  %v2028_v36 = vmul.f32 %v5851_v12, %v10238_v45  ;;  %v2070_v56 = vmul.f32 %v5851_v12, %v1908_v34 }
 0x34e   :  { %v2029_v54 = vmul.f32 %v5853_v16, %v10238_v45  ;;  %v2071_v59 = vmul.f32 %v5853_v16, %v1908_v34  ;;  %v2283_v27 = vmax.f32 %v2155_v22, 0.0  ;;  %v2325_v63 = vmax.f32 %v2197_v43, 0.0  ;;  %v10241_v34 = vld [vmem:[#allocation116_spill] sm:$0xff]  ;;  %v7289_v45 = vld [vmem:[%s9464_s4] ss:$0 sm:$0xff] }
 0x34f   :  { %v2442_v15 = vpop.f32.mrf.mxu0  ;;  %v1638_v32 = vadd.f32 %v1510_v5, %v1120_v38  ;;  %v1680_v37 = vadd.f32 %v1552_v25, %v1162_v58  ;;  %v1037_v4 = vmul.f32 %v5831_v13, %v10237_v48  ;;  %v1639_v24 = vadd.f32 %v1511_v55, %v1121_v7  ;;  %v1912_v7 = vpop.permute.xlu2 %1911  ;;  %v10244_v5 = vld [vmem:[#allocation167_spill] sm:$0xff]  ;;  %v10245_v25 = vld [vmem:[#allocation56_spill] sm:$0xff] }
 0x350   :  { %v2443_v41 = vadd.f32 %v6823_v35, %v2442_v15  ;;  %v2651_v39 = vpop.f32.mrf.mxu1  ;;  %v7261_v35 = vpop.f32.mrf.mxu2  ;;  %v1681_v40 = vadd.f32 %v1553_v8, %v1163_v52  ;;  %v1122_v1 = vadd.f32 %v994_v28, %v10239_v18  ;;  %v1123_v47 = vadd.f32 %v995_v19, %v10240_v3  ;;  %v10242_v28 = vld [vmem:[#allocation55_spill] sm:$0xff]  ;;  %v10243_v52 = vld [vmem:[#allocation148_spill] sm:$0xff] }
 0x351   :  { %v2156_v30 = vadd.f32 %v2028_v36, %v1638_v32  ;;  %v2198_v53 = vadd.f32 %v2070_v56, %v1680_v37  ;;  %v1038_v22 = vmul.f32 %v5829_v14, %v10241_v34  ;;  %v2157_v43 = vadd.f32 %v2029_v54, %v1639_v24  ;;  %v10246_v8 = vld [vmem:[#allocation187_spill] sm:$0xff]  ;;  %v10247_v24 = vld [vmem:[#allocation152_spill] sm:$0xff] }
 0x352   :  { %v7257_v21 = vadd.f32 %v2651_v39, %v2443_v41  ;;  %2489 = vmatmul.f32.gmra.mxu0 %v2282_v33  ;;  %2552 = vmatmul.f32.gmra.mxu2 %v2324_v60  ;;  %v2199_v44 = vadd.f32 %v2071_v59, %v1681_v40  ;;  %v1039_v58 = vmul.f32 %v5831_v13, %v10241_v34 }
 0x353   :  { %2698 = vmatmul.f32.gmra.mxu1 %v2283_v27  ;;  %2761 = vmatmul.f32.gmra.mxu3 %v2325_v63  ;;  %v1164_v62 = vadd.f32 %v1036_v6, %v10242_v28  ;;  %v1512_v20 = vmul.f32 %v5841_v31, %v10243_v52  ;;  %v1554_v50 = vmul.f32 %v5841_v31, %v10244_v5  ;;  %v2284_v41 = vmax.f32 %v2156_v30, 0.0 }
 0x354   :  { %v2844_v38 = vsel %vm2810_vm0, %v7257_v21, -inf  ;;  %v1165_v19 = vadd.f32 %v1037_v4, %v10245_v25  ;;  %v1513_v48 = vmul.f32 %v5843_v23, %v10243_v52  ;;  %v1555_v55 = vmul.f32 %v5843_v23, %v10244_v5  ;;  %v10250_v52 = vld [vmem:[#allocation68_spill] sm:$0xff]  ;;  %v10251_v5 = vld [vmem:[#allocation127_spill] sm:$0xff] }
 0x355   :  { %2845 = vmax.xlane.f32.xlu2 %v2844_v38  ;;  %v2030_v15 = vmul.f32 %v5851_v12, %v10246_v8  ;;  %v2072_v6 = vmul.f32 %v5851_v12, %v1912_v7  ;;  %v2326_v39 = vmax.f32 %v2198_v53, 0.0  ;;  %v2031_v60 = vmul.f32 %v5853_v16, %v10246_v8  ;;  %v10248_v38 = vld [vmem:[#allocation107_spill] sm:$0xff] }
 0x356   :  { %v2073_v54 = vmul.f32 %v5853_v16, %v1912_v7  ;;  %v2285_v59 = vmax.f32 %v2157_v43, 0.0  ;;  %v2327_v27 = vmax.f32 %v2199_v44, 0.0  ;;  %v1640_v63 = vadd.f32 %v1512_v20, %v1122_v1  ;;  %v10249_v7 = vld [vmem:[#allocation66_spill] sm:$0xff] }
 0x357   :  { %v2445_v33 = vpop.f32.mrf.mxu0  ;;  %v1682_v37 = vadd.f32 %v1554_v50, %v1164_v62  ;;  %v1641_v4 = vadd.f32 %v1513_v48, %v1123_v47  ;;  %v1514_v40 = vmul.f32 %v5841_v31, %v10247_v24  ;;  %v1683_v18 = vadd.f32 %v1555_v55, %v1165_v19  ;;  %v1916_v47 = vpop.permute.xlu0 %1915  ;;  %v10252_v19 = vld [vmem:[#allocation174_spill] sm:$0xff] }
 0x358   :  { %v2446_v36 = vadd.f32 %v7289_v45, %v2445_v33  ;;  %v2654_v56 = vpop.f32.mrf.mxu1  ;;  %v998_v30 = vmul.f32 %v5829_v14, %v10248_v38  ;;  %v2158_v3 = vadd.f32 %v2030_v15, %v1640_v63  ;;  %v999_v34 = vmul.f32 %v5831_v13, %v10248_v38  ;;  %v7306_v44 = vpop.f32.mrf.mxu2  ;;  %v10254_v63 = vld [vmem:[#allocation36_spill] sm:$0xff] }
 0x359   :  { %v2200_v1 = vadd.f32 %v2072_v6, %v1682_v37  ;;  %v1166_v43 = vadd.f32 %v1038_v22, %v10249_v7  ;;  %v2159_v28 = vadd.f32 %v2031_v60, %v1641_v4  ;;  %v2201_v62 = vadd.f32 %v2073_v54, %v1683_v18  ;;  %v7315_v55 = vpop.f32.mrf.mxu3  ;;  %v10257_v7 = vld [vmem:[#allocation49_spill] sm:$0xff] }
 0x35a   :  { %v7295_v32 = vadd.f32 %v2654_v56, %v2446_v36  ;;  %2492 = vmatmul.f32.gmra.mxu0 %v2284_v41  ;;  %2555 = vmatmul.f32.gmra.mxu2 %v2326_v39  ;;  %v1167_v20 = vadd.f32 %v1039_v58, %v10250_v52  ;;  %v1040_v50 = vmul.f32 %v5829_v14, %v10251_v5  ;;  %v10253_v58 = vld [vmem:[#allocation60_spill] sm:$0xff]  ;;  %v2286_v39 = vmax.f32 %v2158_v3, 0.0 }
 0x35b   :  { %2701 = vmatmul.f32.gmra.mxu1 %v2285_v59  ;;  %2764 = vmatmul.f32.gmra.mxu3 %v2327_v27  ;;  %v1041_v25 = vmul.f32 %v5831_v13, %v10251_v5  ;;  %v1556_v48 = vmul.f32 %v5841_v31, %v10252_v19  ;;  %v1515_v22 = vmul.f32 %v5843_v23, %v10247_v24  ;;  %v2328_v60 = vmax.f32 %v2200_v1, 0.0  ;;  %v10256_v3 = vld [vmem:[#allocation176_spill] sm:$0xff] }
 0x35c   :  { %v2847_v53 = vsel %vm2810_vm0, %v7295_v32, -inf  ;;  %v1642_v8 = vadd.f32 %v1514_v40, %v7106_v17  ;;  %v1557_v15 = vmul.f32 %v5843_v23, %v10252_v19  ;;  %v2032_v33 = vmul.f32 %v5851_v12, %v10253_v58  ;;  %v10258_v52 = vld [vmem:[#allocation184_spill] sm:$0xff] }
 0x35d   :  { %2848 = vmax.xlane.f32.xlu0 %v2847_v53  ;;  %v2074_v36 = vmul.f32 %v5851_v12, %v1916_v47  ;;  %v2033_v54 = vmul.f32 %v5853_v16, %v10253_v58  ;;  %v2075_v59 = vmul.f32 %v5853_v16, %v1916_v47  ;;  %v2287_v17 = vmax.f32 %v2159_v28, 0.0  ;;  %v10255_v53 = vld [vmem:[#allocation11_spill] sm:$0xff]  ;;  %v10259_v19 = vld [vmem:[#allocation84_spill] sm:$0xff] }
 0x35e   :  { %v2329_v27 = vmax.f32 %v2201_v62, 0.0  ;;  %v1516_v37 = vmul.f32 %v5841_v31, %v10254_v63  ;;  %v1684_v24 = vadd.f32 %v1556_v48, %v1166_v43  ;;  %v1643_v40 = vadd.f32 %v1515_v22, %v7199_v57  ;;  %v1920_v43 = vpop.permute.xlu1 %1919 }
 0x35f   :  { %v2448_v6 = vpop.f32.mrf.mxu0  ;;  %v2160_v18 = vadd.f32 %v2032_v33, %v1642_v8  ;;  %v1685_v38 = vadd.f32 %v1557_v15, %v1167_v20  ;;  %v651_v1 = vadd.f32 %v10256_v3, %v10255_v53  ;;  %v1126_v47 = vadd.f32 %v998_v30, %v10257_v7  ;;  %v10260_v15 = vld [vmem:[#allocation162_spill] sm:$0xff] }
 0x360   :  { %v2449_v56 = vadd.f32 %v7289_v45, %v2448_v6  ;;  %v2657_v41 = vpop.f32.mrf.mxu1  ;;  %v2202_v62 = vadd.f32 %v2074_v36, %v1684_v24  ;;  %v1127_v5 = vadd.f32 %v999_v34, %v10258_v52  ;;  %v1168_v58 = vadd.f32 %v1040_v50, %v10259_v19  ;;  %v10261_v50 = vld [vmem:[#allocation82_spill] sm:$0xff]  ;;  %v10265_v19 = vld [vmem:[#allocation175_spill] sm:$0xff] }
 0x361   :  { %v2161_v48 = vadd.f32 %v2033_v54, %v1643_v40  ;;  %v2203_v22 = vadd.f32 %v2075_v59, %v1685_v38  ;;  %v1169_v8 = vadd.f32 %v1041_v25, %v651_v1  ;;  %v1517_v20 = vmul.f32 %v5843_v23, %v10254_v63  ;;  %v10262_v40 = vld [vmem:[#allocation129_spill] sm:$0xff]  ;;  %v10264_v52 = vld [vmem:[#allocation58_spill] sm:$0xff] }
 0x362   :  { %v7331_v4 = vadd.f32 %v2657_v41, %v2449_v56  ;;  %2495 = vmatmul.f32.gmra.mxu0 %v2286_v39  ;;  %2558 = vmatmul.f32.gmra.mxu2 %v2328_v60  ;;  %v1558_v30 = vmul.f32 %v5841_v31, %v10260_v15  ;;  %v1644_v36 = vadd.f32 %v1516_v37, %v1126_v47  ;;  %v2288_v39 = vmax.f32 %v2160_v18, 0.0 }
 0x363   :  { %2704 = vmatmul.f32.gmra.mxu1 %v2287_v17  ;;  %2767 = vmatmul.f32.gmra.mxu3 %v2329_v27  ;;  %v1559_v34 = vmul.f32 %v5843_v23, %v10260_v15  ;;  %v2034_v56 = vmul.f32 %v5851_v12, %v10261_v50  ;;  %v2076_v25 = vmul.f32 %v5851_v12, %v1920_v43  ;;  %v2330_v17 = vmax.f32 %v2202_v62, 0.0 }
 0x364   :  { %v2850_v28 = vsel %vm2810_vm0, %v7331_v4, -inf  ;;  %v2035_v27 = vmul.f32 %v5853_v16, %v10261_v50  ;;  %v2077_v63 = vmul.f32 %v5853_v16, %v1920_v43  ;;  %v2289_v37 = vmax.f32 %v2161_v48, 0.0  ;;  %v1924_v48 = vpop.permute.xlu2 %1923 }
 0x365   :  { %2851 = vmax.xlane.f32.xlu1 %v2850_v28  ;;  %v2511_v57 = vpop.f32.mrf.mxu2  ;;  %v2331_v24 = vmax.f32 %v2203_v22, 0.0  ;;  %v1042_v38 = vmul.f32 %v5829_v14, %v10262_v40  ;;  %v1686_v18 = vadd.f32 %v1558_v30, %v1168_v58  ;;  %v1645_v1 = vadd.f32 %v1517_v20, %v1127_v5  ;;  %v10266_v5 = vld [vmem:[#allocation59_spill] sm:$0xff]  ;;  %v10267_v30 = vld [vmem:[#allocation170_spill] sm:$0xff] }
 0x366   :  { %v2512_v33 = vadd.f32 %v7289_v45, %v2511_v57  ;;  %v2720_v6 = vpop.f32.mrf.mxu3  ;;  %v2162_v7 = vadd.f32 %v2034_v56, %v1644_v36  ;;  %v1687_v47 = vadd.f32 %v1559_v34, %v1169_v8  ;;  %v652_v43 = vadd.f32 %v10265_v19, %v10264_v52  ;;  %v10268_v36 = vld [vmem:[#allocation71_spill] sm:$0xff] }
 0x367   :  { %v2451_v41 = vpop.f32.mrf.mxu0  ;;  %v2204_v62 = vadd.f32 %v2076_v25, %v1686_v18  ;;  %v1043_v57 = vmul.f32 %v5831_v13, %v10262_v40  ;;  %v2163_v15 = vadd.f32 %v2035_v27, %v1645_v1  ;;  %v653_v20 = vadd.f32 %v10256_v3, %v10266_v5  ;;  %v10269_v34 = vld [vmem:[#allocation171_spill] sm:$0xff] }
 0x368   :  { %v7351_v60 = vadd.f32 %v2720_v6, %v2512_v33  ;;  %v2452_v54 = vadd.f32 %v7289_v45, %v2451_v41  ;;  %v2660_v59 = vpop.f32.mrf.mxu1  ;;  %v2205_v58 = vadd.f32 %v2077_v63, %v1687_v47  ;;  %v1560_v8 = vmul.f32 %v5841_v31, %v10267_v30 }
 0x369   :  { %v521_v50 = vmul.f32 %v10269_v34, %v10268_v36  ;;  %v1170_v56 = vadd.f32 %v1042_v38, %v652_v43  ;;  %v1561_v41 = vmul.f32 %v5843_v23, %v10267_v30  ;;  %v2290_v25 = vmax.f32 %v2162_v7, 0.0  ;;  %v10270_v7 = vld [vmem:[#allocation172_spill] sm:$0xff] }
 0x36a   :  { %v7359_v53 = vadd.f32 %v2660_v59, %v2452_v54  ;;  %2498 = vmatmul.f32.gmra.mxu0 %v2288_v39  ;;  %2561 = vmatmul.f32.gmra.mxu2 %v2330_v17  ;;  %v2078_v54 = vmul.f32 %v5851_v12, %v1924_v48  ;;  %v2332_v63 = vmax.f32 %v2204_v62, 0.0  ;;  %v2291_v40 = vmax.f32 %v2163_v15, 0.0  ;;  %v1928_v15 = vpop.permute.xlu0 %1927 }
 0x36b   :  { %2707 = vmatmul.f32.gmra.mxu1 %v2289_v37  ;;  %2770 = vmatmul.f32.gmra.mxu3 %v2331_v24  ;;  %v1171_v37 = vadd.f32 %v1043_v57, %v653_v20  ;;  %v2079_v24 = vmul.f32 %v5853_v16, %v1924_v48  ;;  %v2333_v18 = vmax.f32 %v2205_v58, 0.0  ;;  %v1688_v38 = vadd.f32 %v1560_v8, %v1170_v56  ;;  %v10272_v20 = vld [vmem:[#allocation81_spill] sm:$0xff] }
 0x36c   :  { %10263 = vst [vmem:[#allocation69_spill] sm:$0xff] %v7359_v53  ;;  %v2853_v28 = vsel %vm2810_vm0, %v7359_v53, -inf  ;;  %v522_v47 = vmul.f32 %v10270_v7, %v10268_v36  ;;  %v654_v48 = vadd.f32 %v10265_v19, %v521_v50  ;;  %v1562_v30 = vmul.f32 %v5841_v31, %v10272_v20 }
 0x36d   :  { %2854 = vmax.xlane.f32.xlu2 %v2853_v28  ;;  %v2514_v22 = vpop.f32.mrf.mxu2  ;;  %v10271_v28 = vld [vmem:[#allocation119_spill] sm:$0xff]  ;;  %v1689_v43 = vadd.f32 %v1561_v41, %v1171_v37  ;;  %v2206_v57 = vadd.f32 %v2078_v54, %v1688_v38  ;;  %v1563_v56 = vmul.f32 %v5843_v23, %v10272_v20  ;;  %v2080_v41 = vmul.f32 %v5851_v12, %v1928_v15  ;;  %v10276_v20 = vld [vmem:[#allocation165_spill] sm:$0xff] }
 0x36e   :  { %v2515_v33 = vadd.f32 %v7289_v45, %v2514_v22  ;;  %v2723_v6 = vpop.f32.mrf.mxu3  ;;  %v1044_v52 = vmul.f32 %v5829_v14, %v10271_v28  ;;  %v1045_v22 = vmul.f32 %v5831_v13, %v10271_v28  ;;  %v10275_v28 = vld [vmem:[#allocation130_spill] sm:$0xff] }
 0x36f   :  { %v2454_v39 = vpop.f32.mrf.mxu0  ;;  %v2207_v5 = vadd.f32 %v2079_v24, %v1689_v43  ;;  %v2081_v24 = vmul.f32 %v5853_v16, %v1928_v15  ;;  %v1932_v15 = vpop.permute.xlu1 %1931 }
 0x370   :  { %v7377_v59 = vadd.f32 %v2723_v6, %v2515_v33  ;;  %v2455_v17 = vadd.f32 %v7289_v45, %v2454_v39  ;;  %v2663_v27 = vpop.f32.mrf.mxu1  ;;  %v655_v6 = vadd.f32 %v10256_v3, %v522_v47  ;;  %v1172_v36 = vadd.f32 %v1044_v52, %v654_v48 }
 0x371   :  { %v1046_v52 = vmul.f32 %v5829_v14, %v10275_v28 }
 0x372   :  { %v7381_v1 = vadd.f32 %v2663_v27, %v2455_v17  ;;  %2501 = vmatmul.f32.gmra.mxu0 %v2290_v25  ;;  %2564 = vmatmul.f32.gmra.mxu2 %v2332_v63  ;;  %v2334_v17 = vmax.f32 %v2206_v57, 0.0  ;;  %v10273_v27 = vld [vmem:[#allocation70_spill] sm:$0xff]  ;;  %v1173_v37 = vadd.f32 %v1045_v22, %v655_v6  ;;  %v1690_v38 = vadd.f32 %v1562_v30, %v1172_v36 }
 0x373   :  { %2710 = vmatmul.f32.gmra.mxu1 %v2291_v40  ;;  %2773 = vmatmul.f32.gmra.mxu3 %v2333_v18  ;;  %v523_v63 = vmul.f32 %v10269_v34, %v10273_v27  ;;  %v2335_v40 = vmax.f32 %v2207_v5, 0.0  ;;  %v524_v47 = vmul.f32 %v10270_v7, %v10273_v27  ;;  %v1047_v22 = vmul.f32 %v5831_v13, %v10275_v28 }
 0x374   :  { %v2856_v62 = vsel %vm2810_vm0, %v7381_v1, -inf  ;;  %v1691_v43 = vadd.f32 %v1563_v56, %v1173_v37  ;;  %v2208_v57 = vadd.f32 %v2080_v41, %v1690_v38  ;;  %v1564_v30 = vmul.f32 %v5841_v31, %v10276_v20 }
 0x375   :  { %2857 = vmax.xlane.f32.xlu0 %v2856_v62  ;;  %v2517_v58 = vpop.f32.mrf.mxu2  ;;  %v656_v48 = vadd.f32 %v10265_v19, %v523_v63  ;;  %v657_v6 = vadd.f32 %v10256_v3, %v524_v47  ;;  %v1565_v56 = vmul.f32 %v5843_v23, %v10276_v20  ;;  %v2082_v41 = vmul.f32 %v5851_v12, %v1932_v15  ;;  %v10277_v63 = vld [vmem:[#allocation61_spill] sm:$0xff] }
 0x376   :  { %v2518_v8 = vadd.f32 %v7289_v45, %v2517_v58  ;;  %v2726_v33 = vpop.f32.mrf.mxu3  ;;  %v2209_v5 = vadd.f32 %v2081_v24, %v1691_v43  ;;  %v2336_v27 = vmax.f32 %v2208_v57, 0.0  ;;  %v525_v37 = vmul.f32 %v10269_v34, %v10277_v63  ;;  %v10279_v43 = vld [vmem:[#allocation131_spill] sm:$0xff] }
 0x377   :  { %v2457_v50 = vpop.f32.mrf.mxu0  ;;  %v1174_v36 = vadd.f32 %v1046_v52, %v656_v48  ;;  %v1175_v24 = vadd.f32 %v1047_v22, %v657_v6  ;;  %v526_v52 = vmul.f32 %v10270_v7, %v10277_v63 }
 0x378   :  { %v7399_v39 = vadd.f32 %v2726_v33, %v2518_v8  ;;  %v2458_v25 = vadd.f32 %v7289_v45, %v2457_v50  ;;  %v2666_v54 = vpop.f32.mrf.mxu1  ;;  %v2337_v38 = vmax.f32 %v2209_v5, 0.0  ;;  %v658_v22 = vadd.f32 %v10265_v19, %v525_v37  ;;  %v1936_v5 = vpop.permute.xlu2 %1935 }
 0x379   :  { %v1692_v28 = vadd.f32 %v1564_v30, %v1174_v36  ;;  %v1693_v48 = vadd.f32 %v1565_v56, %v1175_v24  ;;  %v659_v56 = vadd.f32 %v10256_v3, %v526_v52 }
 0x37a   :  { %v7405_v18 = vadd.f32 %v2666_v54, %v2458_v25  ;;  %2567 = vmatmul.f32.gmra.mxu2 %v2334_v17 }
 0x37b   :  { %2776 = vmatmul.f32.gmra.mxu3 %v2335_v40  ;;  %v2083_v40 = vmul.f32 %v5853_v16, %v1932_v15  ;;  %v1049_v15 = vmul.f32 %v5831_v13, %v10279_v43 }
 0x37c   :  { %10274 = vst [vmem:[#allocation21_spill] sm:$0xff] %v7405_v18  ;;  %v2859_v62 = vsel %vm2810_vm0, %v7405_v18, -inf }
 0x37d   :  { %2860 = vmax.xlane.f32.xlu1 %v2859_v62  ;;  %v2520_v58 = vpop.f32.mrf.mxu2  ;;  %v1048_v62 = vmul.f32 %v5829_v14, %v10279_v43  ;;  %v2211_v30 = vadd.f32 %v2083_v40, %v1693_v48  ;;  %v10281_v40 = vld [vmem:[#allocation74_spill] sm:$0xff]  ;;  %v2085_v43 = vmul.f32 %v5853_v16, %v1936_v5 }
 0x37e   :  { %v2521_v8 = vadd.f32 %v7289_v45, %v2520_v58  ;;  %v2729_v33 = vpop.f32.mrf.mxu3  ;;  %v2210_v58 = vadd.f32 %v2082_v41, %v1692_v28  ;;  %v1177_v28 = vadd.f32 %v1049_v15, %v659_v56  ;;  %v10284_v56 = vld [vmem:[#allocation3_spill] sm:$0xff] }
 0x37f   :  { %v2460_v50 = vpop.f32.mrf.mxu0  ;;  %v2339_v52 = vmax.f32 %v2211_v30, 0.0 }
 0x380   :  { %v7423_v25 = vadd.f32 %v2729_v33, %v2521_v8  ;;  %v2461_v54 = vadd.f32 %v7289_v45, %v2460_v50  ;;  %v2669_v17 = vpop.f32.mrf.mxu1  ;;  %v10280_v8 = vld [vmem:[#allocation8_spill] sm:$0xff]  ;;  %v1176_v50 = vadd.f32 %v1048_v62, %v658_v22  ;;  %v2338_v24 = vmax.f32 %v2210_v58, 0.0  ;;  %v10283_v22 = vld [vmem:[#allocation122_spill] sm:$0xff] }
 0x381   :  { %v1566_v33 = vmul.f32 %v5841_v31, %v10280_v8  ;;  %v1567_v41 = vmul.f32 %v5843_v23, %v10280_v8 }
 0x382   :  { %v7429_v47 = vadd.f32 %v2669_v17, %v2461_v54  ;;  %2570 = vmatmul.f32.gmra.mxu2 %v2336_v27  ;;  %v2084_v17 = vmul.f32 %v5851_v12, %v1936_v5  ;;  %v1051_v5 = vmul.f32 %v5831_v13, %v10283_v22 }
 0x383   :  { %2779 = vmatmul.f32.gmra.mxu3 %v2337_v38  ;;  %v527_v38 = vmul.f32 %v10269_v34, %v10281_v40  ;;  %v1694_v62 = vadd.f32 %v1566_v33, %v1176_v50  ;;  %v1695_v8 = vadd.f32 %v1567_v41, %v1177_v28  ;;  %v1940_v33 = vpop.permute.xlu0 %1939  ;;  %v1568_v50 = vmul.f32 %v5841_v31, %v10284_v56 }
 0x384   :  { %10278 = vst [vmem:[#allocation23_spill] sm:$0xff] %v7429_v47  ;;  %v2862_v57 = vsel %vm2810_vm0, %v7429_v47, -inf }
 0x385   :  { %2863 = vmax.xlane.f32.xlu2 %v2862_v57  ;;  %v2523_v20 = vpop.f32.mrf.mxu2  ;;  %v528_v57 = vmul.f32 %v10270_v7, %v10281_v40  ;;  %v2212_v58 = vadd.f32 %v2084_v17, %v1694_v62  ;;  %v660_v15 = vadd.f32 %v10265_v19, %v527_v38  ;;  %v2213_v30 = vadd.f32 %v2085_v43, %v1695_v8  ;;  %v10285_v62 = vld [vmem:[#allocation73_spill] sm:$0xff] }
 0x386   :  { %v2524_v6 = vadd.f32 %v7289_v45, %v2523_v20  ;;  %v2732_v36 = vpop.f32.mrf.mxu3  ;;  %v1050_v20 = vmul.f32 %v5829_v14, %v10283_v22  ;;  %v2086_v40 = vmul.f32 %v5851_v12, %v1940_v33  ;;  %v529_v22 = vmul.f32 %v10269_v34, %v10285_v62 }
 0x387   :  { %v2463_v54 = vpop.f32.mrf.mxu0  ;;  %v661_v17 = vadd.f32 %v10256_v3, %v528_v57  ;;  %v2341_v57 = vmax.f32 %v2213_v30, 0.0 }
 0x388   :  { %v7447_v27 = vadd.f32 %v2732_v36, %v2524_v6  ;;  %v2464_v63 = vadd.f32 %v7289_v45, %v2463_v54  ;;  %v2672_v37 = vpop.f32.mrf.mxu1 }
 0x389   :  { %v1179_v8 = vadd.f32 %v1051_v5, %v661_v17  ;;  %v662_v5 = vadd.f32 %v10265_v19, %v529_v22 }
 0x38a   :  { %v7453_v48 = vadd.f32 %v2672_v37, %v2464_v63  ;;  %2573 = vmatmul.f32.gmra.mxu2 %v2338_v24  ;;  %v1178_v63 = vadd.f32 %v1050_v20, %v660_v15  ;;  %v1569_v37 = vmul.f32 %v5843_v23, %v10284_v56  ;;  %v10287_v56 = vld [vmem:[#allocation132_spill] sm:$0xff] }
 0x38b   :  { %2782 = vmatmul.f32.gmra.mxu3 %v2339_v52  ;;  %v2340_v52 = vmax.f32 %v2212_v58, 0.0  ;;  %v1053_v30 = vmul.f32 %v5831_v13, %v10287_v56 }
 0x38c   :  { %10282 = vst [vmem:[#allocation24_spill] sm:$0xff] %v7453_v48  ;;  %v2865_v6 = vsel %vm2810_vm0, %v7453_v48, -inf  ;;  %v1696_v20 = vadd.f32 %v1568_v50, %v1178_v63  ;;  %v1944_v50 = vpop.permute.xlu1 %1943  ;;  %v10288_v63 = vld [vmem:[#allocation168_spill] sm:$0xff] }
 0x38d   :  { %2866 = vmax.xlane.f32.xlu0 %v2865_v6  ;;  %v2526_v36 = vpop.f32.mrf.mxu2  ;;  %v2087_v6 = vmul.f32 %v5853_v16, %v1940_v33 }
 0x38e   :  { %v2527_v54 = vadd.f32 %v7289_v45, %v2526_v36  ;;  %v2735_v41 = vpop.f32.mrf.mxu3  ;;  %v530_v36 = vmul.f32 %v10270_v7, %v10285_v62  ;;  %v2214_v58 = vadd.f32 %v2086_v40, %v1696_v20  ;;  %v1571_v62 = vmul.f32 %v5843_v23, %v10288_v63 }
 0x38f   :  { %v2466_v24 = vpop.f32.mrf.mxu0 }
 0x390   :  { %v7471_v38 = vadd.f32 %v2735_v41, %v2527_v54  ;;  %v2467_v28 = vadd.f32 %v7289_v45, %v2466_v24  ;;  %v2675_v43 = vpop.f32.mrf.mxu1  ;;  %v1052_v54 = vmul.f32 %v5829_v14, %v10287_v56  ;;  %v1697_v41 = vadd.f32 %v1569_v37, %v1179_v8 }
 0x391   :  { %v663_v40 = vadd.f32 %v10256_v3, %v530_v36  ;;  %v2088_v8 = vmul.f32 %v5851_v12, %v1944_v50  ;;  %v2342_v56 = vmax.f32 %v2214_v58, 0.0 }
 0x392   :  { %v7477_v15 = vadd.f32 %v2675_v43, %v2467_v28  ;;  %2576 = vmatmul.f32.gmra.mxu2 %v2340_v52  ;;  %v2215_v33 = vadd.f32 %v2087_v6, %v1697_v41  ;;  %v1570_v28 = vmul.f32 %v5841_v31, %v10288_v63  ;;  %v1180_v52 = vadd.f32 %v1052_v54, %v662_v5  ;;  %v10290_v41 = vld [vmem:[#allocation64_spill] sm:$0xff] }
 0x393   :  { %2785 = vmatmul.f32.gmra.mxu3 %v2341_v57  ;;  %v532_v63 = vmul.f32 %v10270_v7, %v10290_v41 }
 0x394   :  { %10286 = vst [vmem:[#allocation85_spill] sm:$0xff] %v7477_v15  ;;  %v2868_v24 = vsel %vm2810_vm0, %v7477_v15, -inf  ;;  %v2089_v15 = vmul.f32 %v5853_v16, %v1944_v50  ;;  %v2343_v36 = vmax.f32 %v2215_v33, 0.0  ;;  %v1698_v54 = vadd.f32 %v1570_v28, %v1180_v52  ;;  %v1948_v50 = vpop.permute.xlu2 %1947  ;;  %v10293_v52 = vld [vmem:[#allocation177_spill] sm:$0xff] }
 0x395   :  { %2869 = vmax.xlane.f32.xlu1 %v2868_v24  ;;  %v2529_v17 = vpop.f32.mrf.mxu2  ;;  %v531_v24 = vmul.f32 %v10269_v34, %v10290_v41  ;;  %v1573_v41 = vmul.f32 %v5843_v23, %v10293_v52 }
 0x396   :  { %v2530_v43 = vadd.f32 %v7289_v45, %v2529_v17  ;;  %v2738_v37 = vpop.f32.mrf.mxu3  ;;  %v1181_v17 = vadd.f32 %v1053_v30, %v663_v40  ;;  %v2216_v58 = vadd.f32 %v2088_v8, %v1698_v54  ;;  %v665_v8 = vadd.f32 %v10256_v3, %v532_v63 }
 0x397   :  { %v2469_v22 = vpop.f32.mrf.mxu0  ;;  %v664_v30 = vadd.f32 %v10265_v19, %v531_v24 }
 0x398   :  { %v7495_v57 = vadd.f32 %v2738_v37, %v2530_v43  ;;  %v2470_v6 = vadd.f32 %v7289_v45, %v2469_v22  ;;  %v2678_v20 = vpop.f32.mrf.mxu1  ;;  %v10292_v43 = vld [vmem:[#allocation133_spill] sm:$0xff]  ;;  %v1699_v22 = vadd.f32 %v1571_v62, %v1181_v17  ;;  %v2090_v17 = vmul.f32 %v5851_v12, %v1948_v50 }
 0x399   :  { %v1054_v37 = vmul.f32 %v5829_v14, %v10292_v43  ;;  %v1055_v33 = vmul.f32 %v5831_v13, %v10292_v43  ;;  %v2344_v54 = vmax.f32 %v2216_v58, 0.0  ;;  %v10294_v43 = vld [vmem:[#allocation77_spill] sm:$0xff] }
 0x39a   :  { %10289 = vst [vmem:[#allocation88_spill] sm:$0xff] %v7495_v57  ;;  %v7501_v5 = vadd.f32 %v2678_v20, %v2470_v6  ;;  %2579 = vmatmul.f32.gmra.mxu2 %v2342_v56  ;;  %v2217_v28 = vadd.f32 %v2089_v15, %v1699_v22  ;;  %v1572_v6 = vmul.f32 %v5841_v31, %v10293_v52 }
 0x39b   :  { %2788 = vmatmul.f32.gmra.mxu3 %v2343_v36  ;;  %v1182_v56 = vadd.f32 %v1054_v37, %v664_v30  ;;  %v533_v22 = vmul.f32 %v10269_v34, %v10294_v43  ;;  %v534_v52 = vmul.f32 %v10270_v7, %v10294_v43 }
 0x39c   :  { %10291 = vst [vmem:[#allocation93_spill] sm:$0xff] %v7501_v5  ;;  %v2871_v47 = vsel %vm2810_vm0, %v7501_v5, -inf  ;;  %v2091_v5 = vmul.f32 %v5853_v16, %v1948_v50  ;;  %v2345_v63 = vmax.f32 %v2217_v28, 0.0 }
 0x39d   :  { %2872 = vmax.xlane.f32.xlu2 %v2871_v47  ;;  %v2532_v40 = vpop.f32.mrf.mxu2  ;;  %v1700_v37 = vadd.f32 %v1572_v6, %v1182_v56  ;;  %v1952_v6 = vpop.permute.xlu0 %1951  ;;  %v10297_v56 = vld [vmem:[#allocation6_spill] sm:$0xff] }
 0x39e   :  { %v2533_v20 = vadd.f32 %v7289_v45, %v2532_v40  ;;  %v2741_v62 = vpop.f32.mrf.mxu3  ;;  %v1183_v40 = vadd.f32 %v1055_v33, %v665_v8  ;;  %v666_v33 = vadd.f32 %v10265_v19, %v533_v22  ;;  %v1575_v43 = vmul.f32 %v5843_v23, %v10297_v56 }
 0x39f   :  { %v2472_v24 = vpop.f32.mrf.mxu0  ;;  %v2218_v58 = vadd.f32 %v2090_v17, %v1700_v37  ;;  %v667_v17 = vadd.f32 %v10256_v3, %v534_v52 }
 0x3a0   :  { %v7519_v36 = vadd.f32 %v2741_v62, %v2533_v20  ;;  %v2473_v47 = vadd.f32 %v7289_v45, %v2472_v24  ;;  %v2681_v15 = vpop.f32.mrf.mxu1  ;;  %v10296_v20 = vld [vmem:[#allocation125_spill] sm:$0xff]  ;;  %v1701_v24 = vadd.f32 %v1573_v41, %v1183_v40  ;;  %v2092_v40 = vmul.f32 %v5851_v12, %v1952_v6 }
 0x3a1   :  { %v1056_v62 = vmul.f32 %v5829_v14, %v10296_v20  ;;  %v1057_v50 = vmul.f32 %v5831_v13, %v10296_v20  ;;  %v2346_v37 = vmax.f32 %v2218_v58, 0.0  ;;  %v10299_v20 = vld [vmem:[#allocation76_spill] sm:$0xff] }
 0x3a2   :  { %v7525_v30 = vadd.f32 %v2681_v15, %v2473_v47  ;;  %2582 = vmatmul.f32.gmra.mxu2 %v2344_v54  ;;  %v2219_v28 = vadd.f32 %v2091_v5, %v1701_v24  ;;  %v1574_v47 = vmul.f32 %v5841_v31, %v10297_v56  ;;  %v535_v24 = vmul.f32 %v10269_v34, %v10299_v20 }
 0x3a3   :  { %2791 = vmatmul.f32.gmra.mxu3 %v2345_v63  ;;  %v1184_v54 = vadd.f32 %v1056_v62, %v666_v33  ;;  %v536_v56 = vmul.f32 %v10270_v7, %v10299_v20 }
 0x3a4   :  { %10295 = vst [vmem:[#allocation179_spill] sm:$0xff] %v7525_v30  ;;  %v2874_v48 = vsel %vm2810_vm0, %v7525_v30, -inf  ;;  %v2093_v30 = vmul.f32 %v5853_v16, %v1952_v6  ;;  %v2347_v52 = vmax.f32 %v2219_v28, 0.0 }
 0x3a5   :  { %2875 = vmax.xlane.f32.xlu0 %v2874_v48  ;;  %v2535_v8 = vpop.f32.mrf.mxu2  ;;  %v1702_v62 = vadd.f32 %v1574_v47, %v1184_v54  ;;  %v1956_v47 = vpop.permute.xlu1 %1955  ;;  %v10302_v54 = vld [vmem:[#allocation173_spill] sm:$0xff] }
 0x3a6   :  { %v2536_v15 = vadd.f32 %v7289_v45, %v2535_v8  ;;  %v2744_v41 = vpop.f32.mrf.mxu3  ;;  %v1185_v8 = vadd.f32 %v1057_v50, %v667_v17  ;;  %v668_v50 = vadd.f32 %v10265_v19, %v535_v24  ;;  %v1577_v20 = vmul.f32 %v5843_v23, %v10302_v54 }
 0x3a7   :  { %v2475_v22 = vpop.f32.mrf.mxu0  ;;  %v2220_v58 = vadd.f32 %v2092_v40, %v1702_v62  ;;  %v669_v40 = vadd.f32 %v10256_v3, %v536_v56 }
 0x3a8   :  { %v7543_v63 = vadd.f32 %v2744_v41, %v2536_v15  ;;  %v2476_v48 = vadd.f32 %v7289_v45, %v2475_v22  ;;  %v2684_v5 = vpop.f32.mrf.mxu1  ;;  %v10301_v15 = vld [vmem:[#allocation134_spill] sm:$0xff]  ;;  %v1703_v22 = vadd.f32 %v1575_v43, %v1185_v8  ;;  %v2094_v8 = vmul.f32 %v5851_v12, %v1956_v47 }
 0x3a9   :  { %v1058_v41 = vmul.f32 %v5829_v14, %v10301_v15  ;;  %v1059_v28 = vmul.f32 %v5831_v13, %v10301_v15  ;;  %v2348_v62 = vmax.f32 %v2220_v58, 0.0  ;;  %v10304_v15 = vld [vmem:[#allocation67_spill] sm:$0xff] }
 0x3aa   :  { %10298 = vst [vmem:[#allocation37_spill] sm:$0xff] %v7543_v63  ;;  %v7549_v33 = vadd.f32 %v2684_v5, %v2476_v48  ;;  %2585 = vmatmul.f32.gmra.mxu2 %v2346_v37  ;;  %v2221_v6 = vadd.f32 %v2093_v30, %v1703_v22  ;;  %v1576_v48 = vmul.f32 %v5841_v31, %v10302_v54 }
 0x3ab   :  { %2794 = vmatmul.f32.gmra.mxu3 %v2347_v52  ;;  %v1186_v37 = vadd.f32 %v1058_v41, %v668_v50  ;;  %v537_v22 = vmul.f32 %v10269_v34, %v10304_v15  ;;  %v538_v54 = vmul.f32 %v10270_v7, %v10304_v15 }
 0x3ac   :  { %10300 = vst [vmem:[#allocation109_spill] sm:$0xff] %v7549_v33  ;;  %v2877_v18 = vsel %vm2810_vm0, %v7549_v33, -inf  ;;  %v2095_v33 = vmul.f32 %v5853_v16, %v1956_v47  ;;  %v2349_v56 = vmax.f32 %v2221_v6, 0.0  ;;  %v1960_v47 = vpop.permute.xlu2 %1959 }
 0x3ad   :  { %2878 = vmax.xlane.f32.xlu1 %v2877_v18  ;;  %v2538_v17 = vpop.f32.mrf.mxu2  ;;  %v1704_v41 = vadd.f32 %v1576_v48, %v1186_v37  ;;  %v10307_v37 = vld [vmem:[#allocation4_spill] sm:$0xff] }
 0x3ae   :  { %v2539_v5 = vadd.f32 %v7289_v45, %v2538_v17  ;;  %v2747_v43 = vpop.f32.mrf.mxu3  ;;  %v1187_v17 = vadd.f32 %v1059_v28, %v669_v40  ;;  %v670_v28 = vadd.f32 %v10265_v19, %v537_v22  ;;  %v1579_v15 = vmul.f32 %v5843_v23, %v10307_v37 }
 0x3af   :  { %v2478_v24 = vpop.f32.mrf.mxu0  ;;  %v2222_v58 = vadd.f32 %v2094_v8, %v1704_v41  ;;  %v671_v8 = vadd.f32 %v10256_v3, %v538_v54 }
 0x3b0   :  { %v7567_v52 = vadd.f32 %v2747_v43, %v2539_v5  ;;  %v2479_v18 = vadd.f32 %v7289_v45, %v2478_v24  ;;  %v2687_v30 = vpop.f32.mrf.mxu1  ;;  %v10306_v5 = vld [vmem:[#allocation135_spill] sm:$0xff]  ;;  %v1705_v24 = vadd.f32 %v1577_v20, %v1187_v17  ;;  %v2096_v17 = vmul.f32 %v5851_v12, %v1960_v47 }
 0x3b1   :  { %v1060_v43 = vmul.f32 %v5829_v14, %v10306_v5  ;;  %v1061_v6 = vmul.f32 %v5831_v13, %v10306_v5  ;;  %v2350_v41 = vmax.f32 %v2222_v58, 0.0  ;;  %v10309_v5 = vld [vmem:[#allocation79_spill] sm:$0xff] }
 0x3b2   :  { %10303 = vst [vmem:[#allocation91_spill] sm:$0xff] %v7567_v52  ;;  %v7573_v50 = vadd.f32 %v2687_v30, %v2479_v18  ;;  %2588 = vmatmul.f32.gmra.mxu2 %v2348_v62  ;;  %v2223_v48 = vadd.f32 %v2095_v33, %v1705_v24  ;;  %v1578_v18 = vmul.f32 %v5841_v31, %v10307_v37 }
 0x3b3   :  { %2797 = vmatmul.f32.gmra.mxu3 %v2349_v56  ;;  %v1188_v62 = vadd.f32 %v1060_v43, %v670_v28  ;;  %v539_v24 = vmul.f32 %v10269_v34, %v10309_v5  ;;  %v540_v37 = vmul.f32 %v10270_v7, %v10309_v5 }
 0x3b4   :  { %10305 = vst [vmem:[#allocation136_spill] sm:$0xff] %v7573_v50  ;;  %v2880_v53 = vsel %vm2810_vm0, %v7573_v50, -inf  ;;  %v2097_v50 = vmul.f32 %v5853_v16, %v1960_v47  ;;  %v2351_v54 = vmax.f32 %v2223_v48, 0.0 }
 0x3b5   :  { %2881 = vmax.xlane.f32.xlu2 %v2880_v53  ;;  %v2541_v40 = vpop.f32.mrf.mxu2  ;;  %v1706_v43 = vadd.f32 %v1578_v18, %v1188_v62  ;;  %v1964_v18 = vpop.permute.xlu0 %1963  ;;  %v10311_v62 = vld [vmem:[#allocation12_spill] sm:$0xff] }
 0x3b6   :  { %v2542_v30 = vadd.f32 %v7289_v45, %v2541_v40  ;;  %v2750_v20 = vpop.f32.mrf.mxu3  ;;  %v1189_v40 = vadd.f32 %v1061_v6, %v671_v8  ;;  %v672_v6 = vadd.f32 %v10265_v19, %v539_v24  ;;  %v1580_v7 = vmul.f32 %v5841_v31, %v10311_v62 }
 0x3b7   :  { %v2481_v22 = vpop.f32.mrf.mxu0  ;;  %v2224_v58 = vadd.f32 %v2096_v17, %v1706_v43  ;;  %v673_v17 = vadd.f32 %v10256_v3, %v540_v37  ;;  %v2099_v31 = vmul.f32 %v5853_v16, %v1964_v18 }
 0x3b8   :  { %v7591_v56 = vadd.f32 %v2750_v20, %v2542_v30  ;;  %v2482_v53 = vadd.f32 %v7289_v45, %v2481_v22  ;;  %v2690_v33 = vpop.f32.mrf.mxu1  ;;  %v10310_v30 = vld [vmem:[#allocation128_spill] sm:$0xff]  ;;  %v1707_v22 = vadd.f32 %v1579_v15, %v1189_v40 }
 0x3b9   :  { %v1062_v20 = vmul.f32 %v5829_v14, %v10310_v30  ;;  %v1063_v47 = vmul.f32 %v5831_v13, %v10310_v30  ;;  %v2352_v24 = vmax.f32 %v2224_v58, 0.0 }
 0x3ba   :  { %10308 = vst [vmem:[#allocation18_spill] sm:$0xff] %v7591_v56  ;;  %v7597_v28 = vadd.f32 %v2690_v33, %v2482_v53  ;;  %2591 = vmatmul.f32.gmra.mxu2 %v2350_v41  ;;  %v2225_v48 = vadd.f32 %v2097_v50, %v1707_v22  ;;  %v1581_v33 = vmul.f32 %v5843_v23, %v10311_v62 }
 0x3bb   :  { %2800 = vmatmul.f32.gmra.mxu3 %v2351_v54  ;;  %v1190_v53 = vadd.f32 %v1062_v20, %v672_v6  ;;  %v2098_v41 = vmul.f32 %v5851_v12, %v1964_v18  ;;  %v1191_v40 = vadd.f32 %v1063_v47, %v673_v17 }
 0x3bc   :  { %v2883_v34 = vsel %vm2810_vm0, %v7597_v28, -inf  ;;  %v2353_v54 = vmax.f32 %v2225_v48, 0.0 }
 0x3bd   :  { %2884 = vmax.xlane.f32.xlu0 %v2883_v34  ;;  %v2544_v8 = vpop.f32.mrf.mxu2  ;;  %v1708_v43 = vadd.f32 %v1580_v7, %v1190_v53  ;;  %v1709_v3 = vadd.f32 %v1581_v33, %v1191_v40 }
 0x3be   :  { %v2545_v14 = vadd.f32 %v7289_v45, %v2544_v8  ;;  %v2753_v15 = vpop.f32.mrf.mxu3 }
 0x3bf   :  { %v2484_v19 = vpop.f32.mrf.mxu0  ;;  %v2226_v23 = vadd.f32 %v2098_v41, %v1708_v43  ;;  %v2227_v37 = vadd.f32 %v2099_v31, %v1709_v3 }
 0x3c0   :  { %v7615_v13 = vadd.f32 %v2753_v15, %v2545_v14  ;;  %v2485_v50 = vadd.f32 %v7289_v45, %v2484_v19  ;;  %v2693_v5 = vpop.f32.mrf.mxu1 }
 0x3c1   :  { %v2354_v48 = vmax.f32 %v2226_v23, 0.0  ;;  %v2355_v18 = vmax.f32 %v2227_v37, 0.0 }
 0x3c2   :  { %10312 = vst [vmem:[#allocation22_spill] sm:$0xff] %v7615_v13  ;;  %v7619_v30 = vadd.f32 %v2693_v5, %v2485_v50  ;;  %2594 = vmatmul.f32.gmra.mxu2 %v2352_v24 }
 0x3c3   :  { %2803 = vmatmul.f32.gmra.mxu3 %v2353_v54 }
 0x3c4   :  { %v2886_v12 = vsel %vm2810_vm0, %v7619_v30, -inf }
 0x3c5   :  { %2887 = vmax.xlane.f32.xlu1 %v2886_v12  ;;  %v2547_v20 = vpop.f32.mrf.mxu2 }
 0x3c6   :  { %v2548_v22 = vadd.f32 %v7289_v45, %v2547_v20  ;;  %v2756_v58 = vpop.f32.mrf.mxu3 }
 0x3c7   :  { %v2487_v34 = vpop.f32.mrf.mxu0 }
 0x3c8   :  { %v7624_v6 = vadd.f32 %v2756_v58, %v2548_v22  ;;  %v2488_v16 = vadd.f32 %v7289_v45, %v2487_v34  ;;  %v2696_v47 = vpop.f32.mrf.mxu1 }
 0x3ca   :  { %10313 = vst [vmem:[#allocation146_spill] sm:$0xff] %v7624_v6  ;;  %v7627_v8 = vadd.f32 %v2696_v47, %v2488_v16  ;;  %2597 = vmatmul.f32.gmra.mxu2 %v2354_v48 }
 0x3cb   :  { %2806 = vmatmul.f32.gmra.mxu3 %v2355_v18  ;;  %v2506_v18 = vadd.f32 %v7289_v45, %v7261_v35 }
 0x3cc   :  { %v2889_v62 = vsel %vm2810_vm0, %v7627_v8, -inf }
 0x3cd   :  { %2890 = vmax.xlane.f32.xlu2 %v2889_v62  ;;  %v2550_v7 = vpop.f32.mrf.mxu2 }
 0x3ce   :  { %v2551_v14 = vadd.f32 %v7289_v45, %v2550_v7  ;;  %v2759_v15 = vpop.f32.mrf.mxu3 }
 0x3cf   :  { %v2490_v17 = vpop.f32.mrf.mxu0 }
 0x3d0   :  { %v7632_v53 = vadd.f32 %v2759_v15, %v2551_v14  ;;  %v2491_v33 = vadd.f32 %v7289_v45, %v2490_v17  ;;  %v2699_v19 = vpop.f32.mrf.mxu1  ;;  %v7660_v17 = vadd.f32 %v7264_v10, %v2506_v18 }
 0x3d2   :  { %10314 = vst [vmem:[#allocation94_spill] sm:$0xff] %v7632_v53  ;;  %v7635_v41 = vadd.f32 %v2699_v19, %v2491_v33 }
 0x3d4   :  { %v2892_v50 = vsel %vm2810_vm0, %v7635_v41, -inf }
 0x3d5   :  { %2893 = vmax.xlane.f32.xlu0 %v2892_v50  ;;  %v2553_v5 = vpop.f32.mrf.mxu2 }
 0x3d6   :  { %v2554_v24 = vadd.f32 %v7289_v45, %v2553_v5  ;;  %v2762_v40 = vpop.f32.mrf.mxu3  ;;  %v2907_v5 = vsel %vm2810_vm0, %v7660_v17, -inf }
 0x3d7   :  { %v2493_v31 = vpop.f32.mrf.mxu0 }
 0x3d8   :  { %v7640_v54 = vadd.f32 %v2762_v40, %v2554_v24  ;;  %v2494_v43 = vadd.f32 %v7289_v45, %v2493_v31  ;;  %v2702_v3 = vpop.f32.mrf.mxu1  ;;  %v2509_v24 = vadd.f32 %v7289_v45, %v7306_v44  ;;  %v2916_v44 = vsel %vm2810_vm0, %v7377_v59, -inf }
 0x3da   :  { %10315 = vst [vmem:[#allocation180_spill] sm:$0xff] %v7640_v54  ;;  %v7643_v23 = vadd.f32 %v2702_v3, %v2494_v43  ;;  %v7675_v3 = vadd.f32 %v7315_v55, %v2509_v24  ;;  %v2913_v55 = vsel %vm2810_vm0, %v7351_v60, -inf  ;;  %v7699_v24 = vpop.xlane.xlu2 %2815 }
 0x3dc   :  { %v2895_v12 = vsel %vm2810_vm0, %v7643_v23, -inf }
 0x3dd   :  { %2896 = vmax.xlane.f32.xlu1 %v2895_v12  ;;  %v2556_v37 = vpop.f32.mrf.mxu2 }
 0x3de   :  { %v2557_v20 = vadd.f32 %v7289_v45, %v2556_v37  ;;  %v2765_v22 = vpop.f32.mrf.mxu3 }
 0x3df   :  { %v2496_v58 = vpop.f32.mrf.mxu0 }
 0x3e0   :  { %v7648_v34 = vadd.f32 %v2765_v22, %v2557_v20  ;;  %v2497_v16 = vadd.f32 %v7289_v45, %v2496_v58  ;;  %v2705_v47 = vpop.f32.mrf.mxu1  ;;  %v2910_v22 = vsel %vm2810_vm0, %v7675_v3, -inf }
 0x3e2   :  { %10316 = vst [vmem:[#allocation111_spill] sm:$0xff] %v7648_v34  ;;  %v7651_v48 = vadd.f32 %v2705_v47, %v2497_v16  ;;  %v2925_v16 = vsel %vm2810_vm0, %v7447_v27, -inf  ;;  %v2919_v47 = vsel %vm2810_vm0, %v7399_v39, -inf }
 0x3e4   :  { %v2898_v62 = vsel %vm2810_vm0, %v7651_v48, -inf }
 0x3e5   :  { %2899 = vmax.xlane.f32.xlu2 %v2898_v62  ;;  %v2559_v7 = vpop.f32.mrf.mxu2 }
 0x3e6   :  { %v7657_v14 = vpop.f32.mrf.mxu3 }
 0x3e7   :  { %v2499_v15 = vpop.f32.mrf.mxu0 }
 0x3e8   :  { %v2500_v33 = vadd.f32 %v7289_v45, %v2499_v15  ;;  %v2708_v19 = vpop.f32.mrf.mxu1  ;;  %v2922_v15 = vsel %vm2810_vm0, %v7423_v25, -inf }
 0x3ea   :  { %v7663_v50 = vadd.f32 %v2708_v19, %v2500_v33  ;;  %v2934_v33 = vsel %vm2810_vm0, %v7519_v36, -inf  ;;  %v2928_v19 = vsel %vm2810_vm0, %v7471_v38, -inf }
 0x3ec   :  { %v2901_v35 = vsel %vm2810_vm0, %v7663_v50, -inf }
 0x3ed   :  { %2908 = vmax.xlane.f32.xlu2 %v2907_v5  ;;  %2902 = vmax.xlane.f32.xlu0 %v2901_v35  ;;  %v2562_v40 = vpop.f32.mrf.mxu2 }
 0x3ee   :  { %v7671_v31 = vpop.f32.mrf.mxu3 }
 0x3ef   :  { %v2502_v10 = vpop.f32.mrf.mxu0 }
 0x3f0   :  { %v2503_v43 = vadd.f32 %v7289_v45, %v2502_v10  ;;  %v2711_v12 = vpop.f32.mrf.mxu1  ;;  %v2931_v10 = vsel %vm2810_vm0, %v7495_v57, -inf }
 0x3f2   :  { %v7677_v37 = vadd.f32 %v2711_v12, %v2503_v43  ;;  %v2943_v43 = vsel %vm2810_vm0, %v7591_v56, -inf  ;;  %v2937_v12 = vsel %vm2810_vm0, %v7543_v63, -inf }
 0x3f4   :  { %v2904_v20 = vsel %vm2810_vm0, %v7677_v37, -inf }
 0x3f5   :  { %2905 = vmax.xlane.f32.xlu1 %v2904_v20  ;;  %2917 = vmax.xlane.f32.xlu2 %v2916_v44  ;;  %v2565_v58 = vpop.f32.mrf.mxu2 }
 0x3f6   :  { %2911 = vmax.xlane.f32.xlu0 %v2910_v22  ;;  %v7685_v45 = vpop.f32.mrf.mxu3  ;;  %v7707_v22 = vpop.xlane.xlu2 %2821 }
 0x3fd   :  { %2914 = vmax.xlane.f32.xlu1 %v2913_v55  ;;  %2926 = vmax.xlane.f32.xlu2 %v2925_v16  ;;  %v2568_v18 = vpop.f32.mrf.mxu2  ;;  %v7712_v55 = vld [vmem:[%s9464_s4] ss:$0 sm:$0xff] }
 0x3fe   :  { %2920 = vmax.xlane.f32.xlu0 %v2919_v47  ;;  %v2777_v62 = vpop.f32.mrf.mxu3  ;;  %v2560_v16 = vadd.f32 %v7712_v55, %v2559_v7  ;;  %v2940_v47 = vsel %vm2810_vm0, %v7567_v52, -inf  ;;  %v7725_v63 = vpop.xlane.xlu2 %2827  ;;  %v2569_v52 = vadd.f32 %v7712_v55, %v2568_v18 }
 0x400   :  { %v7728_v7 = vadd.f32 %v7657_v14, %v2560_v16 }
 0x402   :  { %10317 = vst [vmem:[#allocation19_spill] sm:$0xff] %v7728_v7 }
 0x405   :  { %2923 = vmax.xlane.f32.xlu1 %v2922_v15  ;;  %2935 = vmax.xlane.f32.xlu2 %v2934_v33  ;;  %v2571_v5 = vpop.f32.mrf.mxu2  ;;  %v2952_v15 = vsel %vm2810_vm0, %v7632_v53, -inf  ;;  %v2946_v33 = vsel %vm2810_vm0, %v7615_v13, -inf  ;;  %v2955_v13 = vsel %vm2810_vm0, %v7640_v54, -inf }
 0x406   :  { %2929 = vmax.xlane.f32.xlu0 %v2928_v19  ;;  %v2780_v35 = vpop.f32.mrf.mxu3  ;;  %v7742_v18 = vpop.xlane.xlu2 %2836  ;;  %v2572_v54 = vadd.f32 %v7712_v55, %v2571_v5 }
 0x408   :  { %v7769_v5 = vadd.f32 %v2780_v35, %v2572_v54 }
 0x40a   :  { %10322 = vst [vmem:[#allocation153_spill] sm:$0xff] %v7769_v5 }
 0x40d   :  { %2932 = vmax.xlane.f32.xlu1 %v2931_v10  ;;  %2944 = vmax.xlane.f32.xlu2 %v2943_v43  ;;  %v2574_v20 = vpop.f32.mrf.mxu2  ;;  %v7721_v43 = vpop.xlane.xlu1 %2812 }
 0x40e   :  { %2938 = vmax.xlane.f32.xlu0 %v2937_v12  ;;  %v2783_v44 = vpop.f32.mrf.mxu3  ;;  %v7723_v12 = vpop.xlane.xlu0 %2818 }
 0x415   :  { %2941 = vmax.xlane.f32.xlu1 %v2940_v47  ;;  %2953 = vmax.xlane.f32.xlu2 %v2952_v15  ;;  %v2577_v19 = vpop.f32.mrf.mxu2  ;;  %v2949_v47 = vsel %vm2810_vm0, %v7624_v6, -inf  ;;  %v2961_v15 = vsel %vm2810_vm0, %v7728_v7, -inf  ;;  %v7738_v14 = vpop.xlane.xlu1 %2824  ;;  %v7744_v6 = vadd.f32 %v2777_v62, %v2569_v52 }
 0x416   :  { %2947 = vmax.xlane.f32.xlu0 %v2946_v33  ;;  %v2786_v10 = vpop.f32.mrf.mxu3  ;;  %v2563_v33 = vadd.f32 %v7712_v55, %v2562_v40  ;;  %v7740_v16 = vpop.xlane.xlu0 %2830  ;;  %v2566_v40 = vadd.f32 %v7712_v55, %v2565_v58 }
 0x417   :  { %10318 = vst [vmem:[#allocation72_spill] sm:$0xff] %v7744_v6 }
 0x418   :  { %v7747_v7 = vadd.f32 %v7671_v31, %v2563_v33 }
 0x41a   :  { %10319 = vst [vmem:[#allocation7_spill] sm:$0xff] %v7747_v7  ;;  %v2964_v52 = vsel %vm2810_vm0, %v7747_v7, -inf }
 0x41d   :  { %2950 = vmax.xlane.f32.xlu1 %v2949_v47  ;;  %2962 = vmax.xlane.f32.xlu2 %v2961_v15  ;;  %v2580_v53 = vpop.f32.mrf.mxu2  ;;  %v2578_v47 = vadd.f32 %v7712_v55, %v2577_v19  ;;  %v2958_v15 = vsel %vm2810_vm0, %v7648_v34, -inf  ;;  %v7758_v33 = vpop.xlane.xlu1 %2833  ;;  %v7765_v34 = vadd.f32 %v7685_v45, %v2566_v40  ;;  %v2973_v45 = vsel %vm2810_vm0, %v7769_v5, -inf }
 0x41e   :  { %2956 = vmax.xlane.f32.xlu0 %v2955_v13  ;;  %v2789_v56 = vpop.f32.mrf.mxu3  ;;  %v2970_v13 = vsel %vm2810_vm0, %v7744_v6, -inf  ;;  %v7760_v58 = vpop.xlane.xlu0 %2839  ;;  %v2581_v7 = vadd.f32 %v7712_v55, %v2580_v53 }
 0x41f   :  { %v7762_v19 = vpop.xlane.xlu2 %2845  ;;  %10320 = vst [vmem:[#allocation139_spill] sm:$0xff] %v7765_v34  ;;  %v7767_v6 = vadd.f32 %v2786_v10, %v2578_v47 }
 0x420   :  { %v7790_v53 = vadd.f32 %v2789_v56, %v2581_v7 }
 0x421   :  { %10321 = vst [vmem:[#allocation41_spill] sm:$0xff] %v7767_v6 }
 0x422   :  { %10325 = vst [vmem:[#allocation102_spill] sm:$0xff] %v7790_v53 }
 0x425   :  { %2959 = vmax.xlane.f32.xlu1 %v2958_v15  ;;  %2971 = vmax.xlane.f32.xlu2 %v2970_v13  ;;  %v2583_v62 = vpop.f32.mrf.mxu2  ;;  %v2575_v15 = vadd.f32 %v7712_v55, %v2574_v20  ;;  %v2967_v13 = vsel %vm2810_vm0, %v7765_v34, -inf  ;;  %v7780_v10 = vpop.xlane.xlu1 %2842 }
 0x426   :  { %2965 = vmax.xlane.f32.xlu0 %v2964_v52  ;;  %v2792_v31 = vpop.f32.mrf.mxu3  ;;  %v2979_v52 = vsel %vm2810_vm0, %v7767_v6, -inf  ;;  %v7782_v20 = vpop.xlane.xlu0 %2848 }
 0x427   :  { %v7784_v47 = vpop.xlane.xlu2 %2854  ;;  %v7786_v34 = vadd.f32 %v2783_v44, %v2575_v15 }
 0x429   :  { %10323 = vst [vmem:[#allocation42_spill] sm:$0xff] %v7786_v34 }
 0x42d   :  { %2968 = vmax.xlane.f32.xlu1 %v2967_v13  ;;  %2980 = vmax.xlane.f32.xlu2 %v2979_v52  ;;  %v2586_v40 = vpop.f32.mrf.mxu2  ;;  %v2584_v13 = vadd.f32 %v7712_v55, %v2583_v62  ;;  %v2976_v52 = vsel %vm2810_vm0, %v7786_v34, -inf  ;;  %v7800_v56 = vpop.xlane.xlu1 %2851 }
 0x42e   :  { %2974 = vmax.xlane.f32.xlu0 %v2973_v45  ;;  %v2587_v54 = vadd.f32 %v7712_v55, %v2586_v40  ;;  %v2795_v35 = vpop.f32.mrf.mxu3  ;;  %v2982_v40 = vsel %vm2810_vm0, %v7790_v53, -inf  ;;  %v7802_v7 = vpop.xlane.xlu0 %2857 }
 0x42f   :  { %v7804_v62 = vpop.xlane.xlu2 %2863 }
 0x430   :  { %v7788_v6 = vadd.f32 %v2795_v35, %v2587_v54  ;;  %v7806_v54 = vadd.f32 %v2792_v31, %v2584_v13 }
 0x432   :  { %10324 = vst [vmem:[#allocation33_spill] sm:$0xff] %v7788_v6  ;;  %v2988_v45 = vsel %vm2810_vm0, %v7788_v6, -inf }
 0x433   :  { %10326 = vst [vmem:[#allocation181_spill] sm:$0xff] %v7806_v54 }
 0x435   :  { %2977 = vmax.xlane.f32.xlu1 %v2976_v52  ;;  %2989 = vmax.xlane.f32.xlu2 %v2988_v45  ;;  %v2589_v5 = vpop.f32.mrf.mxu2  ;;  %v3003_v52 = vsub.f32 %v6849_v9, %v7721_v43  ;;  %v2985_v45 = vsel %vm2810_vm0, %v7806_v54, -inf  ;;  %v7817_v31 = vpop.xlane.xlu1 %2860  ;;  %v3004_v43 = vsub.f32 %v6913_v46, %v7699_v24 }
 0x436   :  { %2983 = vmax.xlane.f32.xlu0 %v2982_v40  ;;  %v2590_v44 = vadd.f32 %v7712_v55, %v2589_v5  ;;  %v2798_v15 = vpop.f32.mrf.mxu3  ;;  %v7819_v13 = vpop.xlane.xlu0 %2866 }
 0x437   :  { %v3067_v34 = vmul.f32 1.442695, %v3003_v52 }
 0x438   :  { %v7808_v35 = vadd.f32 %v2798_v15, %v2590_v44  ;;  %v7821_v44 = vpop.xlane.xlu2 %2872  ;;  %v3006_v15 = vsub.f32 %v7007_v49, %v7707_v22  ;;  %v3007_v22 = vsub.f32 %v7041_v51, %v7738_v14 }
 0x439   :  { %4464 = vpow2.f32 %v3067_v34 }
 0x43a   :  { %10327 = vst [vmem:[#allocation95_spill] sm:$0xff] %v7808_v35  ;;  %v2991_v5 = vsel %vm2810_vm0, %v7808_v35, -inf  ;;  %v3073_v54 = vmul.f32 1.442695, %v3006_v15 }
 0x43d   :  { %2986 = vmax.xlane.f32.xlu1 %v2985_v45  ;;  %v2592_v40 = vpop.f32.mrf.mxu2  ;;  %v7832_v57 = vpop.xlane.xlu1 %2869 }
 0x43e   :  { %v2593_v53 = vadd.f32 %v7712_v55, %v2592_v40  ;;  %v2801_v6 = vpop.f32.mrf.mxu3  ;;  %2992 = vmax.xlane.f32.xlu0 %v2991_v5  ;;  %v3069_v40 = vmul.f32 1.442695, %v3004_v43  ;;  %v7836_v46 = vpop.xlane.xlu0 %2875  ;;  %v3009_v43 = vsub.f32 %v7100_v2, %v7740_v16  ;;  %v3008_v2 = vsub.f32 %v7071_v42, %v7725_v63 }
 0x43f   :  { %v7842_v24 = vpop.eup %4464  ;;  %v3012_v42 = vsub.f32 %v7193_v0, %v7760_v58 }
 0x440   :  { %v7823_v9 = vadd.f32 %v2801_v6, %v2593_v53  ;;  %v3005_v6 = vsub.f32 %v6978_v26, %v7723_v12  ;;  %v7838_v34 = vpop.xlane.xlu2 %2881  ;;  %4466 = vpow2.f32 %v3069_v40  ;;  %v3195_v12 = vsel %vm2810_vm0, %v7842_v24, 0.0 }
 0x441   :  { %4468 = vpow2.f32 %v3073_v54  ;;  %v3079_v51 = vmul.f32 1.442695, %v3009_v43  ;;  %v3077_v63 = vmul.f32 1.442695, %v3008_v2 }
 0x442   :  { %v2994_v45 = vsel %vm2810_vm0, %v7823_v9, -inf  ;;  %v3071_v26 = vmul.f32 1.442695, %v3005_v6 }
 0x444   :  { %4470 = vpow2.f32 %v3071_v26 }
 0x445   :  { %v2595_v52 = vpop.f32.mrf.mxu2  ;;  %2995 = vmax.xlane.f32.xlu1 %v2994_v45  ;;  %v7855_v14 = vpop.xlane.xlu1 %2878 }
 0x446   :  { %v2596_v5 = vadd.f32 %v7712_v55, %v2595_v52  ;;  %v2804_v35 = vpop.f32.mrf.mxu3  ;;  %v7853_v40 = vpop.eup %4466 }
 0x447   :  { %v7859_v16 = vpop.xlane.xlu0 %2884  ;;  %v7865_v6 = vpop.eup %4468 }
 0x448   :  { %v7840_v49 = vadd.f32 %v2804_v35, %v2596_v5  ;;  %v3075_v35 = vmul.f32 1.442695, %v3007_v22  ;;  %v7861_v54 = vpop.xlane.xlu2 %2890  ;;  %v3198_v22 = vsel %vm2810_vm0, %v7853_v40, 0.0  ;;  %v3204_v43 = vsel %vm2810_vm0, %v7865_v6, 0.0 }
 0x44a   :  { %v2997_v53 = vsel %vm2810_vm0, %v7840_v49, -inf  ;;  %4472 = vpow2.f32 %v3075_v35 }
 0x44b   :  { %2998 = vmax.xlane.f32.xlu2 %v2997_v53  ;;  %4474 = vpow2.f32 %v3079_v51  ;;  %v3013_v51 = vsub.f32 %v7227_v11, %v7780_v10 }
 0x44c   :  { %4476 = vpow2.f32 %v3077_v63  ;;  %v3014_v63 = vsub.f32 %v7257_v21, %v7762_v19  ;;  %v3018_v21 = vsub.f32 %v7381_v1, %v7802_v7 }
 0x44d   :  { %3196 = vadd.xlane.f32.xlu1 %v3195_v12  ;;  %v2598_v15 = vpop.f32.mrf.mxu2  ;;  %v7877_v12 = vpop.eup %4470 }
 0x44e   :  { %v2599_v45 = vadd.f32 %v7712_v55, %v2598_v15  ;;  %v2807_v52 = vpop.f32.mrf.mxu3  ;;  %v3010_v55 = vsub.f32 %v7134_v61, %v7758_v33  ;;  %v3085_v33 = vmul.f32 1.442695, %v3012_v42  ;;  %v7881_v35 = vpop.xlane.xlu1 %2887  ;;  %v3011_v15 = vsub.f32 %v7164_v29, %v7742_v18 }
 0x44f   :  { %v7885_v0 = vpop.xlane.xlu0 %2893  ;;  %v3201_v2 = vsel %vm2810_vm0, %v7877_v12, 0.0  ;;  %v3015_v29 = vsub.f32 %v7295_v32, %v7782_v20  ;;  %v3089_v19 = vmul.f32 1.442695, %v3014_v63 }
 0x450   :  { %v7863_v5 = vadd.f32 %v2807_v52, %v2599_v45  ;;  %v3081_v26 = vmul.f32 1.442695, %v3010_v55  ;;  %v7879_v61 = vpop.eup %4472  ;;  %v3083_v18 = vmul.f32 1.442695, %v3011_v15 }
 0x451   :  { %v7889_v45 = vpop.eup %4474  ;;  %v3207_v52 = vsel %vm2810_vm0, %v7879_v61, 0.0  ;;  %v3091_v10 = vmul.f32 1.442695, %v3015_v29  ;;  %v10329_v29 = vld [vmem:[#allocation69_spill] sm:$0xff] }
 0x452   :  { %v3000_v53 = vsel %vm2810_vm0, %v7863_v5, -inf  ;;  %4478 = vpow2.f32 %v3081_v26  ;;  %v3213_v55 = vsel %vm2810_vm0, %v7889_v45, 0.0  ;;  %v3016_v26 = vsub.f32 %v7331_v4, %v7800_v56 }
 0x453   :  { %3199 = vadd.xlane.f32.xlu2 %v3198_v22  ;;  %3001 = vmax.xlane.f32.xlu0 %v3000_v53  ;;  %4480 = vpow2.f32 %v3085_v33  ;;  %v3087_v22 = vmul.f32 1.442695, %v3013_v51  ;;  %v7901_v53 = vpop.eup %4476  ;;  %v3097_v56 = vmul.f32 1.442695, %v3018_v21 }
 0x454   :  { %4482 = vpow2.f32 %v3083_v18  ;;  %v3210_v15 = vsel %vm2810_vm0, %v7901_v53, 0.0  ;;  %v3017_v18 = vsub.f32 %v10329_v29, %v7784_v47  ;;  %v10332_v47 = vld [vmem:[#allocation24_spill] sm:$0xff] }
 0x455   :  { %3205 = vadd.xlane.f32.xlu1 %v3204_v43  ;;  %4484 = vpow2.f32 %v3087_v22  ;;  %v10331_v22 = vld [vmem:[#allocation21_spill] sm:$0xff] }
 0x456   :  { %v7905_v42 = vpop.xlane.xlu1 %2896  ;;  %4486 = vpow2.f32 %v3091_v10  ;;  %v3019_v10 = vsub.f32 %v10331_v22, %v7817_v31  ;;  %v3095_v21 = vmul.f32 1.442695, %v3017_v18  ;;  %v10335_v22 = vld [vmem:[#allocation23_spill] sm:$0xff]  ;;  %v10336_v18 = vld [vmem:[#allocation85_spill] sm:$0xff] }
 0x457   :  { %4488 = vpow2.f32 %v3089_v19 }
 0x458   :  { %v7887_v58 = vpop.xlane.xlu2 %2899  ;;  %v7903_v11 = vpop.eup %4478 }
 0x459   :  { %v7913_v43 = vpop.eup %4480  ;;  %v3216_v33 = vsel %vm2810_vm0, %v7903_v11, 0.0 }
 0x45a   :  { %v3222_v51 = vsel %vm2810_vm0, %v7913_v43, 0.0 }
 0x45b   :  { %3208 = vadd.xlane.f32.xlu2 %v3207_v52  ;;  %3202 = vadd.xlane.f32.xlu0 %v3201_v2  ;;  %v3093_v52 = vmul.f32 1.442695, %v3016_v26  ;;  %v7925_v2 = vpop.eup %4482 }
 0x45c   :  { %10328 = vst [vmem:[#allocation27_spill] sm:$0xff] %v7925_v2  ;;  %v7927_v4 = vpop.eup %4484 }
 0x45d   :  { %3214 = vadd.xlane.f32.xlu1 %v3213_v55  ;;  %v7935_v7 = vpop.eup %4486  ;;  %4490 = vpow2.f32 %v3093_v52  ;;  %v3225_v26 = vsel %vm2810_vm0, %v7927_v4, 0.0 }
 0x45e   :  { %10330 = vst [vmem:[#allocation157_spill] sm:$0xff] %v7935_v7  ;;  %4492 = vpow2.f32 %v3097_v56  ;;  %v3231_v19 = vsel %vm2810_vm0, %v7935_v7, 0.0  ;;  %v7949_v31 = vpop.eup %4488  ;;  %v3020_v56 = vsub.f32 %v10335_v22, %v7804_v62  ;;  %v10337_v62 = vld [vmem:[#allocation179_spill] sm:$0xff] }
 0x45f   :  { %10333 = vst [vmem:[#allocation112_spill] sm:$0xff] %v7949_v31  ;;  %4494 = vpow2.f32 %v3095_v21  ;;  %v3024_v21 = vsub.f32 %v10337_v62, %v7836_v46 }
 0x460   :  { %v7909_v32 = vpop.xlane.xlu2 %2908  ;;  %v7911_v20 = vpop.xlane.xlu0 %2902 }
 0x463   :  { %3217 = vadd.xlane.f32.xlu2 %v3216_v33  ;;  %3211 = vadd.xlane.f32.xlu0 %v3210_v15  ;;  %v3219_v33 = vsel %vm2810_vm0, %v7925_v2, 0.0  ;;  %v3021_v15 = vsub.f32 %v10332_v47, %v7819_v13  ;;  %v7951_v52 = vpop.eup %4490 }
 0x464   :  { %10334 = vst [vmem:[#allocation86_spill] sm:$0xff] %v7951_v52  ;;  %v3234_v47 = vsel %vm2810_vm0, %v7951_v52, 0.0  ;;  %v3109_v52 = vmul.f32 1.442695, %v3024_v21 }
 0x465   :  { %3223 = vadd.xlane.f32.xlu1 %v3222_v51  ;;  %v3099_v51 = vmul.f32 1.442695, %v3019_v10  ;;  %v3103_v29 = vmul.f32 1.442695, %v3021_v15  ;;  %v3022_v10 = vsub.f32 %v10336_v18, %v7832_v57  ;;  %v3228_v15 = vsel %vm2810_vm0, %v7949_v31, 0.0  ;;  %v10340_v31 = vld [vmem:[#allocation93_spill] sm:$0xff] }
 0x467   :  { %4496 = vpow2.f32 %v3099_v51  ;;  %v3105_v22 = vmul.f32 1.442695, %v3022_v10 }
 0x468   :  { %v7931_v55 = vpop.xlane.xlu1 %2905  ;;  %v7933_v1 = vpop.xlane.xlu2 %2917  ;;  %4498 = vpow2.f32 %v3103_v29  ;;  %v3023_v29 = vsub.f32 %v10340_v31, %v7821_v44  ;;  %v3027_v44 = vsub.f32 %v7597_v28, %v7859_v16  ;;  %v3028_v16 = vsub.f32 %v7619_v30, %v7881_v35 }
 0x469   :  { %v7939_v63 = vpop.xlane.xlu0 %2911 }
 0x46a   :  { %v3107_v31 = vmul.f32 1.442695, %v3023_v29  ;;  %v3117_v35 = vmul.f32 1.442695, %v3028_v16 }
 0x46b   :  { %3226 = vadd.xlane.f32.xlu2 %v3225_v26  ;;  %3220 = vadd.xlane.f32.xlu0 %v3219_v33  ;;  %v7959_v26 = vpop.eup %4492 }
 0x46c   :  { %v3240_v51 = vsel %vm2810_vm0, %v7959_v26, 0.0  ;;  %v7973_v57 = vpop.eup %4494 }
 0x46d   :  { %3232 = vadd.xlane.f32.xlu1 %v3231_v19  ;;  %v3101_v19 = vmul.f32 1.442695, %v3020_v56  ;;  %10338 = vst [vmem:[#allocation30_spill] sm:$0xff] %v7973_v57  ;;  %v7975_v18 = vpop.eup %4496  ;;  %v10341_v56 = vld [vmem:[#allocation109_spill] sm:$0xff]  ;;  %v3237_v21 = vsel %vm2810_vm0, %v7973_v57, 0.0  ;;  %v10342_v57 = vld [vmem:[#allocation136_spill] sm:$0xff] }
 0x46e   :  { %10339 = vst [vmem:[#allocation83_spill] sm:$0xff] %v7975_v18  ;;  %v3025_v10 = vsub.f32 %v10341_v56, %v7855_v14  ;;  %v3243_v62 = vsel %vm2810_vm0, %v7975_v18, 0.0  ;;  %v3115_v56 = vmul.f32 1.442695, %v3027_v44 }
 0x46f   :  { %4500 = vpow2.f32 %v3101_v19 }
 0x470   :  { %v7955_v2 = vpop.xlane.xlu1 %2914  ;;  %v7957_v13 = vpop.xlane.xlu2 %2926  ;;  %4502 = vpow2.f32 %v3105_v22 }
 0x471   :  { %v7963_v33 = vpop.xlane.xlu0 %2920  ;;  %4504 = vpow2.f32 %v3109_v52  ;;  %v3026_v52 = vsub.f32 %v10342_v57, %v7838_v34  ;;  %v3030_v34 = vsub.f32 %v7635_v41, %v7885_v0  ;;  %v3031_v0 = vsub.f32 %v7643_v23, %v7905_v42 }
 0x472   :  { %4506 = vpow2.f32 %v3107_v31 }
 0x473   :  { %3235 = vadd.xlane.f32.xlu2 %v3234_v47  ;;  %3229 = vadd.xlane.f32.xlu0 %v3228_v15  ;;  %v7983_v47 = vpop.eup %4498  ;;  %v3113_v57 = vmul.f32 1.442695, %v3026_v52  ;;  %v3123_v42 = vmul.f32 1.442695, %v3031_v0 }
 0x474   :  { %v3249_v19 = vsel %vm2810_vm0, %v7983_v47, 0.0 }
 0x475   :  { %3241 = vadd.xlane.f32.xlu1 %v3240_v51  ;;  %v3111_v51 = vmul.f32 1.442695, %v3025_v10  ;;  %v7997_v14 = vpop.eup %4500 }
 0x476   :  { %v7999_v22 = vpop.eup %4502 }
 0x477   :  { %v8005_v28 = vpop.eup %4504  ;;  %4508 = vpow2.f32 %v3111_v51  ;;  %v3029_v51 = vsub.f32 %v7627_v8, %v7861_v54  ;;  %v3033_v8 = vsub.f32 %v7663_v50, %v7911_v20 }
 0x478   :  { %v7979_v7 = vpop.xlane.xlu1 %2923  ;;  %v7981_v46 = vpop.xlane.xlu2 %2935  ;;  %4510 = vpow2.f32 %v3115_v56  ;;  %v3258_v30 = vsel %vm2810_vm0, %v8005_v28, 0.0 }
 0x479   :  { %v7987_v15 = vpop.xlane.xlu0 %2929  ;;  %v8021_v44 = vpop.eup %4506  ;;  %4512 = vpow2.f32 %v3113_v57  ;;  %v3119_v54 = vmul.f32 1.442695, %v3029_v51 }
 0x47a   :  { %4514 = vpow2.f32 %v3117_v35  ;;  %v3032_v35 = vsub.f32 %v7651_v48, %v7887_v58  ;;  %v3036_v48 = vsub.f32 %v7675_v3, %v7939_v63 }
 0x47b   :  { %3244 = vadd.xlane.f32.xlu2 %v3243_v62  ;;  %3238 = vadd.xlane.f32.xlu0 %v3237_v21  ;;  %v3252_v62 = vsel %vm2810_vm0, %v7999_v22, 0.0  ;;  %v3246_v21 = vsel %vm2810_vm0, %v7997_v14, 0.0 }
 0x47c   :  { %v3125_v58 = vmul.f32 1.442695, %v3032_v35 }
 0x47d   :  { %3250 = vadd.xlane.f32.xlu1 %v3249_v19  ;;  %v8023_v31 = vpop.eup %4508  ;;  %v3121_v19 = vmul.f32 1.442695, %v3030_v34 }
 0x47e   :  { %v8029_v41 = vpop.eup %4510  ;;  %v3261_v16 = vsel %vm2810_vm0, %v8023_v31, 0.0 }
 0x47f   :  { %4516 = vpow2.f32 %v3121_v19  ;;  %v3267_v23 = vsel %vm2810_vm0, %v8029_v41, 0.0  ;;  %v8045_v34 = vpop.eup %4512  ;;  %v3034_v19 = vsub.f32 %v7677_v37, %v7931_v55 }
 0x480   :  { %v8003_v18 = vpop.xlane.xlu1 %2932  ;;  %v8011_v10 = vpop.xlane.xlu2 %2944  ;;  %4518 = vpow2.f32 %v3119_v54 }
 0x481   :  { %v8009_v29 = vpop.xlane.xlu0 %2938  ;;  %v8047_v57 = vpop.eup %4514  ;;  %4520 = vpow2.f32 %v3123_v42  ;;  %v3035_v42 = vsub.f32 %v7660_v17, %v7909_v32  ;;  %v3039_v17 = vsub.f32 %v7399_v39, %v7963_v33 }
 0x482   :  { %v3270_v0 = vsel %vm2810_vm0, %v8047_v57, 0.0 }
 0x483   :  { %3253 = vadd.xlane.f32.xlu2 %v3252_v62  ;;  %3247 = vadd.xlane.f32.xlu0 %v3246_v21  ;;  %v3255_v62 = vsel %vm2810_vm0, %v8021_v44, 0.0  ;;  %v3131_v32 = vmul.f32 1.442695, %v3035_v42 }
 0x485   :  { %3259 = vadd.xlane.f32.xlu1 %v3258_v30  ;;  %v3127_v30 = vmul.f32 1.442695, %v3033_v8  ;;  %v8053_v20 = vpop.eup %4516  ;;  %v3129_v8 = vmul.f32 1.442695, %v3034_v19 }
 0x486   :  { %v8067_v37 = vpop.eup %4518 }
 0x487   :  { %4522 = vpow2.f32 %v3127_v30  ;;  %v8071_v54 = vpop.eup %4520  ;;  %v3037_v30 = vsub.f32 %v7351_v60, %v7955_v2 }
 0x488   :  { %v8027_v56 = vpop.xlane.xlu1 %2941  ;;  %v8041_v21 = vpop.xlane.xlu2 %2953  ;;  %4524 = vpow2.f32 %v3125_v58  ;;  %v3279_v19 = vsel %vm2810_vm0, %v8071_v54, 0.0  ;;  %v3139_v58 = vmul.f32 1.442695, %v3039_v17 }
 0x489   :  { %v8033_v52 = vpop.xlane.xlu0 %2947  ;;  %4526 = vpow2.f32 %v3129_v8 }
 0x48b   :  { %3262 = vadd.xlane.f32.xlu2 %v3261_v16  ;;  %3256 = vadd.xlane.f32.xlu0 %v3255_v62  ;;  %v3264_v16 = vsel %vm2810_vm0, %v8045_v34, 0.0  ;;  %v3276_v62 = vsel %vm2810_vm0, %v8053_v20, 0.0 }
 0x48d   :  { %3268 = vadd.xlane.f32.xlu1 %v3267_v23  ;;  %v3133_v23 = vmul.f32 1.442695, %v3036_v48  ;;  %v8077_v63 = vpop.eup %4522  ;;  %v3135_v48 = vmul.f32 1.442695, %v3037_v30 }
 0x48e   :  { %v8091_v60 = vpop.eup %4524 }
 0x48f   :  { %4528 = vpow2.f32 %v3133_v23  ;;  %10343 = vst [vmem:[#allocation96_spill] sm:$0xff] %v8091_v60  ;;  %v8093_v2 = vpop.eup %4526  ;;  %v3040_v23 = vsub.f32 %v7423_v25, %v7979_v7  ;;  %v3282_v30 = vsel %vm2810_vm0, %v8091_v60, 0.0  ;;  %v3041_v25 = vsub.f32 %v7447_v27, %v7957_v13 }
 0x490   :  { %v8051_v50 = vpop.xlane.xlu1 %2950  ;;  %v8069_v55 = vpop.xlane.xlu2 %2962  ;;  %10344 = vst [vmem:[#allocation137_spill] sm:$0xff] %v8093_v2  ;;  %4530 = vpow2.f32 %v3131_v32  ;;  %v3288_v42 = vsel %vm2810_vm0, %v8093_v2, 0.0  ;;  %v3044_v32 = vsub.f32 %v7519_v36, %v7981_v46  ;;  %v10352_v46 = vld [vmem:[#allocation91_spill] sm:$0xff] }
 0x491   :  { %v8057_v51 = vpop.xlane.xlu0 %2956  ;;  %4532 = vpow2.f32 %v3135_v48  ;;  %v3141_v7 = vmul.f32 1.442695, %v3040_v23  ;;  %v3143_v13 = vmul.f32 1.442695, %v3041_v25  ;;  %v10351_v23 = vld [vmem:[#allocation37_spill] sm:$0xff]  ;;  %v10353_v25 = vld [vmem:[#allocation94_spill] sm:$0xff] }
 0x492   :  { %4534 = vpow2.f32 %v3139_v58  ;;  %v10349_v58 = vld [vmem:[#allocation18_spill] sm:$0xff]  ;;  %v3149_v36 = vmul.f32 1.442695, %v3044_v32 }
 0x493   :  { %3271 = vadd.xlane.f32.xlu2 %v3270_v0  ;;  %3265 = vadd.xlane.f32.xlu0 %v3264_v16  ;;  %v3273_v0 = vsel %vm2810_vm0, %v8067_v37, 0.0  ;;  %v3285_v16 = vsel %vm2810_vm0, %v8077_v63, 0.0  ;;  %v10354_v32 = vld [vmem:[#allocation22_spill] sm:$0xff] }
 0x495   :  { %3277 = vadd.xlane.f32.xlu1 %v3276_v62  ;;  %v3038_v62 = vsub.f32 %v7377_v59, %v7933_v1  ;;  %v8101_v33 = vpop.eup %4528  ;;  %v3042_v59 = vsub.f32 %v7471_v38, %v7987_v15  ;;  %v10348_v15 = vld [vmem:[#allocation88_spill] sm:$0xff] }
 0x496   :  { %10345 = vst [vmem:[#allocation149_spill] sm:$0xff] %v8101_v33  ;;  %v8117_v17 = vpop.eup %4530  ;;  %v3043_v48 = vsub.f32 %v10348_v15, %v8003_v18  ;;  %v3048_v15 = vsub.f32 %v10354_v32, %v8033_v52 }
 0x497   :  { %v3137_v1 = vmul.f32 1.442695, %v3038_v62  ;;  %10346 = vst [vmem:[#allocation114_spill] sm:$0xff] %v8117_v17  ;;  %v3145_v38 = vmul.f32 1.442695, %v3042_v59  ;;  %v3047_v62 = vsub.f32 %v10349_v58, %v8011_v10  ;;  %v3046_v59 = vsub.f32 %v10352_v46, %v8027_v56 }
 0x498   :  { %v8075_v3 = vpop.xlane.xlu1 %2959  ;;  %v8097_v8 = vpop.xlane.xlu2 %2971  ;;  %v3291_v10 = vsel %vm2810_vm0, %v8117_v17, 0.0 }
 0x499   :  { %v8081_v35 = vpop.xlane.xlu0 %2965  ;;  %4536 = vpow2.f32 %v3137_v1  ;;  %v3147_v1 = vmul.f32 1.442695, %v3043_v48  ;;  %v3153_v48 = vmul.f32 1.442695, %v3046_v59  ;;  %v10362_v59 = vld [vmem:[#allocation72_spill] sm:$0xff] }
 0x49a   :  { %4538 = vpow2.f32 %v3141_v7  ;;  %v3050_v7 = vsub.f32 %v10353_v25, %v8041_v21  ;;  %v10357_v21 = vld [vmem:[#allocation19_spill] sm:$0xff]  ;;  %v3157_v25 = vmul.f32 1.442695, %v3048_v15 }
 0x49b   :  { %3280 = vadd.xlane.f32.xlu2 %v3279_v19  ;;  %3274 = vadd.xlane.f32.xlu0 %v3273_v0  ;;  %v3294_v0 = vsel %vm2810_vm0, %v8101_v33, 0.0  ;;  %4540 = vpow2.f32 %v3145_v38 }
 0x49c   :  { %4542 = vpow2.f32 %v3143_v13  ;;  %v3161_v52 = vmul.f32 1.442695, %v3050_v7  ;;  %v10359_v13 = vld [vmem:[#allocation180_spill] sm:$0xff] }
 0x49d   :  { %3286 = vadd.xlane.f32.xlu1 %v3285_v16  ;;  %v8121_v16 = vpop.eup %4532  ;;  %4544 = vpow2.f32 %v3149_v36 }
 0x49e   :  { %10347 = vst [vmem:[#allocation25_spill] sm:$0xff] %v8121_v16  ;;  %v8129_v27 = vpop.eup %4534  ;;  %v3297_v18 = vsel %vm2810_vm0, %v8121_v16, 0.0  ;;  %4546 = vpow2.f32 %v3147_v1 }
 0x49f   :  { %10350 = vst [vmem:[#allocation9_spill] sm:$0xff] %v8129_v27  ;;  %v3303_v56 = vsel %vm2810_vm0, %v8129_v27, 0.0  ;;  %v8149_v38 = vpop.eup %4536 }
 0x4a0   :  { %v8099_v39 = vpop.xlane.xlu1 %2968  ;;  %10356 = vst [vmem:[#allocation10_spill] sm:$0xff] %v8149_v38  ;;  %v3300_v1 = vsel %vm2810_vm0, %v8149_v38, 0.0 }
 0x4a1   :  { %v8111_v19 = vpop.xlane.xlu0 %2974 }
 0x4a3   :  { %3289 = vadd.xlane.f32.xlu2 %v3288_v42  ;;  %3283 = vadd.xlane.f32.xlu0 %v3282_v30  ;;  %v3045_v30 = vsub.f32 %v10351_v23, %v8009_v29  ;;  %v3155_v29 = vmul.f32 1.442695, %v3047_v62  ;;  %v10355_v23 = vld [vmem:[#allocation146_spill] sm:$0xff] }
 0x4a4   :  { %v3049_v46 = vsub.f32 %v10355_v23, %v8051_v50  ;;  %v10360_v50 = vld [vmem:[#allocation111_spill] sm:$0xff]  ;;  %v3056_v23 = vsub.f32 %v10362_v59, %v8097_v8 }
 0x4a5   :  { %3295 = vadd.xlane.f32.xlu1 %v3294_v0  ;;  %v8135_v0 = vpop.xlane.xlu2 %2980  ;;  %v3151_v58 = vmul.f32 1.442695, %v3045_v30  ;;  %v3051_v30 = vsub.f32 %v10359_v13, %v8057_v51  ;;  %4548 = vpow2.f32 %v3155_v29  ;;  %v3052_v32 = vsub.f32 %v10360_v50, %v8075_v3  ;;  %v10363_v51 = vld [vmem:[#allocation7_spill] sm:$0xff] }
 0x4a6   :  { %v3054_v29 = vsub.f32 %v10363_v51, %v8081_v35 }
 0x4a7   :  { %4550 = vpow2.f32 %v3151_v58  ;;  %v10365_v58 = vld [vmem:[#allocation139_spill] sm:$0xff] }
 0x4a8   :  { %v8127_v42 = vpop.xlane.xlu1 %2977  ;;  %4552 = vpow2.f32 %v3153_v48  ;;  %v3165_v48 = vmul.f32 1.442695, %v3052_v32  ;;  %v10371_v32 = vld [vmem:[#allocation42_spill] sm:$0xff] }
 0x4a9   :  { %v8153_v62 = vpop.xlane.xlu0 %2983  ;;  %4554 = vpow2.f32 %v3161_v52  ;;  %v3173_v52 = vmul.f32 1.442695, %v3056_v23  ;;  %v3058_v51 = vsub.f32 %v10371_v32, %v8127_v42 }
 0x4aa   :  { %4556 = vpow2.f32 %v3157_v25  ;;  %v3169_v25 = vmul.f32 1.442695, %v3054_v29 }
 0x4ab   :  { %3298 = vadd.xlane.f32.xlu2 %v3297_v18  ;;  %3292 = vadd.xlane.f32.xlu0 %v3291_v10  ;;  %v3053_v18 = vsub.f32 %v10357_v21, %v8069_v55  ;;  %v8155_v10 = vpop.eup %4538  ;;  %v3159_v55 = vmul.f32 1.442695, %v3049_v46  ;;  %v3163_v21 = vmul.f32 1.442695, %v3051_v30  ;;  %v3055_v46 = vsub.f32 %v10365_v58, %v8099_v39  ;;  %v10369_v30 = vld [vmem:[#allocation153_spill] sm:$0xff] }
 0x4ac   :  { %10358 = vst [vmem:[#allocation105_spill] sm:$0xff] %v8155_v10  ;;  %v8163_v36 = vpop.eup %4540  ;;  %v3306_v3 = vsel %vm2810_vm0, %v8155_v10, 0.0  ;;  %v3057_v39 = vsub.f32 %v10369_v30, %v8111_v19  ;;  %v10373_v58 = vld [vmem:[#allocation33_spill] sm:$0xff]  ;;  %v10375_v19 = vld [vmem:[#allocation102_spill] sm:$0xff] }
 0x4ad   :  { %3304 = vadd.xlane.f32.xlu1 %v3303_v56  ;;  %10361 = vst [vmem:[#allocation140_spill] sm:$0xff] %v8163_v36  ;;  %v3167_v7 = vmul.f32 1.442695, %v3053_v18  ;;  %v8173_v15 = vpop.eup %4542  ;;  %v10367_v18 = vld [vmem:[#allocation41_spill] sm:$0xff]  ;;  %v2990_v35 = vpop.xlane.xlu2 %2989  ;;  %v3312_v50 = vsel %vm2810_vm0, %v8163_v36, 0.0  ;;  %4558 = vpow2.f32 %v3159_v55  ;;  %v3060_v23 = vsub.f32 %v10375_v19, %v8153_v62 }
 0x4ae   :  { %10364 = vst [vmem:[#allocation155_spill] sm:$0xff] %v8173_v15  ;;  %v8177_v8 = vpop.eup %4544  ;;  %v3059_v13 = vsub.f32 %v10367_v18, %v8135_v0  ;;  %v3062_v18 = vsub.f32 %v10373_v58, %v2990_v35  ;;  %v3175_v29 = vmul.f32 1.442695, %v3057_v39  ;;  %v3309_v42 = vsel %vm2810_vm0, %v8173_v15, 0.0  ;;  %v10378_v35 = vld [vmem:[#allocation181_spill] sm:$0xff]  ;;  %v10380_v58 = vld [vmem:[#allocation95_spill] sm:$0xff] }
 0x4af   :  { %10366 = vst [vmem:[#allocation39_spill] sm:$0xff] %v8177_v8  ;;  %v8183_v59 = vpop.eup %4546  ;;  %4560 = vpow2.f32 %v3167_v7  ;;  %v3181_v19 = vmul.f32 1.442695, %v3060_v23 }
 0x4b0   :  { %v8161_v56 = vpop.xlane.xlu1 %2986  ;;  %10368 = vst [vmem:[#allocation97_spill] sm:$0xff] %v8183_v59  ;;  %4562 = vpow2.f32 %v3163_v21  ;;  %v3179_v55 = vmul.f32 1.442695, %v3059_v13  ;;  %v3315_v13 = vsel %vm2810_vm0, %v8183_v59, 0.0  ;;  %v3185_v32 = vmul.f32 1.442695, %v3062_v18 }
 0x4b1   :  { %4564 = vpow2.f32 %v3165_v48  ;;  %v3061_v48 = vsub.f32 %v10378_v35, %v8161_v56 }
 0x4b2   :  { %4566 = vpow2.f32 %v3173_v52 }
 0x4b3   :  { %3307 = vadd.xlane.f32.xlu2 %v3306_v3  ;;  %3301 = vadd.xlane.f32.xlu0 %v3300_v1  ;;  %v8187_v1 = vpop.eup %4548  ;;  %v3171_v3 = vmul.f32 1.442695, %v3055_v46  ;;  %4568 = vpow2.f32 %v3169_v25  ;;  %v3177_v46 = vmul.f32 1.442695, %v3058_v51 }
 0x4b4   :  { %10370 = vst [vmem:[#allocation142_spill] sm:$0xff] %v8187_v1  ;;  %v8191_v0 = vpop.eup %4550 }
 0x4b5   :  { %3313 = vadd.xlane.f32.xlu1 %v3312_v50  ;;  %10372 = vst [vmem:[#allocation160_spill] sm:$0xff] %v8191_v0  ;;  %v8194_v36 = vpop.eup %4552  ;;  %v2993_v50 = vpop.xlane.xlu0 %2992  ;;  %4570 = vpow2.f32 %v3171_v3  ;;  %v3321_v56 = vsel %vm2810_vm0, %v8191_v0, 0.0  ;;  %v3183_v3 = vmul.f32 1.442695, %v3061_v48  ;;  %v3318_v48 = vsel %vm2810_vm0, %v8177_v8, 0.0 }
 0x4b6   :  { %10374 = vst [vmem:[#allocation190_spill] sm:$0xff] %v8194_v36  ;;  %v8198_v7 = vpop.eup %4554  ;;  %v3063_v52 = vsub.f32 %v10380_v58, %v2993_v50  ;;  %4572 = vpow2.f32 %v3179_v55 }
 0x4b7   :  { %10376 = vst [vmem:[#allocation78_spill] sm:$0xff] %v8198_v7  ;;  %v8202_v21 = vpop.eup %4556  ;;  %4574 = vpow2.f32 %v3175_v29 }
 0x4b8   :  { %v2996_v30 = vpop.xlane.xlu1 %2995  ;;  %10377 = vst [vmem:[#allocation115_spill] sm:$0xff] %v8202_v21  ;;  %v8208_v62 = vpop.eup %4558  ;;  %4576 = vpow2.f32 %v3177_v46  ;;  %v3324_v46 = vsel %vm2810_vm0, %v8194_v36, 0.0 }
 0x4b9   :  { %10379 = vst [vmem:[#allocation75_spill] sm:$0xff] %v8208_v62  ;;  %v8211_v39 = vpop.eup %4560  ;;  %v3064_v25 = vsub.f32 %v7823_v9, %v2996_v30  ;;  %4578 = vpow2.f32 %v3185_v32 }
 0x4ba   :  { %10381 = vst [vmem:[#allocation178_spill] sm:$0xff] %v8211_v39  ;;  %v8216_v51 = vpop.eup %4562  ;;  %4580 = vpow2.f32 %v3181_v19 }
 0x4bb   :  { %3316 = vadd.xlane.f32.xlu2 %v3315_v13  ;;  %3310 = vadd.xlane.f32.xlu0 %v3309_v42  ;;  %10382 = vst [vmem:[#allocation31_spill] sm:$0xff] %v8216_v51  ;;  %v8218_v35 = vpop.eup %4564  ;;  %v3187_v42 = vmul.f32 1.442695, %v3063_v52  ;;  %v3189_v9 = vmul.f32 1.442695, %v3064_v25  ;;  %v3330_v52 = vsel %vm2810_vm0, %v8202_v21, 0.0 }
 0x4bc   :  { %10383 = vst [vmem:[#allocation98_spill] sm:$0xff] %v8218_v35  ;;  %v8220_v50 = vpop.eup %4566 }
 0x4bd   :  { %3322 = vadd.xlane.f32.xlu1 %v3321_v56  ;;  %10384 = vst [vmem:[#allocation57_spill] sm:$0xff] %v8220_v50  ;;  %v8222_v55 = vpop.eup %4568 }
 0x4be   :  { %v2999_v18 = vpop.xlane.xlu2 %2998  ;;  %10385 = vst [vmem:[#allocation189_spill] sm:$0xff] %v8222_v55  ;;  %v8226_v30 = vpop.eup %4570  ;;  %v8274_v8 = vsel %vm2810_vm0, %v8222_v55, 0.0 }
 0x4bf   :  { %10386 = vst [vmem:[#allocation15_spill] sm:$0xff] %v8226_v30  ;;  %v8229_v29 = vpop.eup %4572  ;;  %v3065_v58 = vsub.f32 %v7840_v49, %v2999_v18  ;;  %v8254_v49 = vsel %vm2810_vm0, %v8198_v7, 0.0 }
 0x4c0   :  { %v8224_v23 = vpop.xlane.xlu1 %3196  ;;  %10387 = vst [vmem:[#allocation151_spill] sm:$0xff] %v8229_v29  ;;  %v8235_v13 = vpop.eup %4574  ;;  %v8301_v59 = vsel %vm2810_vm0, %v8229_v29, 0.0 }
 0x4c1   :  { %4582 = vrcp.f32 %v8224_v23  ;;  %10388 = vst [vmem:[#allocation117_spill] sm:$0xff] %v8235_v13  ;;  %v8237_v32 = vpop.eup %4576  ;;  %v3398_v36 = vand.u32 2147483648, %v8224_v23  ;;  %v8293_v15 = vsel %vm2810_vm0, %v8235_v13, 0.0  ;;  %vm3392_vm2 = vweird.f32 %v8224_v23 }
 0x4c2   :  { %4584 = vpow2.f32 %v3183_v3  ;;  %10389 = vst [vmem:[#allocation188_spill] sm:$0xff] %v8237_v32  ;;  %v8242_v19 = vpop.eup %4578 }
 0x4c3   :  { %4586 = vpow2.f32 %v3187_v42  ;;  %3325 = vadd.xlane.f32.xlu2 %v3324_v46  ;;  %3319 = vadd.xlane.f32.xlu0 %v3318_v48  ;;  %10390 = vst [vmem:[#allocation13_spill] sm:$0xff] %v8242_v19  ;;  %v8244_v25 = vpop.eup %4580  ;;  %v3333_v42 = vsel %vm2810_vm0, %v8208_v62, 0.0  ;;  %v3327_v46 = vsel %vm2810_vm0, %v8187_v1, 0.0  ;;  %v8261_v48 = vsel %vm2810_vm0, %v8218_v35, 0.0 }
 0x4c4   :  { %4588 = vpow2.f32 %v3189_v9  ;;  %10391 = vst [vmem:[#allocation14_spill] sm:$0xff] %v8244_v25  ;;  %v3339_v9 = vsel %vm2810_vm0, %v8216_v51, 0.0  ;;  %v3191_v1 = vmul.f32 1.442695, %v3065_v58  ;;  %v8278_v51 = vsel %vm2810_vm0, %v8220_v50, 0.0 }
 0x4c5   :  { %3331 = vadd.xlane.f32.xlu1 %v3330_v52  ;;  %v8265_v52 = vsel %vm2810_vm0, %v8211_v39, 0.0  ;;  %v3396_v39 = vand.u32 2147483647, %v8224_v23  ;;  %v8287_v58 = vsel %vm2810_vm0, %v8226_v30, 0.0  ;;  %v8297_v50 = vsel %vm2810_vm0, %v8237_v32, 0.0 }
 0x4c6   :  { %v8246_v56 = vpop.xlane.xlu2 %3199  ;;  %v3002_v3 = vpop.xlane.xlu0 %3001  ;;  %v8306_v30 = vsel %vm2810_vm0, %v8244_v25, 0.0  ;;  %v8314_v32 = vsel %vm2810_vm0, %v8242_v19, 0.0 }
 0x4c7   :  { %v4583_v18 = vpop.eup %4582  ;;  %4590 = vrcp.f32 %v8246_v56  ;;  %v3066_v38 = vsub.f32 %v7863_v5, %v3002_v3  ;;  %vm8321_vm3 = vcmp.eq.f32.partialorder %v3396_v39, 8.507059e+37  ;;  %vm3407_vm4 = vweird.f32 %v8246_v56 }
 0x4c8   :  { %v8267_v62 = vpop.eup %4584  ;;  %v3388_v7 = vmul.f32 %v4583_v18, %v8224_v23  ;;  %v8270_v21 = vpop.xlane.xlu1 %3205  ;;  %vm3393_vm1 = vweird.f32 %v4583_v18 }
 0x4c9   :  { %10392 = vst [vmem:[#allocation108_spill] sm:$0xff] %v8267_v62  ;;  %v8280_v35 = vpop.eup %4586  ;;  %4592 = vrcp.f32 %v8270_v21  ;;  %vm3394_vm5 = vmor %vm3392_vm2, %vm3393_vm1  ;;  %v3443_v10 = vand.u32 2147483648, %v8270_v21  ;;  %vm3437_vm8 = vweird.f32 %v8270_v21 }
 0x4ca   :  { %10393 = vst [vmem:[#allocation46_spill] sm:$0xff] %v8280_v35  ;;  %v8289_v0 = vpop.eup %4588  ;;  %v3389_v55 = vsub.f32 1.0, %v3388_v7  ;;  %v8310_v7 = vsel %vm2810_vm0, %v8267_v62, 0.0  ;;  %4594 = vpow2.f32 %v3191_v1  ;;  %v8318_v5 = vsel %vm2810_vm0, %v8280_v35, 0.0 }
 0x4cb   :  { %10394 = vst [vmem:[#allocation141_spill] sm:$0xff] %v8289_v0  ;;  %3334 = vadd.xlane.f32.xlu2 %v3333_v42  ;;  %3328 = vadd.xlane.f32.xlu0 %v3327_v46  ;;  %v3399_v46 = vor.u32 1.1754944e-38, %v3398_v36  ;;  %v8327_v19 = vsel %vm2810_vm0, %v8289_v0, 0.0  ;;  %v3411_v35 = vand.u32 2147483647, %v8246_v56  ;;  %v3413_v36 = vand.u32 2147483648, %v8246_v56 }
 0x4cc   :  { %v3390_v13 = vmul.f32 %v4583_v18, %v3389_v55  ;;  %v3441_v0 = vand.u32 2147483647, %v8270_v21 }
 0x4cd   :  { %v4591_v3 = vpop.eup %4590  ;;  %3340 = vadd.xlane.f32.xlu1 %v3339_v9  ;;  %v3193_v9 = vmul.f32 1.442695, %v3066_v38  ;;  %vm8352_vm7 = vcmp.eq.f32.partialorder %v3411_v35, 8.507059e+37  ;;  %v3414_v2 = vor.u32 1.1754944e-38, %v3413_v36 }
 0x4ce   :  { %v3391_v1 = vadd.f32 %v4583_v18, %v3390_v13  ;;  %v3403_v55 = vmul.f32 %v4591_v3, %v8246_v56  ;;  %v8332_v29 = vpop.xlane.xlu2 %3208  ;;  %v8334_v23 = vpop.xlane.xlu0 %3202  ;;  %vm3408_vm6 = vweird.f32 %v4591_v3  ;;  %vm8367_vm11 = vcmp.eq.f32.partialorder %v3441_v0, 8.507059e+37 }
 0x4cf   :  { %v4593_v39 = vpop.eup %4592  ;;  %4596 = vrcp.f32 %v8332_v29  ;;  %v3456_v16 = vand.u32 2147483647, %v8332_v29  ;;  %vm3409_vm10 = vmor %vm3407_vm4, %vm3408_vm6  ;;  %vm3452_vm12 = vweird.f32 %v8332_v29  ;;  %vm3422_vm15 = vweird.f32 %v8334_v23 }
 0x4d0   :  { %v3395_v13 = vsel %vm3394_vm5, %v4583_v18, %v3391_v1  ;;  %v3404_v62 = vsub.f32 1.0, %v3403_v55  ;;  %v3433_v25 = vmul.f32 %v4593_v39, %v8270_v21  ;;  %v8342_v27 = vpop.xlane.xlu1 %3214  ;;  %4598 = vrcp.f32 %v8334_v23  ;;  %v8348_v38 = vpop.eup %4594 }
 0x4d1   :  { %v3400_v17 = vsel %vm8321_vm3, %v3399_v46, %v3395_v13  ;;  %v3458_v55 = vand.u32 2147483648, %v8332_v29  ;;  %4600 = vrcp.f32 %v8342_v27  ;;  %vm3438_vm9 = vweird.f32 %v4593_v39 }
 0x4d2   :  { %v3401_v33 = vmul.f32 %v7842_v24, %v3400_v17  ;;  %v3405_v18 = vmul.f32 %v4591_v3, %v3404_v62  ;;  %v3434_v1 = vsub.f32 1.0, %v3433_v25  ;;  %4602 = vpow2.f32 %v3193_v9  ;;  %vm3439_vm14 = vmor %vm3437_vm8, %vm3438_vm9 }
 0x4d3   :  { %3343 = vadd.xlane.f32.xlu2 %v8261_v48  ;;  %3337 = vadd.xlane.f32.xlu0 %v8254_v49  ;;  %v3444_v25 = vor.u32 1.1754944e-38, %v3443_v10  ;;  %vm8378_vm13 = vcmp.eq.f32.partialorder %v3456_v16, 8.507059e+37  ;;  %v3459_v0 = vor.u32 1.1754944e-38, %v3458_v55  ;;  %v3428_v21 = vand.u32 2147483648, %v8334_v23 }
 0x4d4   :  { %4347 = vst.msk [vmem:[%s9465_s5] sm:$0xff] %vm2810_vm0, %v3401_v33  ;;  %v3406_v24 = vadd.f32 %v4591_v3, %v3405_v18  ;;  %v3435_v17 = vmul.f32 %v4593_v39, %v3434_v1  ;;  %v8375_v33 = vsel %vm2810_vm0, %v8348_v38, 0.0  ;;  %vm3482_vm2 = vweird.f32 %v8342_v27 }
 0x4d5   :  { %v4597_v62 = vpop.eup %4596  ;;  %3349 = vadd.xlane.f32.xlu1 %v8274_v8  ;;  %v3426_v8 = vand.u32 2147483647, %v8334_v23 }
 0x4d6   :  { %v3410_v49 = vsel %vm3409_vm10, %v4591_v3, %v3406_v24  ;;  %v3436_v48 = vadd.f32 %v4593_v39, %v3435_v17  ;;  %v3448_v42 = vmul.f32 %v4597_v62, %v8332_v29  ;;  %v8382_v46 = vpop.xlane.xlu2 %3217  ;;  %v4599_v10 = vpop.eup %4598  ;;  %vm3453_vm1 = vweird.f32 %v4597_v62 }
 0x4d7   :  { %v3415_v36 = vsel %vm8352_vm7, %v3414_v2, %v3410_v49  ;;  %4604 = vrcp.f32 %v8382_v46  ;;  %v3418_v13 = vmul.f32 %v4599_v10, %v8334_v23  ;;  %v8394_v18 = vpop.xlane.xlu0 %3211  ;;  %v4601_v60 = vpop.eup %4600  ;;  %vm8410_vm3 = vcmp.eq.f32.partialorder %v3426_v8, 8.507059e+37  ;;  %vm3454_vm5 = vmor %vm3452_vm12, %vm3453_vm1 }
 0x4d8   :  { %v3416_v16 = vmul.f32 %v7853_v40, %v3415_v36  ;;  %v3440_v3 = vsel %vm3439_vm14, %v4593_v39, %v3436_v48  ;;  %v3449_v9 = vsub.f32 1.0, %v3448_v42  ;;  %v8400_v1 = vpop.eup %4602  ;;  %v3478_v24 = vmul.f32 %v4601_v60, %v8342_v27  ;;  %v8408_v17 = vpop.xlane.xlu1 %3223 }
 0x4d9   :  { %v3445_v2 = vsel %vm8367_vm11, %v3444_v25, %v3440_v3  ;;  %v3419_v55 = vsub.f32 1.0, %v3418_v13  ;;  %v3486_v25 = vand.u32 2147483647, %v8342_v27  ;;  %v3488_v49 = vand.u32 2147483648, %v8342_v27 }
 0x4da   :  { %4348 = vst.msk [vmem:[%s9465_s5 + $0x8] sm:$0xff] %vm2810_vm0, %v3416_v16  ;;  %v3446_v40 = vmul.f32 %v7865_v6, %v3445_v2  ;;  %v3450_v39 = vmul.f32 %v4597_v62, %v3449_v9  ;;  %4606 = vrcp.f32 %v8394_v18  ;;  %vm3423_vm4 = vweird.f32 %v4599_v10 }
 0x4db   :  { %3352 = vadd.xlane.f32.xlu2 %v8287_v58  ;;  %3346 = vadd.xlane.f32.xlu0 %v8265_v52  ;;  %v3420_v48 = vmul.f32 %v4599_v10, %v3419_v55  ;;  %v3479_v42 = vsub.f32 1.0, %v3478_v24  ;;  %v3429_v8 = vor.u32 1.1754944e-38, %v3428_v21  ;;  %vm3483_vm6 = vweird.f32 %v4601_v60  ;;  %vm3424_vm7 = vmor %vm3422_vm15, %vm3423_vm4 }
 0x4dc   :  { %4350 = vst.msk [vmem:[%s9465_s5 + $0x18] sm:$0xff] %vm2810_vm0, %v3446_v40  ;;  %v3451_v6 = vadd.f32 %v4597_v62, %v3450_v39  ;;  %4608 = vrcp.f32 %v8408_v17  ;;  %v8430_v52 = vsel %vm2810_vm0, %v8400_v1, 0.0  ;;  %vm8440_vm8 = vcmp.eq.f32.partialorder %v3486_v25, 8.507059e+37  ;;  %vm3484_vm9 = vmor %vm3482_vm2, %vm3483_vm6 }
 0x4dd   :  { %v4605_v36 = vpop.eup %4604  ;;  %3358 = vadd.xlane.f32.xlu1 %v8293_v15  ;;  %v3421_v16 = vadd.f32 %v4599_v10, %v3420_v48  ;;  %v3480_v3 = vmul.f32 %v4601_v60, %v3479_v42  ;;  %v3501_v2 = vand.u32 2147483647, %v8382_v46  ;;  %v3489_v23 = vor.u32 1.1754944e-38, %v3488_v49 }
 0x4de   :  { %v3455_v58 = vsel %vm3454_vm5, %v4597_v62, %v3451_v6  ;;  %v3493_v9 = vmul.f32 %v4605_v36, %v8382_v46  ;;  %v8433_v13 = vpop.xlane.xlu2 %3226  ;;  %v3503_v62 = vand.u32 2147483648, %v8382_v46  ;;  %vm3497_vm10 = vweird.f32 %v8382_v46 }
 0x4df   :  { %v3460_v29 = vsel %vm8378_vm13, %v3459_v0, %v3455_v58  ;;  %v3425_v40 = vsel %vm3424_vm7, %v4599_v10, %v3421_v16  ;;  %v3481_v39 = vadd.f32 %v4601_v60, %v3480_v3  ;;  %vm3498_vm11 = vweird.f32 %v4605_v36  ;;  %v8459_v25 = vpop.xlane.xlu0 %3220 }
 0x4e0   :  { %v3461_v21 = vmul.f32 %v7879_v61, %v3460_v29  ;;  %v3494_v55 = vsub.f32 1.0, %v3493_v9  ;;  %v4607_v24 = vpop.eup %4606  ;;  %v3430_v56 = vsel %vm8410_vm3, %v3429_v8, %v3425_v40  ;;  %vm8463_vm12 = vcmp.eq.f32.partialorder %v3501_v2, 8.507059e+37  ;;  %vm3499_vm13 = vmor %vm3497_vm10, %vm3498_vm11  ;;  %v8488_v9 = vpop.xlane.xlu1 %3232 }
 0x4e1   :  { %v3431_v61 = vmul.f32 %v7877_v12, %v3430_v56  ;;  %v3485_v0 = vsel %vm3484_vm9, %v4601_v60, %v3481_v39  ;;  %v3463_v35 = vmul.f32 %v4607_v24, %v8394_v18  ;;  %v3504_v48 = vor.u32 1.1754944e-38, %v3503_v62 }
 0x4e2   :  { %4351 = vst.msk [vmem:[%s9465_s5 + $0x20] sm:$0xff] %vm2810_vm0, %v3461_v21  ;;  %v3495_v10 = vmul.f32 %v4605_v36, %v3494_v55  ;;  %v4609_v6 = vpop.eup %4608  ;;  %v3490_v27 = vsel %vm8440_vm8, %v3489_v23, %v3485_v0  ;;  %v3471_v42 = vand.u32 2147483647, %v8394_v18  ;;  %v3473_v16 = vand.u32 2147483648, %v8394_v18 }
 0x4e3   :  { %3361 = vadd.xlane.f32.xlu2 %v8297_v50  ;;  %3355 = vadd.xlane.f32.xlu0 %v8278_v51  ;;  %4349 = vst.msk [vmem:[%s9465_s5 + $0x10] sm:$0xff] %vm2810_vm0, %v3431_v61  ;;  %v3491_v12 = vmul.f32 %v7889_v45, %v3490_v27  ;;  %v3464_v8 = vsub.f32 1.0, %v3463_v35  ;;  %v3523_v58 = vmul.f32 %v4609_v6, %v8408_v17  ;;  %v3531_v50 = vand.u32 2147483647, %v8408_v17 }
 0x4e4   :  { %v3496_v60 = vadd.f32 %v4605_v36, %v3495_v10  ;;  %v3533_v51 = vand.u32 2147483648, %v8408_v17  ;;  %4610 = vrcp.f32 %v8433_v13  ;;  %vm3468_vm14 = vweird.f32 %v4607_v24 }
 0x4e5   :  { %3367 = vadd.xlane.f32.xlu1 %v8306_v30  ;;  %4353 = vst.msk [vmem:[%s9465_s5 + $0x30] sm:$0xff] %vm2810_vm0, %v3491_v12  ;;  %v3465_v3 = vmul.f32 %v4607_v24, %v3464_v8  ;;  %v3524_v46 = vsub.f32 1.0, %v3523_v58  ;;  %vm3467_vm15 = vweird.f32 %v8394_v18  ;;  %vm3528_vm1 = vweird.f32 %v4609_v6 }
 0x4e6   :  { %v3500_v45 = vsel %vm3499_vm13, %v4605_v36, %v3496_v60  ;;  %4612 = vrcp.f32 %v8459_v25  ;;  %v3546_v62 = vand.u32 2147483647, %v8433_v13  ;;  %v8496_v36 = vpop.xlane.xlu2 %3235  ;;  %vm3469_vm2 = vmor %vm3467_vm15, %vm3468_vm14  ;;  %vm3472_vm3 = vcmp.eq.f32.partialorder %v3471_v42, 8.507059e+37 }
 0x4e7   :  { %v3505_v29 = vsel %vm8463_vm12, %v3504_v48, %v3500_v45  ;;  %v3466_v15 = vadd.f32 %v4607_v24, %v3465_v3  ;;  %v3525_v2 = vmul.f32 %v4609_v6, %v3524_v46  ;;  %v3474_v21 = vor.u32 1.1754944e-38, %v3473_v16  ;;  %v8520_v10 = vpop.xlane.xlu0 %3229 }
 0x4e8   :  { %v3506_v30 = vmul.f32 %v7903_v11, %v3505_v29  ;;  %vm3527_vm4 = vweird.f32 %v8408_v17  ;;  %4614 = vrcp.f32 %v8488_v9  ;;  %vm8504_vm5 = vcmp.eq.f32.partialorder %v3531_v50, 8.507059e+37  ;;  %v8543_v58 = vpop.xlane.xlu1 %3241 }
 0x4e9   :  { %v3470_v18 = vsel %vm3469_vm2, %v4607_v24, %v3466_v15  ;;  %v3526_v11 = vadd.f32 %v4609_v6, %v3525_v2  ;;  %v3534_v39 = vor.u32 1.1754944e-38, %v3533_v51  ;;  %vm3529_vm6 = vmor %vm3527_vm4, %vm3528_vm1  ;;  %vm3542_vm7 = vweird.f32 %v8433_v13 }
 0x4ea   :  { %4354 = vst.msk [vmem:[%s9465_s5 + $0x38] sm:$0xff] %vm2810_vm0, %v3506_v30  ;;  %v4611_v55 = vpop.eup %4610  ;;  %v3475_v56 = vsel %vm3472_vm3, %v3474_v21, %v3470_v18  ;;  %v3548_v17 = vand.u32 2147483648, %v8433_v13  ;;  %4616 = vrcp.f32 %v8496_v36  ;;  %vm8516_vm8 = vcmp.eq.f32.partialorder %v3546_v62, 8.507059e+37 }
 0x4eb   :  { %3370 = vadd.xlane.f32.xlu2 %v8310_v7  ;;  %3364 = vadd.xlane.f32.xlu0 %v8301_v59  ;;  %v3476_v24 = vmul.f32 %v7901_v53, %v3475_v56  ;;  %v3530_v23 = vsel %vm3529_vm6, %v4609_v6, %v3526_v11  ;;  %v3538_v61 = vmul.f32 %v4611_v55, %v8433_v13  ;;  %v3516_v49 = vand.u32 2147483647, %v8459_v25 }
 0x4ec   :  { %v4613_v35 = vpop.eup %4612  ;;  %v3535_v27 = vsel %vm8504_vm5, %v3534_v39, %v3530_v23  ;;  %v3518_v7 = vand.u32 2147483648, %v8459_v25  ;;  %v3576_v59 = vand.u32 2147483647, %v8488_v9  ;;  %vm3512_vm9 = vweird.f32 %v8459_v25 }
 0x4ed   :  { %3376 = vadd.xlane.f32.xlu1 %v8318_v5  ;;  %4352 = vst.msk [vmem:[%s9465_s5 + $0x28] sm:$0xff] %vm2810_vm0, %v3476_v24  ;;  %v3536_v53 = vmul.f32 %v7913_v43, %v3535_v27  ;;  %v3539_v6 = vsub.f32 1.0, %v3538_v61  ;;  %v3508_v48 = vmul.f32 %v4613_v35, %v8459_v25  ;;  %v3549_v12 = vor.u32 1.1754944e-38, %v3548_v17 }
 0x4ee   :  { %v4615_v42 = vpop.eup %4614  ;;  %vm3572_vm10 = vweird.f32 %v8488_v9  ;;  %v3578_v60 = vand.u32 2147483648, %v8488_v9  ;;  %4618 = vrcp.f32 %v8520_v10  ;;  %vm3543_vm11 = vweird.f32 %v4611_v55  ;;  %v8567_v56 = vpop.xlane.xlu2 %3244 }
 0x4ef   :  { %4356 = vst.msk [vmem:[%s9465_s5 + $0x48] sm:$0xff] %vm2810_vm0, %v3536_v53  ;;  %v3540_v5 = vmul.f32 %v4611_v55, %v3539_v6  ;;  %v3509_v43 = vsub.f32 1.0, %v3508_v48  ;;  %v3568_v8 = vmul.f32 %v4615_v42, %v8488_v9  ;;  %vm3513_vm12 = vweird.f32 %v4613_v35  ;;  %vm3544_vm15 = vmor %vm3542_vm7, %vm3543_vm11  ;;  %v10420_v6 = vld [vmem:[#allocation157_spill] sm:$0xff] }
 0x4f0   :  { %v4617_v16 = vpop.eup %4616  ;;  %vm8545_vm13 = vcmp.eq.f32.partialorder %v3516_v49, 8.507059e+37  ;;  %v3519_v51 = vor.u32 1.1754944e-38, %v3518_v7  ;;  %vm8549_vm14 = vcmp.eq.f32.partialorder %v3576_v59, 8.507059e+37  ;;  %vm3573_vm1 = vweird.f32 %v4615_v42  ;;  %vm3514_vm2 = vmor %vm3512_vm9, %vm3513_vm12 }
 0x4f1   :  { %v3541_v3 = vadd.f32 %v4611_v55, %v3540_v5  ;;  %v3510_v46 = vmul.f32 %v4613_v35, %v3509_v43  ;;  %v3569_v29 = vsub.f32 1.0, %v3568_v8  ;;  %v3583_v30 = vmul.f32 %v4617_v16, %v8496_v36  ;;  %vm3574_vm5 = vmor %vm3572_vm10, %vm3573_vm1  ;;  %v8603_v5 = vpop.xlane.xlu1 %3250 }
 0x4f2   :  { %v3591_v15 = vand.u32 2147483647, %v8496_v36  ;;  %v3593_v2 = vand.u32 2147483648, %v8496_v36  ;;  %4620 = vrcp.f32 %v8543_v58  ;;  %v3579_v39 = vor.u32 1.1754944e-38, %v3578_v60 }
 0x4f3   :  { %3379 = vadd.xlane.f32.xlu2 %v8327_v19  ;;  %3373 = vadd.xlane.f32.xlu0 %v8314_v32  ;;  %v3545_v62 = vsel %vm3544_vm15, %v4611_v55, %v3541_v3  ;;  %v3511_v21 = vadd.f32 %v4613_v35, %v3510_v46  ;;  %v3570_v18 = vmul.f32 %v4615_v42, %v3569_v29  ;;  %v3584_v11 = vsub.f32 1.0, %v3583_v30 }
 0x4f4   :  { %v4619_v40 = vpop.eup %4618  ;;  %v3550_v13 = vsel %vm8516_vm8, %v3549_v12, %v3545_v62  ;;  %vm3587_vm3 = vweird.f32 %v8496_v36  ;;  %vm3588_vm4 = vweird.f32 %v4617_v16  ;;  %vm8576_vm6 = vcmp.eq.f32.partialorder %v3591_v15, 8.507059e+37 }
 0x4f5   :  { %3385 = vadd.xlane.f32.xlu1 %v8430_v52  ;;  %v3551_v32 = vmul.f32 %v7927_v4, %v3550_v13  ;;  %v3515_v19 = vsel %vm3514_vm2, %v4613_v35, %v3511_v21  ;;  %v3571_v55 = vadd.f32 %v4615_v42, %v3570_v18  ;;  %v3585_v17 = vmul.f32 %v4617_v16, %v3584_v11  ;;  %v8581_v52 = vpop.xlane.xlu0 %3238  ;;  %v10419_v4 = vld [vmem:[#allocation27_spill] sm:$0xff]  ;;  %vm3589_vm7 = vmor %vm3587_vm3, %vm3588_vm4 }
 0x4f6   :  { %v3520_v24 = vsel %vm8545_vm13, %v3519_v51, %v3515_v19  ;;  %v3594_v23 = vor.u32 1.1754944e-38, %v3593_v2  ;;  %v3553_v61 = vmul.f32 %v4619_v40, %v8520_v10  ;;  %v3561_v9 = vand.u32 2147483647, %v8520_v10  ;;  %v8627_v2 = vpop.xlane.xlu2 %3253 }
 0x4f7   :  { %4357 = vst.msk [vmem:[%s9465_s5 + $0x50] sm:$0xff] %vm2810_vm0, %v3551_v32  ;;  %v3521_v0 = vmul.f32 %v10419_v4, %v3520_v24  ;;  %v3575_v35 = vsel %vm3574_vm5, %v4615_v42, %v3571_v55  ;;  %v3586_v27 = vadd.f32 %v4617_v16, %v3585_v17  ;;  %v3563_v53 = vand.u32 2147483648, %v8520_v10 }
 0x4f8   :  { %v4621_v49 = vpop.eup %4620  ;;  %v3580_v7 = vsel %vm8549_vm14, %v3579_v39, %v3575_v35  ;;  %v3554_v59 = vsub.f32 1.0, %v3553_v61  ;;  %4622 = vrcp.f32 %v8567_v56  ;;  %v3621_v60 = vand.u32 2147483647, %v8543_v58 }
 0x4f9   :  { %4355 = vst.msk [vmem:[%s9465_s5 + $0x40] sm:$0xff] %vm2810_vm0, %v3521_v0  ;;  %v3581_v48 = vmul.f32 %v10420_v6, %v3580_v7  ;;  %v3590_v42 = vsel %vm3589_vm7, %v4617_v16, %v3586_v27  ;;  %v3613_v12 = vmul.f32 %v4621_v49, %v8543_v58  ;;  %vm3558_vm8 = vweird.f32 %v4619_v40  ;;  %v10421_v16 = vld [vmem:[#allocation86_spill] sm:$0xff]  ;;  %v8653_v27 = vpop.xlane.xlu1 %3259 }
 0x4fa   :  { %v3595_v36 = vsel %vm8576_vm6, %v3594_v23, %v3590_v42  ;;  %v3555_v43 = vmul.f32 %v4619_v40, %v3554_v59  ;;  %v3623_v8 = vand.u32 2147483648, %v8543_v58  ;;  %4624 = vrcp.f32 %v8581_v52 }
 0x4fb   :  { %3382 = vadd.xlane.f32.xlu0 %v8375_v33  ;;  %4359 = vst.msk [vmem:[%s9465_s5 + $0x60] sm:$0xff] %vm2810_vm0, %v3581_v48  ;;  %v3596_v50 = vmul.f32 %v10421_v16, %v3595_v36  ;;  %v3614_v51 = vsub.f32 1.0, %v3613_v12  ;;  %vm3557_vm9 = vweird.f32 %v8520_v10  ;;  %vm3562_vm10 = vcmp.eq.f32.partialorder %v3561_v9, 8.507059e+37 }
 0x4fc   :  { %v3556_v45 = vadd.f32 %v4619_v40, %v3555_v43  ;;  %v3564_v3 = vor.u32 1.1754944e-38, %v3563_v53  ;;  %vm3559_vm11 = vmor %vm3557_vm9, %vm3558_vm8  ;;  %vm3617_vm12 = vweird.f32 %v8543_v58  ;;  %vm3618_vm13 = vweird.f32 %v4621_v49  ;;  %v10424_v58 = vld [vmem:[#allocation112_spill] sm:$0xff] }
 0x4fd   :  { %4360 = vst.msk [vmem:[%s9465_s5 + $0x68] sm:$0xff] %vm2810_vm0, %v3596_v50  ;;  %v3615_v33 = vmul.f32 %v4621_v49, %v3614_v51  ;;  %4626 = vrcp.f32 %v8603_v5  ;;  %vm8622_vm14 = vcmp.eq.f32.partialorder %v3621_v60, 8.507059e+37  ;;  %v3624_v10 = vor.u32 1.1754944e-38, %v3623_v8  ;;  %vm3619_vm1 = vmor %vm3617_vm12, %vm3618_vm13  ;;  %v8635_v39 = vpop.xlane.xlu0 %3247 }
 0x4fe   :  { %v4623_v46 = vpop.eup %4622  ;;  %v3560_v29 = vsel %vm3559_vm11, %v4619_v40, %v3556_v45  ;;  %v3636_v15 = vand.u32 2147483647, %v8567_v56  ;;  %vm3632_vm15 = vweird.f32 %v8567_v56  ;;  %v3638_v40 = vand.u32 2147483648, %v8567_v56  ;;  %v8677_v51 = vpop.xlane.xlu2 %3262 }
 0x4ff   :  { %v3565_v62 = vsel %vm3562_vm10, %v3564_v3, %v3560_v29  ;;  %v3616_v21 = vadd.f32 %v4621_v49, %v3615_v33  ;;  %v3628_v18 = vmul.f32 %v4623_v46, %v8567_v56  ;;  %vm3602_vm2 = vweird.f32 %v8581_v52  ;;  %v10431_v3 = vld [vmem:[#allocation83_spill] sm:$0xff] }
 0x500   :  { %v3566_v11 = vmul.f32 %v10424_v58, %v3565_v62  ;;  %v3606_v13 = vand.u32 2147483647, %v8581_v52  ;;  %v4625_v32 = vpop.eup %4624  ;;  %v3608_v17 = vand.u32 2147483648, %v8581_v52  ;;  %4628 = vrcp.f32 %v8627_v2 }
 0x501   :  { %v3620_v19 = vsel %vm3619_vm1, %v4621_v49, %v3616_v21  ;;  %v3629_v55 = vsub.f32 1.0, %v3628_v18  ;;  %vm8645_vm3 = vcmp.eq.f32.partialorder %v3636_v15, 8.507059e+37  ;;  %v3598_v23 = vmul.f32 %v4625_v32, %v8581_v52 }
 0x502   :  { %4358 = vst.msk [vmem:[%s9465_s5 + $0x58] sm:$0xff] %vm2810_vm0, %v3566_v11  ;;  %v3625_v24 = vsel %vm8622_vm14, %v3624_v10, %v3620_v19  ;;  %v3666_v61 = vand.u32 2147483647, %v8603_v5  ;;  %vm3633_vm4 = vweird.f32 %v4623_v46  ;;  %4630 = vrcp.f32 %v8635_v39  ;;  %v10434_v11 = vld [vmem:[#allocation30_spill] sm:$0xff] }
 0x503   :  { %v4627_v4 = vpop.eup %4626  ;;  %v3626_v0 = vmul.f32 %v7959_v26, %v3625_v24  ;;  %v3630_v35 = vmul.f32 %v4623_v46, %v3629_v55  ;;  %v3639_v9 = vor.u32 1.1754944e-38, %v3638_v40  ;;  %v3599_v49 = vsub.f32 1.0, %v3598_v23  ;;  %vm3634_vm7 = vmor %vm3632_vm15, %vm3633_vm4 }
 0x504   :  { %v3658_v7 = vmul.f32 %v4627_v4, %v8603_v5  ;;  %vm3662_vm5 = vweird.f32 %v8603_v5  ;;  %vm8661_vm6 = vcmp.eq.f32.partialorder %v3606_v13, 8.507059e+37  ;;  %v3609_v53 = vor.u32 1.1754944e-38, %v3608_v17 }
 0x505   :  { %4362 = vst.msk [vmem:[%s9465_s5 + $0x78] sm:$0xff] %vm2810_vm0, %v3626_v0  ;;  %v3631_v59 = vadd.f32 %v4623_v46, %v3630_v35  ;;  %v3668_v6 = vand.u32 2147483648, %v8603_v5  ;;  %v3600_v48 = vmul.f32 %v4625_v32, %v3599_v49  ;;  %vm3603_vm8 = vweird.f32 %v4625_v32  ;;  %v8700_v18 = vpop.xlane.xlu0 %3256 }
 0x506   :  { %v3659_v42 = vsub.f32 1.0, %v3658_v7  ;;  %4632 = vrcp.f32 %v8653_v27  ;;  %v4629_v12 = vpop.eup %4628  ;;  %vm3663_vm9 = vweird.f32 %v4627_v4  ;;  %vm8669_vm10 = vcmp.eq.f32.partialorder %v3666_v61, 8.507059e+37  ;;  %vm3604_vm11 = vmor %vm3602_vm2, %vm3603_vm8  ;;  %v8724_v7 = vpop.xlane.xlu1 %3268 }
 0x507   :  { %v3635_v60 = vsel %vm3634_vm7, %v4623_v46, %v3631_v59  ;;  %v3681_v43 = vand.u32 2147483647, %v8627_v2  ;;  %v3601_v16 = vadd.f32 %v4625_v32, %v3600_v48  ;;  %v3673_v50 = vmul.f32 %v4629_v12, %v8627_v2  ;;  %vm3664_vm13 = vmor %vm3662_vm5, %vm3663_vm9 }
 0x508   :  { %v3640_v8 = vsel %vm8645_vm3, %v3639_v9, %v3635_v60  ;;  %v3660_v56 = vmul.f32 %v4627_v4, %v3659_v42  ;;  %v4631_v45 = vpop.eup %4630  ;;  %v3669_v46 = vor.u32 1.1754944e-38, %v3668_v6  ;;  %vm3677_vm12 = vweird.f32 %v8627_v2 }
 0x509   :  { %v3641_v33 = vmul.f32 %v10431_v3, %v3640_v8  ;;  %v3683_v29 = vand.u32 2147483648, %v8627_v2  ;;  %v3605_v30 = vsel %vm3604_vm11, %v4625_v32, %v3601_v16  ;;  %v3674_v15 = vsub.f32 1.0, %v3673_v50 }
 0x50a   :  { %v3661_v10 = vadd.f32 %v4627_v4, %v3660_v56  ;;  %v3643_v62 = vmul.f32 %v4631_v45, %v8635_v39  ;;  %v3610_v21 = vsel %vm8661_vm6, %v3609_v53, %v3605_v30  ;;  %vm3678_vm14 = vweird.f32 %v4629_v12 }
 0x50b   :  { %4363 = vst.msk [vmem:[%s9465_s5 + $0x80] sm:$0xff] %vm2810_vm0, %v3641_v33  ;;  %vm8695_vm15 = vcmp.eq.f32.partialorder %v3681_v43, 8.507059e+37  ;;  %4634 = vrcp.f32 %v8677_v51  ;;  %v3611_v40 = vmul.f32 %v10434_v11, %v3610_v21  ;;  %v3675_v32 = vmul.f32 %v4629_v12, %v3674_v15  ;;  %vm3679_vm2 = vmor %vm3677_vm12, %vm3678_vm14 }
 0x50c   :  { %v4633_v58 = vpop.eup %4632  ;;  %v3665_v13 = vsel %vm3664_vm13, %v4627_v4, %v3661_v10  ;;  %v3644_v19 = vsub.f32 1.0, %v3643_v62  ;;  %v3651_v5 = vand.u32 2147483647, %v8635_v39  ;;  %v3653_v17 = vand.u32 2147483648, %v8635_v39 }
 0x50d   :  { %v3670_v55 = vsel %vm8669_vm10, %v3669_v46, %v3665_v13  ;;  %v3703_v24 = vmul.f32 %v4633_v58, %v8653_v27  ;;  %4361 = vst.msk [vmem:[%s9465_s5 + $0x70] sm:$0xff] %vm2810_vm0, %v3611_v40  ;;  %v3676_v23 = vadd.f32 %v4629_v12, %v3675_v32  ;;  %vm3648_vm1 = vweird.f32 %v4631_v45 }
 0x50e   :  { %v3671_v25 = vmul.f32 %v7983_v47, %v3670_v55  ;;  %v3645_v61 = vmul.f32 %v4631_v45, %v3644_v19  ;;  %v3684_v4 = vor.u32 1.1754944e-38, %v3683_v29  ;;  %v3711_v35 = vand.u32 2147483647, %v8653_v27  ;;  %v8765_v11 = vpop.xlane.xlu1 %3277 }
 0x50f   :  { %v3704_v0 = vsub.f32 1.0, %v3703_v24  ;;  %4636 = vrcp.f32 %v8700_v18  ;;  %v3680_v9 = vsel %vm3679_vm2, %v4629_v12, %v3676_v23  ;;  %vm3647_vm3 = vweird.f32 %v8635_v39  ;;  %v8730_v12 = vpop.xlane.xlu2 %3271 }
 0x510   :  { %4365 = vst.msk [vmem:[%s9465_s5 + $0x90] sm:$0xff] %vm2810_vm0, %v3671_v25  ;;  %v3646_v47 = vadd.f32 %v4631_v45, %v3645_v61  ;;  %v3713_v49 = vand.u32 2147483648, %v8653_v27  ;;  %v3685_v59 = vsel %vm8695_vm15, %v3684_v4, %v3680_v9  ;;  %vm3649_vm4 = vmor %vm3647_vm3, %vm3648_vm1  ;;  %v3654_v26 = vor.u32 1.1754944e-38, %v3653_v17 }
 0x511   :  { %v4635_v2 = vpop.eup %4634  ;;  %v3705_v53 = vmul.f32 %v4633_v58, %v3704_v0  ;;  %vm3708_vm5 = vweird.f32 %v4633_v58  ;;  %v3686_v6 = vmul.f32 %v7999_v22, %v3685_v59  ;;  %vm3652_vm6 = vcmp.eq.f32.partialorder %v3651_v5, 8.507059e+37 }
 0x512   :  { %v3650_v48 = vsel %vm3649_vm4, %v4631_v45, %v3646_v47  ;;  %v3718_v42 = vmul.f32 %v4635_v2, %v8677_v51  ;;  %vm3707_vm7 = vweird.f32 %v8653_v27  ;;  %vm3712_vm8 = vcmp.eq.f32.partialorder %v3711_v35, 8.507059e+37  ;;  %v8742_v45 = vpop.xlane.xlu0 %3265 }
 0x513   :  { %v3655_v39 = vsel %vm3652_vm6, %v3654_v26, %v3650_v48  ;;  %v3706_v60 = vadd.f32 %v4633_v58, %v3705_v53  ;;  %4366 = vst.msk [vmem:[%s9465_s5 + $0x98] sm:$0xff] %vm2810_vm0, %v3686_v6  ;;  %vm3709_vm9 = vmor %vm3707_vm7, %vm3708_vm5  ;;  %v3714_v22 = vor.u32 1.1754944e-38, %v3713_v49  ;;  %4638 = vrcp.f32 %v8724_v7 }
 0x514   :  { %v3656_v36 = vmul.f32 %v7997_v14, %v3655_v39  ;;  %v3719_v43 = vsub.f32 1.0, %v3718_v42  ;;  %v3726_v56 = vand.u32 2147483647, %v8677_v51  ;;  %v3728_v50 = vand.u32 2147483648, %v8677_v51 }
 0x515   :  { %v4637_v8 = vpop.eup %4636  ;;  %v3710_v16 = vsel %vm3709_vm9, %v4633_v58, %v3706_v60  ;;  %v3696_v27 = vand.u32 2147483647, %v8700_v18  ;;  %vm3723_vm10 = vweird.f32 %v4635_v2  ;;  %vm3722_vm11 = vweird.f32 %v8677_v51 }
 0x516   :  { %4364 = vst.msk [vmem:[%s9465_s5 + $0x88] sm:$0xff] %vm2810_vm0, %v3656_v36  ;;  %v3715_v14 = vsel %vm3712_vm8, %v3714_v22, %v3710_v16  ;;  %v3720_v3 = vmul.f32 %v4635_v2, %v3719_v43  ;;  %v3688_v33 = vmul.f32 %v4637_v8, %v8700_v18  ;;  %v3698_v29 = vand.u32 2147483648, %v8700_v18  ;;  %vm3724_vm12 = vmor %vm3722_vm11, %vm3723_vm10 }
 0x517   :  { %v3716_v46 = vmul.f32 %v8005_v28, %v3715_v14  ;;  %4640 = vrcp.f32 %v8730_v12  ;;  %v3756_v15 = vand.u32 2147483647, %v8724_v7  ;;  %v3758_v62 = vand.u32 2147483648, %v8724_v7  ;;  %v8774_v24 = vpop.xlane.xlu2 %3280 }
 0x518   :  { %v3721_v30 = vadd.f32 %v4635_v2, %v3720_v3  ;;  %v3689_v10 = vsub.f32 1.0, %v3688_v33  ;;  %vm3727_vm13 = vcmp.eq.f32.partialorder %v3726_v56, 8.507059e+37  ;;  %v3729_v28 = vor.u32 1.1754944e-38, %v3728_v50  ;;  %v8816_v50 = vpop.xlane.xlu1 %3286 }
 0x519   :  { %4368 = vst.msk [vmem:[%s9465_s5 + $0xa8] sm:$0xff] %vm2810_vm0, %v3716_v46  ;;  %vm3692_vm14 = vweird.f32 %v8700_v18  ;;  %4642 = vrcp.f32 %v8742_v45  ;;  %v4639_v51 = vpop.eup %4638  ;;  %vm3693_vm15 = vweird.f32 %v4637_v8  ;;  %vm8761_vm1 = vcmp.eq.f32.partialorder %v3696_v27, 8.507059e+37 }
 0x51a   :  { %v3725_v21 = vsel %vm3724_vm12, %v4635_v2, %v3721_v30  ;;  %v3690_v52 = vmul.f32 %v4637_v8, %v3689_v10  ;;  %v3699_v13 = vor.u32 1.1754944e-38, %v3698_v29  ;;  %v3748_v32 = vmul.f32 %v4639_v51, %v8724_v7  ;;  %vm3694_vm4 = vmor %vm3692_vm14, %vm3693_vm15  ;;  %v8791_v49 = vpop.xlane.xlu0 %3274 }
 0x51b   :  { %v3730_v40 = vsel %vm3727_vm13, %v3729_v28, %v3725_v21  ;;  %vm3752_vm2 = vweird.f32 %v8724_v7  ;;  %vm8770_vm3 = vcmp.eq.f32.partialorder %v3756_v15, 8.507059e+37  ;;  %v3759_v17 = vor.u32 1.1754944e-38, %v3758_v62 }
 0x51c   :  { %v3731_v19 = vmul.f32 %v8023_v31, %v3730_v40  ;;  %v3691_v55 = vadd.f32 %v4637_v8, %v3690_v52  ;;  %v3749_v23 = vsub.f32 1.0, %v3748_v32  ;;  %v3771_v61 = vand.u32 2147483647, %v8730_v12 }
 0x51d   :  { %v4641_v25 = vpop.eup %4640  ;;  %v3773_v4 = vand.u32 2147483648, %v8730_v12  ;;  %4644 = vrcp.f32 %v8765_v11  ;;  %vm3767_vm5 = vweird.f32 %v8730_v12  ;;  %v3741_v18 = vand.u32 2147483647, %v8742_v45 }
 0x51e   :  { %4369 = vst.msk [vmem:[%s9465_s5 + $0xb0] sm:$0xff] %vm2810_vm0, %v3731_v19  ;;  %v3695_v31 = vsel %vm3694_vm4, %v4637_v8, %v3691_v55  ;;  %v3763_v0 = vmul.f32 %v4641_v25, %v8730_v12  ;;  %v3750_v47 = vmul.f32 %v4639_v51, %v3749_v23  ;;  %vm3753_vm6 = vweird.f32 %v4639_v51 }
 0x51f   :  { %v4643_v35 = vpop.eup %4642  ;;  %v3700_v9 = vsel %vm8761_vm1, %v3699_v13, %v3695_v31  ;;  %4646 = vrcp.f32 %v8774_v24  ;;  %vm3737_vm7 = vweird.f32 %v8742_v45  ;;  %vm8796_vm8 = vcmp.eq.f32.partialorder %v3771_v61, 8.507059e+37  ;;  %vm3754_vm9 = vmor %vm3752_vm2, %vm3753_vm6  ;;  %v8839_v15 = vpop.xlane.xlu2 %3289 }
 0x520   :  { %v3701_v2 = vmul.f32 %v8021_v44, %v3700_v9  ;;  %v3764_v59 = vsub.f32 1.0, %v3763_v0  ;;  %v3733_v26 = vmul.f32 %v4643_v35, %v8742_v45  ;;  %v3751_v53 = vadd.f32 %v4639_v51, %v3750_v47  ;;  %v8869_v47 = vpop.xlane.xlu1 %3295 }
 0x521   :  { %v3774_v48 = vor.u32 1.1754944e-38, %v3773_v4  ;;  %v3743_v42 = vand.u32 2147483648, %v8742_v45  ;;  %vm3768_vm10 = vweird.f32 %v4641_v25  ;;  %4648 = vrcp.f32 %v8791_v49 }
 0x522   :  { %4367 = vst.msk [vmem:[%s9465_s5 + $0xa0] sm:$0xff] %vm2810_vm0, %v3701_v2  ;;  %v3765_v44 = vmul.f32 %v4641_v25, %v3764_v59  ;;  %v3734_v39 = vsub.f32 1.0, %v3733_v26  ;;  %v3755_v36 = vsel %vm3754_vm9, %v4639_v51, %v3751_v53  ;;  %vm3738_vm11 = vweird.f32 %v4643_v35  ;;  %vm3769_vm13 = vmor %vm3767_vm5, %vm3768_vm10  ;;  %v8863_v61 = vpop.xlane.xlu0 %3283 }
 0x523   :  { %v4645_v60 = vpop.eup %4644  ;;  %vm8808_vm12 = vcmp.eq.f32.partialorder %v3741_v18, 8.507059e+37  ;;  %v3801_v43 = vand.u32 2147483647, %v8765_v11  ;;  %v3760_v8 = vsel %vm8770_vm3, %v3759_v17, %v3755_v36  ;;  %v3744_v3 = vor.u32 1.1754944e-38, %v3743_v42  ;;  %vm3739_vm15 = vmor %vm3737_vm7, %vm3738_vm11 }
 0x524   :  { %v3766_v16 = vadd.f32 %v4641_v25, %v3765_v44  ;;  %v3735_v7 = vmul.f32 %v4643_v35, %v3734_v39  ;;  %v3793_v56 = vmul.f32 %v4645_v60, %v8765_v11  ;;  %v3761_v14 = vmul.f32 %v8029_v41, %v3760_v8 }
 0x525   :  { %v4647_v27 = vpop.eup %4646  ;;  %vm3797_vm14 = vweird.f32 %v8765_v11  ;;  %v3803_v33 = vand.u32 2147483648, %v8765_v11  ;;  %vm3798_vm1 = vweird.f32 %v4645_v60  ;;  %vm8834_vm2 = vcmp.eq.f32.partialorder %v3801_v43, 8.507059e+37 }
 0x526   :  { %v3770_v46 = vsel %vm3769_vm13, %v4641_v25, %v3766_v16  ;;  %v3736_v29 = vadd.f32 %v4643_v35, %v3735_v7  ;;  %v3794_v30 = vsub.f32 1.0, %v3793_v56  ;;  %v3808_v10 = vmul.f32 %v4647_v27, %v8774_v24  ;;  %4371 = vst.msk [vmem:[%s9465_s5 + $0xc0] sm:$0xff] %vm2810_vm0, %v3761_v14  ;;  %vm3799_vm4 = vmor %vm3797_vm14, %vm3798_vm1  ;;  %v10458_v14 = vld [vmem:[#allocation25_spill] sm:$0xff] }
 0x527   :  { %v3775_v41 = vsel %vm8796_vm8, %v3774_v48, %v3770_v46  ;;  %4650 = vrcp.f32 %v8816_v50  ;;  %v4649_v62 = vpop.eup %4648  ;;  %v3816_v45 = vand.u32 2147483647, %v8774_v24  ;;  %v3818_v40 = vand.u32 2147483648, %v8774_v24  ;;  %v8881_v44 = vpop.xlane.xlu2 %3298 }
 0x528   :  { %v3776_v28 = vmul.f32 %v8047_v57, %v3775_v41  ;;  %v3740_v51 = vsel %vm3739_vm15, %v4643_v35, %v3736_v29  ;;  %v3795_v21 = vmul.f32 %v4645_v60, %v3794_v30  ;;  %v3809_v52 = vsub.f32 1.0, %v3808_v10 }
 0x529   :  { %v3745_v58 = vsel %vm8808_vm12, %v3744_v3, %v3740_v51  ;;  %v3778_v13 = vmul.f32 %v4649_v62, %v8791_v49  ;;  %vm3813_vm3 = vweird.f32 %v4647_v27  ;;  %v3804_v55 = vor.u32 1.1754944e-38, %v3803_v33 }
 0x52a   :  { %4372 = vst.msk [vmem:[%s9465_s5 + $0xc8] sm:$0xff] %vm2810_vm0, %v3776_v28  ;;  %v3746_v32 = vmul.f32 %v8045_v34, %v3745_v58  ;;  %v3796_v57 = vadd.f32 %v4645_v60, %v3795_v21  ;;  %v3810_v19 = vmul.f32 %v4647_v27, %v3809_v52  ;;  %v3786_v17 = vand.u32 2147483647, %v8791_v49  ;;  %v8904_v3 = vpop.xlane.xlu0 %3292 }
 0x52b   :  { %v3779_v5 = vsub.f32 1.0, %v3778_v13  ;;  %4652 = vrcp.f32 %v8839_v15  ;;  %vm3812_vm5 = vweird.f32 %v8774_v24  ;;  %v3788_v23 = vand.u32 2147483648, %v8791_v49 }
 0x52c   :  { %4370 = vst.msk [vmem:[%s9465_s5 + $0xb8] sm:$0xff] %vm2810_vm0, %v3746_v32  ;;  %v3800_v25 = vsel %vm3799_vm4, %v4645_v60, %v3796_v57  ;;  %v3811_v34 = vadd.f32 %v4647_v27, %v3810_v19  ;;  %vm3814_vm6 = vmor %vm3812_vm5, %vm3813_vm3  ;;  %v3819_v31 = vor.u32 1.1754944e-38, %v3818_v40  ;;  %vm3783_vm7 = vweird.f32 %v4649_v62  ;;  %v10449_v57 = vld [vmem:[#allocation137_spill] sm:$0xff] }
 0x52d   :  { %v4651_v11 = vpop.eup %4650  ;;  %v3805_v4 = vsel %vm8834_vm2, %v3804_v55, %v3800_v25  ;;  %v3780_v0 = vmul.f32 %v4649_v62, %v3779_v5  ;;  %vm3817_vm8 = vcmp.eq.f32.partialorder %v3816_v45, 8.507059e+37  ;;  %vm3782_vm9 = vweird.f32 %v8791_v49 }
 0x52e   :  { %v3806_v18 = vmul.f32 %v8053_v20, %v3805_v4  ;;  %v3815_v35 = vsel %vm3814_vm6, %v4647_v27, %v3811_v34  ;;  %v3838_v9 = vmul.f32 %v4651_v11, %v8816_v50  ;;  %vm3787_vm10 = vcmp.eq.f32.partialorder %v3786_v17, 8.507059e+37  ;;  %vm3784_vm11 = vmor %vm3782_vm9, %vm3783_vm7 }
 0x52f   :  { %v3820_v24 = vsel %vm3817_vm8, %v3819_v31, %v3815_v35  ;;  %v3781_v2 = vadd.f32 %v4649_v62, %v3780_v0  ;;  %v3789_v20 = vor.u32 1.1754944e-38, %v3788_v23  ;;  %4654 = vrcp.f32 %v8863_v61  ;;  %v8930_v32 = vpop.xlane.xlu2 %3307 }
 0x530   :  { %4374 = vst.msk [vmem:[%s9465_s5 + $0xd8] sm:$0xff] %vm2810_vm0, %v3806_v18  ;;  %v3821_v59 = vmul.f32 %v8071_v54, %v3820_v24  ;;  %v3839_v26 = vsub.f32 1.0, %v3838_v9  ;;  %v3846_v48 = vand.u32 2147483647, %v8816_v50  ;;  %v3848_v42 = vand.u32 2147483648, %v8816_v50 }
 0x531   :  { %v4653_v53 = vpop.eup %4652  ;;  %v3785_v6 = vsel %vm3784_vm11, %v4649_v62, %v3781_v2  ;;  %v3861_v49 = vand.u32 2147483647, %v8839_v15  ;;  %vm3843_vm12 = vweird.f32 %v4651_v11  ;;  %vm3842_vm13 = vweird.f32 %v8816_v50  ;;  %v8913_v62 = vpop.xlane.xlu1 %3304 }
 0x532   :  { %4375 = vst.msk [vmem:[%s9465_s5 + $0xe0] sm:$0xff] %vm2810_vm0, %v3821_v59  ;;  %v3790_v54 = vsel %vm3787_vm10, %v3789_v20, %v3785_v6  ;;  %v3840_v39 = vmul.f32 %v4651_v11, %v3839_v26  ;;  %v3853_v60 = vmul.f32 %v4653_v53, %v8839_v15  ;;  %v3863_v22 = vand.u32 2147483648, %v8839_v15  ;;  %vm3844_vm14 = vmor %vm3842_vm13, %vm3843_vm12  ;;  %v8955_v59 = vpop.xlane.xlu0 %3301  ;;  %v10454_v26 = vld [vmem:[#allocation96_spill] sm:$0xff] }
 0x533   :  { %v3791_v36 = vmul.f32 %v8067_v37, %v3790_v54  ;;  %4656 = vrcp.f32 %v8869_v47  ;;  %v3831_v16 = vand.u32 2147483647, %v8863_v61  ;;  %v3833_v7 = vand.u32 2147483648, %v8863_v61 }
 0x534   :  { %v3841_v43 = vadd.f32 %v4651_v11, %v3840_v39  ;;  %v3854_v8 = vsub.f32 1.0, %v3853_v60  ;;  %vm3847_vm15 = vcmp.eq.f32.partialorder %v3846_v48, 8.507059e+37  ;;  %v3849_v37 = vor.u32 1.1754944e-38, %v3848_v42 }
 0x535   :  { %4373 = vst.msk [vmem:[%s9465_s5 + $0xd0] sm:$0xff] %vm2810_vm0, %v3791_v36  ;;  %vm3857_vm1 = vweird.f32 %v8839_v15  ;;  %4658 = vrcp.f32 %v8881_v44  ;;  %v4655_v56 = vpop.eup %4654  ;;  %vm3858_vm2 = vweird.f32 %v4653_v53  ;;  %vm8900_vm3 = vcmp.eq.f32.partialorder %v3861_v49, 8.507059e+37 }
 0x536   :  { %v3845_v50 = vsel %vm3844_vm14, %v4651_v11, %v3841_v43  ;;  %v3855_v27 = vmul.f32 %v4653_v53, %v3854_v8  ;;  %v3864_v46 = vor.u32 1.1754944e-38, %v3863_v22  ;;  %v3823_v29 = vmul.f32 %v4655_v56, %v8863_v61  ;;  %vm3859_vm6 = vmor %vm3857_vm1, %vm3858_vm2  ;;  %v10457_v43 = vld [vmem:[#allocation149_spill] sm:$0xff] }
 0x537   :  { %v3850_v33 = vsel %vm3847_vm15, %v3849_v37, %v3845_v50  ;;  %vm3827_vm4 = vweird.f32 %v8863_v61  ;;  %vm8909_vm5 = vcmp.eq.f32.partialorder %v3831_v16, 8.507059e+37  ;;  %v3834_v12 = vor.u32 1.1754944e-38, %v3833_v7 }
 0x538   :  { %v3851_v30 = vmul.f32 %v8077_v63, %v3850_v33  ;;  %v3856_v10 = vadd.f32 %v4653_v53, %v3855_v27  ;;  %v3824_v51 = vsub.f32 1.0, %v3823_v29  ;;  %v3891_v21 = vand.u32 2147483647, %v8869_v47 }
 0x539   :  { %v4657_v28 = vpop.eup %4656  ;;  %v3893_v52 = vand.u32 2147483648, %v8869_v47  ;;  %4660 = vrcp.f32 %v8904_v3  ;;  %vm3887_vm7 = vweird.f32 %v8869_v47  ;;  %v3906_v15 = vand.u32 2147483647, %v8881_v44  ;;  %v8978_v36 = vpop.xlane.xlu1 %3313 }
 0x53a   :  { %4377 = vst.msk [vmem:[%s9465_s5 + $0xf0] sm:$0xff] %vm2810_vm0, %v3851_v30  ;;  %v3860_v63 = vsel %vm3859_vm6, %v4653_v53, %v3856_v10  ;;  %v3883_v58 = vmul.f32 %v4657_v28, %v8869_v47  ;;  %v3825_v13 = vmul.f32 %v4655_v56, %v3824_v51  ;;  %vm3828_vm8 = vweird.f32 %v4655_v56 }
 0x53b   :  { %v4659_v45 = vpop.eup %4658  ;;  %v3865_v40 = vsel %vm8900_vm3, %v3864_v46, %v3860_v63  ;;  %4662 = vrcp.f32 %v8913_v62  ;;  %vm3902_vm9 = vweird.f32 %v8881_v44  ;;  %vm8935_vm10 = vcmp.eq.f32.partialorder %v3891_v21, 8.507059e+37  ;;  %vm3829_vm11 = vmor %vm3827_vm4, %vm3828_vm8  ;;  %v9002_v21 = vpop.xlane.xlu2 %3316 }
 0x53c   :  { %v3866_v19 = vmul.f32 %v10449_v57, %v3865_v40  ;;  %v3884_v55 = vsub.f32 1.0, %v3883_v58  ;;  %v3898_v5 = vmul.f32 %v4659_v45, %v8881_v44  ;;  %v3826_v17 = vadd.f32 %v4655_v56, %v3825_v13  ;;  %v9008_v57 = vpop.xlane.xlu0 %3310 }
 0x53d   :  { %v3894_v34 = vor.u32 1.1754944e-38, %v3893_v52  ;;  %v3908_v23 = vand.u32 2147483648, %v8881_v44  ;;  %vm3888_vm12 = vweird.f32 %v4657_v28  ;;  %4664 = vrcp.f32 %v8930_v32 }
 0x53e   :  { %4378 = vst.msk [vmem:[%s9465_s5 + $0xf8] sm:$0xff] %vm2810_vm0, %v3866_v19  ;;  %v3885_v11 = vmul.f32 %v4657_v28, %v3884_v55  ;;  %v3899_v4 = vsub.f32 1.0, %v3898_v5  ;;  %v3830_v0 = vsel %vm3829_vm11, %v4655_v56, %v3826_v17  ;;  %vm3903_vm13 = vweird.f32 %v4659_v45  ;;  %vm3889_vm15 = vmor %vm3887_vm7, %vm3888_vm12  ;;  %v10460_v55 = vld [vmem:[#allocation9_spill] sm:$0xff] }
 0x53f   :  { %v4661_v31 = vpop.eup %4660  ;;  %vm8947_vm14 = vcmp.eq.f32.partialorder %v3906_v15, 8.507059e+37  ;;  %v3876_v35 = vand.u32 2147483647, %v8904_v3  ;;  %v3835_v9 = vsel %vm8909_vm5, %v3834_v12, %v3830_v0  ;;  %v3909_v6 = vor.u32 1.1754944e-38, %v3908_v23  ;;  %vm3904_vm2 = vmor %vm3902_vm9, %vm3903_vm13  ;;  %v10459_v15 = vld [vmem:[#allocation114_spill] sm:$0xff] }
 0x540   :  { %v3886_v24 = vadd.f32 %v4657_v28, %v3885_v11  ;;  %v3900_v61 = vmul.f32 %v4659_v45, %v3899_v4  ;;  %v3868_v2 = vmul.f32 %v4661_v31, %v8904_v3  ;;  %v3836_v53 = vmul.f32 %v10454_v26, %v3835_v9  ;;  %v10461_v9 = vld [vmem:[#allocation105_spill] sm:$0xff] }
 0x541   :  { %v4663_v20 = vpop.eup %4662  ;;  %vm3872_vm1 = vweird.f32 %v8904_v3  ;;  %v3878_v48 = vand.u32 2147483648, %v8904_v3  ;;  %vm3873_vm3 = vweird.f32 %v4661_v31  ;;  %vm8973_vm4 = vcmp.eq.f32.partialorder %v3876_v35, 8.507059e+37 }
 0x542   :  { %v3890_v42 = vsel %vm3889_vm15, %v4657_v28, %v3886_v24  ;;  %v3901_v49 = vadd.f32 %v4659_v45, %v3900_v61  ;;  %v3869_v54 = vsub.f32 1.0, %v3868_v2  ;;  %v3928_v39 = vmul.f32 %v4663_v20, %v8913_v62  ;;  %4376 = vst.msk [vmem:[%s9465_s5 + $0xe8] sm:$0xff] %vm2810_vm0, %v3836_v53  ;;  %vm3874_vm6 = vmor %vm3872_vm1, %vm3873_vm3 }
 0x543   :  { %v3895_v60 = vsel %vm8935_vm10, %v3894_v34, %v3890_v42  ;;  %4666 = vrcp.f32 %v8955_v59  ;;  %v4665_v22 = vpop.eup %4664  ;;  %v3936_v44 = vand.u32 2147483647, %v8913_v62  ;;  %v3938_v50 = vand.u32 2147483648, %v8913_v62 }
 0x544   :  { %v3896_v8 = vmul.f32 %v10457_v43, %v3895_v60  ;;  %v3905_v16 = vsel %vm3904_vm2, %v4659_v45, %v3901_v49  ;;  %v3870_v7 = vmul.f32 %v4661_v31, %v3869_v54  ;;  %v3929_v37 = vsub.f32 1.0, %v3928_v39  ;;  %v9043_v54 = vpop.xlane.xlu2 %3325 }
 0x545   :  { %v3910_v56 = vsel %vm8947_vm14, %v3909_v6, %v3905_v16  ;;  %v3943_v27 = vmul.f32 %v4665_v22, %v8930_v32  ;;  %vm3933_vm5 = vweird.f32 %v4663_v20  ;;  %v3879_v30 = vor.u32 1.1754944e-38, %v3878_v48 }
 0x546   :  { %4380 = vst.msk [vmem:[%s9465_s5 + $0x108] sm:$0xff] %vm2810_vm0, %v3896_v8  ;;  %v3911_v33 = vmul.f32 %v10458_v14, %v3910_v56  ;;  %v3871_v46 = vadd.f32 %v4661_v31, %v3870_v7  ;;  %v3930_v29 = vmul.f32 %v4663_v20, %v3929_v37  ;;  %v3951_v41 = vand.u32 2147483647, %v8930_v32  ;;  %v9052_v37 = vpop.xlane.xlu0 %3319 }
 0x547   :  { %v3944_v10 = vsub.f32 1.0, %v3943_v27  ;;  %4668 = vrcp.f32 %v8978_v36  ;;  %vm3932_vm7 = vweird.f32 %v8913_v62  ;;  %v3953_v51 = vand.u32 2147483648, %v8930_v32 }
 0x548   :  { %4381 = vst.msk [vmem:[%s9465_s5 + $0x110] sm:$0xff] %vm2810_vm0, %v3911_v33  ;;  %v3875_v12 = vsel %vm3874_vm6, %v4661_v31, %v3871_v46  ;;  %v3931_v28 = vadd.f32 %v4663_v20, %v3930_v29  ;;  %vm3934_vm8 = vmor %vm3932_vm7, %vm3933_vm5  ;;  %v3939_v63 = vor.u32 1.1754944e-38, %v3938_v50  ;;  %vm3948_vm9 = vweird.f32 %v4665_v22  ;;  %v9020_v31 = vpop.xlane.xlu1 %3322 }
 0x549   :  { %v4667_v3 = vpop.eup %4666  ;;  %v3880_v52 = vsel %vm8973_vm4, %v3879_v30, %v3875_v12  ;;  %v3945_v58 = vmul.f32 %v4665_v22, %v3944_v10  ;;  %vm3937_vm10 = vcmp.eq.f32.partialorder %v3936_v44, 8.507059e+37  ;;  %vm3947_vm11 = vweird.f32 %v8930_v32 }
 0x54a   :  { %v3881_v45 = vmul.f32 %v10459_v15, %v3880_v52  ;;  %v3935_v40 = vsel %vm3934_vm8, %v4663_v20, %v3931_v28  ;;  %v3913_v13 = vmul.f32 %v4667_v3, %v8955_v59  ;;  %vm3952_vm12 = vcmp.eq.f32.partialorder %v3951_v41, 8.507059e+37  ;;  %vm3949_vm13 = vmor %vm3947_vm11, %vm3948_vm9  ;;  %v10467_v41 = vld [vmem:[#allocation140_spill] sm:$0xff] }
 0x54b   :  { %v3940_v62 = vsel %vm3937_vm10, %v3939_v63, %v3935_v40  ;;  %v3946_v19 = vadd.f32 %v4665_v22, %v3945_v58  ;;  %v3954_v17 = vor.u32 1.1754944e-38, %v3953_v51  ;;  %4670 = vrcp.f32 %v9002_v21 }
 0x54c   :  { %4379 = vst.msk [vmem:[%s9465_s5 + $0x100] sm:$0xff] %vm2810_vm0, %v3881_v45  ;;  %v3941_v5 = vmul.f32 %v10460_v55, %v3940_v62  ;;  %v3914_v25 = vsub.f32 1.0, %v3913_v13  ;;  %v3921_v11 = vand.u32 2147483647, %v8955_v59  ;;  %v3923_v4 = vand.u32 2147483648, %v8955_v59 }
 0x54d   :  { %v4669_v34 = vpop.eup %4668  ;;  %v3950_v23 = vsel %vm3949_vm13, %v4665_v22, %v3946_v19  ;;  %v3981_v32 = vand.u32 2147483647, %v8978_v36  ;;  %vm3918_vm14 = vweird.f32 %v4667_v3  ;;  %vm3917_vm15 = vweird.f32 %v8955_v59  ;;  %v10464_v22 = vld [vmem:[#allocation10_spill] sm:$0xff] }
 0x54e   :  { %4383 = vst.msk [vmem:[%s9465_s5 + $0x120] sm:$0xff] %vm2810_vm0, %v3941_v5  ;;  %v3955_v0 = vsel %vm3952_vm12, %v3954_v17, %v3950_v23  ;;  %v3915_v18 = vmul.f32 %v4667_v3, %v3914_v25  ;;  %v3973_v35 = vmul.f32 %v4669_v34, %v8978_v36  ;;  %v3983_v61 = vand.u32 2147483648, %v8978_v36  ;;  %vm3919_vm1 = vmor %vm3917_vm15, %vm3918_vm14  ;;  %v9094_v25 = vpop.xlane.xlu2 %3334  ;;  %v10472_v23 = vld [vmem:[#allocation97_spill] sm:$0xff] }
 0x54f   :  { %v3956_v24 = vmul.f32 %v10461_v9, %v3955_v0  ;;  %4672 = vrcp.f32 %v9008_v57  ;;  %v3996_v26 = vand.u32 2147483647, %v9002_v21  ;;  %v3998_v53 = vand.u32 2147483648, %v9002_v21 }
 0x550   :  { %v3916_v2 = vadd.f32 %v4667_v3, %v3915_v18  ;;  %v3974_v20 = vsub.f32 1.0, %v3973_v35  ;;  %vm3922_vm2 = vcmp.eq.f32.partialorder %v3921_v11, 8.507059e+37  ;;  %v3924_v6 = vor.u32 1.1754944e-38, %v3923_v4  ;;  %v9069_v10 = vpop.xlane.xlu1 %3331 }
 0x551   :  { %4384 = vst.msk [vmem:[%s9465_s5 + $0x128] sm:$0xff] %vm2810_vm0, %v3956_v24  ;;  %vm3977_vm3 = vweird.f32 %v8978_v36  ;;  %4674 = vrcp.f32 %v9020_v31  ;;  %v4671_v59 = vpop.eup %4670  ;;  %vm3978_vm4 = vweird.f32 %v4669_v34  ;;  %vm9039_vm5 = vcmp.eq.f32.partialorder %v3981_v32, 8.507059e+37 }
 0x552   :  { %v3920_v48 = vsel %vm3919_vm1, %v4667_v3, %v3916_v2  ;;  %v3975_v42 = vmul.f32 %v4669_v34, %v3974_v20  ;;  %v3984_v60 = vor.u32 1.1754944e-38, %v3983_v61  ;;  %v3988_v47 = vmul.f32 %v4671_v59, %v9002_v21  ;;  %vm3979_vm8 = vmor %vm3977_vm3, %vm3978_vm4  ;;  %v9117_v61 = vpop.xlane.xlu0 %3328  ;;  %v10475_v20 = vld [vmem:[#allocation155_spill] sm:$0xff] }
 0x553   :  { %v3925_v39 = vsel %vm3922_vm2, %v3924_v6, %v3920_v48  ;;  %vm3992_vm6 = vweird.f32 %v9002_v21  ;;  %vm9048_vm7 = vcmp.eq.f32.partialorder %v3996_v26, 8.507059e+37  ;;  %v3999_v7 = vor.u32 1.1754944e-38, %v3998_v53 }
 0x554   :  { %v3926_v43 = vmul.f32 %v10464_v22, %v3925_v39  ;;  %v3976_v8 = vadd.f32 %v4669_v34, %v3975_v42  ;;  %v3989_v44 = vsub.f32 1.0, %v3988_v47  ;;  %v3966_v50 = vand.u32 2147483647, %v9008_v57  ;;  %v10476_v39 = vld [vmem:[#allocation160_spill] sm:$0xff] }
 0x555   :  { %v4673_v56 = vpop.eup %4672  ;;  %v3968_v27 = vand.u32 2147483648, %v9008_v57  ;;  %4676 = vrcp.f32 %v9043_v54  ;;  %vm3962_vm9 = vweird.f32 %v9008_v57  ;;  %v4026_v36 = vand.u32 2147483647, %v9020_v31 }
 0x556   :  { %4382 = vst.msk [vmem:[%s9465_s5 + $0x118] sm:$0xff] %vm2810_vm0, %v3926_v43  ;;  %v3980_v14 = vsel %vm3979_vm8, %v4669_v34, %v3976_v8  ;;  %v3958_v33 = vmul.f32 %v4673_v56, %v9008_v57  ;;  %v3990_v30 = vmul.f32 %v4671_v59, %v3989_v44  ;;  %vm3993_vm10 = vweird.f32 %v4671_v59 }
 0x557   :  { %v4675_v46 = vpop.eup %4674  ;;  %v3985_v29 = vsel %vm9039_vm5, %v3984_v60, %v3980_v14  ;;  %4678 = vrcp.f32 %v9052_v37  ;;  %vm4022_vm11 = vweird.f32 %v9020_v31  ;;  %vm9074_vm12 = vcmp.eq.f32.partialorder %v3966_v50, 8.507059e+37  ;;  %vm3994_vm13 = vmor %vm3992_vm6, %vm3993_vm10 }
 0x558   :  { %v3986_v12 = vmul.f32 %v10467_v41, %v3985_v29  ;;  %v3959_v28 = vsub.f32 1.0, %v3958_v33  ;;  %v4018_v51 = vmul.f32 %v4675_v46, %v9020_v31  ;;  %v3991_v3 = vadd.f32 %v4671_v59, %v3990_v30  ;;  %v9141_v50 = vpop.xlane.xlu1 %3340  ;;  %v9147_v41 = vpop.xlane.xlu2 %3343 }
 0x559   :  { %v3969_v63 = vor.u32 1.1754944e-38, %v3968_v27  ;;  %v4028_v58 = vand.u32 2147483648, %v9020_v31  ;;  %vm3963_vm14 = vweird.f32 %v4673_v56  ;;  %4680 = vrcp.f32 %v9069_v10 }
 0x55a   :  { %4386 = vst.msk [vmem:[%s9465_s5 + $0x138] sm:$0xff] %vm2810_vm0, %v3986_v12  ;;  %v3960_v15 = vmul.f32 %v4673_v56, %v3959_v28  ;;  %v4019_v45 = vsub.f32 1.0, %v4018_v51  ;;  %v3995_v13 = vsel %vm3994_vm13, %v4671_v59, %v3991_v3  ;;  %vm4023_vm15 = vweird.f32 %v4675_v46  ;;  %vm3964_vm2 = vmor %vm3962_vm9, %vm3963_vm14  ;;  %v10478_v28 = vld [vmem:[#allocation39_spill] sm:$0xff] }
 0x55b   :  { %v4677_v40 = vpop.eup %4676  ;;  %vm9086_vm1 = vcmp.eq.f32.partialorder %v4026_v36, 8.507059e+37  ;;  %v4041_v19 = vand.u32 2147483647, %v9043_v54  ;;  %v4000_v55 = vsel %vm9048_vm7, %v3999_v7, %v3995_v13  ;;  %v4029_v4 = vor.u32 1.1754944e-38, %v4028_v58  ;;  %vm4024_vm4 = vmor %vm4022_vm11, %vm4023_vm15  ;;  %v10477_v36 = vld [vmem:[#allocation190_spill] sm:$0xff] }
 0x55c   :  { %v3961_v5 = vadd.f32 %v4673_v56, %v3960_v15  ;;  %v4020_v21 = vmul.f32 %v4675_v46, %v4019_v45  ;;  %v4033_v17 = vmul.f32 %v4677_v40, %v9043_v54  ;;  %v4001_v11 = vmul.f32 %v10472_v23, %v4000_v55  ;;  %v10479_v55 = vld [vmem:[#allocation115_spill] sm:$0xff] }
 0x55d   :  { %v4679_v34 = vpop.eup %4678  ;;  %vm4037_vm3 = vweird.f32 %v9043_v54  ;;  %v4043_v32 = vand.u32 2147483648, %v9043_v54  ;;  %vm4038_vm5 = vweird.f32 %v4677_v40  ;;  %vm9112_vm6 = vcmp.eq.f32.partialorder %v4041_v19, 8.507059e+37 }
 0x55e   :  { %v3965_v0 = vsel %vm3964_vm2, %v4673_v56, %v3961_v5  ;;  %v4021_v18 = vadd.f32 %v4675_v46, %v4020_v21  ;;  %v4034_v35 = vsub.f32 1.0, %v4033_v17  ;;  %v4003_v9 = vmul.f32 %v4679_v34, %v9052_v37  ;;  %4387 = vst.msk [vmem:[%s9465_s5 + $0x140] sm:$0xff] %vm2810_vm0, %v4001_v11  ;;  %vm4039_vm8 = vmor %vm4037_vm3, %vm4038_vm5 }
 0x55f   :  { %v3970_v24 = vsel %vm9074_vm12, %v3969_v63, %v3965_v0  ;;  %4682 = vrcp.f32 %v9094_v25  ;;  %v4681_v2 = vpop.eup %4680  ;;  %v4011_v31 = vand.u32 2147483647, %v9052_v37  ;;  %v4013_v42 = vand.u32 2147483648, %v9052_v37 }
 0x560   :  { %v3971_v26 = vmul.f32 %v10475_v20, %v3970_v24  ;;  %v4025_v53 = vsel %vm4024_vm4, %v4675_v46, %v4021_v18  ;;  %v4035_v6 = vmul.f32 %v4677_v40, %v4034_v35  ;;  %v4004_v59 = vsub.f32 1.0, %v4003_v9  ;;  %v9182_v35 = vpop.xlane.xlu1 %3349 }
 0x561   :  { %v4030_v48 = vsel %vm9086_vm1, %v4029_v4, %v4025_v53  ;;  %v4063_v49 = vmul.f32 %v4681_v2, %v9069_v10  ;;  %vm4008_vm7 = vweird.f32 %v4679_v34  ;;  %v4044_v43 = vor.u32 1.1754944e-38, %v4043_v32 }
 0x562   :  { %4385 = vst.msk [vmem:[%s9465_s5 + $0x130] sm:$0xff] %vm2810_vm0, %v3971_v26  ;;  %v4031_v60 = vmul.f32 %v10476_v39, %v4030_v48  ;;  %v4036_v47 = vadd.f32 %v4677_v40, %v4035_v6  ;;  %v4005_v22 = vmul.f32 %v4679_v34, %v4004_v59  ;;  %v4071_v16 = vand.u32 2147483647, %v9069_v10  ;;  %v9191_v59 = vpop.xlane.xlu2 %3352 }
 0x563   :  { %v4064_v8 = vsub.f32 1.0, %v4063_v49  ;;  %4684 = vrcp.f32 %v9117_v61  ;;  %vm4007_vm9 = vweird.f32 %v9052_v37  ;;  %v4073_v44 = vand.u32 2147483648, %v9069_v10 }
 0x564   :  { %4389 = vst.msk [vmem:[%s9465_s5 + $0x150] sm:$0xff] %vm2810_vm0, %v4031_v60  ;;  %v4040_v7 = vsel %vm4039_vm8, %v4677_v40, %v4036_v47  ;;  %v4006_v56 = vadd.f32 %v4679_v34, %v4005_v22  ;;  %vm4009_vm10 = vmor %vm4007_vm9, %vm4008_vm7  ;;  %v4014_v14 = vor.u32 1.1754944e-38, %v4013_v42  ;;  %vm4068_vm11 = vweird.f32 %v4681_v2  ;;  %v9159_v40 = vpop.xlane.xlu0 %3337 }
 0x565   :  { %v4683_v54 = vpop.eup %4682  ;;  %v4045_v27 = vsel %vm9112_vm6, %v4044_v43, %v4040_v7  ;;  %v4065_v33 = vmul.f32 %v4681_v2, %v4064_v8  ;;  %vm4012_vm12 = vcmp.eq.f32.partialorder %v4011_v31, 8.507059e+37  ;;  %vm4067_vm13 = vweird.f32 %v9069_v10 }
 0x566   :  { %v4046_v46 = vmul.f32 %v10477_v36, %v4045_v27  ;;  %v4010_v29 = vsel %vm4009_vm10, %v4679_v34, %v4006_v56  ;;  %v4078_v30 = vmul.f32 %v4683_v54, %v9094_v25  ;;  %vm4072_vm14 = vcmp.eq.f32.partialorder %v4071_v16, 8.507059e+37  ;;  %vm4069_vm15 = vmor %vm4067_vm13, %vm4068_vm11  ;;  %v10485_v16 = vld [vmem:[#allocation142_spill] sm:$0xff] }
 0x567   :  { %v4015_v37 = vsel %vm4012_vm12, %v4014_v14, %v4010_v29  ;;  %v4066_v12 = vadd.f32 %v4681_v2, %v4065_v33  ;;  %v4074_v3 = vor.u32 1.1754944e-38, %v4073_v44  ;;  %4686 = vrcp.f32 %v9141_v50 }
 0x568   :  { %4390 = vst.msk [vmem:[%s9465_s5 + $0x158] sm:$0xff] %vm2810_vm0, %v4046_v46  ;;  %v4016_v51 = vmul.f32 %v10478_v28, %v4015_v37  ;;  %v4079_v52 = vsub.f32 1.0, %v4078_v30  ;;  %v4086_v15 = vand.u32 2147483647, %v9094_v25  ;;  %v4088_v45 = vand.u32 2147483648, %v9094_v25 }
 0x569   :  { %v4685_v63 = vpop.eup %4684  ;;  %v4070_v58 = vsel %vm4069_vm15, %v4681_v2, %v4066_v12  ;;  %v4056_v10 = vand.u32 2147483647, %v9117_v61  ;;  %vm4083_vm1 = vweird.f32 %v4683_v54  ;;  %vm4082_vm2 = vweird.f32 %v9094_v25  ;;  %v10482_v2 = vld [vmem:[#allocation75_spill] sm:$0xff] }
 0x56a   :  { %4388 = vst.msk [vmem:[%s9465_s5 + $0x148] sm:$0xff] %vm2810_vm0, %v4016_v51  ;;  %v4075_v13 = vsel %vm4072_vm14, %v4074_v3, %v4070_v58  ;;  %v4080_v62 = vmul.f32 %v4683_v54, %v4079_v52  ;;  %v4048_v19 = vmul.f32 %v4685_v63, %v9117_v61  ;;  %v4058_v21 = vand.u32 2147483648, %v9117_v61  ;;  %vm4084_vm3 = vmor %vm4082_vm2, %vm4083_vm1  ;;  %v9233_v52 = vpop.xlane.xlu1 %3358  ;;  %v10490_v58 = vld [vmem:[#allocation31_spill] sm:$0xff] }
 0x56b   :  { %v4076_v5 = vmul.f32 %v10479_v55, %v4075_v13  ;;  %4688 = vrcp.f32 %v9147_v41  ;;  %v4116_v23 = vand.u32 2147483647, %v9141_v50  ;;  %v4118_v11 = vand.u32 2147483648, %v9141_v50 }
 0x56c   :  { %v4081_v17 = vadd.f32 %v4683_v54, %v4080_v62  ;;  %v4049_v34 = vsub.f32 1.0, %v4048_v19  ;;  %vm4087_vm4 = vcmp.eq.f32.partialorder %v4086_v15, 8.507059e+37  ;;  %v4089_v4 = vor.u32 1.1754944e-38, %v4088_v45  ;;  %v9208_v8 = vpop.xlane.xlu0 %3346 }
 0x56d   :  { %4392 = vst.msk [vmem:[%s9465_s5 + $0x168] sm:$0xff] %vm2810_vm0, %v4076_v5  ;;  %vm4052_vm5 = vweird.f32 %v9117_v61  ;;  %4690 = vrcp.f32 %v9159_v40  ;;  %v4687_v25 = vpop.eup %4686  ;;  %vm4053_vm6 = vweird.f32 %v4685_v63  ;;  %vm9178_vm7 = vcmp.eq.f32.partialorder %v4056_v10, 8.507059e+37 }
 0x56e   :  { %v4085_v32 = vsel %vm4084_vm3, %v4683_v54, %v4081_v17  ;;  %v4050_v0 = vmul.f32 %v4685_v63, %v4049_v34  ;;  %v4059_v24 = vor.u32 1.1754944e-38, %v4058_v21  ;;  %v4108_v57 = vmul.f32 %v4687_v25, %v9141_v50  ;;  %vm4054_vm10 = vmor %vm4052_vm5, %vm4053_vm6  ;;  %v9256_v21 = vpop.xlane.xlu2 %3361  ;;  %v10493_v34 = vld [vmem:[#allocation98_spill] sm:$0xff] }
 0x56f   :  { %v4090_v9 = vsel %vm4087_vm4, %v4089_v4, %v4085_v32  ;;  %vm4112_vm8 = vweird.f32 %v9141_v50  ;;  %vm9187_vm9 = vcmp.eq.f32.partialorder %v4116_v23, 8.507059e+37  ;;  %v4119_v6 = vor.u32 1.1754944e-38, %v4118_v11 }
 0x570   :  { %v4091_v20 = vmul.f32 %v10482_v2, %v4090_v9  ;;  %v4051_v26 = vadd.f32 %v4685_v63, %v4050_v0  ;;  %v4109_v31 = vsub.f32 1.0, %v4108_v57  ;;  %v4131_v42 = vand.u32 2147483647, %v9147_v41  ;;  %v10494_v9 = vld [vmem:[#allocation78_spill] sm:$0xff] }
 0x571   :  { %v4689_v48 = vpop.eup %4688  ;;  %v4133_v49 = vand.u32 2147483648, %v9147_v41  ;;  %4692 = vrcp.f32 %v9182_v35  ;;  %vm4127_vm11 = vweird.f32 %v9147_v41  ;;  %v4101_v61 = vand.u32 2147483647, %v9159_v40 }
 0x572   :  { %4393 = vst.msk [vmem:[%s9465_s5 + $0x170] sm:$0xff] %vm2810_vm0, %v4091_v20  ;;  %v4055_v39 = vsel %vm4054_vm10, %v4685_v63, %v4051_v26  ;;  %v4123_v60 = vmul.f32 %v4689_v48, %v9147_v41  ;;  %v4110_v43 = vmul.f32 %v4687_v25, %v4109_v31  ;;  %vm4113_vm12 = vweird.f32 %v4687_v25 }
 0x573   :  { %v4691_v47 = vpop.eup %4690  ;;  %v4060_v22 = vsel %vm9178_vm7, %v4059_v24, %v4055_v39  ;;  %4694 = vrcp.f32 %v9191_v59  ;;  %vm4097_vm13 = vweird.f32 %v9159_v40  ;;  %vm9213_vm14 = vcmp.eq.f32.partialorder %v4131_v42, 8.507059e+37  ;;  %vm4114_vm15 = vmor %vm4112_vm8, %vm4113_vm12 }
 0x574   :  { %v4061_v7 = vmul.f32 %v10485_v16, %v4060_v22  ;;  %v4124_v56 = vsub.f32 1.0, %v4123_v60  ;;  %v4093_v44 = vmul.f32 %v4691_v47, %v9159_v40  ;;  %v4111_v54 = vadd.f32 %v4687_v25, %v4110_v43  ;;  %v9286_v16 = vpop.xlane.xlu1 %3367 }
 0x575   :  { %v4134_v14 = vor.u32 1.1754944e-38, %v4133_v49  ;;  %v4103_v33 = vand.u32 2147483648, %v9159_v40  ;;  %vm4128_vm1 = vweird.f32 %v4689_v48  ;;  %4696 = vrcp.f32 %v9208_v8 }
 0x576   :  { %4391 = vst.msk [vmem:[%s9465_s5 + $0x160] sm:$0xff] %vm2810_vm0, %v4061_v7  ;;  %v4125_v36 = vmul.f32 %v4689_v48, %v4124_v56  ;;  %v4094_v46 = vsub.f32 1.0, %v4093_v44  ;;  %v4115_v30 = vsel %vm4114_vm15, %v4687_v25, %v4111_v54  ;;  %vm4098_vm2 = vweird.f32 %v4691_v47  ;;  %vm4129_vm4 = vmor %vm4127_vm11, %vm4128_vm1  ;;  %v10496_v56 = vld [vmem:[#allocation15_spill] sm:$0xff] }
 0x577   :  { %v4693_v29 = vpop.eup %4692  ;;  %vm9225_vm3 = vcmp.eq.f32.partialorder %v4101_v61, 8.507059e+37  ;;  %v4161_v12 = vand.u32 2147483647, %v9182_v35  ;;  %v4120_v28 = vsel %vm9187_vm9, %v4119_v6, %v4115_v30  ;;  %v4104_v45 = vor.u32 1.1754944e-38, %v4103_v33  ;;  %vm4099_vm6 = vmor %vm4097_vm13, %vm4098_vm2  ;;  %v9274_v6 = vpop.xlane.xlu0 %3355  ;;  %v10495_v61 = vld [vmem:[#allocation189_spill] sm:$0xff] }
 0x578   :  { %v4126_v51 = vadd.f32 %v4689_v48, %v4125_v36  ;;  %v4095_v50 = vmul.f32 %v4691_v47, %v4094_v46  ;;  %v4153_v3 = vmul.f32 %v4693_v29, %v9182_v35  ;;  %v4121_v15 = vmul.f32 %v10490_v58, %v4120_v28  ;;  %v10497_v28 = vld [vmem:[#allocation178_spill] sm:$0xff] }
 0x579   :  { %v4695_v63 = vpop.eup %4694  ;;  %vm4157_vm5 = vweird.f32 %v9182_v35  ;;  %v4163_v10 = vand.u32 2147483648, %v9182_v35  ;;  %vm4158_vm7 = vweird.f32 %v4693_v29  ;;  %vm9251_vm8 = vcmp.eq.f32.partialorder %v4161_v12, 8.507059e+37 }
 0x57a   :  { %v4130_v13 = vsel %vm4129_vm4, %v4689_v48, %v4126_v51  ;;  %v4096_v62 = vadd.f32 %v4691_v47, %v4095_v50  ;;  %v4154_v19 = vsub.f32 1.0, %v4153_v3  ;;  %v4168_v55 = vmul.f32 %v4695_v63, %v9191_v59  ;;  %4395 = vst.msk [vmem:[%s9465_s5 + $0x180] sm:$0xff] %vm2810_vm0, %v4121_v15  ;;  %vm4159_vm10 = vmor %vm4157_vm5, %vm4158_vm7 }
 0x57b   :  { %v4135_v5 = vsel %vm9213_vm14, %v4134_v14, %v4130_v13  ;;  %4698 = vrcp.f32 %v9233_v52  ;;  %v4697_v17 = vpop.eup %4696  ;;  %v4176_v40 = vand.u32 2147483647, %v9191_v59  ;;  %v4178_v0 = vand.u32 2147483648, %v9191_v59 }
 0x57c   :  { %v4136_v23 = vmul.f32 %v10493_v34, %v4135_v5  ;;  %v4100_v11 = vsel %vm4099_vm6, %v4691_v47, %v4096_v62  ;;  %v4155_v4 = vmul.f32 %v4693_v29, %v4154_v19  ;;  %v4169_v25 = vsub.f32 1.0, %v4168_v55 }
 0x57d   :  { %v4105_v32 = vsel %vm9225_vm3, %v4104_v45, %v4100_v11  ;;  %v4138_v18 = vmul.f32 %v4697_v17, %v9208_v8  ;;  %vm4173_vm9 = vweird.f32 %v4695_v63  ;;  %v4164_v20 = vor.u32 1.1754944e-38, %v4163_v10 }
 0x57e   :  { %4396 = vst.msk [vmem:[%s9465_s5 + $0x188] sm:$0xff] %vm2810_vm0, %v4136_v23  ;;  %v4106_v24 = vmul.f32 %v10494_v9, %v4105_v32  ;;  %v4156_v57 = vadd.f32 %v4693_v29, %v4155_v4  ;;  %v4170_v2 = vmul.f32 %v4695_v63, %v4169_v25  ;;  %v4146_v53 = vand.u32 2147483647, %v9208_v8  ;;  %v9330_v25 = vpop.xlane.xlu1 %3376 }
 0x57f   :  { %v4139_v26 = vsub.f32 1.0, %v4138_v18  ;;  %4700 = vrcp.f32 %v9256_v21  ;;  %vm4172_vm11 = vweird.f32 %v9191_v59  ;;  %v4148_v35 = vand.u32 2147483648, %v9208_v8 }
 0x580   :  { %4394 = vst.msk [vmem:[%s9465_s5 + $0x178] sm:$0xff] %vm2810_vm0, %v4106_v24  ;;  %v4160_v48 = vsel %vm4159_vm10, %v4693_v29, %v4156_v57  ;;  %v4171_v31 = vadd.f32 %v4695_v63, %v4170_v2  ;;  %vm4174_vm12 = vmor %vm4172_vm11, %vm4173_vm9  ;;  %v4179_v39 = vor.u32 1.1754944e-38, %v4178_v0  ;;  %vm4143_vm13 = vweird.f32 %v4697_v17  ;;  %v9298_v29 = vpop.xlane.xlu2 %3370 }
 0x581   :  { %v4699_v42 = vpop.eup %4698  ;;  %v4165_v49 = vsel %vm9251_vm8, %v4164_v20, %v4160_v48  ;;  %v4140_v60 = vmul.f32 %v4697_v17, %v4139_v26  ;;  %vm4177_vm14 = vcmp.eq.f32.partialorder %v4176_v40, 8.507059e+37  ;;  %vm4142_vm15 = vweird.f32 %v9208_v8 }
 0x582   :  { %v4166_v47 = vmul.f32 %v10495_v61, %v4165_v49  ;;  %v4175_v22 = vsel %vm4174_vm12, %v4695_v63, %v4171_v31  ;;  %v4198_v43 = vmul.f32 %v4699_v42, %v9233_v52  ;;  %vm4147_vm1 = vcmp.eq.f32.partialorder %v4146_v53, 8.507059e+37  ;;  %vm4144_vm2 = vmor %vm4142_vm15, %vm4143_vm13  ;;  %v10503_v53 = vld [vmem:[#allocation188_spill] sm:$0xff] }
 0x583   :  { %v4180_v7 = vsel %vm4177_vm14, %v4179_v39, %v4175_v22  ;;  %v4141_v59 = vadd.f32 %v4697_v17, %v4140_v60  ;;  %v4149_v54 = vor.u32 1.1754944e-38, %v4148_v35  ;;  %4702 = vrcp.f32 %v9274_v6 }
 0x584   :  { %4398 = vst.msk [vmem:[%s9465_s5 + $0x198] sm:$0xff] %vm2810_vm0, %v4166_v47  ;;  %v4181_v44 = vmul.f32 %v10496_v56, %v4180_v7  ;;  %v4199_v27 = vsub.f32 1.0, %v4198_v43  ;;  %v4206_v36 = vand.u32 2147483647, %v9233_v52  ;;  %v4208_v46 = vand.u32 2147483648, %v9233_v52 }
 0x585   :  { %v4701_v14 = vpop.eup %4700  ;;  %v4145_v33 = vsel %vm4144_vm2, %v4697_v17, %v4141_v59  ;;  %v4221_v8 = vand.u32 2147483647, %v9256_v21  ;;  %vm4203_vm3 = vweird.f32 %v4699_v42  ;;  %vm4202_vm4 = vweird.f32 %v9233_v52  ;;  %v9317_v52 = vpop.xlane.xlu0 %3364  ;;  %v10500_v17 = vld [vmem:[#allocation117_spill] sm:$0xff] }
 0x586   :  { %4399 = vst.msk [vmem:[%s9465_s5 + $0x1a0] sm:$0xff] %vm2810_vm0, %v4181_v44  ;;  %v4150_v30 = vsel %vm4147_vm1, %v4149_v54, %v4145_v33  ;;  %v4200_v37 = vmul.f32 %v4699_v42, %v4199_v27  ;;  %v4213_v12 = vmul.f32 %v4701_v14, %v9256_v21  ;;  %v4223_v50 = vand.u32 2147483648, %v9256_v21  ;;  %vm4204_vm5 = vmor %vm4202_vm4, %vm4203_vm3  ;;  %v10508_v33 = vld [vmem:[#allocation57_spill] sm:$0xff] }
 0x587   :  { %v4151_v51 = vmul.f32 %v10497_v28, %v4150_v30  ;;  %4704 = vrcp.f32 %v9286_v16  ;;  %v4191_v58 = vand.u32 2147483647, %v9274_v6  ;;  %v4193_v15 = vand.u32 2147483648, %v9274_v6 }
 0x588   :  { %v4201_v3 = vadd.f32 %v4699_v42, %v4200_v37  ;;  %v4214_v63 = vsub.f32 1.0, %v4213_v12  ;;  %vm4207_vm6 = vcmp.eq.f32.partialorder %v4206_v36, 8.507059e+37  ;;  %v4209_v45 = vor.u32 1.1754944e-38, %v4208_v46  ;;  %v9347_v26 = vpop.xlane.xlu2 %3379 }
 0x589   :  { %4397 = vst.msk [vmem:[%s9465_s5 + $0x190] sm:$0xff] %vm2810_vm0, %v4151_v51  ;;  %vm4217_vm7 = vweird.f32 %v9256_v21  ;;  %4706 = vrcp.f32 %v9298_v29  ;;  %v4703_v10 = vpop.eup %4702  ;;  %vm4218_vm8 = vweird.f32 %v4701_v14  ;;  %vm9319_vm9 = vcmp.eq.f32.partialorder %v4221_v8, 8.507059e+37 }
 0x58a   :  { %v4205_v13 = vsel %vm4204_vm5, %v4699_v42, %v4201_v3  ;;  %v4215_v62 = vmul.f32 %v4701_v14, %v4214_v63  ;;  %v4224_v5 = vor.u32 1.1754944e-38, %v4223_v50  ;;  %v4183_v41 = vmul.f32 %v4703_v10, %v9274_v6  ;;  %vm4219_vm12 = vmor %vm4217_vm7, %vm4218_vm8  ;;  %v10511_v3 = vld [vmem:[#allocation14_spill] sm:$0xff] }
 0x58b   :  { %v4210_v55 = vsel %vm4207_vm6, %v4209_v45, %v4205_v13  ;;  %vm4187_vm10 = vweird.f32 %v9274_v6  ;;  %vm9326_vm11 = vcmp.eq.f32.partialorder %v4191_v58, 8.507059e+37  ;;  %v4194_v4 = vor.u32 1.1754944e-38, %v4193_v15 }
 0x58c   :  { %v4211_v34 = vmul.f32 %v10500_v17, %v4210_v55  ;;  %v4216_v23 = vadd.f32 %v4701_v14, %v4215_v62  ;;  %v4184_v40 = vsub.f32 1.0, %v4183_v41  ;;  %v4251_v0 = vand.u32 2147483647, %v9286_v16  ;;  %v10512_v55 = vld [vmem:[#allocation108_spill] sm:$0xff] }
 0x58d   :  { %v4705_v32 = vpop.eup %4704  ;;  %v4253_v18 = vand.u32 2147483648, %v9286_v16  ;;  %4708 = vrcp.f32 %v9317_v52  ;;  %vm4247_vm13 = vweird.f32 %v9286_v16  ;;  %v4266_v21 = vand.u32 2147483647, %v9298_v29  ;;  %v9369_v56 = vpop.xlane.xlu0 %3373 }
 0x58e   :  { %4401 = vst.msk [vmem:[%s9465_s5 + $0x1b0] sm:$0xff] %vm2810_vm0, %v4211_v34  ;;  %v4220_v9 = vsel %vm4219_vm12, %v4701_v14, %v4216_v23  ;;  %v4243_v24 = vmul.f32 %v4705_v32, %v9286_v16  ;;  %v4185_v20 = vmul.f32 %v4703_v10, %v4184_v40  ;;  %vm4188_vm14 = vweird.f32 %v4703_v10 }
 0x58f   :  { %v4707_v57 = vpop.eup %4706  ;;  %v4225_v2 = vsel %vm9319_vm9, %v4224_v5, %v4220_v9  ;;  %4710 = vrcp.f32 %v9330_v25  ;;  %vm4262_vm15 = vweird.f32 %v9298_v29  ;;  %vm9352_vm1 = vcmp.eq.f32.partialorder %v4251_v0, 8.507059e+37  ;;  %vm4189_vm2 = vmor %vm4187_vm10, %vm4188_vm14 }
 0x590   :  { %v4226_v48 = vmul.f32 %v10503_v53, %v4225_v2  ;;  %v4244_v31 = vsub.f32 1.0, %v4243_v24  ;;  %v4258_v35 = vmul.f32 %v4707_v57, %v9298_v29  ;;  %v4186_v42 = vadd.f32 %v4703_v10, %v4185_v20  ;;  %v10513_v24 = vld [vmem:[#allocation151_spill] sm:$0xff] }
 0x591   :  { %v4254_v39 = vor.u32 1.1754944e-38, %v4253_v18  ;;  %v4268_v60 = vand.u32 2147483648, %v9298_v29  ;;  %vm4248_vm3 = vweird.f32 %v4705_v32  ;;  %4712 = vrcp.f32 %v9347_v26 }
 0x592   :  { %4402 = vst.msk [vmem:[%s9465_s5 + $0x1b8] sm:$0xff] %vm2810_vm0, %v4226_v48  ;;  %v4245_v61 = vmul.f32 %v4705_v32, %v4244_v31  ;;  %v4259_v47 = vsub.f32 1.0, %v4258_v35  ;;  %v4190_v43 = vsel %vm4189_vm2, %v4703_v10, %v4186_v42  ;;  %vm4263_vm4 = vweird.f32 %v4707_v57  ;;  %vm4249_vm6 = vmor %vm4247_vm13, %vm4248_vm3  ;;  %v9396_v10 = vpop.xlane.xlu1 %3385  ;;  %v10514_v48 = vld [vmem:[#allocation46_spill] sm:$0xff] }
 0x593   :  { %v4709_v22 = vpop.eup %4708  ;;  %vm9364_vm5 = vcmp.eq.f32.partialorder %v4266_v21, 8.507059e+37  ;;  %v4236_v59 = vand.u32 2147483647, %v9317_v52  ;;  %v4195_v6 = vsel %vm9326_vm11, %v4194_v4, %v4190_v43  ;;  %v4269_v46 = vor.u32 1.1754944e-38, %v4268_v60  ;;  %vm4264_vm8 = vmor %vm4262_vm15, %vm4263_vm4  ;;  %v10515_v43 = vld [vmem:[#allocation141_spill] sm:$0xff] }
 0x594   :  { %v4246_v44 = vadd.f32 %v4705_v32, %v4245_v61  ;;  %v4260_v54 = vmul.f32 %v4707_v57, %v4259_v47  ;;  %v4228_v27 = vmul.f32 %v4709_v22, %v9317_v52  ;;  %v4196_v36 = vmul.f32 %v10508_v33, %v4195_v6 }
 0x595   :  { %v4711_v14 = vpop.eup %4710  ;;  %vm4232_vm7 = vweird.f32 %v9317_v52  ;;  %v4238_v8 = vand.u32 2147483648, %v9317_v52  ;;  %vm4233_vm9 = vweird.f32 %v4709_v22  ;;  %vm9390_vm10 = vcmp.eq.f32.partialorder %v4236_v59, 8.507059e+37  ;;  %v3383_v9 = vpop.xlane.xlu0 %3382 }
 0x596   :  { %v4250_v30 = vsel %vm4249_vm6, %v4705_v32, %v4246_v44  ;;  %v4261_v37 = vadd.f32 %v4707_v57, %v4260_v54  ;;  %v4229_v12 = vsub.f32 1.0, %v4228_v27  ;;  %v4288_v28 = vmul.f32 %v4711_v14, %v9330_v25  ;;  %4400 = vst.msk [vmem:[%s9465_s5 + $0x1a8] sm:$0xff] %vm2810_vm0, %v4196_v36  ;;  %vm4234_vm12 = vmor %vm4232_vm7, %vm4233_vm9 }
 0x597   :  { %v4255_v51 = vsel %vm9352_vm1, %v4254_v39, %v4250_v30  ;;  %4714 = vrcp.f32 %v9369_v56  ;;  %v4713_v50 = vpop.eup %4712  ;;  %v4296_v29 = vand.u32 2147483647, %v9330_v25  ;;  %v4298_v62 = vand.u32 2147483648, %v9330_v25 }
 0x598   :  { %v4256_v63 = vmul.f32 %v10511_v3, %v4255_v51  ;;  %v4265_v58 = vsel %vm4264_vm8, %v4707_v57, %v4261_v37  ;;  %v4230_v15 = vmul.f32 %v4709_v22, %v4229_v12  ;;  %v4289_v45 = vsub.f32 1.0, %v4288_v28 }
 0x599   :  { %v4270_v13 = vsel %vm9364_vm5, %v4269_v46, %v4265_v58  ;;  %v4303_v19 = vmul.f32 %v4713_v50, %v9347_v26  ;;  %vm4293_vm11 = vweird.f32 %v4711_v14  ;;  %v4239_v34 = vor.u32 1.1754944e-38, %v4238_v8 }
 0x59a   :  { %4404 = vst.msk [vmem:[%s9465_s5 + $0x1c8] sm:$0xff] %vm2810_vm0, %v4256_v63  ;;  %v4271_v5 = vmul.f32 %v10512_v55, %v4270_v13  ;;  %v4231_v41 = vadd.f32 %v4709_v22, %v4230_v15  ;;  %v4290_v17 = vmul.f32 %v4711_v14, %v4289_v45  ;;  %vm4292_vm13 = vweird.f32 %v9330_v25 }
 0x59b   :  { %v4304_v23 = vsub.f32 1.0, %v4303_v19  ;;  %4716 = vrcp.f32 %v9396_v10  ;;  %v4311_v32 = vand.u32 2147483647, %v9347_v26  ;;  %v4313_v40 = vand.u32 2147483648, %v9347_v26  ;;  %vm4294_vm14 = vmor %vm4292_vm13, %vm4293_vm11 }
 0x59c   :  { %4405 = vst.msk [vmem:[%s9465_s5 + $0x1d0] sm:$0xff] %vm2810_vm0, %v4271_v5  ;;  %v4235_v11 = vsel %vm4234_vm12, %v4709_v22, %v4231_v41  ;;  %v4291_v4 = vadd.f32 %v4711_v14, %v4290_v17  ;;  %v4299_v25 = vor.u32 1.1754944e-38, %v4298_v62  ;;  %vm4308_vm15 = vweird.f32 %v4713_v50 }
 0x59d   :  { %v4715_v0 = vpop.eup %4714  ;;  %v4240_v52 = vsel %vm9390_vm10, %v4239_v34, %v4235_v11  ;;  %v4305_v18 = vmul.f32 %v4713_v50, %v4304_v23  ;;  %vm4297_vm1 = vcmp.eq.f32.partialorder %v4296_v29, 8.507059e+37  ;;  %vm4307_vm2 = vweird.f32 %v9347_v26 }
 0x59e   :  { %v4241_v21 = vmul.f32 %v10513_v24, %v4240_v52  ;;  %v4295_v57 = vsel %vm4294_vm14, %v4711_v14, %v4291_v4  ;;  %v4273_v2 = vmul.f32 %v4715_v0, %v9369_v56  ;;  %vm4309_vm3 = vmor %vm4307_vm2, %vm4308_vm15  ;;  %v4314_v35 = vor.u32 1.1754944e-38, %v4313_v40 }
 0x59f   :  { %v4300_v20 = vsel %vm4297_vm1, %v4299_v25, %v4295_v57  ;;  %v4306_v53 = vadd.f32 %v4713_v50, %v4305_v18  ;;  %4718 = vrcp.f32 %v3383_v9  ;;  %vm4312_vm4 = vcmp.eq.f32.partialorder %v4311_v32, 8.507059e+37 }
 0x5a0   :  { %4403 = vst.msk [vmem:[%s9465_s5 + $0x1c0] sm:$0xff] %vm2810_vm0, %v4241_v21  ;;  %v4301_v31 = vmul.f32 %v10514_v48, %v4300_v20  ;;  %v4274_v42 = vsub.f32 1.0, %v4273_v2  ;;  %v4281_v60 = vand.u32 2147483647, %v9369_v56  ;;  %v4283_v61 = vand.u32 2147483648, %v9369_v56 }
 0x5a1   :  { %v4717_v49 = vpop.eup %4716  ;;  %v4310_v39 = vsel %vm4309_vm3, %v4713_v50, %v4306_v53  ;;  %vm4278_vm5 = vweird.f32 %v4715_v0  ;;  %vm4277_vm6 = vweird.f32 %v9369_v56  ;;  %v4341_v54 = vand.u32 2147483647, %v9396_v10  ;;  %v10516_v56 = vld [vmem:[#allocation13_spill] sm:$0xff] }
 0x5a2   :  { %4407 = vst.msk [vmem:[%s9465_s5 + $0x1e0] sm:$0xff] %vm2810_vm0, %v4301_v31  ;;  %v4315_v26 = vsel %vm4312_vm4, %v4314_v35, %v4310_v39  ;;  %v4275_v47 = vmul.f32 %v4715_v0, %v4274_v42  ;;  %v4333_v22 = vmul.f32 %v4717_v49, %v9396_v10  ;;  %vm4279_vm7 = vmor %vm4277_vm6, %vm4278_vm5  ;;  %v4284_v44 = vor.u32 1.1754944e-38, %v4283_v61 }
 0x5a3   :  { %v4316_v7 = vmul.f32 %v10515_v43, %v4315_v26  ;;  %v4343_v27 = vand.u32 2147483648, %v9396_v10  ;;  %vm4282_vm8 = vcmp.eq.f32.partialorder %v4281_v60, 8.507059e+37  ;;  %vm4338_vm9 = vweird.f32 %v4717_v49 }
 0x5a4   :  { %v4276_v59 = vadd.f32 %v4715_v0, %v4275_v47  ;;  %v4334_v6 = vsub.f32 1.0, %v4333_v22  ;;  %vm4337_vm10 = vweird.f32 %v9396_v10  ;;  %vm4342_vm12 = vcmp.eq.f32.partialorder %v4341_v54, 8.507059e+37 }
 0x5a5   :  { %4408 = vst.msk [vmem:[%s9465_s5 + $0x1e8] sm:$0xff] %vm2810_vm0, %v4316_v7  ;;  %v4719_v14 = vpop.eup %4718  ;;  %vm4339_vm11 = vmor %vm4337_vm10, %vm4338_vm9  ;;  %v4344_v12 = vor.u32 1.1754944e-38, %v4343_v27  ;;  %v4328_v16 = vand.u32 2147483648, %v3383_v9  ;;  %v4326_v63 = vand.u32 2147483647, %v3383_v9  ;;  %vm4322_vm14 = vweird.f32 %v3383_v9 }
 0x5a6   :  { %v4280_v33 = vsel %vm4279_vm7, %v4715_v0, %v4276_v59  ;;  %v4335_v36 = vmul.f32 %v4717_v49, %v4334_v6  ;;  %v4318_v8 = vmul.f32 %v4719_v14, %v3383_v9  ;;  %vm4323_vm13 = vweird.f32 %v4719_v14 }
 0x5a7   :  { %v4285_v46 = vsel %vm4282_vm8, %v4284_v44, %v4280_v33  ;;  %vm4324_vm15 = vmor %vm4322_vm14, %vm4323_vm13  ;;  %v4329_v45 = vor.u32 1.1754944e-38, %v4328_v16  ;;  %vm4327_vm1 = vcmp.eq.f32.partialorder %v4326_v63, 8.507059e+37 }
 0x5a8   :  { %v4286_v30 = vmul.f32 %v10516_v56, %v4285_v46  ;;  %v4336_v37 = vadd.f32 %v4717_v49, %v4335_v36  ;;  %v4319_v28 = vsub.f32 1.0, %v4318_v8 }
 0x5aa   :  { %4406 = vst.msk [vmem:[%s9465_s5 + $0x1d8] sm:$0xff] %vm2810_vm0, %v4286_v30  ;;  %v4340_v51 = vsel %vm4339_vm11, %v4717_v49, %v4336_v37  ;;  %v4320_v3 = vmul.f32 %v4719_v14, %v4319_v28 }
 0x5ab   :  { %v4345_v50 = vsel %vm4342_vm12, %v4344_v12, %v4340_v51 }
 0x5ac   :  { %v4346_v58 = vmul.f32 %v8400_v1, %v4345_v50  ;;  %v4321_v15 = vadd.f32 %v4719_v14, %v4320_v3 }
 0x5ae   :  { %4410 = vst.msk [vmem:[%s9465_s5 + $0x1f8] sm:$0xff] %vm2810_vm0, %v4346_v58  ;;  %v4325_v10 = vsel %vm4324_vm15, %v4719_v14, %v4321_v15 }
 0x5af   :  { %v4330_v13 = vsel %vm4327_vm1, %v4329_v45, %v4325_v10 }
 0x5b0   :  { %v4331_v29 = vmul.f32 %v8348_v38, %v4330_v13 }
 0x5b2   :  { %4409 = vst.msk [vmem:[%s9465_s5 + $0x1f0] sm:$0xff] %vm2810_vm0, %v4331_v29 }

</bundles_post_ra>
